<compile_context>
chip_gen: v7x
topology: tpu7x:2x2x1
jax: 0.10.0
libtpu: 0.0.40
codegen_flags: <defaults>
</compile_context>

<pallas_src>
import jax
import jax.numpy as jnp
from jax.experimental import pallas as pl
from jax.experimental.pallas import tpu as pltpu

# matcher hyper-parameters (module __init__ defaults)
COST_CLASS = 1.0
COST_BBOX = 1.0
COST_GIOU = 1.0
ALPHA = 0.25
GAMMA = 2.0   # kernel exploits gamma == 2 with explicit squares
EPS = 1e-8    # only used by the pure-JAX reference (mirrors the torch code)

_LANE = 128
_SUBLANE = 8


def _softplus(x):
    # log(1 + exp(x)), stable form (exp + log both on the EUP).
    return jnp.maximum(x, 0.0) + jnp.log(1.0 + jnp.exp(-jnp.abs(x)))


def _recip(x):
    # Approximate reciprocal on the EUP + one Newton step -> ~f32 accuracy
    # while keeping the big pairwise divides off the VALU.
    r = pl.reciprocal(x, approx=True)
    return r * (2.0 - x * r)


def _scale(x, w):
    # avoid emitting x * 1.0 for the default weights
    return x if w == 1.0 else w * x


def _matcher_cost_kernel(logits_ref, pfeat_ref, onehot_ref, tfeat_ref, c_ref,
                         fhi_ref, flo_ref):
    """Computes one [TILE_P, TILE_T] block of the matching cost matrix.

    logits_ref : [TILE_P, num_classes]  f32   prediction logits
    pfeat_ref  : [TILE_P, 8]            f32   pred cols: (cx,cy,w,h,x0,y0,x1,y1)
    onehot_ref : [num_classes, TILE_T]  bf16  one-hot of target class ids
    tfeat_ref  : [8, TILE_T]            f32   tgt rows (lane-major), same order
    c_ref      : [TILE_P, TILE_T]       f32   output cost block
    fhi_ref    : [TILE_P, num_classes]  bf16  scratch: focal cost (hi part)
    flo_ref    : [TILE_P, num_classes]  bf16  scratch: focal cost (lo part)
    """
    # ---- per-prediction focal class cost: compute once per prediction tile --
    @pl.when(pl.program_id(1) == 0)
    def _():
        logits = logits_ref[...]
        prob = jax.nn.sigmoid(logits)
        one_m_prob = 1.0 - prob
        nlog_p = _softplus(-logits)       # = -log(sigmoid(x))
        nlog_1mp = _softplus(logits)      # = -log(1 - sigmoid(x))
        neg_cost = (1.0 - ALPHA) * (prob * prob) * nlog_1mp
        pos_cost = ALPHA * (one_m_prob * one_m_prob) * nlog_p
        f = pos_cost - neg_cost           # [TILE_P, C] f32
        f_hi = f.astype(jnp.bfloat16)
        fhi_ref[...] = f_hi
        flo_ref[...] = (f - f_hi.astype(jnp.float32)).astype(jnp.bfloat16)

    # gather along class dim at tgt_ids == split-bf16 matmul with one-hot (MXU)
    onehot = onehot_ref[...]
    cost_class = (jnp.dot(fhi_ref[...], onehot, preferred_element_type=jnp.float32)
                  + jnp.dot(flo_ref[...], onehot, preferred_element_type=jnp.float32))

    # prediction-side columns (sublane-major [TILE_P, 1]) -- precomputed
    pf = pfeat_ref[...]
    pcx = pf[:, 0:1]
    pcy = pf[:, 1:2]
    pw = pf[:, 2:3]
    ph = pf[:, 3:4]
    px0 = pf[:, 4:5]
    py0 = pf[:, 5:6]
    px1 = pf[:, 6:7]
    py1 = pf[:, 7:8]
    area_p = pw * ph                                       # [TILE_P, 1]

    # target-side rows (lane-major [1, TILE_T]) -- precomputed in the wrapper
    tcx = tfeat_ref[0:1, :]
    tcy = tfeat_ref[1:2, :]
    tw = tfeat_ref[2:3, :]
    th = tfeat_ref[3:4, :]
    tx0 = tfeat_ref[4:5, :]
    ty0 = tfeat_ref[5:6, :]
    tx1 = tfeat_ref[6:7, :]
    ty1 = tfeat_ref[7:8, :]
    area_t = tw * th                                       # [1, TILE_T]

    # L1 cdist over the 4 cxcywh coords
    cost_bbox = (jnp.abs(pcx - tcx) + jnp.abs(pcy - tcy)
                 + jnp.abs(pw - tw) + jnp.abs(ph - th))    # [TILE_P, TILE_T]

    # GIoU (folded, clamp-trimmed)
    ix0 = jnp.maximum(px0, tx0)
    iy0 = jnp.maximum(py0, ty0)
    ix1 = jnp.minimum(px1, tx1)
    iy1 = jnp.minimum(py1, ty1)
    inter = jnp.maximum(ix1 - ix0, 0.0) * jnp.maximum(iy1 - iy0, 0.0)
    union = area_p + area_t - inter

    # enclosing box: (ex1-ex0), (ey1-ey0) >= 0 always holds for cxcywh boxes
    # with non-negative w,h (true for real + padded dummy boxes) -> no clamps.
    ex0 = jnp.minimum(px0, tx0)
    ey0 = jnp.minimum(py0, ty0)
    ex1 = jnp.maximum(px1, tx1)
    ey1 = jnp.maximum(py1, ty1)
    enc = (ex1 - ex0) * (ey1 - ey0)

    # -giou = (enc - union)/enc - inter/union, folded straight into the sum
    neg_giou = (enc - union) * _recip(enc) - inter * _recip(union)

    c_ref[...] = (_scale(cost_bbox, COST_BBOX)
                  + _scale(cost_class, COST_CLASS)
                  + _scale(neg_giou, COST_GIOU))


def _round_up(x, m):
    return -(-x // m) * m


def _num_tensorcores():
    """Best-effort detection of TensorCores per chip (2 on v7x, else 1)."""
    try:
        kind = (getattr(jax.devices()[0], "device_kind", "") or "").lower()
    except Exception:
        kind = ""
    return 2 if ("v7" in kind or "7x" in kind) else 1


def hungarian_matcher_cost(pred_logits, pred_boxes, tgt_ids, tgt_boxes, *,
                           tile_p=512, tile_t=512):
    """Returns the matching cost matrix C of shape [bs, num_queries, N_tgt].

    pred_logits : [bs, num_queries, num_classes] f32
    pred_boxes  : [bs, num_queries, 4]           f32  (cx, cy, w, h)
    tgt_ids     : [N_tgt]                        i32  (labels concat'd over batch)
    tgt_boxes   : [N_tgt, 4]                     f32  (boxes concat'd over batch)
    """
    bs, num_queries, num_classes = pred_logits.shape
    n_pred = bs * num_queries
    n_tgt = int(tgt_boxes.shape[0])

    # ---- tile selection ----------------------------------------------------
    # Only split the prediction axis on multi-TensorCore chips (v7x); on
    # single-TC v5e/v6e the split is pure grid-step / DMA overhead.
    n_tc = _num_tensorcores()
    tile_p = min(int(tile_p), _round_up(n_pred, _SUBLANE))
    if n_tc > 1:
        tile_p = min(tile_p, _round_up(-(-n_pred // n_tc), _SUBLANE))
    tile_p = _round_up(max(tile_p, _SUBLANE), _SUBLANE)
    n_pred_pad = _round_up(n_pred, tile_p)

    # lane-dense target axis: pad N_tgt to a multiple of 128 and tile it.
    n_tgt_pad = _round_up(max(n_tgt, 1), _LANE)
    tile_t = _round_up(min(int(tile_t), n_tgt_pad), _LANE)
    n_tgt_pad = _round_up(n_tgt_pad, tile_t)

    # ---- padded, layout-friendly operands ----------------------------------
    logits_flat = pred_logits.reshape(n_pred, num_classes).astype(jnp.float32)
    boxes_flat = pred_boxes.reshape(n_pred, 4).astype(jnp.float32)
    pad_rows = n_pred_pad - n_pred
    if pad_rows:
        logits_flat = jnp.pad(logits_flat, ((0, pad_rows), (0, 0)))
        dummy_p = jnp.tile(jnp.array([[0.5, 0.5, 1.0, 1.0]], jnp.float32),
                           (pad_rows, 1))
        boxes_flat = jnp.concatenate([boxes_flat, dummy_p], axis=0)

    tgt_boxes_f = tgt_boxes.astype(jnp.float32)
    pad_cols = n_tgt_pad - n_tgt
    if pad_cols:
        dummy_t = jnp.tile(jnp.array([[0.5, 0.5, 1.0, 1.0]], jnp.float32),
                           (pad_cols, 1))
        tgt_boxes_f = jnp.concatenate([tgt_boxes_f, dummy_t], axis=0)

    # one-hot of target ids in bf16; the class gather becomes a split-bf16
    # matmul inside the kernel.  Padded columns are all-zero.
    ids = tgt_ids.astype(jnp.int32)
    onehot = (jnp.arange(num_classes, dtype=jnp.int32)[:, None]
              == ids[None, :]).astype(jnp.bfloat16)
    if pad_cols:
        onehot = jnp.pad(onehot, ((0, 0), (0, pad_cols)))

    # prediction-side features hoisted out of the kernel:
    # columns = (cx, cy, w, h, x0, y0, x1, y1)
    pcx, pcy, pw, ph = (boxes_flat[:, k] for k in range(4))
    pfeat = jnp.stack([pcx, pcy, pw, ph,
                       pcx - 0.5 * pw, pcy - 0.5 * ph,
                       pcx + 0.5 * pw, pcy + 0.5 * ph], axis=1)  # [n_pred_pad, 8]

    # target-side features, lane-major: rows = (cx, cy, w, h, x0, y0, x1, y1)
    tcx, tcy, tw, th = (tgt_boxes_f[:, k] for k in range(4))
    tfeat = jnp.stack([tcx, tcy, tw, th,
                       tcx - 0.5 * tw, tcy - 0.5 * th,
                       tcx + 0.5 * tw, tcy + 0.5 * th], axis=0)  # [8, n_tgt_pad]

    grid = (n_pred_pad // tile_p, n_tgt_pad // tile_t)

    # real footprint: double-buffered input/output blocks + bf16 scratch + slack
    block_bytes = (4 * (tile_p * tile_t            # output block
                        + tile_p * num_classes     # logits block
                        + tile_p * 8               # pred features
                        + 8 * tile_t)              # target features
                   + 2 * num_classes * tile_t)     # bf16 one-hot block
    scratch_bytes = 2 * 2 * tile_p * num_classes   # two bf16 scratches
    vmem_limit = int(min(max(2 * block_bytes + scratch_bytes + (4 << 20),
                             8 << 20), 64 << 20))

    c_pad = pl.pallas_call(
        _matcher_cost_kernel,
        out_shape=jax.ShapeDtypeStruct((n_pred_pad, n_tgt_pad), jnp.float32),
        grid_spec=pltpu.PrefetchScalarGridSpec(
            num_scalar_prefetch=0,
            grid=grid,
            in_specs=[
                pl.BlockSpec((tile_p, num_classes), lambda i, j: (i, 0)),
                pl.BlockSpec((tile_p, 8), lambda i, j: (i, 0)),
                pl.BlockSpec((num_classes, tile_t), lambda i, j: (0, j)),
                pl.BlockSpec((8, tile_t), lambda i, j: (0, j)),
            ],
            out_specs=pl.BlockSpec((tile_p, tile_t), lambda i, j: (i, j)),
            scratch_shapes=[
                pltpu.VMEM((tile_p, num_classes), jnp.bfloat16),  # f_hi cache
                pltpu.VMEM((tile_p, num_classes), jnp.bfloat16),  # f_lo cache
            ],
        ),
        compiler_params=pltpu.CompilerParams(
            # target axis is 'arbitrary': the f_hi/f_lo scratch cache written at
            # j == 0 is reused by all later j-steps of the same prediction tile.
            dimension_semantics=("parallel", "arbitrary"),
            vmem_limit_bytes=vmem_limit),
    )(logits_flat, pfeat, onehot, tfeat)

    c = c_pad[:n_pred, :n_tgt]
    return c.reshape(bs, num_queries, n_tgt)


# ---------------------------------------------------------------------------
# pure-JAX reference (mirrors the torch code) for correctness checking
# ---------------------------------------------------------------------------
def _ref_cost(pred_logits, pred_boxes, tgt_ids, tgt_boxes):
    bs, nq, nc = pred_logits.shape
    out_prob = jax.nn.sigmoid(pred_logits.reshape(-1, nc))
    out_bbox = pred_boxes.reshape(-1, 4)
    neg = (1 - ALPHA) * out_prob ** GAMMA * (-jnp.log(1 - out_prob + EPS))
    pos = ALPHA * (1 - out_prob) ** GAMMA * (-jnp.log(out_prob + EPS))
    cost_class = pos[:, tgt_ids] - neg[:, tgt_ids]
    cost_bbox = jnp.sum(jnp.abs(out_bbox[:, None, :] - tgt_boxes[None, :, :]), -1)

    def to_xyxy(b):
        cx, cy, w, h = b[..., 0], b[..., 1], b[..., 2], b[..., 3]
        return jnp.stack([cx - 0.5 * w, cy - 0.5 * h, cx + 0.5 * w, cy + 0.5 * h], -1)

    b1, b2 = to_xyxy(out_bbox), to_xyxy(tgt_boxes)
    a1 = (b1[:, 2] - b1[:, 0]) * (b1[:, 3] - b1[:, 1])
    a2 = (b2[:, 2] - b2[:, 0]) * (b2[:, 3] - b2[:, 1])
    lt = jnp.maximum(b1[:, None, :2], b2[None, :, :2])
    rb = jnp.minimum(b1[:, None, 2:], b2[None, :, 2:])
    wh = jnp.clip(rb - lt, 0)
    inter = wh[..., 0] * wh[..., 1]
    union = a1[:, None] + a2[None, :] - inter
    iou = inter / union
    lt_e = jnp.minimum(b1[:, None, :2], b2[None, :, :2])
    rb_e = jnp.maximum(b1[:, None, 2:], b2[None, :, 2:])
    wh_e = jnp.clip(rb_e - lt_e, 0)
    enc = wh_e[..., 0] * wh_e[..., 1]
    giou = iou - (enc - union) / enc
    C = COST_BBOX * cost_bbox + COST_CLASS * cost_class + COST_GIOU * (-giou)
    return C.reshape(bs, nq, -1)


if __name__ == "__main__":
    key = jax.random.PRNGKey(0)
    bs, num_queries, num_classes = 2, 128, 32
    tgts_per_image = 4                      # each image has 4 ground-truth boxes
    n_tgt = bs * tgts_per_image

    k1, k2, k3, k4 = jax.random.split(key, 4)
    pred_logits = jax.random.normal(k1, (bs, num_queries, num_classes), jnp.float32)
    # predicted boxes in cxcywh with positive w,h
    p_cxcy = jax.random.uniform(k2, (bs, num_queries, 2), minval=0.2, maxval=0.8)
    p_wh = jax.random.uniform(k2, (bs, num_queries, 2), minval=0.05, maxval=0.3)
    pred_boxes = jnp.concatenate([p_cxcy, p_wh], axis=-1)
    # targets: labels + boxes, concatenated over batch (as in the torch code)
    tgt_ids = jax.random.randint(k3, (n_tgt,), 0, num_classes, dtype=jnp.int32)
    t_cxcy = jax.random.uniform(k4, (n_tgt, 2), minval=0.2, maxval=0.8)
    t_wh = jax.random.uniform(k4, (n_tgt, 2), minval=0.05, maxval=0.3)
    tgt_boxes = jnp.concatenate([t_cxcy, t_wh], axis=-1)

    C = hungarian_matcher_cost(pred_logits, pred_boxes, tgt_ids, tgt_boxes)
    C = jax.block_until_ready(C)

    C_ref = _ref_cost(pred_logits, pred_boxes, tgt_ids, tgt_boxes)
    assert C.shape == (bs, num_queries, n_tgt)
    assert jnp.allclose(C, C_ref, rtol=1e-4, atol=1e-4), "mismatch vs reference"

    print("KERNEL_OK")
</pallas_src>

<mosaic_0001>
module attributes {stable_mosaic.version = 11 : i64} {
  func.func @_matcher_cost_kernel(%arg0: i32, %arg1: i32, %arg2: memref<256x32xf32, #tpu.memory_space<vmem>>, %arg3: memref<256x8xf32, #tpu.memory_space<vmem>>, %arg4: memref<32x128xbf16, #tpu.memory_space<vmem>>, %arg5: memref<8x128xf32, #tpu.memory_space<vmem>>, %arg6: memref<256x128xf32, #tpu.memory_space<vmem>>, %arg7: memref<256x32xbf16, #tpu.memory_space<vmem>>, %arg8: memref<256x32xbf16, #tpu.memory_space<vmem>>) attributes {dimension_semantics = [#tpu.dimension_semantics<parallel>, #tpu.dimension_semantics<arbitrary>], iteration_bounds = array<i64: 1, 1>, scalar_prefetch = 0 : i64, scratch_operands = 2 : i64, tpu.core_type = #tpu.core_type<tc>, window_params = [{transform_indices = @transform_0, window_bounds = array<i64: 256, 32>}, {transform_indices = @transform_1, window_bounds = array<i64: 256, 8>}, {transform_indices = @transform_2, window_bounds = array<i64: 32, 128>}, {transform_indices = @transform_3, window_bounds = array<i64: 8, 128>}, {transform_indices = @transform_4, window_bounds = array<i64: 256, 128>}]} {
    %c0_i32 = arith.constant 0 : i32
    %0 = arith.cmpi eq, %arg1, %c0_i32 : i32
    %1 = arith.extui %0 : i1 to i32
    %c0_i32_0 = arith.constant 0 : i32
    %2 = arith.cmpi ne, %1, %c0_i32_0 : i32
    scf.if %2 {
      %c0_24 = arith.constant 0 : index
      %c0_25 = arith.constant 0 : index
      %102 = vector.load %arg2[%c0_24, %c0_25] : memref<256x32xf32, #tpu.memory_space<vmem>>, vector<256x32xf32>
      %103 = arith.negf %102 : vector<256x32xf32>
      %104 = math.exp %103 : vector<256x32xf32>
      %cst_26 = arith.constant 1.000000e+00 : f32
      %105 = vector.broadcast %cst_26 : f32 to vector<256x32xf32>
      %106 = arith.addf %105, %104 : vector<256x32xf32>
      %107 = arith.divf %105, %106 : vector<256x32xf32>
      %cst_27 = arith.constant 1.000000e+00 : f32
      %108 = vector.broadcast %cst_27 : f32 to vector<256x32xf32>
      %109 = arith.subf %108, %107 : vector<256x32xf32>
      %cst_28 = arith.constant 0.000000e+00 : f32
      %110 = vector.broadcast %cst_28 : f32 to vector<256x32xf32>
      %111 = arith.subf %110, %102 : vector<256x32xf32>
      %cst_29 = arith.constant 0.000000e+00 : f32
      %112 = vector.broadcast %cst_29 : f32 to vector<256x32xf32>
      %113 = arith.maximumf %111, %112 : vector<256x32xf32>
      %114 = math.absf %111 : vector<256x32xf32>
      %cst_30 = arith.constant 0.000000e+00 : f32
      %115 = vector.broadcast %cst_30 : f32 to vector<256x32xf32>
      %116 = arith.subf %115, %114 : vector<256x32xf32>
      %117 = math.exp %116 : vector<256x32xf32>
      %cst_31 = arith.constant 1.000000e+00 : f32
      %118 = vector.broadcast %cst_31 : f32 to vector<256x32xf32>
      %119 = arith.addf %118, %117 : vector<256x32xf32>
      %120 = math.log %119 : vector<256x32xf32>
      %121 = arith.addf %113, %120 : vector<256x32xf32>
      %cst_32 = arith.constant 0.000000e+00 : f32
      %122 = vector.broadcast %cst_32 : f32 to vector<256x32xf32>
      %123 = arith.maximumf %102, %122 : vector<256x32xf32>
      %124 = math.absf %102 : vector<256x32xf32>
      %cst_33 = arith.constant 0.000000e+00 : f32
      %125 = vector.broadcast %cst_33 : f32 to vector<256x32xf32>
      %126 = arith.subf %125, %124 : vector<256x32xf32>
      %127 = math.exp %126 : vector<256x32xf32>
      %cst_34 = arith.constant 1.000000e+00 : f32
      %128 = vector.broadcast %cst_34 : f32 to vector<256x32xf32>
      %129 = arith.addf %128, %127 : vector<256x32xf32>
      %130 = math.log %129 : vector<256x32xf32>
      %131 = arith.addf %123, %130 : vector<256x32xf32>
      %132 = arith.mulf %107, %107 : vector<256x32xf32>
      %cst_35 = arith.constant 7.500000e-01 : f32
      %133 = vector.broadcast %cst_35 : f32 to vector<256x32xf32>
      %134 = arith.mulf %133, %132 : vector<256x32xf32>
      %135 = arith.mulf %134, %131 : vector<256x32xf32>
      %136 = arith.mulf %109, %109 : vector<256x32xf32>
      %cst_36 = arith.constant 2.500000e-01 : f32
      %137 = vector.broadcast %cst_36 : f32 to vector<256x32xf32>
      %138 = arith.mulf %137, %136 : vector<256x32xf32>
      %139 = arith.mulf %138, %121 : vector<256x32xf32>
      %140 = arith.subf %139, %135 : vector<256x32xf32>
      %141 = arith.truncf %140 : vector<256x32xf32> to vector<256x32xbf16>
      %c0_37 = arith.constant 0 : index
      %c0_38 = arith.constant 0 : index
      %142 = vector.load %arg7[%c0_37, %c0_38] : memref<256x32xbf16, #tpu.memory_space<vmem>>, vector<256x32xbf16>
      tpu.vector_store %arg7[%c0_37, %c0_38], %141 {strides = array<i32>} : memref<256x32xbf16, #tpu.memory_space<vmem>>, vector<256x32xbf16>,
      %143 = arith.extf %141 : vector<256x32xbf16> to vector<256x32xf32>
      %144 = arith.subf %140, %143 : vector<256x32xf32>
      %145 = arith.truncf %144 : vector<256x32xf32> to vector<256x32xbf16>
      %c0_39 = arith.constant 0 : index
      %c0_40 = arith.constant 0 : index
      %146 = vector.load %arg8[%c0_39, %c0_40] : memref<256x32xbf16, #tpu.memory_space<vmem>>, vector<256x32xbf16>
      tpu.vector_store %arg8[%c0_39, %c0_40], %145 {strides = array<i32>} : memref<256x32xbf16, #tpu.memory_space<vmem>>, vector<256x32xbf16>,
    } else {
    }
    %c0 = arith.constant 0 : index
    %c0_1 = arith.constant 0 : index
    %3 = vector.load %arg4[%c0, %c0_1] : memref<32x128xbf16, #tpu.memory_space<vmem>>, vector<32x128xbf16>
    %c0_2 = arith.constant 0 : index
    %c0_3 = arith.constant 0 : index
    %4 = vector.load %arg7[%c0_2, %c0_3] : memref<256x32xbf16, #tpu.memory_space<vmem>>, vector<256x32xbf16>
    %cst = arith.constant dense<0.000000e+00> : vector<256x128xf32>
    %5 = tpu.matmul %4, %3, %cst {dimension_numbers = #tpu.dot_dimension_numbers<[1], [0], [0], [1], [0, 0, 1, 1], [], []>} : vector<256x32xbf16>, vector<32x128xbf16>, vector<256x128xf32> -> vector<256x128xf32>
    %c0_4 = arith.constant 0 : index
    %c0_5 = arith.constant 0 : index
    %6 = vector.load %arg8[%c0_4, %c0_5] : memref<256x32xbf16, #tpu.memory_space<vmem>>, vector<256x32xbf16>
    %cst_6 = arith.constant dense<0.000000e+00> : vector<256x128xf32>
    %7 = tpu.matmul %6, %3, %cst_6 {dimension_numbers = #tpu.dot_dimension_numbers<[1], [0], [0], [1], [0, 0, 1, 1], [], []>} : vector<256x32xbf16>, vector<32x128xbf16>, vector<256x128xf32> -> vector<256x128xf32>
    %8 = arith.addf %5, %7 : vector<256x128xf32>
    %c0_7 = arith.constant 0 : index
    %c0_8 = arith.constant 0 : index
    %9 = vector.load %arg3[%c0_7, %c0_8] : memref<256x8xf32, #tpu.memory_space<vmem>>, vector<256x8xf32>
    %10 = vector.extract_strided_slice %9 {offsets = [0, 0], sizes = [256, 1], strides = [1, 1]} : vector<256x8xf32> to vector<256x1xf32>
    %11 = vector.extract_strided_slice %9 {offsets = [0, 1], sizes = [256, 1], strides = [1, 1]} : vector<256x8xf32> to vector<256x1xf32>
    %12 = vector.extract_strided_slice %9 {offsets = [0, 2], sizes = [256, 1], strides = [1, 1]} : vector<256x8xf32> to vector<256x1xf32>
    %13 = vector.extract_strided_slice %9 {offsets = [0, 3], sizes = [256, 1], strides = [1, 1]} : vector<256x8xf32> to vector<256x1xf32>
    %14 = vector.extract_strided_slice %9 {offsets = [0, 4], sizes = [256, 1], strides = [1, 1]} : vector<256x8xf32> to vector<256x1xf32>
    %15 = vector.extract_strided_slice %9 {offsets = [0, 5], sizes = [256, 1], strides = [1, 1]} : vector<256x8xf32> to vector<256x1xf32>
    %16 = vector.extract_strided_slice %9 {offsets = [0, 6], sizes = [256, 1], strides = [1, 1]} : vector<256x8xf32> to vector<256x1xf32>
    %17 = vector.extract_strided_slice %9 {offsets = [0, 7], sizes = [256, 1], strides = [1, 1]} : vector<256x8xf32> to vector<256x1xf32>
    %18 = arith.mulf %12, %13 : vector<256x1xf32>
    %c0_9 = arith.constant 0 : index
    %c0_10 = arith.constant 0 : index
    %19 = vector.load %arg5[%c0_9, %c0_10] : memref<8x128xf32, #tpu.memory_space<vmem>>, vector<1x128xf32>
    %c1 = arith.constant 1 : index
    %c0_11 = arith.constant 0 : index
    %20 = vector.load %arg5[%c1, %c0_11] : memref<8x128xf32, #tpu.memory_space<vmem>>, vector<1x128xf32>
    %c2 = arith.constant 2 : index
    %c0_12 = arith.constant 0 : index
    %21 = vector.load %arg5[%c2, %c0_12] : memref<8x128xf32, #tpu.memory_space<vmem>>, vector<1x128xf32>
    %c3 = arith.constant 3 : index
    %c0_13 = arith.constant 0 : index
    %22 = vector.load %arg5[%c3, %c0_13] : memref<8x128xf32, #tpu.memory_space<vmem>>, vector<1x128xf32>
    %c4 = arith.constant 4 : index
    %c0_14 = arith.constant 0 : index
    %23 = vector.load %arg5[%c4, %c0_14] : memref<8x128xf32, #tpu.memory_space<vmem>>, vector<1x128xf32>
    %c5 = arith.constant 5 : index
    %c0_15 = arith.constant 0 : index
    %24 = vector.load %arg5[%c5, %c0_15] : memref<8x128xf32, #tpu.memory_space<vmem>>, vector<1x128xf32>
    %c6 = arith.constant 6 : index
    %c0_16 = arith.constant 0 : index
    %25 = vector.load %arg5[%c6, %c0_16] : memref<8x128xf32, #tpu.memory_space<vmem>>, vector<1x128xf32>
    %c7 = arith.constant 7 : index
    %c0_17 = arith.constant 0 : index
    %26 = vector.load %arg5[%c7, %c0_17] : memref<8x128xf32, #tpu.memory_space<vmem>>, vector<1x128xf32>
    %27 = arith.mulf %21, %22 : vector<1x128xf32>
    %28 = vector.broadcast %10 : vector<256x1xf32> to vector<256x128xf32>
    %29 = vector.broadcast %19 : vector<1x128xf32> to vector<256x128xf32>
    %30 = arith.subf %28, %29 : vector<256x128xf32>
    %31 = math.absf %30 : vector<256x128xf32>
    %32 = vector.broadcast %11 : vector<256x1xf32> to vector<256x128xf32>
    %33 = vector.broadcast %20 : vector<1x128xf32> to vector<256x128xf32>
    %34 = arith.subf %32, %33 : vector<256x128xf32>
    %35 = math.absf %34 : vector<256x128xf32>
    %36 = arith.addf %31, %35 : vector<256x128xf32>
    %37 = vector.broadcast %12 : vector<256x1xf32> to vector<256x128xf32>
    %38 = vector.broadcast %21 : vector<1x128xf32> to vector<256x128xf32>
    %39 = arith.subf %37, %38 : vector<256x128xf32>
    %40 = math.absf %39 : vector<256x128xf32>
    %41 = arith.addf %36, %40 : vector<256x128xf32>
    %42 = vector.broadcast %13 : vector<256x1xf32> to vector<256x128xf32>
    %43 = vector.broadcast %22 : vector<1x128xf32> to vector<256x128xf32>
    %44 = arith.subf %42, %43 : vector<256x128xf32>
    %45 = math.absf %44 : vector<256x128xf32>
    %46 = arith.addf %41, %45 : vector<256x128xf32>
    %47 = vector.broadcast %14 : vector<256x1xf32> to vector<256x128xf32>
    %48 = vector.broadcast %23 : vector<1x128xf32> to vector<256x128xf32>
    %49 = arith.maximumf %47, %48 : vector<256x128xf32>
    %50 = vector.broadcast %15 : vector<256x1xf32> to vector<256x128xf32>
    %51 = vector.broadcast %24 : vector<1x128xf32> to vector<256x128xf32>
    %52 = arith.maximumf %50, %51 : vector<256x128xf32>
    %53 = vector.broadcast %16 : vector<256x1xf32> to vector<256x128xf32>
    %54 = vector.broadcast %25 : vector<1x128xf32> to vector<256x128xf32>
    %55 = arith.minimumf %53, %54 : vector<256x128xf32>
    %56 = vector.broadcast %17 : vector<256x1xf32> to vector<256x128xf32>
    %57 = vector.broadcast %26 : vector<1x128xf32> to vector<256x128xf32>
    %58 = arith.minimumf %56, %57 : vector<256x128xf32>
    %59 = arith.subf %55, %49 : vector<256x128xf32>
    %cst_18 = arith.constant 0.000000e+00 : f32
    %60 = vector.broadcast %cst_18 : f32 to vector<256x128xf32>
    %61 = arith.maximumf %59, %60 : vector<256x128xf32>
    %62 = arith.subf %58, %52 : vector<256x128xf32>
    %cst_19 = arith.constant 0.000000e+00 : f32
    %63 = vector.broadcast %cst_19 : f32 to vector<256x128xf32>
    %64 = arith.maximumf %62, %63 : vector<256x128xf32>
    %65 = arith.mulf %61, %64 : vector<256x128xf32>
    %66 = vector.broadcast %18 : vector<256x1xf32> to vector<256x128xf32>
    %67 = vector.broadcast %27 : vector<1x128xf32> to vector<256x128xf32>
    %68 = arith.addf %66, %67 : vector<256x128xf32>
    %69 = arith.subf %68, %65 : vector<256x128xf32>
    %70 = vector.broadcast %14 : vector<256x1xf32> to vector<256x128xf32>
    %71 = vector.broadcast %23 : vector<1x128xf32> to vector<256x128xf32>
    %72 = arith.minimumf %70, %71 : vector<256x128xf32>
    %73 = vector.broadcast %15 : vector<256x1xf32> to vector<256x128xf32>
    %74 = vector.broadcast %24 : vector<1x128xf32> to vector<256x128xf32>
    %75 = arith.minimumf %73, %74 : vector<256x128xf32>
    %76 = vector.broadcast %16 : vector<256x1xf32> to vector<256x128xf32>
    %77 = vector.broadcast %25 : vector<1x128xf32> to vector<256x128xf32>
    %78 = arith.maximumf %76, %77 : vector<256x128xf32>
    %79 = vector.broadcast %17 : vector<256x1xf32> to vector<256x128xf32>
    %80 = vector.broadcast %26 : vector<1x128xf32> to vector<256x128xf32>
    %81 = arith.maximumf %79, %80 : vector<256x128xf32>
    %82 = arith.subf %78, %72 : vector<256x128xf32>
    %83 = arith.subf %81, %75 : vector<256x128xf32>
    %84 = arith.mulf %82, %83 : vector<256x128xf32>
    %85 = arith.subf %84, %69 : vector<256x128xf32>
    %86 = tpu.reciprocal %84 {approx = true} : vector<256x128xf32> -> vector<256x128xf32>
    %87 = arith.mulf %84, %86 : vector<256x128xf32>
    %cst_20 = arith.constant 2.000000e+00 : f32
    %88 = vector.broadcast %cst_20 : f32 to vector<256x128xf32>
    %89 = arith.subf %88, %87 : vector<256x128xf32>
    %90 = arith.mulf %86, %89 : vector<256x128xf32>
    %91 = arith.mulf %85, %90 : vector<256x128xf32>
    %92 = tpu.reciprocal %69 {approx = true} : vector<256x128xf32> -> vector<256x128xf32>
    %93 = arith.mulf %69, %92 : vector<256x128xf32>
    %cst_21 = arith.constant 2.000000e+00 : f32
    %94 = vector.broadcast %cst_21 : f32 to vector<256x128xf32>
    %95 = arith.subf %94, %93 : vector<256x128xf32>
    %96 = arith.mulf %92, %95 : vector<256x128xf32>
    %97 = arith.mulf %65, %96 : vector<256x128xf32>
    %98 = arith.subf %91, %97 : vector<256x128xf32>
    %99 = arith.addf %46, %8 : vector<256x128xf32>
    %100 = arith.addf %99, %98 : vector<256x128xf32>
    %c0_22 = arith.constant 0 : index
    %c0_23 = arith.constant 0 : index
    %101 = vector.load %arg6[%c0_22, %c0_23] : memref<256x128xf32, #tpu.memory_space<vmem>>, vector<256x128xf32>
    tpu.vector_store %arg6[%c0_22, %c0_23], %100 {strides = array<i32>} : memref<256x128xf32, #tpu.memory_space<vmem>>, vector<256x128xf32>,
    return
  }
  func.func @transform_0(%arg0: i32, %arg1: i32) -> (i32, i32) {
    %c0_i32 = arith.constant 0 : i32
    %c0_i32_0 = arith.constant 0 : i32
    return %arg0, %c0_i32 : i32, i32
  }
  func.func @transform_1(%arg0: i32, %arg1: i32) -> (i32, i32) {
    %c0_i32 = arith.constant 0 : i32
    %c0_i32_0 = arith.constant 0 : i32
    return %arg0, %c0_i32 : i32, i32
  }
  func.func @transform_2(%arg0: i32, %arg1: i32) -> (i32, i32) {
    %c0_i32 = arith.constant 0 : i32
    %c0_i32_0 = arith.constant 0 : i32
    return %c0_i32, %arg1 : i32, i32
  }
  func.func @transform_3(%arg0: i32, %arg1: i32) -> (i32, i32) {
    %c0_i32 = arith.constant 0 : i32
    %c0_i32_0 = arith.constant 0 : i32
    return %c0_i32, %arg1 : i32, i32
  }
  func.func @transform_4(%arg0: i32, %arg1: i32) -> (i32, i32) {
    %c0_i32 = arith.constant 0 : i32
    return %arg0, %arg1 : i32, i32
  }
}

</mosaic_0001>

<bundles_post_ra>
// kernel: tpu_custom_call.1
= control target key start
LH: loop header
LB: loop body
LE: loop exit
PB: predicated region body
PF: predicated region fallthrough
CT: control target
= control target key end

     0   :  { %s5434_s19 = smov 127   ;;  %v5435_v4 = vmov 0   ;;  %s10002_s0 = inlined_call_operand.vmem [shape: f32[256,32], index: 0, kind: input, shape index: {}]   ;;  %s10003_s1 = inlined_call_operand.vmem [shape: f32[256,8], index: 1, kind: input, shape index: {}]   ;;  %s10004_s2 = inlined_call_operand.vmem [shape: bf16[32,128], index: 2, kind: input, shape index: {}]   ;;  %s10005_s3 = inlined_call_operand.vmem [shape: f32[8,128], index: 3, kind: input, shape index: {}]   ;;  %s10006_s4 = inlined_call_operand.hbm [shape: f32[256,128], index: 4, kind: output, shape index: {}]  }
   0x1   :  { %v5474_v0 = vld [vmem:[%s10003_s1 + $0x10] sm:$0xff]  ;;  %v5479_v1 = vld [vmem:[%s10003_s1] sm:$0xff]  ;;  %v5488_v2 = vld [vmem:[%s10003_s1 + $0x18] sm:$0xff]  ;;  %4777 = vset.pattern.permute.xlu1 %v5435_v4  ;;  %4776 = vset.pattern.permute.xlu0 %v5435_v4 }
   0x2   :  { %1775 = vrot.lane.b32.xlu1 %v5474_v0, %s5434_s19  ;;  %1771 = vrot.lane.b32.xlu0 %v5479_v1, %s5434_s19  ;;  %v5493_v3 = vld [vmem:[%s10003_s1 + $0x8] sm:$0xff]  ;;  %v5507_v6 = vld [vmem:[%s10003_s1 + $0x20] sm:$0xff] }
   0x3   :  { %v5502_v5 = vld [vmem:[%s10003_s1 + $0x28] sm:$0xff]  ;;  %v5516_v7 = vld [vmem:[%s10003_s1 + $0x38] sm:$0xff]  ;;  %v5521_v8 = vld [vmem:[%s10003_s1 + $0x30] sm:$0xff] }
   0x4   :  { %v5526_v9 = vld [vmem:[%s10003_s1 + $0x48] sm:$0xff]  ;;  %v4793_v10 = vld [vmem:[%s10004_s2] sm:$0xff]   ;;  %v5562_v21 = vld [vmem:[%s10002_s0 + $0x10] sm:$0xff] }
   0x5   :  { %v4794_v11 = vld [vmem:[%s10004_s2 + $0x8] sm:$0xff]   ;;  %v5541_v12 = vld [vmem:[%s10003_s1 + $0x40] sm:$0xff]  ;;  %4660 = vmatprep.subr.bf16.mxu1 %v4793_v10  ;;  %4696 = vmatprep.subr.bf16.mxu0 %v4793_v10  ;;  %v5573_v23 = vld [vmem:[%s10002_s0 + $0x18] sm:$0xff]  ;;  %v4554_v30 = vmul.f32 -1.442695, %v5562_v21  ;;  %v281_v31 = vsub.f32 0.0, %v5562_v21 }
   0x6   :  { %1777 = vrot.lane.b32.xlu1 %v5488_v2, %s5434_s19  ;;  %1773 = vrot.lane.b32.xlu0 %v5493_v3, %s5434_s19  ;;  %v5546_v13 = vld [vmem:[%s10002_s0] sm:$0xff]  ;;  %v5551_v14 = vld [vmem:[%s10002_s0 + $0x8] sm:$0xff]  ;;  %v282_v36 = vsub.f32 0.0, %v5573_v23  ;;  %v4555_v41 = vmul.f32 -1.442695, %v5573_v23 }
   0x7   :  { %4661 = vmatpush3.bf16.msra.mxu1 %v4793_v10  ;;  %4697 = vmatpush3.bf16.msra.mxu0 %v4793_v10  ;;  %v4552_v15 = vmul.f32 -1.442695, %v5546_v13  ;;  %v4553_v16 = vmul.f32 -1.442695, %v5551_v14  ;;  %v279_v17 = vsub.f32 0.0, %v5546_v13  ;;  %v280_v18 = vsub.f32 0.0, %v5551_v14 }
   0x8   :  { %4662 = vmatprep.subr.bf16.mxu1 %v4794_v11  ;;  %4698 = vmatprep.subr.bf16.mxu0 %v4794_v11  ;;  %v631_v19 = vand.u32 2147483647, %v5546_v13  ;;  %v632_v20 = vand.u32 2147483647, %v5551_v14  ;;  %v5578_v24 = vld [vmem:[%s10003_s1 + $0x58] sm:$0xff]  ;;  %v5583_v25 = vld [vmem:[%s10003_s1 + $0x50] sm:$0xff] }
   0x9   :  { %4795 = vpow2.f32 %v4552_v15  ;;  %v343_v22 = vand.u32 2147483647, %v279_v17  ;;  %v344_v26 = vand.u32 2147483647, %v280_v18  ;;  %v5592_v32 = vld [vmem:[%s10003_s1 + $0x68] sm:$0xff]  ;;  %v5597_v33 = vld [vmem:[%s10003_s1 + $0x60] sm:$0xff] }
   0xa   :  { %1781 = vrot.lane.b32.xlu1 %v5502_v5, %s5434_s19  ;;  %1779 = vrot.lane.b32.xlu0 %v5507_v6, %s5434_s19  ;;  %4797 = vpow2.f32 %v4553_v16  ;;  %v663_v27 = vsub.f32 0.0, %v631_v19  ;;  %v664_v28 = vsub.f32 0.0, %v632_v20  ;;  %v345_v39 = vand.u32 2147483647, %v281_v31  ;;  %v5608_v44 = vld [vmem:[%s10002_s0 + $0x20] sm:$0xff]  ;;  %v5615_v48 = vld [vmem:[%s10002_s0 + $0x28] sm:$0xff] }
   0xb   :  { %4663 = vmatpush3.bf16.msra.mxu1 %v4794_v11  ;;  %4699 = vmatpush3.bf16.msra.mxu0 %v4794_v11  ;;  %v375_v29 = vsub.f32 0.0, %v343_v22  ;;  %v376_v34 = vsub.f32 0.0, %v344_v26  ;;  %4799 = vpow2.f32 %v4554_v30  ;;  %v346_v42 = vand.u32 2147483647, %v282_v36  ;;  %v5625_v51 = vld [vmem:[%s10003_s1 + $0x78] sm:$0xff]  ;;  %v5630_v52 = vld [vmem:[%s10003_s1 + $0x70] sm:$0xff] }
   0xc   :  { %v695_v35 = vmul.f32 1.442695, %v663_v27  ;;  %v697_v38 = vmul.f32 1.442695, %v664_v28  ;;  %v377_v43 = vsub.f32 0.0, %v345_v39  ;;  %v283_v58 = vsub.f32 0.0, %v5608_v44 }
   0xd   :  { %v407_v37 = vmul.f32 1.442695, %v375_v29  ;;  %v409_v40 = vmul.f32 1.442695, %v376_v34  ;;  %v378_v45 = vsub.f32 0.0, %v346_v42  ;;  %v284_v59 = vsub.f32 0.0, %v5615_v48 }
   0xe   :  { %1785 = vrot.lane.b32.xlu1 %v5516_v7, %s5434_s19  ;;  %1783 = vrot.lane.b32.xlu0 %v5521_v8, %s5434_s19  ;;  %4801 = vpow2.f32 %v695_v35  ;;  %v633_v46 = vand.u32 2147483647, %v5562_v21  ;;  %v634_v47 = vand.u32 2147483647, %v5573_v23  ;;  %v411_v49 = vmul.f32 1.442695, %v377_v43 }
   0xf   :  { %4803 = vpow2.f32 %v407_v37  ;;  %v4556_v50 = vmul.f32 -1.442695, %v5608_v44  ;;  %v413_v53 = vmul.f32 1.442695, %v378_v45  ;;  %v5642_v10 = vmax.f32 %v279_v17, 0.0 }
  0x10   :  { %4805 = vpow2.f32 %v409_v40  ;;  %v665_v54 = vsub.f32 0.0, %v633_v46  ;;  %v666_v55 = vsub.f32 0.0, %v634_v47 }
  0x11   :  { %4807 = vpow2.f32 %v697_v38 }
  0x12   :  { %1789 = vrot.lane.b32.xlu1 %v5526_v9, %s5434_s19  ;;  %1787 = vrot.lane.b32.xlu0 %v5541_v12, %s5434_s19  ;;  %4809 = vpow2.f32 %v4555_v41  ;;  %v699_v63 = vmul.f32 1.442695, %v665_v54  ;;  %v701_v11 = vmul.f32 1.442695, %v666_v55 }
  0x13   :  { %v4796_v56 = vpop.eup %4795  ;;  %4811 = vpow2.f32 %v411_v49 }
  0x14   :  { %v4798_v60 = vpop.eup %4797  ;;  %v151_v61 = vadd.f32 1.0, %v4796_v56  ;;  %4813 = vpow2.f32 %v413_v53 }
  0x15   :  { %v152_v4 = vadd.f32 1.0, %v4798_v60  ;;  %4815 = vpow2.f32 %v4556_v50 }
  0x16   :  { %1793 = vrot.lane.b32.xlu1 %v5578_v24, %s5434_s19  ;;  %1791 = vrot.lane.b32.xlu0 %v5583_v25, %s5434_s19 }
  0x1a   :  { %1797 = vrot.lane.b32.xlu1 %v5592_v32, %s5434_s19  ;;  %1795 = vrot.lane.b32.xlu0 %v5597_v33, %s5434_s19 }
  0x1e   :  { %1801 = vrot.lane.b32.xlu1 %v5625_v51, %s5434_s19  ;;  %1799 = vrot.lane.b32.xlu0 %v5630_v52, %s5434_s19 }
  0x1f   :  { %9 = vsyncpa [#allocation5], 0  ;;  %v5647_v15 = vld [vmem:[%s10003_s1 + $0x88] sm:$0xff]  ;;  %v5652_v16 = vld [vmem:[%s10003_s1 + $0x80] sm:$0xff]  ;;  %4817 = vrcp.f32 %v151_v61  ;;  %v5656_v19 = vmax.f32 %v280_v18, 0.0  ;;  %v5658_v17 = vmax.f32 %v281_v31, 0.0  ;;  %v4800_v22 = vpop.eup %4799 }
  0x20   :  { %v5660_v20 = vmax.f32 %v282_v36, 0.0  ;;  %4819 = vrcp.f32 %v152_v4  ;;  %v347_v27 = vand.u32 2147483647, %v283_v58  ;;  %v348_v28 = vand.u32 2147483647, %v284_v59  ;;  %v4802_v29 = vpop.eup %4801  ;;  %v5672_v18 = vld [vmem:[%s10003_s1 + $0x98] sm:$0xff] }
  0x21   :  { %v153_v30 = vadd.f32 1.0, %v4800_v22  ;;  %4821 = vpow2.f32 %v699_v63  ;;  %v635_v35 = vand.u32 2147483647, %v5608_v44  ;;  %v4804_v37 = vpop.eup %4803  ;;  %10181 = vst [vmem:[#allocation7_spill] sm:$0xff] %v5672_v18  ;;  %v759_v31 = vadd.f32 1.0, %v4802_v29  ;;  %v5679_v39 = vld [vmem:[%s10002_s0 + $0x30] sm:$0xff] }
  0x22   :  { %1805 = vrot.lane.b32.xlu1 %v5647_v15, %s5434_s19  ;;  %1803 = vrot.lane.b32.xlu0 %v5652_v16, %s5434_s19  ;;  %4823 = vpow2.f32 %v701_v11  ;;  %v4557_v36 = vmul.f32 -1.442695, %v5615_v48  ;;  %v4806_v40 = vpop.eup %4805  ;;  %v5684_v41 = vld [vmem:[%s10003_s1 + $0x90] sm:$0xff]  ;;  %v471_v42 = vadd.f32 1.0, %v4804_v37  ;;  %v5686_v43 = vmax.f32 %v283_v58, 0.0  ;;  %v5692_v46 = vld [vmem:[%s10002_s0 + $0x38] sm:$0xff] }
  0x23   :  { %4825 = vrcp.f32 %v153_v30  ;;  %v636_v45 = vand.u32 2147483647, %v5615_v48  ;;  %v4808_v47 = vpop.eup %4807  ;;  %v472_v49 = vadd.f32 1.0, %v4806_v40  ;;  %v379_v50 = vsub.f32 0.0, %v347_v27  ;;  %v5702_v61 = vld [vmem:[%s10003_s1 + $0xa8] sm:$0xff]  ;;  %v5710_v27 = vld [vmem:[%s10003_s1 + $0xa0] sm:$0xff] }
  0x24   :  { %4827 = vlog2.f32 %v759_v31  ;;  %v380_v53 = vsub.f32 0.0, %v348_v28  ;;  %v4810_v54 = vpop.eup %4809  ;;  %v760_v55 = vadd.f32 1.0, %v4808_v47  ;;  %v667_v56 = vsub.f32 0.0, %v635_v35  ;;  %10182 = vst [vmem:[#allocation8_spill] sm:$0xff] %v5702_v61  ;;  %10183 = vst [vmem:[#allocation9_spill] sm:$0xff] %v5710_v27 }
  0x25   :  { %4829 = vlog2.f32 %v471_v42  ;;  %v10008_v60 = vsub.f32 0.0, %v5679_v39  ;;  %v4812_v58 = vpop.eup %4811  ;;  %v154_v63 = vadd.f32 1.0, %v4810_v54  ;;  %v5704_v4 = vmax.f32 %v284_v59, 0.0 }
  0x26   :  { %1809 = vrot.lane.b32.xlu1 %v5672_v18, %s5434_s19  ;;  %1807 = vrot.lane.b32.xlu0 %v5684_v41, %s5434_s19  ;;  %4831 = vlog2.f32 %v472_v49  ;;  %v10007_v11 = vsub.f32 0.0, %v5692_v46  ;;  %v4814_v22 = vpop.eup %4813  ;;  %v473_v28 = vadd.f32 1.0, %v4812_v58  ;;  %v5713_v29 = vmul.f32 -1.442695, %v5679_v39 }
  0x27   :  { %4833 = vlog2.f32 %v760_v55  ;;  %v349_v30 = vand.u32 2147483647, %v10008_v60  ;;  %v4816_v35 = vpop.eup %4815  ;;  %v474_v59 = vadd.f32 1.0, %v4814_v22  ;;  %v415_v37 = vmul.f32 1.442695, %v379_v50 }
  0x28   :  { %4835 = vrcp.f32 %v154_v63  ;;  %v668_v31 = vsub.f32 0.0, %v636_v45  ;;  %v155_v42 = vadd.f32 1.0, %v4816_v35  ;;  %v417_v47 = vmul.f32 1.442695, %v380_v53  ;;  %v5728_v53 = vld [vmem:[%s10003_s1 + $0xb8] sm:$0xff] }
  0x29   :  { %v4818_v40 = vpop.eup %4817  ;;  %4837 = vlog2.f32 %v473_v28  ;;  %v703_v49 = vmul.f32 1.442695, %v667_v56  ;;  %v5723_v58 = vand.u32 2147483647, %v10007_v11  ;;  %v381_v50 = vsub.f32 0.0, %v349_v30  ;;  %10184 = vst [vmem:[#allocation10_spill] sm:$0xff] %v5728_v53 }
  0x2a   :  { %v4820_v54 = vpop.eup %4819  ;;  %1813 = vrot.lane.b32.xlu1 %v5702_v61, %s5434_s19  ;;  %1811 = vrot.lane.b32.xlu0 %v5710_v27, %s5434_s19  ;;  %v247_v55 = vsub.f32 1.0, %v4818_v40  ;;  %4839 = vlog2.f32 %v474_v59  ;;  %v5733_v56 = vld [vmem:[%s10003_s1 + $0xb0] sm:$0xff]  ;;  %v887_v22 = vmul.f32 %v4818_v40, %v4818_v40  ;;  %v705_v30 = vmul.f32 1.442695, %v668_v31 }
  0x2b   :  { %v4822_v45 = vpop.eup %4821  ;;  %10185 = vst [vmem:[#allocation11_spill] sm:$0xff] %v5733_v56  ;;  %v248_v63 = vsub.f32 1.0, %v4820_v54  ;;  %v888_v28 = vmul.f32 %v4820_v54, %v4820_v54  ;;  %4841 = vpow2.f32 %v4557_v36  ;;  %v5736_v26 = vmul.f32 -1.442695, %v5692_v46  ;;  %v5753_v54 = vld [vmem:[%s10003_s1 + $0xc0] sm:$0xff] }
  0x2c   :  { %v4824_v35 = vpop.eup %4823  ;;  %v983_v59 = vmul.f32 %v247_v55, %v247_v55  ;;  %v761_v11 = vadd.f32 1.0, %v4822_v45  ;;  %4843 = vrcp.f32 %v155_v42  ;;  %v382_v40 = vsub.f32 0.0, %v5723_v58  ;;  %10187 = vst [vmem:[#allocation13_spill] sm:$0xff] %v5753_v54 }
  0x2d   :  { %v4826_v60 = vpop.eup %4825  ;;  %v984_v38 = vmul.f32 %v248_v63, %v248_v63  ;;  %v762_v34 = vadd.f32 1.0, %v4824_v35  ;;  %4845 = vpow2.f32 %v415_v37  ;;  %v5743_v42 = vmul.f32 1.442695, %v381_v50  ;;  %v5748_v37 = vld [vmem:[%s10003_s1 + $0xc8] sm:$0xff] }
  0x2e   :  { %v4828_v62 = vpop.eup %4827  ;;  %1817 = vrot.lane.b32.xlu1 %v5728_v53, %s5434_s19  ;;  %1815 = vrot.lane.b32.xlu0 %v5733_v56, %s5434_s19  ;;  %v249_v36 = vsub.f32 1.0, %v4826_v60  ;;  %4847 = vlog2.f32 %v761_v11  ;;  %10186 = vst [vmem:[#allocation12_spill] sm:$0xff] %v5748_v37  ;;  %v919_v45 = vmul.f32 0.75, %v887_v22  ;;  %v920_v63 = vmul.f32 0.75, %v888_v28 }
  0x2f   :  { %v4830_v31 = vpop.eup %4829  ;;  %v792_v55 = vmul.f32 0.6931472, %v4828_v62  ;;  %4849 = vlog2.f32 %v762_v34  ;;  %v1015_v58 = vmul.f32 0.25, %v983_v59  ;;  %v10188_v56 = vmax.f32 %v5546_v13, 0.0  ;;  %v5765_v13 = vld [vmem:[%s10003_s1 + $0xd8] sm:$0xff] }
  0x30   :  { %v4832_v11 = vpop.eup %4831  ;;  %v504_v35 = vmul.f32 0.6931472, %v4830_v31  ;;  %v985_v50 = vmul.f32 %v249_v36, %v249_v36  ;;  %4851 = vpow2.f32 %v417_v47  ;;  %v1016_v27 = vmul.f32 0.25, %v984_v38  ;;  %v5770_v38 = vld [vmem:[%s10003_s1 + $0xd0] sm:$0xff] }
  0x31   :  { %v4834_v57 = vpop.eup %4833  ;;  %v506_v53 = vmul.f32 0.6931472, %v4832_v11  ;;  %v855_v61 = vadd.f32 %v792_v55, %v10188_v56  ;;  %vm1127_vm0 = vcmask 261120   ;;  %4853 = vpow2.f32 %v703_v49 }
  0x32   :  { %v4836_v18 = vpop.eup %4835  ;;  %1821 = vrot.lane.b32.xlu1 %v5748_v37, %s5434_s19  ;;  %1819 = vrot.lane.b32.xlu0 %v5753_v54, %s5434_s19  ;;  %v567_v62 = vadd.f32 %v504_v35, %v5642_v10  ;;  %v794_v34 = vmul.f32 0.6931472, %v4834_v57  ;;  %v889_v22 = vmul.f32 %v4826_v60, %v4826_v60  ;;  %4855 = vpow2.f32 %v705_v30 }
  0x33   :  { %v4838_v47 = vpop.eup %4837  ;;  %v568_v49 = vadd.f32 %v506_v53, %v5656_v19  ;;  %v951_v56 = vmul.f32 %v919_v45, %v855_v61  ;;  %v250_v28 = vsub.f32 1.0, %v4836_v18  ;;  %v1017_v59 = vmul.f32 0.25, %v985_v50 }
  0x34   :  { %v4840_v10 = vpop.eup %4839  ;;  %v10189_v57 = vmax.f32 %v5551_v14, 0.0  ;;  %v1047_v30 = vmul.f32 %v1015_v58, %v567_v62  ;;  %v508_v36 = vmul.f32 0.6931472, %v4838_v47  ;;  %4857 = vpow2.f32 %v5713_v29 }
  0x35   :  { %v4842_v31 = vpop.eup %4841  ;;  %v1048_v55 = vmul.f32 %v1016_v27, %v568_v49  ;;  %v510_v11 = vmul.f32 0.6931472, %v4840_v10  ;;  %v890_v35 = vmul.f32 %v4836_v18, %v4836_v18  ;;  %v986_v37 = vmul.f32 %v250_v28, %v250_v28  ;;  %v5786_v27 = vld [vmem:[%s10003_s1 + $0xe8] sm:$0xff]  ;;  %v5791_v18 = vld [vmem:[%s10003_s1 + $0xe0] sm:$0xff] }
  0x36   :  { %v856_v60 = vadd.f32 %v794_v34, %v10189_v57  ;;  %v5776_v54 = vpop.eup %4843  ;;  %1825 = vrot.lane.b32.xlu1 %v5765_v13, %s5434_s19  ;;  %1823 = vrot.lane.b32.xlu0 %v5770_v38, %s5434_s19  ;;  %v1079_v14 = vsub.f32 %v1047_v30, %v951_v56  ;;  %v569_v61 = vadd.f32 %v508_v36, %v5658_v17  ;;  %v156_v53 = vadd.f32 1.0, %v4842_v31  ;;  %v5803_v30 = vld [vmem:[%s10003_s1 + $0xf8] sm:$0xff] }
  0x37   :  { %v4846_v45 = vpop.eup %4845  ;;  %v570_v29 = vadd.f32 %v510_v11, %v5660_v20  ;;  %v921_v58 = vmul.f32 0.75, %v889_v22  ;;  %v1018_v50 = vmul.f32 0.25, %v986_v37  ;;  %v637_v47 = vand.u32 2147483647, %v5679_v39 }
  0x38   :  { %v952_v19 = vmul.f32 %v920_v63, %v856_v60  ;;  %v421_v63 = vmul.f32 1.442695, %v382_v40  ;;  %v4848_v62 = vpop.eup %4847  ;;  %4859 = vrcp.f32 %v156_v53  ;;  %v475_v17 = vadd.f32 1.0, %v4846_v45 }
  0x39   :  { %v4850_v49 = vpop.eup %4849  ;;  %v796_v56 = vmul.f32 0.6931472, %v4848_v62  ;;  %v922_v28 = vmul.f32 0.75, %v890_v35  ;;  %v1049_v10 = vmul.f32 %v1017_v59, %v569_v61  ;;  %v251_v57 = vsub.f32 1.0, %v5776_v54  ;;  %v5808_v59 = vld [vmem:[%s10003_s1 + $0xf0] sm:$0xff] }
  0x3a   :  { %v1080_v34 = vsub.f32 %v1048_v55, %v952_v19  ;;  %v4852_v60 = vpop.eup %4851  ;;  %1829 = vrot.lane.b32.xlu1 %v5786_v27, %s5434_s19  ;;  %1827 = vrot.lane.b32.xlu0 %v5791_v18, %s5434_s19  ;;  %v798_v40 = vmul.f32 0.6931472, %v4850_v49  ;;  %v1050_v37 = vmul.f32 %v1018_v50, %v570_v29  ;;  %4861 = vlog2.f32 %v475_v17 }
  0x3b   :  { %v4854_v22 = vpop.eup %4853  ;;  %v10190_v36 = vmax.f32 %v5562_v21, 0.0  ;;  %v476_v55 = vadd.f32 1.0, %v4852_v60  ;;  %4863 = vpow2.f32 %v5736_v26  ;;  %v638_v11 = vand.u32 2147483647, %v5692_v46 }
  0x3c   :  { %v1111_v20 = vpack.c.bf16 %v1080_v34, %v1079_v14  ;;  %v4856_v35 = vpop.eup %4855  ;;  %v10191_v53 = vmax.f32 %v5573_v23, 0.0  ;;  %v763_v29 = vadd.f32 1.0, %v4854_v22  ;;  %v669_v17 = vsub.f32 0.0, %v637_v47  ;;  %v5825_v22 = vld [vmem:[%s10002_s0 + $0x40] sm:$0xff] }
  0x3d   :  { %v857_v31 = vadd.f32 %v796_v56, %v10190_v36  ;;  %4865 = vlog2.f32 %v476_v55  ;;  %v764_v62 = vadd.f32 1.0, %v4856_v35  ;;  %v604_v36 = vmax.f32 %v5615_v48, 0.0 }
  0x3e   :  { %v1144_v19 = vunpack.c.l.bf16 %v1111_v20  ;;  %v1145_v61 = vunpack.c.h.bf16 %v1111_v20  ;;  %1128 = vst.msk [vmem:[#allocation2] sm:$0xff] %vm1127_vm0, %v1111_v20  ;;  %v858_v45 = vadd.f32 %v798_v40, %v10191_v53  ;;  %v4858_v21 = vpop.eup %4857  ;;  %1833 = vrot.lane.b32.xlu1 %v5803_v30, %s5434_s19  ;;  %1831 = vrot.lane.b32.xlu0 %v5808_v59, %s5434_s19  ;;  %4867 = vlog2.f32 %v763_v29 }
  0x3f   :  { %v953_v50 = vmul.f32 %v921_v58, %v857_v31  ;;  %4869 = vlog2.f32 %v764_v62  ;;  %v157_v23 = vadd.f32 1.0, %v4858_v21  ;;  %v670_v20 = vsub.f32 0.0, %v638_v11 }
  0x40   :  { %v1176_v26 = vsub.f32 %v1079_v14, %v1144_v19  ;;  %v1177_v49 = vsub.f32 %v1080_v34, %v1145_v61  ;;  %v954_v56 = vmul.f32 %v922_v28, %v858_v45  ;;  %4871 = vpow2.f32 %v5743_v42  ;;  %v5831_v34 = vld [vmem:[%s10002_s0 + $0x48] sm:$0xff] }
  0x41   :  { %v1081_v60 = vsub.f32 %v1049_v10, %v953_v50  ;;  %v707_v47 = vmul.f32 1.442695, %v669_v17  ;;  %4873 = vrcp.f32 %v157_v23  ;;  %v709_v14 = vmul.f32 1.442695, %v670_v20 }
  0x42   :  { %v1208_v40 = vpack.c.bf16 %v1177_v49, %v1176_v26  ;;  %v1082_v58 = vsub.f32 %v1050_v37, %v954_v56  ;;  %v4560_v28 = vmul.f32 -1.442695, %v5825_v22  ;;  %v4860_v10 = vpop.eup %4859  ;;  %1913 = vperm.xlu1 %4777, %v5493_v3   ;;  %1909 = vperm.xlu0 %4776, %v5479_v1   ;;  %v891_v37 = vmul.f32 %v5776_v54, %v5776_v54 }
  0x43   :  { %4875 = vpow2.f32 %v421_v63  ;;  %v4561_v31 = vmul.f32 -1.442695, %v5831_v34  ;;  %v252_v11 = vsub.f32 1.0, %v4860_v10  ;;  %v987_v35 = vmul.f32 %v251_v57, %v251_v57 }
  0x44   :  { %1224 = vst.msk [vmem:[#allocation3] sm:$0xff] %vm1127_vm0, %v1208_v40  ;;  %v1112_v42 = vpack.c.bf16 %v1082_v58, %v1081_v60  ;;  %4877 = vpow2.f32 %v707_v47  ;;  %v287_v19 = vsub.f32 0.0, %v5825_v22  ;;  %v4862_v61 = vpop.eup %4861  ;;  %v288_v53 = vsub.f32 0.0, %v5831_v34 }
  0x45   :  { %v1244_v55 = vld [vmem:[#allocation2] sm:$0xff]  ;;  %4879 = vpow2.f32 %v709_v14  ;;  %v4864_v54 = vpop.eup %4863  ;;  %v512_v63 = vmul.f32 0.6931472, %v4862_v61  ;;  %v892_v45 = vmul.f32 %v4860_v10, %v4860_v10  ;;  %v988_v29 = vmul.f32 %v252_v11, %v252_v11 }
  0x46   :  { %4700 = vmatprep.mubr.msk.bf16.mxu0 %vm1127_vm0, %v1244_v55  ;;  %v1146_v3 = vunpack.c.l.bf16 %v1112_v42  ;;  %v1147_v1 = vunpack.c.h.bf16 %v1112_v42  ;;  %1129 = vst.msk [vmem:[#allocation2 + $0x8] sm:$0xff] %vm1127_vm0, %v1112_v42  ;;  %4881 = vpow2.f32 %v4560_v28  ;;  %1917 = vperm.xlu1 %4777, %v5474_v0   ;;  %v158_v62 = vadd.f32 1.0, %v4864_v54 }
  0x47   :  { %1921 = vperm.xlu0 %4776, %v5488_v2   ;;  %4883 = vpow2.f32 %v4561_v31  ;;  %v4866_v17 = vpop.eup %4865  ;;  %v571_v21 = vadd.f32 %v512_v63, %v5686_v43  ;;  %v1019_v26 = vmul.f32 0.25, %v987_v35  ;;  %v1020_v49 = vmul.f32 0.25, %v988_v29 }
  0x48   :  { %v1178_v57 = vsub.f32 %v1081_v60, %v1146_v3  ;;  %v1179_v50 = vsub.f32 %v1082_v58, %v1147_v1  ;;  %v351_v56 = vand.u32 2147483647, %v287_v19  ;;  %v4868_v23 = vpop.eup %4867  ;;  %v514_v40 = vmul.f32 0.6931472, %v4866_v17 }
  0x49   :  { %4885 = vrcp.f32 %v158_v62  ;;  %v352_v0 = vand.u32 2147483647, %v288_v53  ;;  %v4870_v2 = vpop.eup %4869  ;;  %v800_v58 = vmul.f32 0.6931472, %v4868_v23  ;;  %v923_v47 = vmul.f32 0.75, %v891_v37 }
  0x4a   :  { %v1209_v20 = vpack.c.bf16 %v1179_v50, %v1178_v57  ;;  %v4872_v14 = vpop.eup %4871  ;;  %1925 = vperm.xlu1 %4777, %v5507_v6   ;;  %v572_v43 = vadd.f32 %v514_v40, %v5704_v4  ;;  %v802_v28 = vmul.f32 0.6931472, %v4870_v2  ;;  %v924_v10 = vmul.f32 0.75, %v892_v45  ;;  %v5872_v2 = vld [vmem:[%s10002_s0 + $0x50] sm:$0xff] }
  0x4b   :  { %v1260_v60 = vld [vmem:[#allocation3] sm:$0xff]  ;;  %1929 = vperm.xlu0 %4776, %v5502_v5   ;;  %v383_v42 = vsub.f32 0.0, %v351_v56  ;;  %v5855_v31 = vpop.eup %4873  ;;  %v10192_v11 = vmax.f32 %v5608_v44, 0.0  ;;  %v1051_v35 = vmul.f32 %v1019_v26, %v571_v21  ;;  %v477_v61 = vadd.f32 1.0, %v4872_v14 }
  0x4c   :  { %1225 = vst.msk [vmem:[#allocation3 + $0x8] sm:$0xff] %vm1127_vm0, %v1209_v20  ;;  %4664 = vmatprep.mubr.msk.bf16.mxu1 %vm1127_vm0, %v1260_v60  ;;  %v639_v6 = vand.u32 2147483647, %v5825_v22  ;;  %v860_v4 = vadd.f32 %v802_v28, %v604_v36  ;;  %v1052_v3 = vmul.f32 %v1020_v49, %v572_v43  ;;  %v384_v1 = vsub.f32 0.0, %v352_v0  ;;  %v5881_v28 = vld [vmem:[%s10002_s0 + $0x58] sm:$0xff] }
  0x4d   :  { %v1245_v55 = vld [vmem:[#allocation2 + $0x8] sm:$0xff]  ;;  %v859_v37 = vadd.f32 %v800_v58, %v10192_v11  ;;  %v4876_v5 = vpop.eup %4875  ;;  %4887 = vlog2.f32 %v477_v61  ;;  %v640_v29 = vand.u32 2147483647, %v5831_v34  ;;  %v605_v50 = vmax.f32 %v5679_v39, 0.0 }
  0x4e   :  { %4701 = vmatmul.mubr.msk.bf16.vlgmr.msra.gmra.mrb[0].mxu0 %vm1127_vm0, %v1245_v55  ;;  %v4878_v54 = vpop.eup %4877  ;;  %v478_v45 = vadd.f32 1.0, %v4876_v5  ;;  %1933 = vperm.xlu1 %4777, %v5521_v8   ;;  %v956_v57 = vmul.f32 %v924_v10, %v860_v4  ;;  %v423_v17 = vmul.f32 1.442695, %v383_v42  ;;  %v671_v26 = vsub.f32 0.0, %v639_v6 }
  0x4f   :  { %v955_v63 = vmul.f32 %v923_v47, %v859_v37  ;;  %v4880_v44 = vpop.eup %4879  ;;  %1937 = vperm.xlu0 %4776, %v5516_v7   ;;  %v765_v62 = vadd.f32 1.0, %v4878_v54  ;;  %v253_v23 = vsub.f32 1.0, %v5855_v31  ;;  %v425_v7 = vmul.f32 1.442695, %v384_v1 }
  0x50   :  { %v4882_v48 = vpop.eup %4881  ;;  %4889 = vlog2.f32 %v478_v45  ;;  %v766_v21 = vadd.f32 1.0, %v4880_v44  ;;  %v1084_v56 = vsub.f32 %v1052_v3, %v956_v57  ;;  %v672_v0 = vsub.f32 0.0, %v640_v29 }
  0x51   :  { %v1083_v36 = vsub.f32 %v1051_v35, %v955_v63  ;;  %v4884_v49 = vpop.eup %4883  ;;  %4891 = vlog2.f32 %v765_v62  ;;  %v159_v20 = vadd.f32 1.0, %v4882_v48  ;;  %v10193_v47 = vsub.f32 0.0, %v5679_v39 }
  0x52   :  { %4893 = vlog2.f32 %v766_v21  ;;  %v160_v8 = vadd.f32 1.0, %v4884_v49  ;;  %1941 = vperm.xlu1 %4777, %v5541_v12   ;;  %v711_v43 = vmul.f32 1.442695, %v671_v26  ;;  %v713_v42 = vmul.f32 1.442695, %v672_v0 }
  0x53   :  { %v1261_v40 = vld [vmem:[#allocation3 + $0x8] sm:$0xff]  ;;  %v4886_v60 = vpop.eup %4885  ;;  %1945 = vperm.xlu0 %4776, %v5526_v9   ;;  %v1113_v58 = vpack.c.bf16 %v1084_v56, %v1083_v36  ;;  %v317_v14 = vmax.f32 %v10193_v47, 0.0  ;;  %4895 = vrcp.f32 %v159_v20  ;;  %v4562_v12 = vmul.f32 -1.442695, %v5872_v2  ;;  %v5913_v47 = vld [vmem:[%s10002_s0 + $0x60] sm:$0xff] }
  0x54   :  { %4665 = vmatmul.mubr.msk.bf16.vlgmr.msra.gmra.mrb[0].mxu1 %vm1127_vm0, %v1261_v40  ;;  %v254_v10 = vsub.f32 1.0, %v4886_v60  ;;  %4897 = vrcp.f32 %v160_v8  ;;  %v289_v11 = vsub.f32 0.0, %v5872_v2  ;;  %v989_v37 = vmul.f32 %v253_v23, %v253_v23 }
  0x55   :  { %v1148_v55 = vunpack.c.l.bf16 %v1113_v58  ;;  %v1149_v9 = vunpack.c.h.bf16 %v1113_v58  ;;  %1130 = vst.msk [vmem:[#allocation2 + $0x10] sm:$0xff] %vm1127_vm0, %v1113_v58  ;;  %4899 = vpow2.f32 %v423_v17  ;;  %v4563_v35 = vmul.f32 -1.442695, %v5881_v28 }
  0x56   :  { %4901 = vpow2.f32 %v425_v7  ;;  %v290_v61 = vsub.f32 0.0, %v5881_v28  ;;  %1949 = vperm.xlu1 %4777, %v5583_v25   ;;  %v990_v4 = vmul.f32 %v254_v10, %v254_v10  ;;  %v10194_v1 = vsub.f32 0.0, %v5692_v46 }
  0x57   :  { %1953 = vperm.xlu0 %4776, %v5578_v24   ;;  %v1180_v6 = vsub.f32 %v1083_v36, %v1148_v55  ;;  %v1181_v5 = vsub.f32 %v1084_v56, %v1149_v9  ;;  %4903 = vpow2.f32 %v711_v43  ;;  %v4888_v3 = vpop.eup %4887  ;;  %v893_v63 = vmul.f32 %v5855_v31, %v5855_v31 }
  0x58   :  { %v318_v54 = vmax.f32 %v10194_v1, 0.0  ;;  %4905 = vpow2.f32 %v713_v42  ;;  %v353_v45 = vand.u32 2147483647, %v289_v11  ;;  %v516_v44 = vmul.f32 0.6931472, %v4888_v3 }
  0x59   :  { %v1210_v29 = vpack.c.bf16 %v1181_v5, %v1180_v6  ;;  %v894_v25 = vmul.f32 %v4886_v60, %v4886_v60  ;;  %4907 = vpow2.f32 %v4562_v12  ;;  %v1021_v57 = vmul.f32 0.25, %v989_v37 }
  0x5a   :  { %v4890_v24 = vpop.eup %4889  ;;  %4909 = vpow2.f32 %v4563_v35  ;;  %v354_v62 = vand.u32 2147483647, %v290_v61  ;;  %v385_v17 = vsub.f32 0.0, %v353_v45  ;;  %1957 = vperm.xlu1 %4777, %v5597_v33   ;;  %v573_v36 = vadd.f32 %v516_v44, %v317_v14 }
  0x5b   :  { %v4892_v48 = vpop.eup %4891  ;;  %1961 = vperm.xlu0 %4776, %v5592_v32   ;;  %1226 = vst.msk [vmem:[#allocation3 + $0x10] sm:$0xff] %vm1127_vm0, %v1210_v29  ;;  %v518_v31 = vmul.f32 0.6931472, %v4890_v24  ;;  %v606_v21 = vmax.f32 %v5692_v46, 0.0  ;;  %v1022_v26 = vmul.f32 0.25, %v990_v4  ;;  %v925_v20 = vmul.f32 0.75, %v893_v63 }
  0x5c   :  { %v4894_v49 = vpop.eup %4893  ;;  %v1246_v56 = vld [vmem:[#allocation2 + $0x10] sm:$0xff]  ;;  %v804_v23 = vmul.f32 0.6931472, %v4892_v48  ;;  %v427_v40 = vmul.f32 1.442695, %v385_v17  ;;  %v926_v0 = vmul.f32 0.75, %v894_v25  ;;  %v1053_v58 = vmul.f32 %v1021_v57, %v573_v36 }
  0x5d   :  { %v5903_v8 = vpop.eup %4895  ;;  %4704 = vmatprep.mubr.msk.bf16.mxu0 %vm1127_vm0, %v1246_v56  ;;  %v574_v7 = vadd.f32 %v518_v31, %v318_v54  ;;  %v806_v33 = vmul.f32 0.6931472, %v4894_v49  ;;  %v386_v46 = vsub.f32 0.0, %v354_v62  ;;  %v607_v42 = vmax.f32 %v5825_v22, 0.0  ;;  %v5933_v62 = vld [vmem:[%s10002_s0 + $0x68] sm:$0xff] }
  0x5e   :  { %v5906_v32 = vpop.eup %4897  ;;  %v861_v60 = vadd.f32 %v804_v23, %v605_v50  ;;  %4911 = vpow2.f32 %v427_v40  ;;  %1965 = vperm.xlu1 %4777, %v5630_v52   ;;  %v5920_v50 = vmax.f32 %v287_v19, 0.0  ;;  %v641_v9 = vand.u32 2147483647, %v5872_v2 }
  0x5f   :  { %v4900_v14 = vpop.eup %4899  ;;  %1969 = vperm.xlu0 %4776, %v5625_v51   ;;  %v862_v43 = vadd.f32 %v806_v33, %v606_v21  ;;  %v1054_v10 = vmul.f32 %v1022_v26, %v574_v7  ;;  %v255_v6 = vsub.f32 1.0, %v5903_v8  ;;  %v291_v51 = vsub.f32 0.0, %v5913_v47  ;;  %v10195_v21 = vld [vmem:[#allocation7_spill] sm:$0xff] }
  0x60   :  { %v4902_v12 = vpop.eup %4901  ;;  %v957_v39 = vmul.f32 %v925_v20, %v861_v60  ;;  %v479_v55 = vadd.f32 1.0, %v4900_v14  ;;  %v429_v54 = vmul.f32 1.442695, %v386_v46  ;;  %v256_v45 = vsub.f32 1.0, %v5906_v32  ;;  %v10196_v14 = vld [vmem:[#allocation9_spill] sm:$0xff] }
  0x61   :  { %v4904_v37 = vpop.eup %4903  ;;  %v958_v35 = vmul.f32 %v926_v0, %v862_v43  ;;  %v480_v52 = vadd.f32 1.0, %v4902_v12  ;;  %v642_v24 = vand.u32 2147483647, %v5881_v28  ;;  %v673_v57 = vsub.f32 0.0, %v641_v9  ;;  %v10197_v43 = vld [vmem:[#allocation8_spill] sm:$0xff] }
  0x62   :  { %v4906_v5 = vpop.eup %4905  ;;  %v1262_v4 = vld [vmem:[#allocation3 + $0x10] sm:$0xff]  ;;  %v1085_v3 = vsub.f32 %v1053_v58, %v957_v39  ;;  %4913 = vlog2.f32 %v479_v55  ;;  %v767_v1 = vadd.f32 1.0, %v4904_v37  ;;  %1973 = vperm.xlu1 %4777, %v5652_v16   ;;  %v4564_v36 = vmul.f32 -1.442695, %v5913_v47 }
  0x63   :  { %v4908_v63 = vpop.eup %4907  ;;  %1977 = vperm.xlu0 %4776, %v5647_v15   ;;  %v1086_v19 = vsub.f32 %v1054_v10, %v958_v35  ;;  %4915 = vlog2.f32 %v480_v52  ;;  %v768_v29 = vadd.f32 1.0, %v4906_v5  ;;  %4668 = vmatprep.mubr.msk.bf16.mxu1 %vm1127_vm0, %v1262_v4  ;;  %v991_v15 = vmul.f32 %v255_v6, %v255_v6 }
  0x64   :  { %v4910_v44 = vpop.eup %4909  ;;  %4917 = vlog2.f32 %v767_v1  ;;  %v161_v25 = vadd.f32 1.0, %v4908_v63  ;;  %v674_v48 = vsub.f32 0.0, %v642_v24  ;;  %v715_v31 = vmul.f32 1.442695, %v673_v57 }
  0x65   :  { %v1114_v16 = vpack.c.bf16 %v1086_v19, %v1085_v3  ;;  %4919 = vlog2.f32 %v768_v29  ;;  %v162_v17 = vadd.f32 1.0, %v4910_v44  ;;  %v292_v56 = vsub.f32 0.0, %v5933_v62 }
  0x66   :  { %4921 = vrcp.f32 %v161_v25  ;;  %1981 = vperm.xlu1 %4777, %v5684_v41   ;;  %v717_v20 = vmul.f32 1.442695, %v674_v48  ;;  %v4565_v40 = vmul.f32 -1.442695, %v5933_v62  ;;  %v355_v7 = vand.u32 2147483647, %v291_v51 }
  0x67   :  { %1985 = vperm.xlu0 %4776, %v10195_v21   ;;  %v1150_v26 = vunpack.c.l.bf16 %v1114_v16  ;;  %v1151_v49 = vunpack.c.h.bf16 %v1114_v16  ;;  %1131 = vst.msk [vmem:[#allocation2 + $0x18] sm:$0xff] %vm1127_vm0, %v1114_v16  ;;  %4923 = vrcp.f32 %v162_v17  ;;  %v992_v60 = vmul.f32 %v256_v45, %v256_v45 }
  0x68   :  { %v4912_v23 = vpop.eup %4911  ;;  %4925 = vpow2.f32 %v429_v54  ;;  %v356_v58 = vand.u32 2147483647, %v292_v56  ;;  %v387_v46 = vsub.f32 0.0, %v355_v7  ;;  %v320_v12 = vmax.f32 %v288_v53, 0.0 }
  0x69   :  { %v1182_v33 = vsub.f32 %v1085_v3, %v1150_v26  ;;  %v1183_v0 = vsub.f32 %v1086_v19, %v1151_v49  ;;  %v481_v41 = vadd.f32 1.0, %v4912_v23  ;;  %4927 = vpow2.f32 %v715_v31  ;;  %v10198_v19 = vld [vmem:[#allocation11_spill] sm:$0xff]  ;;  %v10200_v23 = vld [vmem:[#allocation13_spill] sm:$0xff] }
  0x6a   :  { %4929 = vpow2.f32 %v717_v20  ;;  %1989 = vperm.xlu1 %4777, %v10196_v14   ;;  %v895_v39 = vmul.f32 %v5903_v8, %v5903_v8  ;;  %v896_v9 = vmul.f32 %v5906_v32, %v5906_v32  ;;  %v388_v37 = vsub.f32 0.0, %v356_v58  ;;  %v10199_v32 = vld [vmem:[#allocation10_spill] sm:$0xff]  ;;  %v10201_v20 = vld [vmem:[#allocation12_spill] sm:$0xff] }
  0x6b   :  { %1993 = vperm.xlu0 %4776, %v10197_v43   ;;  %v1211_v10 = vpack.c.bf16 %v1183_v0, %v1182_v33  ;;  %4931 = vlog2.f32 %v481_v41  ;;  %v431_v35 = vmul.f32 1.442695, %v387_v46  ;;  %v608_v5 = vmax.f32 %v5831_v34, 0.0  ;;  %v5961_v34 = vld [vmem:[%s10002_s0 + $0x70] sm:$0xff] }
  0x6c   :  { %v4914_v55 = vpop.eup %4913  ;;  %4933 = vpow2.f32 %v4564_v36  ;;  %v1023_v4 = vmul.f32 0.25, %v991_v15  ;;  %v1024_v8 = vmul.f32 0.25, %v992_v60  ;;  %v433_v54 = vmul.f32 1.442695, %v388_v37 }
  0x6d   :  { %v4916_v6 = vpop.eup %4915  ;;  %1227 = vst.msk [vmem:[#allocation3 + $0x18] sm:$0xff] %vm1127_vm0, %v1211_v10  ;;  %v520_v52 = vmul.f32 0.6931472, %v4914_v55  ;;  %4935 = vpow2.f32 %v4565_v40  ;;  %v927_v44 = vmul.f32 0.75, %v895_v39  ;;  %v928_v16 = vmul.f32 0.75, %v896_v9 }
  0x6e   :  { %v4918_v53 = vpop.eup %4917  ;;  %v1247_v3 = vld [vmem:[#allocation2 + $0x18] sm:$0xff]  ;;  %v522_v1 = vmul.f32 0.6931472, %v4916_v6  ;;  %4937 = vpow2.f32 %v431_v35  ;;  %1997 = vperm.xlu1 %4777, %v10198_v19   ;;  %v4566_v15 = vmul.f32 -1.442695, %v5961_v34  ;;  %v321_v9 = vmax.f32 %v289_v11, 0.0 }
  0x6f   :  { %v4920_v63 = vpop.eup %4919  ;;  %2001 = vperm.xlu0 %4776, %v10199_v32   ;;  %v575_v45 = vadd.f32 %v520_v52, %v5920_v50  ;;  %v808_v29 = vmul.f32 0.6931472, %v4918_v53  ;;  %4705 = vmatmul.mubr.msk.bf16.gmra.mrb[4].mxu0 %vm1127_vm0, %v1247_v3  ;;  %4939 = vpow2.f32 %v433_v54  ;;  %v643_v31 = vand.u32 2147483647, %v5913_v47 }
  0x70   :  { %v4922_v25 = vpop.eup %4921  ;;  %v576_v24 = vadd.f32 %v522_v1, %v320_v12  ;;  %v810_v57 = vmul.f32 0.6931472, %v4920_v63  ;;  %v644_v33 = vand.u32 2147483647, %v5933_v62  ;;  %4941 = vpow2.f32 %v4566_v15 }
  0x71   :  { %v5965_v17 = vpop.eup %4923  ;;  %v863_v50 = vadd.f32 %v808_v29, %v607_v42  ;;  %v1055_v48 = vmul.f32 %v1023_v4, %v575_v45  ;;  %v675_v43 = vsub.f32 0.0, %v643_v31  ;;  %v257_v39 = vsub.f32 1.0, %v4922_v25 }
  0x72   :  { %v4926_v36 = vpop.eup %4925  ;;  %v864_v21 = vadd.f32 %v810_v57, %v608_v5  ;;  %v1056_v26 = vmul.f32 %v1024_v8, %v576_v24  ;;  %2005 = vperm.xlu1 %4777, %v10200_v23   ;;  %v258_v55 = vsub.f32 1.0, %v5965_v17  ;;  %v322_v35 = vmax.f32 %v290_v61, 0.0 }
  0x73   :  { %v4928_v49 = vpop.eup %4927  ;;  %2009 = vperm.xlu0 %4776, %v10201_v20   ;;  %v959_v40 = vmul.f32 %v927_v44, %v863_v50  ;;  %v482_v7 = vadd.f32 1.0, %v4926_v36  ;;  %v676_v52 = vsub.f32 0.0, %v644_v33  ;;  %v609_v53 = vmax.f32 %v5872_v2, 0.0  ;;  %v5309_v2 = vld [vmem:[%s10003_s1 + $0x10] sm:$0xff] }
  0x74   :  { %v4930_v0 = vpop.eup %4929  ;;  %v1263_v41 = vld [vmem:[#allocation3 + $0x18] sm:$0xff]  ;;  %v960_v22 = vmul.f32 %v928_v16, %v864_v21  ;;  %v769_v42 = vadd.f32 1.0, %v4928_v49  ;;  %v5973_v58 = vpop.permute.xlu1 %1775  ;;  %v897_v11 = vmul.f32 %v4922_v25, %v4922_v25  ;;  %v719_v54 = vmul.f32 1.442695, %v675_v43 }
  0x75   :  { %v4932_v60 = vpop.eup %4931  ;;  %10202 = vst [vmem:[#allocation7_spill] sm:$0xff] %v5973_v58  ;;  %4669 = vmatmul.mubr.msk.bf16.gmra.mrb[4].mxu1 %vm1127_vm0, %v1263_v41  ;;  %v1087_v46 = vsub.f32 %v1055_v48, %v959_v40  ;;  %4943 = vlog2.f32 %v482_v7  ;;  %v770_v14 = vadd.f32 1.0, %v4930_v0  ;;  %v993_v19 = vmul.f32 %v257_v39, %v257_v39  ;;  %v6004_v31 = vpop.permute.xlu0 %1771 }
  0x76   :  { %v4934_v10 = vpop.eup %4933  ;;  %v1088_v12 = vsub.f32 %v1056_v26, %v960_v22  ;;  %2013 = vperm.xlu1 %4777, %v5770_v38   ;;  %4945 = vlog2.f32 %v769_v42  ;;  %v293_v38 = vsub.f32 0.0, %v5961_v34  ;;  %v994_v32 = vmul.f32 %v258_v55, %v258_v55  ;;  %10205 = vst [vmem:[#allocation11_spill] sm:$0xff] %v6004_v31  ;;  %v5307_v55 = vld [vmem:[%s10003_s1] sm:$0xff] }
  0x77   :  { %v4936_v37 = vpop.eup %4935  ;;  %2017 = vperm.xlu0 %4776, %v5765_v13   ;;  %v163_v6 = vadd.f32 1.0, %v4934_v10  ;;  %4947 = vlog2.f32 %v770_v14  ;;  %v5989_v13 = vld [vmem:[%s10002_s0 + $0x78] sm:$0xff]  ;;  %v524_v29 = vmul.f32 0.6931472, %v4932_v60  ;;  %v721_v44 = vmul.f32 1.442695, %v676_v52 }
  0x78   :  { %v4938_v5 = vpop.eup %4937  ;;  %v1115_v4 = vpack.c.bf16 %v1088_v12, %v1087_v46  ;;  %v164_v3 = vadd.f32 1.0, %v4936_v37  ;;  %v5984_v1 = vpop.permute.xlu1 %1777  ;;  %v4567_v25 = vmul.f32 -1.442695, %v5989_v13  ;;  %v294_v16 = vsub.f32 0.0, %v5989_v13 }
  0x79   :  { %10203 = vst [vmem:[#allocation9_spill] sm:$0xff] %v5984_v1  ;;  %v483_v8 = vadd.f32 1.0, %v4938_v5  ;;  %v4940_v45 = vpop.eup %4939  ;;  %4949 = vrcp.f32 %v163_v6  ;;  %v610_v50 = vmax.f32 %v5881_v28, 0.0  ;;  %v898_v48 = vmul.f32 %v5965_v17, %v5965_v17  ;;  %v6021_v37 = vpop.permute.xlu0 %1773 }
  0x7a   :  { %v1152_v61 = vunpack.c.l.bf16 %v1115_v4  ;;  %v1153_v63 = vunpack.c.h.bf16 %v1115_v4  ;;  %1132 = vst.msk [vmem:[#allocation2 + $0x20] sm:$0xff] %vm1127_vm0, %v1115_v4  ;;  %2021 = vperm.xlu1 %4777, %v5791_v18   ;;  %4951 = vrcp.f32 %v164_v3  ;;  %v4942_v18 = vpop.eup %4941  ;;  %v929_v21 = vmul.f32 0.75, %v897_v11  ;;  %10207 = vst [vmem:[#allocation13_spill] sm:$0xff] %v6021_v37 }
  0x7b   :  { %2025 = vperm.xlu0 %4776, %v5786_v27   ;;  %4953 = vlog2.f32 %v483_v8  ;;  %v357_v27 = vand.u32 2147483647, %v293_v38  ;;  %v484_v26 = vadd.f32 1.0, %v4940_v45  ;;  %v1025_v28 = vmul.f32 0.25, %v993_v19 }
  0x7c   :  { %v1184_v24 = vsub.f32 %v1087_v46, %v1152_v61  ;;  %v1185_v57 = vsub.f32 %v1088_v12, %v1153_v63  ;;  %v5997_v15 = vpop.permute.xlu1 %1781  ;;  %4955 = vpow2.f32 %v719_v54  ;;  %v358_v17 = vand.u32 2147483647, %v294_v16 }
  0x7d   :  { %10204 = vst [vmem:[#allocation8_spill] sm:$0xff] %v5997_v15  ;;  %4957 = vpow2.f32 %v721_v44  ;;  %v389_v23 = vsub.f32 0.0, %v357_v27  ;;  %v577_v40 = vadd.f32 %v524_v29, %v321_v9  ;;  %v1026_v7 = vmul.f32 0.25, %v994_v32  ;;  %v5308_v9 = vld [vmem:[%s10003_s1 + $0x8] sm:$0xff] }
  0x7e   :  { %v1212_v36 = vpack.c.bf16 %v1185_v57, %v1184_v24  ;;  %2029 = vperm.xlu1 %4777, %v5808_v59   ;;  %4959 = vpow2.f32 %v4567_v25  ;;  %v390_v22 = vsub.f32 0.0, %v358_v17  ;;  %v165_v14 = vadd.f32 1.0, %v4942_v18 }
  0x7f   :  { %v4944_v49 = vpop.eup %4943  ;;  %2033 = vperm.xlu0 %4776, %v5803_v30   ;;  %v435_v59 = vmul.f32 1.442695, %v389_v23  ;;  %v645_v30 = vand.u32 2147483647, %v5961_v34  ;;  %4961 = vlog2.f32 %v484_v26  ;;  %v5436_v43 = vmov 1  }
  0x80   :  { %1228 = vst.msk [vmem:[#allocation3 + $0x20] sm:$0xff] %vm1127_vm0, %v1212_v36  ;;  %v526_v20 = vmul.f32 0.6931472, %v4944_v49  ;;  %v4946_v33 = vpop.eup %4945  ;;  %v6011_v0 = vpop.permute.xlu1 %1785  ;;  %v930_v12 = vmul.f32 0.75, %v898_v48  ;;  %v437_v39 = vmul.f32 1.442695, %v390_v22  ;;  %v1057_v6 = vmul.f32 %v1025_v28, %v577_v40 }
  0x81   :  { %10206 = vst [vmem:[#allocation10_spill] sm:$0xff] %v6011_v0  ;;  %v1248_v41 = vld [vmem:[#allocation2 + $0x20] sm:$0xff]  ;;  %v4948_v42 = vpop.eup %4947  ;;  %v812_v46 = vmul.f32 0.6931472, %v4946_v33  ;;  %4963 = vpow2.f32 %v435_v59  ;;  %v646_v52 = vand.u32 2147483647, %v5989_v13  ;;  %v6043_v36 = vpop.permute.xlu0 %1779 }
  0x82   :  { %4708 = vmatprep.mubr.msk.bf16.mxu0 %vm1127_vm0, %v1248_v41  ;;  %v578_v60 = vadd.f32 %v526_v20, %v322_v35  ;;  %4778 = vset.pattern.permute.xlu1 %v5436_v43  ;;  %v814_v10 = vmul.f32 0.6931472, %v4948_v42  ;;  %4965 = vpow2.f32 %v437_v39  ;;  %v677_v11 = vsub.f32 0.0, %v645_v30  ;;  %10209 = vst [vmem:[#allocation14_spill] sm:$0xff] %v6043_v36  ;;  %v5311_v40 = vld [vmem:[%s10003_s1 + $0x18] sm:$0xff] }
  0x83   :  { %4779 = vset.pattern.permute.xlu0 %v5436_v43  ;;  %2105 = vperm.xlu1 %4778, %v5307_v55   ;;  %v865_v35 = vadd.f32 %v812_v46, %v609_v53  ;;  %v4950_v5 = vpop.eup %4949  ;;  %4967 = vrcp.f32 %v165_v14  ;;  %v5310_v53 = vld [vmem:[%s10003_s1 + $0x20] sm:$0xff]  ;;  %v323_v44 = vmax.f32 %v291_v51, 0.0  ;;  %v6040_v25 = vmax.f32 %v292_v56, 0.0 }
  0x84   :  { %2109 = vperm.xlu0 %4779, %v5308_v9   ;;  %v866_v4 = vadd.f32 %v814_v10, %v610_v50  ;;  %v1058_v3 = vmul.f32 %v1026_v7, %v578_v60  ;;  %v6026_v8 = vpop.eup %4951  ;;  %v6028_v54 = vpop.permute.xlu1 %1789  ;;  %v678_v48 = vsub.f32 0.0, %v646_v52  ;;  %v723_v27 = vmul.f32 1.442695, %v677_v11  ;;  %v5312_v7 = vld [vmem:[%s10003_s1 + $0x30] sm:$0xff]  ;;  %v6067_v55 = vld [vmem:[%s10002_s0 + $0x80] sm:$0xff]  ;;  %v6072_v9 = vld [vmem:[%s10002_s0 + $0x88] sm:$0xff] }
  0x85   :  { %10208 = vst [vmem:[#allocation12_spill] sm:$0xff] %v6028_v54  ;;  %v961_v61 = vmul.f32 %v929_v21, %v865_v35  ;;  %v4954_v63 = vpop.eup %4953  ;;  %v259_v21 = vsub.f32 1.0, %v4950_v5  ;;  %v611_v26 = vmax.f32 %v5913_v47, 0.0  ;;  %v612_v49 = vmax.f32 %v5933_v62, 0.0  ;;  %v5313_v52 = vld [vmem:[%s10003_s1 + $0x28] sm:$0xff]  ;;  %v6134_v62 = vld [vmem:[%s10002_s0 + $0x98] sm:$0xff] }
  0x86   :  { %v962_v32 = vmul.f32 %v930_v12, %v866_v4  ;;  %v4956_v45 = vpop.eup %4955  ;;  %v6049_v56 = vmax.f32 %v293_v38, 0.0  ;;  %v613_v17 = vmax.f32 %v5961_v34, 0.0  ;;  %v260_v33 = vsub.f32 1.0, %v6026_v8  ;;  %v5326_v34 = vld [vmem:[%s10003_s1 + $0xa0] sm:$0xff] }
  0x87   :  { %v1264_v19 = vld [vmem:[#allocation3 + $0x20] sm:$0xff]  ;;  %2113 = vperm.xlu1 %4778, %v5309_v2   ;;  %v1089_v29 = vsub.f32 %v1057_v6, %v961_v61  ;;  %v4958_v24 = vpop.eup %4957  ;;  %v771_v50 = vadd.f32 1.0, %v4956_v45  ;;  %v528_v41 = vmul.f32 0.6931472, %v4954_v63  ;;  %v725_v42 = vmul.f32 1.442695, %v678_v48  ;;  %v6074_v6 = vpop.permute.xlu0 %1783 }
  0x88   :  { %2121 = vperm.xlu0 %4779, %v5310_v53   ;;  %4672 = vmatprep.mubr.msk.bf16.mxu1 %vm1127_vm0, %v1264_v19  ;;  %v1090_v57 = vsub.f32 %v1058_v3, %v962_v32  ;;  %v4960_v18 = vpop.eup %4959  ;;  %v772_v51 = vadd.f32 1.0, %v4958_v24  ;;  %v6052_v20 = vpop.permute.xlu1 %1793  ;;  %v899_v60 = vmul.f32 %v4950_v5, %v4950_v5  ;;  %v995_v46 = vmul.f32 %v259_v21, %v259_v21  ;;  %v5314_v5 = vld [vmem:[%s10003_s1 + $0x40] sm:$0xff]  ;;  %v5315_v48 = vld [vmem:[%s10003_s1 + $0x38] sm:$0xff] }
  0x89   :  { %4969 = vlog2.f32 %v771_v50  ;;  %v4962_v23 = vpop.eup %4961  ;;  %10210 = vst [vmem:[#allocation15_spill] sm:$0xff] %v6052_v20  ;;  %v166_v38 = vadd.f32 1.0, %v4960_v18  ;;  %v900_v39 = vmul.f32 %v6026_v8, %v6026_v8  ;;  %10211 = vst [vmem:[#allocation16_spill] sm:$0xff] %v6074_v6  ;;  %v996_v3 = vmul.f32 %v260_v33, %v260_v33 }
  0x8a   :  { %v1116_v28 = vpack.c.bf16 %v1090_v57, %v1089_v29  ;;  %4971 = vlog2.f32 %v772_v51  ;;  %v530_v4 = vmul.f32 0.6931472, %v4962_v23  ;;  %v579_v61 = vadd.f32 %v528_v41, %v323_v44 }
  0x8b   :  { %2117 = vperm.xlu1 %4778, %v5311_v40   ;;  %v4964_v22 = vpop.eup %4963  ;;  %4973 = vpow2.f32 %v723_v27  ;;  %v4568_v63 = vmul.f32 -1.442695, %v6067_v55  ;;  %v4569_v19 = vmul.f32 -1.442695, %v6072_v9  ;;  %v1027_v45 = vmul.f32 0.25, %v995_v46  ;;  %v5316_v27 = vld [vmem:[%s10003_s1 + $0x50] sm:$0xff] }
  0x8c   :  { %2129 = vperm.xlu0 %4779, %v5312_v7   ;;  %v1154_v59 = vunpack.c.l.bf16 %v1116_v28  ;;  %v1155_v30 = vunpack.c.h.bf16 %v1116_v28  ;;  %1133 = vst.msk [vmem:[#allocation2 + $0x28] sm:$0xff] %vm1127_vm0, %v1116_v28  ;;  %4975 = vrcp.f32 %v166_v38  ;;  %v485_v14 = vadd.f32 1.0, %v4964_v22  ;;  %v4966_v43 = vpop.eup %4965  ;;  %v6084_v32 = vpop.permute.xlu1 %1797  ;;  %v6110_v7 = vld [vmem:[%s10002_s0 + $0x90] sm:$0xff] }
  0x8d   :  { %4977 = vpow2.f32 %v725_v42  ;;  %v4968_v35 = vpop.eup %4967  ;;  %v486_v11 = vadd.f32 1.0, %v4966_v43  ;;  %10212 = vst [vmem:[#allocation17_spill] sm:$0xff] %v6084_v32  ;;  %v295_v2 = vsub.f32 0.0, %v6067_v55  ;;  %v296_v53 = vsub.f32 0.0, %v6072_v9  ;;  %v6112_v22 = vpop.permute.xlu0 %1787 }
  0x8e   :  { %v1186_v10 = vsub.f32 %v1089_v29, %v1154_v59  ;;  %v1187_v12 = vsub.f32 %v1090_v57, %v1155_v30  ;;  %4979 = vlog2.f32 %v485_v14  ;;  %v261_v29 = vsub.f32 1.0, %v4968_v35  ;;  %10213 = vst [vmem:[#allocation18_spill] sm:$0xff] %v6112_v22 }
  0x8f   :  { %2125 = vperm.xlu1 %4778, %v5313_v52   ;;  %4981 = vlog2.f32 %v486_v11  ;;  %v6091_v24 = vmax.f32 %v294_v16, 0.0  ;;  %v614_v44 = vmax.f32 %v5989_v13, 0.0  ;;  %v931_v50 = vmul.f32 0.75, %v899_v60  ;;  %v5317_v52 = vld [vmem:[%s10003_s1 + $0x48] sm:$0xff] }
  0x90   :  { %2137 = vperm.xlu0 %4779, %v5314_v5   ;;  %v1213_v8 = vpack.c.bf16 %v1187_v12, %v1186_v10  ;;  %4983 = vpow2.f32 %v4568_v63  ;;  %v359_v16 = vand.u32 2147483647, %v295_v2  ;;  %v647_v18 = vand.u32 2147483647, %v6067_v55  ;;  %v6116_v10 = vpop.permute.xlu1 %1801  ;;  %v5318_v5 = vld [vmem:[%s10003_s1 + $0x60] sm:$0xff] }
  0x91   :  { %4985 = vpow2.f32 %v4569_v19  ;;  %v580_v51 = vadd.f32 %v530_v4, %v6040_v25  ;;  %v932_v28 = vmul.f32 0.75, %v900_v39  ;;  %v1028_v23 = vmul.f32 0.25, %v996_v3  ;;  %10214 = vst [vmem:[#allocation19_spill] sm:$0xff] %v6116_v10 }
  0x92   :  { %1229 = vst.msk [vmem:[#allocation3 + $0x28] sm:$0xff] %vm1127_vm0, %v1213_v8  ;;  %v360_v40 = vand.u32 2147483647, %v296_v53  ;;  %v1059_v38 = vmul.f32 %v1027_v45, %v579_v61  ;;  %v391_v59 = vsub.f32 0.0, %v359_v16  ;;  %v4570_v30 = vmul.f32 -1.442695, %v6110_v7 }
  0x93   :  { %v1249_v57 = vld [vmem:[#allocation2 + $0x28] sm:$0xff]  ;;  %2133 = vperm.xlu1 %4778, %v5315_v48   ;;  %v4970_v21 = vpop.eup %4969  ;;  %v901_v60 = vmul.f32 %v4968_v35, %v4968_v35  ;;  %v997_v46 = vmul.f32 %v261_v29, %v261_v29  ;;  %v648_v14 = vand.u32 2147483647, %v6072_v9  ;;  %v679_v35 = vsub.f32 0.0, %v647_v18 }
  0x94   :  { %2145 = vperm.xlu0 %4779, %v5316_v27   ;;  %4709 = vmatmul.mubr.msk.bf16.gmra.mrb[8].mxu0 %vm1127_vm0, %v1249_v57  ;;  %v4972_v33 = vpop.eup %4971  ;;  %v816_v41 = vmul.f32 0.6931472, %v4970_v21  ;;  %4987 = vpow2.f32 %v4570_v30  ;;  %v1060_v11 = vmul.f32 %v1028_v23, %v580_v51  ;;  %v439_v45 = vmul.f32 1.442695, %v391_v59  ;;  %v5319_v51 = vld [vmem:[%s10003_s1 + $0x58] sm:$0xff]  ;;  %v6144_v30 = vpop.permute.xlu1 %1805 }
  0x95   :  { %v4974_v42 = vpop.eup %4973  ;;  %v818_v25 = vmul.f32 0.6931472, %v4972_v33  ;;  %v6129_v48 = vmul.f32 0.75, %v901_v60  ;;  %v680_v27 = vsub.f32 0.0, %v648_v14  ;;  %v1029_v18 = vmul.f32 0.25, %v997_v46  ;;  %10216 = vst [vmem:[#allocation21_spill] sm:$0xff] %v6144_v30 }
  0x96   :  { %v4976_v43 = vpop.eup %4975  ;;  %v867_v12 = vadd.f32 %v816_v41, %v611_v26  ;;  %v773_v39 = vadd.f32 1.0, %v4974_v42  ;;  %v392_v26 = vsub.f32 0.0, %v360_v40  ;;  %v727_v21 = vmul.f32 1.442695, %v679_v35  ;;  %v5321_v35 = vld [vmem:[%s10003_s1 + $0x68] sm:$0xff] }
  0x97   :  { %2141 = vperm.xlu1 %4778, %v5317_v52   ;;  %v4978_v4 = vpop.eup %4977  ;;  %v868_v3 = vadd.f32 %v818_v25, %v612_v49  ;;  %v262_v47 = vsub.f32 1.0, %v4976_v43  ;;  %v902_v57 = vmul.f32 %v4976_v43, %v4976_v43  ;;  %v297_v25 = vsub.f32 0.0, %v6110_v7 }
  0x98   :  { %2153 = vperm.xlu0 %4779, %v5318_v5   ;;  %v4980_v8 = vpop.eup %4979  ;;  %v963_v63 = vmul.f32 %v931_v50, %v867_v12  ;;  %v774_v19 = vadd.f32 1.0, %v4978_v4  ;;  %4989 = vlog2.f32 %v773_v39  ;;  %v6136_v50 = vpop.permute.xlu0 %1791  ;;  %v298_v60 = vsub.f32 0.0, %v6134_v62  ;;  %v5322_v4 = vld [vmem:[%s10003_s1 + $0x80] sm:$0xff] }
  0x99   :  { %v1265_v61 = vld [vmem:[#allocation3 + $0x28] sm:$0xff]  ;;  %v964_v29 = vmul.f32 %v932_v28, %v868_v3  ;;  %v4982_v49 = vpop.eup %4981  ;;  %10215 = vst [vmem:[#allocation20_spill] sm:$0xff] %v6136_v50  ;;  %v5320_v28 = vld [vmem:[%s10003_s1 + $0x70] sm:$0xff]  ;;  %v532_v33 = vmul.f32 0.6931472, %v4980_v8  ;;  %v998_v41 = vmul.f32 %v262_v47, %v262_v47  ;;  %v6148_v14 = vmul.f32 0.75, %v902_v57 }
  0x9a   :  { %4673 = vmatmul.mubr.msk.bf16.gmra.mrb[8].mxu1 %vm1127_vm0, %v1265_v61  ;;  %v1091_v16 = vsub.f32 %v1059_v38, %v963_v63  ;;  %4991 = vlog2.f32 %v774_v19  ;;  %v4984_v23 = vpop.eup %4983  ;;  %v441_v38 = vmul.f32 1.442695, %v392_v26  ;;  %v729_v12 = vmul.f32 1.442695, %v680_v27 }
  0x9b   :  { %2149 = vperm.xlu1 %4778, %v5319_v51   ;;  %v1092_v40 = vsub.f32 %v1060_v11, %v964_v29  ;;  %v4986_v59 = vpop.eup %4985  ;;  %v167_v42 = vadd.f32 1.0, %v4984_v23  ;;  %4993 = vpow2.f32 %v439_v45  ;;  %v534_v39 = vmul.f32 0.6931472, %v4982_v49  ;;  %v6166_v51 = vpop.permute.xlu1 %1809  ;;  %v5323_v23 = vld [vmem:[%s10003_s1 + $0x78] sm:$0xff] }
  0x9c   :  { %2161 = vperm.xlu0 %4779, %v5320_v28   ;;  %v168_v43 = vadd.f32 1.0, %v4986_v59  ;;  %v4571_v52 = vmul.f32 -1.442695, %v6134_v62  ;;  %v361_v5 = vand.u32 2147483647, %v297_v25  ;;  %v581_v47 = vadd.f32 %v532_v33, %v6049_v56  ;;  %v6161_v61 = vpop.permute.xlu0 %1795  ;;  %10218 = vst [vmem:[#allocation23_spill] sm:$0xff] %v6166_v51 }
  0x9d   :  { %v1117_v46 = vpack.c.bf16 %v1092_v40, %v1091_v16  ;;  %4995 = vrcp.f32 %v167_v42  ;;  %v1030_v8 = vmul.f32 0.25, %v998_v41  ;;  %10217 = vst [vmem:[#allocation22_spill] sm:$0xff] %v6161_v61  ;;  %v362_v63 = vand.u32 2147483647, %v298_v60 }
  0x9e   :  { %4997 = vrcp.f32 %v168_v43  ;;  %v4988_v26 = vpop.eup %4987  ;;  %v393_v19 = vsub.f32 0.0, %v361_v5  ;;  %v582_v49 = vadd.f32 %v534_v39, %v6091_v24  ;;  %v649_v24 = vand.u32 2147483647, %v6110_v7 }
  0x9f   :  { %2157 = vperm.xlu1 %4778, %v5321_v35   ;;  %v1156_v3 = vunpack.c.l.bf16 %v1117_v46  ;;  %v1157_v11 = vunpack.c.h.bf16 %v1117_v46  ;;  %1134 = vst.msk [vmem:[#allocation2 + $0x30] sm:$0xff] %vm1127_vm0, %v1117_v46  ;;  %4999 = vpow2.f32 %v441_v38  ;;  %v169_v57 = vadd.f32 1.0, %v4988_v26 }
  0xa0   :  { %2169 = vperm.xlu0 %4779, %v5322_v4   ;;  %5001 = vpow2.f32 %v727_v21  ;;  %v394_v56 = vsub.f32 0.0, %v362_v63  ;;  %v443_v28 = vmul.f32 1.442695, %v393_v19  ;;  %v1061_v41 = vmul.f32 %v1029_v18, %v581_v47  ;;  %v6180_v18 = vpop.permute.xlu0 %1799  ;;  %v5325_v4 = vld [vmem:[%s10003_s1 + $0x88] sm:$0xff] }
  0xa1   :  { %v1188_v45 = vsub.f32 %v1091_v16, %v1156_v3  ;;  %v1189_v29 = vsub.f32 %v1092_v40, %v1157_v11  ;;  %5003 = vpow2.f32 %v729_v12  ;;  %v5324_v16 = vld [vmem:[%s10003_s1 + $0x90] sm:$0xff]  ;;  %v650_v59 = vand.u32 2147483647, %v6134_v62  ;;  %10219 = vst [vmem:[#allocation24_spill] sm:$0xff] %v6180_v18 }
  0xa2   :  { %v4990_v27 = vpop.eup %4989  ;;  %5005 = vpow2.f32 %v4571_v52  ;;  %v445_v38 = vmul.f32 1.442695, %v394_v56  ;;  %v681_v43 = vsub.f32 0.0, %v649_v24  ;;  %v1062_v5 = vmul.f32 %v1030_v8, %v582_v49  ;;  %v5327_v56 = vld [vmem:[%s10003_s1 + $0x98] sm:$0xff] }
  0xa3   :  { %2165 = vperm.xlu1 %4778, %v5323_v23   ;;  %v1214_v21 = vpack.c.bf16 %v1189_v29, %v1188_v45  ;;  %v820_v40 = vmul.f32 0.6931472, %v4990_v27  ;;  %5007 = vrcp.f32 %v169_v57  ;;  %v615_v52 = vmax.f32 %v6067_v55, 0.0  ;;  %v6201_v29 = vpop.permute.xlu1 %1813 }
  0xa4   :  { %2177 = vperm.xlu0 %4779, %v5324_v16   ;;  %v4992_v33 = vpop.eup %4991  ;;  %5009 = vpow2.f32 %v443_v28  ;;  %v682_v35 = vsub.f32 0.0, %v650_v59  ;;  %v731_v47 = vmul.f32 1.442695, %v681_v43  ;;  %v6194_v8 = vmax.f32 %v295_v2, 0.0  ;;  %10220 = vst [vmem:[#allocation25_spill] sm:$0xff] %v6201_v29  ;;  %v6226_v59 = vpop.permute.xlu0 %1803 }
  0xa5   :  { %1230 = vst.msk [vmem:[#allocation3 + $0x30] sm:$0xff] %vm1127_vm0, %v1214_v21  ;;  %v822_v42 = vmul.f32 0.6931472, %v4992_v33  ;;  %v869_v46 = vadd.f32 %v820_v40, %v613_v17  ;;  %v4994_v12 = vpop.eup %4993  ;;  %5011 = vpow2.f32 %v445_v38  ;;  %v6198_v63 = vmax.f32 %v296_v53, 0.0  ;;  %10221 = vst [vmem:[#allocation26_spill] sm:$0xff] %v6226_v59 }
  0xa6   :  { %v1250_v39 = vld [vmem:[#allocation2 + $0x30] sm:$0xff]  ;;  %v487_v11 = vadd.f32 1.0, %v4994_v12  ;;  %v616_v19 = vmax.f32 %v6072_v9, 0.0  ;;  %v733_v45 = vmul.f32 1.442695, %v682_v35  ;;  %v6206_v57 = vmax.f32 %v297_v25, 0.0 }
  0xa7   :  { %2173 = vperm.xlu1 %4778, %v5325_v4   ;;  %4712 = vmatprep.mubr.msk.bf16.mxu0 %vm1127_vm0, %v1250_v39  ;;  %v870_v17 = vadd.f32 %v822_v42, %v614_v44  ;;  %v965_v3 = vmul.f32 %v6129_v48, %v869_v46  ;;  %v4996_v26 = vpop.eup %4995  ;;  %v6210_v53 = vmax.f32 %v298_v60, 0.0  ;;  %v6223_v60 = vld [vmem:[%s10002_s0 + $0xa0] sm:$0xff]  ;;  %v6232_v39 = vld [vmem:[%s10002_s0 + $0xa8] sm:$0xff] }
  0xa8   :  { %2185 = vperm.xlu0 %4779, %v5326_v34   ;;  %v4998_v13 = vpop.eup %4997  ;;  %5013 = vlog2.f32 %v487_v11  ;;  %v263_v27 = vsub.f32 1.0, %v4996_v26  ;;  %v4572_v38 = vmul.f32 -1.442695, %v6223_v60  ;;  %v6234_v34 = vpop.permute.xlu1 %1817  ;;  %v5330_v11 = vld [vmem:[%s10003_s1 + $0xc0] sm:$0xff] }
  0xa9   :  { %v966_v44 = vmul.f32 %v6148_v14, %v870_v17  ;;  %v1093_v48 = vsub.f32 %v1061_v41, %v965_v3  ;;  %v5000_v2 = vpop.eup %4999  ;;  %5015 = vpow2.f32 %v731_v47  ;;  %v5328_v14 = vld [vmem:[%s10003_s1 + $0xb0] sm:$0xff]  ;;  %v264_v24 = vsub.f32 1.0, %v4998_v13  ;;  %10222 = vst [vmem:[#allocation27_spill] sm:$0xff] %v6234_v34  ;;  %v5329_v3 = vld [vmem:[%s10003_s1 + $0xa8] sm:$0xff] }
  0xaa   :  { %v5002_v25 = vpop.eup %5001  ;;  %v488_v23 = vadd.f32 1.0, %v5000_v2  ;;  %5017 = vpow2.f32 %v733_v45  ;;  %v903_v41 = vmul.f32 %v4996_v26, %v4996_v26  ;;  %v904_v12 = vmul.f32 %v4998_v13, %v4998_v13 }
  0xab   :  { %2181 = vperm.xlu1 %4778, %v5327_v56   ;;  %v1094_v28 = vsub.f32 %v1062_v5, %v966_v44  ;;  %v5004_v21 = vpop.eup %5003  ;;  %v775_v33 = vadd.f32 1.0, %v5002_v25  ;;  %v999_v35 = vmul.f32 %v263_v27, %v263_v27  ;;  %v10017_v17 = vsub.f32 0.0, %v6223_v60 }
  0xac   :  { %2193 = vperm.xlu0 %4779, %v5328_v14   ;;  %v1266_v40 = vld [vmem:[#allocation3 + $0x30] sm:$0xff]  ;;  %v5006_v42 = vpop.eup %5005  ;;  %5019 = vlog2.f32 %v488_v23  ;;  %v776_v43 = vadd.f32 1.0, %v5004_v21  ;;  %v1000_v2 = vmul.f32 %v264_v24, %v264_v24  ;;  %v10016_v56 = vsub.f32 0.0, %v6232_v39  ;;  %v5331_v24 = vld [vmem:[%s10003_s1 + $0xb8] sm:$0xff] }
  0xad   :  { %4676 = vmatprep.mubr.msk.bf16.mxu1 %vm1127_vm0, %v1266_v40  ;;  %v1118_v46 = vpack.c.bf16 %v1094_v28, %v1093_v48  ;;  %v5008_v5 = vpop.eup %5007  ;;  %5021 = vlog2.f32 %v775_v33  ;;  %v170_v4 = vadd.f32 1.0, %v5006_v42  ;;  %v4573_v21 = vmul.f32 -1.442695, %v6232_v39 }
  0xae   :  { %v5010_v47 = vpop.eup %5009  ;;  %5023 = vlog2.f32 %v776_v43  ;;  %v265_v13 = vsub.f32 1.0, %v5008_v5  ;;  %v6246_v40 = vmul.f32 0.75, %v903_v41  ;;  %v6248_v33 = vmul.f32 0.75, %v904_v12 }
  0xaf   :  { %2189 = vperm.xlu1 %4778, %v5329_v3   ;;  %v1158_v26 = vunpack.c.l.bf16 %v1118_v46  ;;  %v1159_v45 = vunpack.c.h.bf16 %v1118_v46  ;;  %1135 = vst.msk [vmem:[#allocation2 + $0x38] sm:$0xff] %vm1127_vm0, %v1118_v46  ;;  %v5012_v44 = vpop.eup %5011  ;;  %5025 = vrcp.f32 %v170_v4  ;;  %v489_v27 = vadd.f32 1.0, %v5010_v47  ;;  %v6250_v46 = vpop.permute.xlu0 %1807 }
  0xb0   :  { %2201 = vperm.xlu0 %4779, %v5330_v11   ;;  %v490_v23 = vadd.f32 1.0, %v5012_v44  ;;  %v1031_v42 = vmul.f32 0.25, %v999_v35  ;;  %10223 = vst [vmem:[#allocation28_spill] sm:$0xff] %v6250_v46  ;;  %v1001_v41 = vmul.f32 %v265_v13, %v265_v13  ;;  %v363_v12 = vand.u32 2147483647, %v10017_v17  ;;  %v6262_v47 = vpop.permute.xlu1 %1821 }
  0xb1   :  { %v1190_v14 = vsub.f32 %v1093_v48, %v1158_v26  ;;  %v1191_v25 = vsub.f32 %v1094_v28, %v1159_v45  ;;  %5027 = vlog2.f32 %v489_v27  ;;  %v5332_v48 = vld [vmem:[%s10003_s1 + $0xd0] sm:$0xff]  ;;  %v1032_v3 = vmul.f32 0.25, %v1000_v2  ;;  %10224 = vst [vmem:[#allocation29_spill] sm:$0xff] %v6262_v47  ;;  %v5333_v2 = vld [vmem:[%s10003_s1 + $0xc8] sm:$0xff] }
  0xb2   :  { %v5014_v28 = vpop.eup %5013  ;;  %5029 = vlog2.f32 %v490_v23  ;;  %v364_v11 = vand.u32 2147483647, %v10016_v56  ;;  %v6265_v44 = vmul.f32 %v5008_v5, %v5008_v5  ;;  %v395_v13 = vsub.f32 0.0, %v363_v12 }
  0xb3   :  { %2197 = vperm.xlu1 %4778, %v5331_v24   ;;  %v1215_v43 = vpack.c.bf16 %v1191_v25, %v1190_v14  ;;  %v5016_v35 = vpop.eup %5015  ;;  %v536_v4 = vmul.f32 0.6931472, %v5014_v28  ;;  %5031 = vpow2.f32 %v4572_v38  ;;  %v651_v38 = vand.u32 2147483647, %v6223_v60  ;;  %v5334_v24 = vld [vmem:[%s10003_s1 + $0xe0] sm:$0xff]  ;;  %v6282_v28 = vld [vmem:[%s10002_s0 + $0xb0] sm:$0xff] }
  0xb4   :  { %2209 = vperm.xlu0 %4779, %v5332_v48   ;;  %v5018_v26 = vpop.eup %5017  ;;  %v777_v45 = vadd.f32 1.0, %v5016_v35  ;;  %5033 = vpow2.f32 %v4573_v21  ;;  %v396_v23 = vsub.f32 0.0, %v364_v11  ;;  %v6276_v21 = vmul.f32 0.25, %v1001_v41  ;;  %v6285_v11 = vpop.permute.xlu0 %1811 }
  0xb5   :  { %1231 = vst.msk [vmem:[#allocation3 + $0x38] sm:$0xff] %vm1127_vm0, %v1215_v43  ;;  %v583_v14 = vadd.f32 %v536_v4, %v6194_v8  ;;  %v778_v25 = vadd.f32 1.0, %v5018_v26  ;;  %v447_v8 = vmul.f32 1.442695, %v395_v13  ;;  %v652_v48 = vand.u32 2147483647, %v6232_v39 }
  0xb6   :  { %v1251_v27 = vld [vmem:[#allocation2 + $0x38] sm:$0xff]  ;;  %v5020_v5 = vpop.eup %5019  ;;  %5035 = vlog2.f32 %v777_v45  ;;  %v449_v35 = vmul.f32 1.442695, %v396_v23  ;;  %v4574_v4 = vmul.f32 -1.442695, %v6282_v28  ;;  %10225 = vst [vmem:[#allocation30_spill] sm:$0xff] %v6285_v11  ;;  %v6293_v23 = vpop.permute.xlu1 %1825 }
  0xb7   :  { %2205 = vperm.xlu1 %4778, %v5333_v2   ;;  %4713 = vmatmul.mubr.msk.bf16.gmra.mrb[12].mxu0 %vm1127_vm0, %v1251_v27  ;;  %v5022_v43 = vpop.eup %5021  ;;  %v538_v12 = vmul.f32 0.6931472, %v5020_v5  ;;  %5037 = vlog2.f32 %v778_v25  ;;  %v683_v41 = vsub.f32 0.0, %v651_v38  ;;  %v684_v13 = vsub.f32 0.0, %v652_v48  ;;  %v6291_v25 = vld [vmem:[%s10002_s0 + $0xb8] sm:$0xff]  ;;  %10226 = vst [vmem:[#allocation31_spill] sm:$0xff] %v6293_v23 }
  0xb8   :  { %2217 = vperm.xlu0 %4779, %v5334_v24   ;;  %v5024_v26 = vpop.eup %5023  ;;  %v824_v45 = vmul.f32 0.6931472, %v5022_v43  ;;  %5039 = vpow2.f32 %v447_v8  ;;  %v1063_v56 = vmul.f32 %v1031_v42, %v583_v14  ;;  %v5335_v5 = vld [vmem:[%s10003_s1 + $0xd8] sm:$0xff]  ;;  %v5336_v38 = vld [vmem:[%s10003_s1 + $0xf0] sm:$0xff]  ;;  %v4575_v8 = vmul.f32 -1.442695, %v6291_v25  ;;  %v6310_v9 = vpop.permute.xlu0 %1815 }
  0xb9   :  { %v5026_v27 = vpop.eup %5025  ;;  %v584_v2 = vadd.f32 %v538_v12, %v6198_v63  ;;  %v826_v24 = vmul.f32 0.6931472, %v5024_v26  ;;  %5041 = vpow2.f32 %v449_v35  ;;  %v735_v14 = vmul.f32 1.442695, %v683_v41  ;;  %10227 = vst [vmem:[#allocation32_spill] sm:$0xff] %v6310_v9 }
  0xba   :  { %v871_v63 = vadd.f32 %v824_v45, %v615_v52  ;;  %v266_v42 = vsub.f32 1.0, %v5026_v27  ;;  %v906_v26 = vmul.f32 %v5026_v27, %v5026_v27  ;;  %5043 = vpow2.f32 %v4574_v4 }
  0xbb   :  { %2213 = vperm.xlu1 %4778, %v5335_v5   ;;  %v5028_v48 = vpop.eup %5027  ;;  %v872_v12 = vadd.f32 %v826_v24, %v616_v19  ;;  %v1064_v35 = vmul.f32 %v1032_v3, %v584_v2  ;;  %v737_v5 = vmul.f32 1.442695, %v684_v13  ;;  %5045 = vpow2.f32 %v735_v14  ;;  %v5337_v19 = vld [vmem:[%s10003_s1 + $0xe8] sm:$0xff]  ;;  %v6317_v24 = vpop.permute.xlu1 %1829 }
  0xbc   :  { %2225 = vperm.xlu0 %4779, %v5336_v38   ;;  %v1267_v43 = vld [vmem:[#allocation3 + $0x38] sm:$0xff]  ;;  %v5030_v17 = vpop.eup %5029  ;;  %v967_v38 = vmul.f32 %v6246_v40, %v871_v63  ;;  %v540_v16 = vmul.f32 0.6931472, %v5028_v48  ;;  %v1002_v55 = vmul.f32 %v266_v42, %v266_v42  ;;  %v10019_v49 = vsub.f32 0.0, %v6282_v28  ;;  %10228 = vst [vmem:[#allocation33_spill] sm:$0xff] %v6317_v24 }
  0xbd   :  { %4677 = vmatmul.mubr.msk.bf16.gmra.mrb[12].mxu1 %vm1127_vm0, %v1267_v43  ;;  %v5032_v52 = vpop.eup %5031  ;;  %v968_v45 = vmul.f32 %v6248_v33, %v872_v12  ;;  %v542_v41 = vmul.f32 0.6931472, %v5030_v17  ;;  %5047 = vpow2.f32 %v737_v5  ;;  %v937_v42 = vmul.f32 0.75, %v6265_v44 }
  0xbe   :  { %v5034_v3 = vpop.eup %5033  ;;  %v1095_v13 = vsub.f32 %v1063_v56, %v967_v38  ;;  %v585_v40 = vadd.f32 %v540_v16, %v6206_v57  ;;  %v1034_v27 = vmul.f32 0.25, %v1002_v55  ;;  %v171_v4 = vadd.f32 1.0, %v5032_v52 }
  0xbf   :  { %2221 = vperm.xlu1 %4778, %v5337_v19   ;;  %v1096_v2 = vsub.f32 %v1064_v35, %v968_v45  ;;  %v586_v33 = vadd.f32 %v542_v41, %v6210_v53  ;;  %v172_v17 = vadd.f32 1.0, %v5034_v3  ;;  %v938_v14 = vmul.f32 0.75, %v906_v26  ;;  %v5338_v53 = vld [vmem:[%s10003_s1 + $0xf8] sm:$0xff]  ;;  %v6330_v41 = vpop.permute.xlu0 %1819 }
  0xc0   :  { %v5036_v63 = vpop.eup %5035  ;;  %5049 = vrcp.f32 %v171_v4  ;;  %v10018_v48 = vsub.f32 0.0, %v6291_v25  ;;  %v1065_v57 = vmul.f32 %v6276_v21, %v585_v40  ;;  %v365_v44 = vand.u32 2147483647, %v10019_v49  ;;  %10230 = vst [vmem:[#allocation34_spill] sm:$0xff] %v6330_v41 }
  0xc1   :  { %v5038_v43 = vpop.eup %5037  ;;  %v1119_v56 = vpack.c.bf16 %v1096_v2, %v1095_v13  ;;  %v828_v12 = vmul.f32 0.6931472, %v5036_v63  ;;  %5051 = vrcp.f32 %v172_v17  ;;  %v1066_v5 = vmul.f32 %v1034_v27, %v586_v33  ;;  %v6336_v63 = vpop.permute.xlu1 %1833 }
  0xc2   :  { %v5040_v16 = vpop.eup %5039  ;;  %v830_v35 = vmul.f32 0.6931472, %v5038_v43  ;;  %5053 = vpow2.f32 %v4575_v8  ;;  %v10229_v21 = vmax.f32 %v6110_v7, 0.0  ;;  %v10231_v19 = vmax.f32 %v6134_v62, 0.0  ;;  %10232 = vst [vmem:[#allocation35_spill] sm:$0xff] %v6336_v63 }
  0xc3   :  { %2229 = vperm.xlu1 %4778, %v5338_v53   ;;  %v5042_v26 = vpop.eup %5041  ;;  %v1160_v38 = vunpack.c.l.bf16 %v1119_v56  ;;  %v1161_v55 = vunpack.c.h.bf16 %v1119_v56  ;;  %1136 = vst.msk [vmem:[#allocation2 + $0x40] sm:$0xff] %vm1127_vm0, %v1119_v56  ;;  %v491_v45 = vadd.f32 1.0, %v5040_v16  ;;  %v366_v8 = vand.u32 2147483647, %v10018_v48 }
  0xc4   :  { %v873_v52 = vadd.f32 %v828_v12, %v10229_v21  ;;  %v874_v3 = vadd.f32 %v830_v35, %v10231_v19  ;;  %v492_v40 = vadd.f32 1.0, %v5042_v26  ;;  %v397_v27 = vsub.f32 0.0, %v365_v44  ;;  %v5044_v43 = vpop.eup %5043 }
  0xc5   :  { %v1192_v4 = vsub.f32 %v1095_v13, %v1160_v38  ;;  %v1193_v33 = vsub.f32 %v1096_v2, %v1161_v55  ;;  %5055 = vlog2.f32 %v491_v45  ;;  %v398_v56 = vsub.f32 0.0, %v366_v8  ;;  %v5046_v12 = vpop.eup %5045  ;;  %v6342_v44 = vpop.permute.xlu1 %1913 }
  0xc6   :  { %v969_v17 = vmul.f32 %v937_v42, %v873_v52  ;;  %v970_v7 = vmul.f32 %v938_v14, %v874_v3  ;;  %5057 = vlog2.f32 %v492_v40  ;;  %v451_v62 = vmul.f32 1.442695, %v397_v27  ;;  %v6340_v42 = vpop.permute.xlu0 %1823  ;;  %10234 = vst [vmem:[#allocation37_spill] sm:$0xff] %v6342_v44 }
  0xc7   :  { %v1216_v53 = vpack.c.bf16 %v1193_v33, %v1192_v4  ;;  %v779_v26 = vadd.f32 1.0, %v5046_v12  ;;  %v453_v21 = vmul.f32 1.442695, %v398_v56  ;;  %v5048_v19 = vpop.eup %5047  ;;  %v173_v13 = vadd.f32 1.0, %v5044_v43  ;;  %10233 = vst [vmem:[#allocation36_spill] sm:$0xff] %v6340_v42 }
  0xc8   :  { %v1097_v16 = vsub.f32 %v1065_v57, %v969_v17  ;;  %v1098_v35 = vsub.f32 %v1066_v5, %v970_v7  ;;  %5059 = vpow2.f32 %v451_v62  ;;  %v653_v2 = vand.u32 2147483647, %v6282_v28 }
  0xc9   :  { %1232 = vst.msk [vmem:[#allocation3 + $0x40] sm:$0xff] %vm1127_vm0, %v1216_v53  ;;  %v780_v52 = vadd.f32 1.0, %v5048_v19  ;;  %5061 = vlog2.f32 %v779_v26  ;;  %v654_v57 = vand.u32 2147483647, %v6291_v25  ;;  %v6349_v43 = vpop.permute.xlu1 %1917  ;;  %v10237_v62 = vsub.f32 0.0, %v6223_v60 }
  0xca   :  { %v5050_v14 = vpop.eup %5049  ;;  %v1252_v38 = vld [vmem:[#allocation2 + $0x40] sm:$0xff]  ;;  %v1120_v55 = vpack.c.bf16 %v1098_v35, %v1097_v16  ;;  %5063 = vpow2.f32 %v453_v21  ;;  %v685_v3 = vsub.f32 0.0, %v653_v2  ;;  %v6347_v17 = vpop.permute.xlu0 %1827  ;;  %10236 = vst [vmem:[#allocation39_spill] sm:$0xff] %v6349_v43 }
  0xcb   :  { %v5052_v5 = vpop.eup %5051  ;;  %4716 = vmatprep.mubr.msk.bf16.mxu0 %vm1127_vm0, %v1252_v38  ;;  %v267_v45 = vsub.f32 1.0, %v5050_v14  ;;  %5065 = vlog2.f32 %v780_v52  ;;  %10235 = vst [vmem:[#allocation38_spill] sm:$0xff] %v6347_v17  ;;  %v686_v12 = vsub.f32 0.0, %v654_v57  ;;  %v331_v26 = vmax.f32 %v10237_v62, 0.0  ;;  %v6359_v57 = vld [vmem:[%s10002_s0 + $0xc0] sm:$0xff] }
  0xcc   :  { %v5054_v40 = vpop.eup %5053  ;;  %v1162_v8 = vunpack.c.l.bf16 %v1120_v55  ;;  %v1163_v27 = vunpack.c.h.bf16 %v1120_v55  ;;  %1137 = vst.msk [vmem:[#allocation2 + $0x48] sm:$0xff] %vm1127_vm0, %v1120_v55  ;;  %v268_v4 = vsub.f32 1.0, %v5052_v5  ;;  %5067 = vrcp.f32 %v173_v13 }
  0xcd   :  { %v174_v33 = vadd.f32 1.0, %v5054_v40  ;;  %v1003_v21 = vmul.f32 %v267_v45, %v267_v45  ;;  %v739_v19 = vmul.f32 1.442695, %v685_v3  ;;  %v10238_v52 = vsub.f32 0.0, %v6232_v39  ;;  %v6364_v45 = vld [vmem:[%s10002_s0 + $0xc8] sm:$0xff] }
  0xce   :  { %v1194_v7 = vsub.f32 %v1097_v16, %v1162_v8  ;;  %v1195_v56 = vsub.f32 %v1098_v35, %v1163_v27  ;;  %v741_v49 = vmul.f32 1.442695, %v686_v12  ;;  %v907_v35 = vmul.f32 %v5050_v14, %v5050_v14  ;;  %v6366_v3 = vpop.permute.xlu0 %1831  ;;  %v6368_v8 = vpop.permute.xlu1 %1925 }
  0xcf   :  { %v5056_v53 = vpop.eup %5055  ;;  %5069 = vrcp.f32 %v174_v33  ;;  %v332_v40 = vmax.f32 %v10238_v52, 0.0  ;;  %v1004_v13 = vmul.f32 %v268_v4, %v268_v4  ;;  %10239 = vst [vmem:[#allocation40_spill] sm:$0xff] %v6366_v3  ;;  %10240 = vst [vmem:[#allocation41_spill] sm:$0xff] %v6368_v8  ;;  %v619_v14 = vmax.f32 %v6223_v60, 0.0 }
  0xd0   :  { %v5058_v2 = vpop.eup %5057  ;;  %v1268_v38 = vld [vmem:[#allocation3 + $0x40] sm:$0xff]  ;;  %v1217_v55 = vpack.c.bf16 %v1195_v56, %v1194_v7  ;;  %v544_v48 = vmul.f32 0.6931472, %v5056_v53  ;;  %5071 = vpow2.f32 %v739_v19  ;;  %v908_v27 = vmul.f32 %v5052_v5, %v5052_v5 }
  0xd1   :  { %4680 = vmatprep.mubr.msk.bf16.mxu1 %vm1127_vm0, %v1268_v38  ;;  %v546_v16 = vmul.f32 0.6931472, %v5058_v2  ;;  %5073 = vpow2.f32 %v741_v49  ;;  %v4576_v4 = vmul.f32 -1.442695, %v6359_v57  ;;  %v620_v12 = vmax.f32 %v6232_v39, 0.0 }
  0xd2   :  { %1233 = vst.msk [vmem:[#allocation3 + $0x48] sm:$0xff] %vm1127_vm0, %v1217_v55  ;;  %v5060_v33 = vpop.eup %5059  ;;  %v587_v56 = vadd.f32 %v544_v48, %v331_v26  ;;  %v1035_v53 = vmul.f32 0.25, %v1003_v21  ;;  %v4577_v62 = vmul.f32 -1.442695, %v6364_v45  ;;  %v939_v52 = vmul.f32 0.75, %v907_v35  ;;  %v6378_v48 = vpop.permute.xlu0 %1909 }
  0xd3   :  { %v1253_v7 = vld [vmem:[#allocation2 + $0x48] sm:$0xff]  ;;  %v5062_v19 = vpop.eup %5061  ;;  %v493_v2 = vadd.f32 1.0, %v5060_v33  ;;  %5075 = vpow2.f32 %v4576_v4  ;;  %v588_v5 = vadd.f32 %v546_v16, %v332_v40  ;;  %v1036_v3 = vmul.f32 0.25, %v1004_v13  ;;  %10241 = vst [vmem:[#allocation42_spill] sm:$0xff] %v6378_v48  ;;  %v6380_v39 = vpop.permute.xlu1 %1933 }
  0xd4   :  { %4717 = vmatmul.mubr.msk.bf16.gmra.mrb[16].mxu0 %vm1127_vm0, %v1253_v7  ;;  %v5064_v49 = vpop.eup %5063  ;;  %v832_v55 = vmul.f32 0.6931472, %v5062_v19  ;;  %10242 = vst [vmem:[#allocation43_spill] sm:$0xff] %v6380_v39  ;;  %v940_v21 = vmul.f32 0.75, %v908_v27  ;;  %v1067_v4 = vmul.f32 %v1035_v53, %v587_v56  ;;  %v10243_v60 = vsub.f32 0.0, %v6282_v28 }
  0xd5   :  { %v5066_v26 = vpop.eup %5065  ;;  %v494_v17 = vadd.f32 1.0, %v5064_v49  ;;  %5077 = vlog2.f32 %v493_v2  ;;  %v10244_v40 = vsub.f32 0.0, %v6359_v57  ;;  %v10245_v35 = vsub.f32 0.0, %v6364_v45 }
  0xd6   :  { %v834_v7 = vmul.f32 0.6931472, %v5066_v26  ;;  %v875_v33 = vadd.f32 %v832_v55, %v619_v14  ;;  %5079 = vpow2.f32 %v4577_v62  ;;  %v5068_v38 = vpop.eup %5067  ;;  %v6384_v42 = vmax.f32 %v10243_v60, 0.0  ;;  %v6393_v53 = vpop.permute.xlu0 %1921 }
  0xd7   :  { %5081 = vlog2.f32 %v494_v17  ;;  %v367_v16 = vand.u32 2147483647, %v10244_v40  ;;  %v368_v13 = vand.u32 2147483647, %v10245_v35  ;;  %v1068_v14 = vmul.f32 %v1036_v3, %v588_v5  ;;  %10246 = vst [vmem:[#allocation44_spill] sm:$0xff] %v6393_v53  ;;  %v6395_v62 = vpop.permute.xlu1 %1941 }
  0xd8   :  { %v876_v2 = vadd.f32 %v834_v7, %v620_v12  ;;  %v971_v49 = vmul.f32 %v939_v52, %v875_v33  ;;  %v655_v56 = vand.u32 2147483647, %v6359_v57  ;;  %10247 = vst [vmem:[#allocation45_spill] sm:$0xff] %v6395_v62  ;;  %v10248_v17 = vsub.f32 0.0, %v6291_v25 }
  0xd9   :  { %v6390_v19 = vpop.eup %5069  ;;  %v1269_v27 = vld [vmem:[#allocation3 + $0x48] sm:$0xff]  ;;  %v909_v55 = vmul.f32 %v5068_v38, %v5068_v38  ;;  %v399_v26 = vsub.f32 0.0, %v367_v16  ;;  %v400_v40 = vsub.f32 0.0, %v368_v13  ;;  %v269_v52 = vsub.f32 1.0, %v5068_v38  ;;  %v6408_v16 = vld [vmem:[%s10002_s0 + $0xd0] sm:$0xff] }
  0xda   :  { %4681 = vmatmul.mubr.msk.bf16.gmra.mrb[16].mxu1 %vm1127_vm0, %v1269_v27  ;;  %v6400_v60 = vmax.f32 %v10248_v17, 0.0  ;;  %v5072_v35 = vpop.eup %5071  ;;  %v972_v41 = vmul.f32 %v940_v21, %v876_v2  ;;  %v1099_v12 = vsub.f32 %v1067_v4, %v971_v49  ;;  %v656_v3 = vand.u32 2147483647, %v6364_v45  ;;  %v6410_v21 = vpop.permute.xlu0 %1929 }
  0xdb   :  { %v5074_v5 = vpop.eup %5073  ;;  %v270_v7 = vsub.f32 1.0, %v6390_v19  ;;  %v781_v33 = vadd.f32 1.0, %v5072_v35  ;;  %v455_v63 = vmul.f32 1.442695, %v399_v26  ;;  %v687_v62 = vsub.f32 0.0, %v655_v56  ;;  %10249 = vst [vmem:[#allocation46_spill] sm:$0xff] %v6410_v21  ;;  %v6412_v38 = vpop.permute.xlu1 %1949 }
  0xdc   :  { %v1100_v27 = vsub.f32 %v1068_v14, %v972_v41  ;;  %v782_v17 = vadd.f32 1.0, %v5074_v5  ;;  %v688_v9 = vsub.f32 0.0, %v656_v3  ;;  %v6415_v2 = vmul.f32 0.75, %v909_v55  ;;  %v6420_v26 = vld [vmem:[%s10002_s0 + $0xd8] sm:$0xff] }
  0xdd   :  { %v5076_v4 = vpop.eup %5075  ;;  %5083 = vlog2.f32 %v781_v33  ;;  %v457_v41 = vmul.f32 1.442695, %v400_v40  ;;  %v1005_v14 = vmul.f32 %v269_v52, %v269_v52  ;;  %v1006_v3 = vmul.f32 %v270_v7, %v270_v7 }
  0xde   :  { %v1121_v49 = vpack.c.bf16 %v1100_v27, %v1099_v12  ;;  %5085 = vlog2.f32 %v782_v17  ;;  %v175_v56 = vadd.f32 1.0, %v5076_v4  ;;  %v743_v5 = vmul.f32 1.442695, %v687_v62  ;;  %v6425_v17 = vpop.permute.xlu0 %1937 }
  0xdf   :  { %v5078_v35 = vpop.eup %5077  ;;  %5087 = vpow2.f32 %v455_v63  ;;  %v745_v40 = vmul.f32 1.442695, %v688_v9  ;;  %v4578_v52 = vmul.f32 -1.442695, %v6408_v16  ;;  %10250 = vst [vmem:[#allocation47_spill] sm:$0xff] %v6425_v17  ;;  %v6427_v4 = vpop.permute.xlu1 %1957  ;;  %v10020_v63 = vsub.f32 0.0, %v6420_v26 }
  0xe0   :  { %v5080_v13 = vpop.eup %5079  ;;  %v1164_v33 = vunpack.c.l.bf16 %v1121_v49  ;;  %v1165_v55 = vunpack.c.h.bf16 %v1121_v49  ;;  %1138 = vst.msk [vmem:[#allocation2 + $0x50] sm:$0xff] %vm1127_vm0, %v1121_v49  ;;  %v548_v8 = vmul.f32 0.6931472, %v5078_v35  ;;  %5089 = vpow2.f32 %v457_v41 }
  0xe1   :  { %v5082_v21 = vpop.eup %5081  ;;  %v176_v53 = vadd.f32 1.0, %v5080_v13  ;;  %5091 = vrcp.f32 %v175_v56  ;;  %v4579_v39 = vmul.f32 -1.442695, %v6420_v26  ;;  %v10251_v9 = vsub.f32 0.0, %v6408_v16 }
  0xe2   :  { %v1196_v62 = vsub.f32 %v1099_v12, %v1164_v33  ;;  %v1197_v7 = vsub.f32 %v1100_v27, %v1165_v55  ;;  %v550_v24 = vmul.f32 0.6931472, %v5082_v21  ;;  %v370_v17 = vand.u32 2147483647, %v10020_v63  ;;  %v6437_v35 = vpop.permute.xlu0 %1945 }
  0xe3   :  { %5093 = vrcp.f32 %v176_v53  ;;  %v369_v49 = vand.u32 2147483647, %v10251_v9  ;;  %v910_v13 = vmul.f32 %v6390_v19, %v6390_v19  ;;  %v1037_v41 = vmul.f32 0.25, %v1005_v14  ;;  %10252 = vst [vmem:[#allocation48_spill] sm:$0xff] %v6437_v35  ;;  %v6439_v12 = vpop.permute.xlu1 %1965 }
  0xe4   :  { %v1218_v43 = vpack.c.bf16 %v1197_v7, %v1196_v62  ;;  %5095 = vpow2.f32 %v743_v5  ;;  %v589_v27 = vadd.f32 %v548_v8, %v6384_v42  ;;  %v402_v21 = vsub.f32 0.0, %v370_v17 }
  0xe5   :  { %5097 = vpow2.f32 %v745_v40  ;;  %v401_v53 = vsub.f32 0.0, %v369_v49  ;;  %v1038_v56 = vmul.f32 0.25, %v1006_v3  ;;  %v10253_v33 = vsub.f32 0.0, %v6359_v57 }
  0xe6   :  { %1234 = vst.msk [vmem:[#allocation3 + $0x50] sm:$0xff] %vm1127_vm0, %v1218_v43  ;;  %5099 = vpow2.f32 %v4578_v52  ;;  %v657_v19 = vand.u32 2147483647, %v6408_v16  ;;  %v590_v62 = vadd.f32 %v550_v24, %v6400_v60  ;;  %v461_v42 = vmul.f32 1.442695, %v402_v21  ;;  %v6455_v9 = vpop.permute.xlu0 %1953 }
  0xe7   :  { %v6445_v55 = vmax.f32 %v10253_v33, 0.0  ;;  %v5084_v14 = vpop.eup %5083  ;;  %v1254_v5 = vld [vmem:[#allocation2 + $0x50] sm:$0xff]  ;;  %5101 = vpow2.f32 %v4579_v39  ;;  %v459_v7 = vmul.f32 1.442695, %v401_v53  ;;  %v10254_v43 = vsub.f32 0.0, %v6364_v45  ;;  %10255 = vst [vmem:[#allocation49_spill] sm:$0xff] %v6455_v9  ;;  %v6457_v49 = vpop.permute.xlu1 %1973 }
  0xe8   :  { %v5086_v8 = vpop.eup %5085  ;;  %4720 = vmatprep.mubr.msk.bf16.mxu0 %vm1127_vm0, %v1254_v5  ;;  %v836_v40 = vmul.f32 0.6931472, %v5084_v14  ;;  %v658_v17 = vand.u32 2147483647, %v6420_v26  ;;  %v689_v52 = vsub.f32 0.0, %v657_v19  ;;  %v942_v39 = vmul.f32 0.75, %v910_v13 }
  0xe9   :  { %v6452_v3 = vmax.f32 %v10254_v43, 0.0  ;;  %v5088_v33 = vpop.eup %5087  ;;  %v838_v24 = vmul.f32 0.6931472, %v5086_v8  ;;  %v1069_v60 = vmul.f32 %v1037_v41, %v589_v27  ;;  %5103 = vpow2.f32 %v459_v7  ;;  %v6464_v43 = vld [vmem:[%s10002_s0 + $0xe0] sm:$0xff] }
  0xea   :  { %v10256_v53 = vmax.f32 %v6282_v28, 0.0  ;;  %v495_v14 = vadd.f32 1.0, %v5088_v33  ;;  %5105 = vpow2.f32 %v461_v42  ;;  %v690_v5 = vsub.f32 0.0, %v658_v17  ;;  %v5090_v19 = vpop.eup %5089  ;;  %v6470_v42 = vpop.permute.xlu0 %1961 }
  0xeb   :  { %v10257_v63 = vmax.f32 %v6291_v25, 0.0  ;;  %v1070_v35 = vmul.f32 %v1038_v56, %v590_v62  ;;  %v747_v8 = vmul.f32 1.442695, %v689_v52  ;;  %v4580_v13 = vmul.f32 -1.442695, %v6464_v43  ;;  %v5092_v41 = vpop.eup %5091  ;;  %10258 = vst [vmem:[#allocation50_spill] sm:$0xff] %v6470_v42 }
  0xec   :  { %v877_v21 = vadd.f32 %v836_v40, %v10256_v53  ;;  %v496_v27 = vadd.f32 1.0, %v5090_v19  ;;  %5107 = vlog2.f32 %v495_v14  ;;  %v749_v7 = vmul.f32 1.442695, %v690_v5  ;;  %v6472_v40 = vpop.permute.xlu1 %1981 }
  0xed   :  { %v878_v9 = vadd.f32 %v838_v24, %v10257_v63  ;;  %v5094_v17 = vpop.eup %5093  ;;  %v1270_v33 = vld [vmem:[#allocation3 + $0x50] sm:$0xff]  ;;  %5109 = vpow2.f32 %v747_v8  ;;  %v10260_v24 = vsub.f32 0.0, %v6420_v26  ;;  %v271_v8 = vsub.f32 1.0, %v5092_v41 }
  0xee   :  { %v973_v28 = vmul.f32 %v6415_v2, %v877_v21  ;;  %v5096_v56 = vpop.eup %5095  ;;  %4684 = vmatprep.mubr.msk.bf16.mxu1 %vm1127_vm0, %v1270_v33  ;;  %5111 = vlog2.f32 %v496_v27  ;;  %v10259_v2 = vsub.f32 0.0, %v6408_v16  ;;  %v6486_v33 = vmul.f32 %v5092_v41, %v5092_v41 }
  0xef   :  { %v974_v53 = vmul.f32 %v942_v39, %v878_v9  ;;  %v6483_v21 = vmax.f32 %v10260_v24, 0.0  ;;  %v5098_v14 = vpop.eup %5097  ;;  %v783_v39 = vadd.f32 1.0, %v5096_v56  ;;  %5113 = vpow2.f32 %v749_v7 }
  0xf0   :  { %v1101_v62 = vsub.f32 %v1069_v60, %v973_v28  ;;  %v6479_v52 = vmax.f32 %v10259_v2, 0.0  ;;  %v5100_v19 = vpop.eup %5099  ;;  %v784_v63 = vadd.f32 1.0, %v5098_v14  ;;  %v6491_v60 = vld [vmem:[%s10002_s0 + $0xe8] sm:$0xff]  ;;  %5115 = vpow2.f32 %v4580_v13  ;;  %v6493_v28 = vpop.permute.xlu0 %1969 }
  0xf1   :  { %v1102_v9 = vsub.f32 %v1070_v35, %v974_v53  ;;  %10261 = vst [vmem:[#allocation51_spill] sm:$0xff] %v6493_v28  ;;  %v6495_v27 = vpop.permute.xlu1 %1989  ;;  %v5102_v35 = vpop.eup %5101  ;;  %5117 = vlog2.f32 %v783_v39  ;;  %v177_v56 = vadd.f32 1.0, %v5100_v19  ;;  %v4581_v7 = vmul.f32 -1.442695, %v6491_v60 }
  0xf2   :  { %v272_v2 = vsub.f32 1.0, %v5094_v17  ;;  %5119 = vlog2.f32 %v784_v63  ;;  %v178_v41 = vadd.f32 1.0, %v5102_v35  ;;  %v10021_v24 = vsub.f32 0.0, %v6464_v43 }
  0xf3   :  { %v1122_v53 = vpack.c.bf16 %v1102_v9, %v1101_v62  ;;  %v5104_v14 = vpop.eup %5103  ;;  %5121 = vrcp.f32 %v177_v56  ;;  %v10022_v13 = vsub.f32 0.0, %v6491_v60  ;;  %v1007_v42 = vmul.f32 %v271_v8, %v271_v8 }
  0xf4   :  { %v5106_v28 = vpop.eup %5105  ;;  %5123 = vrcp.f32 %v178_v41  ;;  %v497_v39 = vadd.f32 1.0, %v5104_v14  ;;  %v371_v19 = vand.u32 2147483647, %v10021_v24  ;;  %v6503_v48 = vpop.permute.xlu0 %1977  ;;  %v912_v47 = vmul.f32 %v5094_v17, %v5094_v17 }
  0xf5   :  { %v1166_v5 = vunpack.c.l.bf16 %v1122_v53  ;;  %v1167_v25 = vunpack.c.h.bf16 %v1122_v53  ;;  %1139 = vst.msk [vmem:[#allocation2 + $0x58] sm:$0xff] %vm1127_vm0, %v1122_v53  ;;  %10262 = vst [vmem:[#allocation52_spill] sm:$0xff] %v6503_v48  ;;  %v6505_v63 = vpop.permute.xlu1 %1997  ;;  %v498_v11 = vadd.f32 1.0, %v5106_v28  ;;  %5125 = vpow2.f32 %v4581_v7 }
  0xf6   :  { %v5108_v23 = vpop.eup %5107  ;;  %v1008_v53 = vmul.f32 %v272_v2, %v272_v2  ;;  %5127 = vlog2.f32 %v497_v39  ;;  %v372_v56 = vand.u32 2147483647, %v10022_v13  ;;  %v403_v8 = vsub.f32 0.0, %v371_v19 }
  0xf7   :  { %v1198_v35 = vsub.f32 %v1101_v62, %v1166_v5  ;;  %v1199_v44 = vsub.f32 %v1102_v9, %v1167_v25  ;;  %v5110_v41 = vpop.eup %5109  ;;  %v552_v46 = vmul.f32 0.6931472, %v5108_v23  ;;  %5129 = vlog2.f32 %v498_v11 }
  0xf8   :  { %v5112_v24 = vpop.eup %5111  ;;  %v1039_v48 = vmul.f32 0.25, %v1007_v42  ;;  %v785_v59 = vadd.f32 1.0, %v5110_v41  ;;  %v404_v34 = vsub.f32 0.0, %v372_v56  ;;  %v463_v62 = vmul.f32 1.442695, %v403_v8  ;;  %v6509_v25 = vpop.permute.xlu0 %1985 }
  0xf9   :  { %v1219_v14 = vpack.c.bf16 %v1199_v44, %v1198_v35  ;;  %10263 = vst [vmem:[#allocation53_spill] sm:$0xff] %v6509_v25  ;;  %v6511_v9 = vpop.permute.xlu1 %2005  ;;  %v5114_v5 = vpop.eup %5113  ;;  %v554_v28 = vmul.f32 0.6931472, %v5112_v24  ;;  %v591_v7 = vadd.f32 %v552_v46, %v6445_v55  ;;  %v659_v44 = vand.u32 2147483647, %v6464_v43 }
  0xfa   :  { %v660_v23 = vand.u32 2147483647, %v6491_v60  ;;  %v5116_v11 = vpop.eup %5115  ;;  %v1040_v42 = vmul.f32 0.25, %v1008_v53  ;;  %v786_v2 = vadd.f32 1.0, %v5114_v5  ;;  %5131 = vlog2.f32 %v785_v59 }
  0xfb   :  { %1235 = vst.msk [vmem:[#allocation3 + $0x58] sm:$0xff] %vm1127_vm0, %v1219_v14  ;;  %v465_v39 = vmul.f32 1.442695, %v404_v34  ;;  %v5118_v19 = vpop.eup %5117  ;;  %v592_v35 = vadd.f32 %v554_v28, %v6452_v3  ;;  %v943_v56 = vmul.f32 0.75, %v6486_v33  ;;  %5133 = vpow2.f32 %v463_v62 }
  0xfc   :  { %v1255_v17 = vld [vmem:[#allocation2 + $0x58] sm:$0xff]  ;;  %v5120_v46 = vpop.eup %5119  ;;  %v840_v55 = vmul.f32 0.6931472, %v5118_v19  ;;  %v944_v8 = vmul.f32 0.75, %v912_v47  ;;  %5135 = vlog2.f32 %v786_v2  ;;  %v691_v41 = vsub.f32 0.0, %v659_v44  ;;  %v6521_v14 = vpop.permute.xlu0 %1993 }
  0xfd   :  { %4721 = vmatmul.mubr.msk.bf16.gmra.mrb[20].mxu0 %vm1127_vm0, %v1255_v17  ;;  %10264 = vst [vmem:[#allocation54_spill] sm:$0xff] %v6521_v14  ;;  %v6523_v53 = vpop.permute.xlu1 %2013  ;;  %v5122_v59 = vpop.eup %5121  ;;  %v842_v34 = vmul.f32 0.6931472, %v5120_v46  ;;  %v1071_v5 = vmul.f32 %v1039_v48, %v591_v7  ;;  %v179_v17 = vadd.f32 1.0, %v5116_v11  ;;  %v692_v13 = vsub.f32 0.0, %v660_v23  ;;  %v6532_v48 = vld [vmem:[%s10002_s0 + $0xf0] sm:$0xff] }
  0xfe   :  { %v5124_v3 = vpop.eup %5123  ;;  %v10265_v33 = vmax.f32 %v6359_v57, 0.0  ;;  %v1072_v24 = vmul.f32 %v1040_v42, %v592_v35  ;;  %v273_v62 = vsub.f32 1.0, %v5122_v59  ;;  %5137 = vpow2.f32 %v465_v39 }
  0xff   :  { %v5126_v19 = vpop.eup %5125  ;;  %v10266_v47 = vmax.f32 %v6364_v45, 0.0  ;;  %v274_v2 = vsub.f32 1.0, %v5124_v3  ;;  %v913_v14 = vmul.f32 %v5122_v59, %v5122_v59  ;;  %v751_v25 = vmul.f32 1.442695, %v691_v41 }
 0x100   :  { %v879_v28 = vadd.f32 %v840_v55, %v10265_v33  ;;  %v5128_v7 = vpop.eup %5127  ;;  %v1009_v57 = vmul.f32 %v273_v62, %v273_v62  ;;  %v180_v46 = vadd.f32 1.0, %v5126_v19  ;;  %v4582_v42 = vmul.f32 -1.442695, %v6532_v48  ;;  %v6535_v39 = vpop.permute.xlu0 %2001 }
 0x101   :  { %v880_v44 = vadd.f32 %v842_v34, %v10266_v47  ;;  %10267 = vst [vmem:[#allocation55_spill] sm:$0xff] %v6535_v39  ;;  %v6537_v35 = vpop.permute.xlu1 %2021  ;;  %v5130_v45 = vpop.eup %5129  ;;  %v556_v41 = vmul.f32 0.6931472, %v5128_v7  ;;  %v914_v59 = vmul.f32 %v5124_v3, %v5124_v3  ;;  %v1010_v34 = vmul.f32 %v274_v2, %v274_v2 }
 0x102   :  { %v1271_v23 = vld [vmem:[#allocation3 + $0x58] sm:$0xff]  ;;  %v975_v11 = vmul.f32 %v943_v56, %v879_v28  ;;  %v558_v47 = vmul.f32 0.6931472, %v5130_v45  ;;  %v1041_v18 = vmul.f32 0.25, %v1009_v57  ;;  %5139 = vrcp.f32 %v179_v17 }
 0x103   :  { %4685 = vmatmul.mubr.msk.bf16.gmra.mrb[20].mxu1 %vm1127_vm0, %v1271_v23  ;;  %v976_v55 = vmul.f32 %v944_v8, %v880_v44  ;;  %v593_v28 = vadd.f32 %v556_v41, %v6479_v52  ;;  %v945_v62 = vmul.f32 0.75, %v913_v14  ;;  %5141 = vpow2.f32 %v751_v25  ;;  %v6549_v52 = vld [vmem:[%s10002_s0 + $0xf8] sm:$0xff] }
 0x104   :  { %v1103_v33 = vsub.f32 %v1071_v5, %v975_v11  ;;  %v5132_v19 = vpop.eup %5131  ;;  %v594_v39 = vadd.f32 %v558_v47, %v6483_v21  ;;  %v1042_v29 = vmul.f32 0.25, %v1010_v34  ;;  %5143 = vrcp.f32 %v180_v46  ;;  %v6542_v23 = vpop.permute.xlu0 %2009 }
 0x105   :  { %v1104_v56 = vsub.f32 %v1072_v24, %v976_v55  ;;  %v753_v51 = vmul.f32 1.442695, %v692_v13  ;;  %10268 = vst [vmem:[#allocation56_spill] sm:$0xff] %v6542_v23  ;;  %v6544_v8 = vpop.permute.xlu1 %2029  ;;  %v5134_v3 = vpop.eup %5133  ;;  %v844_v44 = vmul.f32 0.6931472, %v5132_v19  ;;  %v946_v2 = vmul.f32 0.75, %v914_v59 }
 0x106   :  { %5145 = vpow2.f32 %v4582_v42  ;;  %v5136_v25 = vpop.eup %5135  ;;  %v1073_v24 = vmul.f32 %v1041_v18, %v593_v28  ;;  %v499_v21 = vadd.f32 1.0, %v5134_v3  ;;  %v4583_v13 = vmul.f32 -1.442695, %v6549_v52 }
 0x107   :  { %v1123_v5 = vpack.c.bf16 %v1104_v56, %v1103_v33  ;;  %5147 = vpow2.f32 %v753_v51  ;;  %v846_v7 = vmul.f32 0.6931472, %v5136_v25  ;;  %v10269_v11 = vmax.f32 %v6408_v16, 0.0 }
 0x108   :  { %v5138_v46 = vpop.eup %5137  ;;  %v1074_v45 = vmul.f32 %v1042_v29, %v594_v39  ;;  %5149 = vlog2.f32 %v499_v21  ;;  %v10024_v55 = vsub.f32 0.0, %v6532_v48  ;;  %v10023_v42 = vsub.f32 0.0, %v6549_v52  ;;  %v6557_v18 = vpop.permute.xlu0 %2017 }
 0x109   :  { %v1168_v14 = vunpack.c.l.bf16 %v1123_v5  ;;  %v1169_v17 = vunpack.c.h.bf16 %v1123_v5  ;;  %1140 = vst.msk [vmem:[#allocation2 + $0x60] sm:$0xff] %vm1127_vm0, %v1123_v5  ;;  %v881_v57 = vadd.f32 %v844_v44, %v10269_v11  ;;  %10270 = vst [vmem:[#allocation57_spill] sm:$0xff] %v6557_v18  ;;  %v6559_v51 = vpop.permute.xlu1 %2105  ;;  %v10272_v34 = vmax.f32 %v6420_v26, 0.0 }
 0x10a   :  { %10271 = vst [vmem:[#allocation58_spill] sm:$0xff] %v6559_v51  ;;  %v500_v19 = vadd.f32 1.0, %v5138_v46  ;;  %5151 = vpow2.f32 %v4583_v13  ;;  %v373_v5 = vand.u32 2147483647, %v10024_v55  ;;  %v374_v44 = vand.u32 2147483647, %v10023_v42 }
 0x10b   :  { %v1200_v41 = vsub.f32 %v1103_v33, %v1168_v14  ;;  %v1201_v59 = vsub.f32 %v1104_v56, %v1169_v17  ;;  %v882_v47 = vadd.f32 %v846_v7, %v10272_v34  ;;  %v977_v28 = vmul.f32 %v945_v62, %v881_v57 }
 0x10c   :  { %v5140_v39 = vpop.eup %5139  ;;  %5153 = vlog2.f32 %v500_v19  ;;  %v6567_v25 = vpop.permute.xlu0 %2025  ;;  %v405_v21 = vsub.f32 0.0, %v373_v5  ;;  %v406_v13 = vsub.f32 0.0, %v374_v44  ;;  %v661_v46 = vand.u32 2147483647, %v6532_v48 }
 0x10d   :  { %v1220_v16 = vpack.c.bf16 %v1201_v59, %v1200_v41  ;;  %v978_v3 = vmul.f32 %v946_v2, %v882_v47  ;;  %v1105_v29 = vsub.f32 %v1073_v24, %v977_v28  ;;  %v6569_v33 = vpop.permute.xlu1 %2113  ;;  %v5142_v26 = vpop.eup %5141  ;;  %v275_v11 = vsub.f32 1.0, %v5140_v39 }
 0x10e   :  { %10273 = vst [vmem:[#allocation59_spill] sm:$0xff] %v6569_v33  ;;  %v6572_v62 = vpop.eup %5143  ;;  %v787_v24 = vadd.f32 1.0, %v5142_v26  ;;  %v467_v57 = vmul.f32 1.442695, %v405_v21  ;;  %v469_v28 = vmul.f32 1.442695, %v406_v13 }
 0x10f   :  { %1236 = vst.msk [vmem:[#allocation3 + $0x60] sm:$0xff] %vm1127_vm0, %v1220_v16  ;;  %v1106_v56 = vsub.f32 %v1074_v45, %v978_v3  ;;  %v10275_v16 = vsub.f32 0.0, %v6464_v43  ;;  %v662_v5 = vand.u32 2147483647, %v6549_v52  ;;  %v693_v44 = vsub.f32 0.0, %v661_v46 }
 0x110   :  { %v1256_v2 = vld [vmem:[#allocation2 + $0x60] sm:$0xff]  ;;  %v5146_v14 = vpop.eup %5145  ;;  %5155 = vlog2.f32 %v787_v24  ;;  %v6576_v41 = vpop.permute.xlu0 %2033  ;;  %v276_v55 = vsub.f32 1.0, %v6572_v62  ;;  %v1011_v18 = vmul.f32 %v275_v11, %v275_v11  ;;  %v6597_v11 = vld [vmem:[%s10003_s1 + $0x8] sm:$0xff]  ;;  %v10288_v51 = vsub.f32 0.0, %v6549_v52 }
 0x111   :  { %4724 = vmatprep.mubr.msk.bf16.mxu0 %vm1127_vm0, %v1256_v2  ;;  %v1124_v17 = vpack.c.bf16 %v1106_v56, %v1105_v29  ;;  %v5148_v7 = vpop.eup %5147  ;;  %v6578_v59 = vpop.permute.xlu1 %2117  ;;  %v339_v3 = vmax.f32 %v10275_v16, 0.0  ;;  %v181_v24 = vadd.f32 1.0, %v5146_v14 }
 0x112   :  { %10274 = vst [vmem:[#allocation60_spill] sm:$0xff] %v6578_v59  ;;  %v788_v47 = vadd.f32 1.0, %v5148_v7  ;;  %v5150_v19 = vpop.eup %5149  ;;  %v694_v59 = vsub.f32 0.0, %v662_v5  ;;  %v342_v61 = vmax.f32 %v10288_v51, 0.0 }
 0x113   :  { %v1170_v45 = vunpack.c.l.bf16 %v1124_v17  ;;  %v1171_v34 = vunpack.c.h.bf16 %v1124_v17  ;;  %1141 = vst.msk [vmem:[#allocation2 + $0x68] sm:$0xff] %vm1127_vm0, %v1124_v17  ;;  %v755_v17 = vmul.f32 1.442695, %v693_v44  ;;  %v1012_v44 = vmul.f32 %v276_v55, %v276_v55 }
 0x114   :  { %5157 = vlog2.f32 %v788_v47  ;;  %v5152_v21 = vpop.eup %5151  ;;  %v6585_v7 = vpop.permute.xlu0 %2109  ;;  %v757_v14 = vmul.f32 1.442695, %v694_v59  ;;  %v10278_v47 = vsub.f32 0.0, %v6491_v60  ;;  %v916_v55 = vmul.f32 %v6572_v62, %v6572_v62 }
 0x115   :  { %v1202_v26 = vsub.f32 %v1105_v29, %v1170_v45  ;;  %v1203_v2 = vsub.f32 %v1106_v56, %v1171_v34  ;;  %5159 = vpow2.f32 %v467_v57  ;;  %10276 = vst [vmem:[#allocation61_spill] sm:$0xff] %v6585_v7  ;;  %v6587_v13 = vpop.permute.xlu1 %2125  ;;  %v182_v46 = vadd.f32 1.0, %v5152_v21 }
 0x116   :  { %v1272_v42 = vld [vmem:[#allocation3 + $0x60] sm:$0xff]  ;;  %10277 = vst [vmem:[#allocation62_spill] sm:$0xff] %v6587_v13  ;;  %5161 = vpow2.f32 %v469_v28  ;;  %v5154_v29 = vpop.eup %5153  ;;  %v560_v56 = vmul.f32 0.6931472, %v5150_v19  ;;  %v915_v45 = vmul.f32 %v5140_v39, %v5140_v39  ;;  %v10027_v57 = vmov 3  }
 0x117   :  { %4688 = vmatprep.mubr.msk.bf16.mxu1 %vm1127_vm0, %v1272_v42  ;;  %v1221_v16 = vpack.c.bf16 %v1203_v2, %v1202_v26  ;;  %5163 = vpow2.f32 %v755_v17  ;;  %4782 = vset.pattern.permute.xlu0 %v10027_v57  ;;  %v340_v5 = vmax.f32 %v10278_v47, 0.0  ;;  %v562_v42 = vmul.f32 0.6931472, %v5154_v29 }
 0x118   :  { %5165 = vrcp.f32 %v181_v24  ;;  %2565 = vperm.xlu0 %4782, %v6597_v11   ;;  %v6600_v59 = vpop.permute.xlu0 %2121  ;;  %v627_v28 = vmax.f32 %v6464_v43, 0.0  ;;  %v595_v26 = vadd.f32 %v560_v56, %v339_v3  ;;  %v1043_v2 = vmul.f32 0.25, %v1011_v18  ;;  %v6614_v43 = vld [vmem:[%s10003_s1 + $0x20] sm:$0xff] }
 0x119   :  { %1237 = vst.msk [vmem:[#allocation3 + $0x68] sm:$0xff] %vm1127_vm0, %v1221_v16  ;;  %5167 = vpow2.f32 %v757_v14  ;;  %10279 = vst [vmem:[#allocation63_spill] sm:$0xff] %v6600_v59  ;;  %v6602_v39 = vpop.permute.xlu1 %2133  ;;  %v10025_v24 = vmov 2   ;;  %v947_v17 = vmul.f32 0.75, %v915_v45  ;;  %v596_v16 = vadd.f32 %v562_v42, %v340_v5 }
 0x11a   :  { %v1257_v34 = vld [vmem:[#allocation2 + $0x68] sm:$0xff]  ;;  %10280 = vst [vmem:[#allocation64_spill] sm:$0xff] %v6602_v39  ;;  %5169 = vrcp.f32 %v182_v46  ;;  %v5156_v19 = vpop.eup %5155  ;;  %4780 = vset.pattern.permute.xlu1 %v10025_v24  ;;  %v628_v29 = vmax.f32 %v6491_v60, 0.0  ;;  %v1044_v14 = vmul.f32 0.25, %v1012_v44  ;;  %v948_v47 = vmul.f32 0.75, %v916_v55 }
 0x11b   :  { %4725 = vmatmul.mubr.msk.bf16.gmra.mrb[24].mxu0 %vm1127_vm0, %v1257_v34  ;;  %v848_v21 = vmul.f32 0.6931472, %v5156_v19  ;;  %2337 = vperm.xlu1 %4780, %v6597_v11   ;;  %v1075_v5 = vmul.f32 %v1043_v2, %v595_v26  ;;  %v6625_v19 = vld [vmem:[%s10003_s1 + $0x10] sm:$0xff] }
 0x11c   :  { %2577 = vperm.xlu0 %4782, %v6614_v43   ;;  %v6617_v62 = vpop.permute.xlu0 %2129  ;;  %v6631_v26 = vld [vmem:[%s10003_s1 + $0x30] sm:$0xff] }
 0x11d   :  { %10281 = vst [vmem:[#allocation65_spill] sm:$0xff] %v6617_v62  ;;  %v6619_v18 = vpop.permute.xlu1 %2141  ;;  %v883_v46 = vadd.f32 %v848_v21, %v627_v28  ;;  %v1076_v28 = vmul.f32 %v1044_v14, %v596_v16 }
 0x11e   :  { %10282 = vst [vmem:[#allocation66_spill] sm:$0xff] %v6619_v18  ;;  %v5158_v3 = vpop.eup %5157 }
 0x11f   :  { %v5160_v56 = vpop.eup %5159  ;;  %v850_v34 = vmul.f32 0.6931472, %v5158_v3  ;;  %v979_v42 = vmul.f32 %v947_v17, %v883_v46  ;;  %2341 = vperm.xlu1 %4780, %v6625_v19  }
 0x120   :  { %v1273_v45 = vld [vmem:[#allocation3 + $0x68] sm:$0xff]  ;;  %v5162_v60 = vpop.eup %5161  ;;  %v501_v44 = vadd.f32 1.0, %v5160_v56  ;;  %2585 = vperm.xlu0 %4782, %v6631_v26   ;;  %v6634_v55 = vpop.permute.xlu0 %2137 }
 0x121   :  { %4689 = vmatmul.mubr.msk.bf16.gmra.mrb[24].mxu1 %vm1127_vm0, %v1273_v45  ;;  %v5164_v24 = vpop.eup %5163  ;;  %v884_v57 = vadd.f32 %v850_v34, %v628_v29  ;;  %v502_v21 = vadd.f32 1.0, %v5162_v60  ;;  %10283 = vst [vmem:[#allocation67_spill] sm:$0xff] %v6634_v55  ;;  %v6636_v2 = vpop.permute.xlu1 %2149  ;;  %v1107_v45 = vsub.f32 %v1075_v5, %v979_v42 }
 0x122   :  { %10284 = vst [vmem:[#allocation68_spill] sm:$0xff] %v6636_v2  ;;  %v5166_v17 = vpop.eup %5165  ;;  %5171 = vlog2.f32 %v501_v44  ;;  %v789_v3 = vadd.f32 1.0, %v5164_v24  ;;  %v6638_v16 = vpop.f32.mrb[0].mxu0  ;;  %v6646_v44 = vld [vmem:[%s10003_s1 + $0x40] sm:$0xff]  ;;  %v10287_v2 = vsub.f32 0.0, %v6532_v48 }
 0x123   :  { %v5168_v46 = vpop.eup %5167  ;;  %v980_v56 = vmul.f32 %v948_v47, %v884_v57  ;;  %5173 = vlog2.f32 %v502_v21  ;;  %2349 = vperm.xlu1 %4780, %v6614_v43   ;;  %v277_v18 = vsub.f32 1.0, %v5166_v17  ;;  %v6655_v21 = vpop.f32.mrb[1].mxu0  ;;  %v917_v62 = vmul.f32 %v5166_v17, %v5166_v17  ;;  %v6686_v17 = vld [vmem:[%s10003_s1 + $0x60] sm:$0xff] }
 0x124   :  { %v5170_v29 = vpop.eup %5169  ;;  %v790_v14 = vadd.f32 1.0, %v5168_v46  ;;  %5175 = vlog2.f32 %v789_v3  ;;  %2593 = vperm.xlu0 %4782, %v6646_v44   ;;  %v6649_v57 = vpop.permute.xlu0 %2145  ;;  %v341_v39 = vmax.f32 %v10287_v2, 0.0 }
 0x125   :  { %v1108_v60 = vsub.f32 %v1076_v28, %v980_v56  ;;  %v6651_v24 = vpop.permute.xlu1 %2157  ;;  %v278_v5 = vsub.f32 1.0, %v5170_v29  ;;  %v1013_v46 = vmul.f32 %v277_v18, %v277_v18  ;;  %v6662_v56 = vld [vmem:[%s10003_s1 + $0x50] sm:$0xff]  ;;  %v6673_v13 = vpop.f32.mrb[2].mxu0  ;;  %v918_v10 = vmul.f32 %v5170_v29, %v5170_v29 }
 0x126   :  { %10285 = vst [vmem:[#allocation69_spill] sm:$0xff] %v6651_v24  ;;  %5177 = vlog2.f32 %v790_v14  ;;  %v6677_v33 = vpop.f32.mrb[3].mxu0 }
 0x127   :  { %v6641_v34 = vpop.f32.mrb[0].mxu1  ;;  %v1125_v47 = vpack.c.bf16 %v1108_v60, %v1107_v45  ;;  %2357 = vperm.xlu1 %4780, %v6631_v26   ;;  %v1014_v59 = vmul.f32 %v278_v5, %v278_v5 }
 0x128   :  { %v6653_v42 = vpop.f32.mrb[1].mxu1  ;;  %2601 = vperm.xlu0 %4782, %v6662_v56   ;;  %v6665_v14 = vpop.permute.xlu0 %2153 }
 0x129   :  { %v1172_v28 = vunpack.c.l.bf16 %v1125_v47  ;;  %v1173_v3 = vunpack.c.h.bf16 %v1125_v47  ;;  %1142 = vst.msk [vmem:[#allocation2 + $0x70] sm:$0xff] %vm1127_vm0, %v1125_v47  ;;  %v6667_v24 = vpop.permute.xlu1 %2165  ;;  %v6671_v55 = vpop.f32.mrb[2].mxu1 }
 0x12a   :  { %10286 = vst [vmem:[#allocation70_spill] sm:$0xff] %v6667_v24  ;;  %v6675_v23 = vpop.f32.mrb[3].mxu1  ;;  %v629_v24 = vmax.f32 %v6532_v48, 0.0 }
 0x12b   :  { %v1204_v47 = vsub.f32 %v1107_v45, %v1172_v28  ;;  %v1205_v18 = vsub.f32 %v1108_v60, %v1173_v3  ;;  %2365 = vperm.xlu1 %4780, %v6646_v44   ;;  %v1045_v45 = vmul.f32 0.25, %v1013_v46  ;;  %v630_v28 = vmax.f32 %v6549_v52, 0.0  ;;  %v6700_v52 = vld [vmem:[%s10003_s1 + $0x70] sm:$0xff] }
 0x12c   :  { %v5172_v7 = vpop.eup %5171  ;;  %2609 = vperm.xlu0 %4782, %v6686_v17   ;;  %v6689_v60 = vpop.permute.xlu0 %2161  ;;  %v949_v3 = vmul.f32 0.75, %v917_v62  ;;  %v1046_v46 = vmul.f32 0.25, %v1014_v59 }
 0x12d   :  { %v5174_v2 = vpop.eup %5173  ;;  %v1222_v50 = vpack.c.bf16 %v1205_v18, %v1204_v47  ;;  %v564_v30 = vmul.f32 0.6931472, %v5172_v7  ;;  %v6691_v5 = vpop.permute.xlu1 %2173 }
 0x12e   :  { %10289 = vst [vmem:[#allocation71_spill] sm:$0xff] %v6691_v5  ;;  %v5176_v51 = vpop.eup %5175  ;;  %v566_v48 = vmul.f32 0.6931472, %v5174_v2  ;;  %v950_v5 = vmul.f32 0.75, %v918_v10  ;;  %v6709_v10 = vld [vmem:[%s10003_s1 + $0x80] sm:$0xff] }
 0x12f   :  { %1238 = vst.msk [vmem:[#allocation3 + $0x70] sm:$0xff] %vm1127_vm0, %v1222_v50  ;;  %v597_v7 = vadd.f32 %v564_v30, %v341_v39  ;;  %v852_v29 = vmul.f32 0.6931472, %v5176_v51  ;;  %2373 = vperm.xlu1 %4780, %v6662_v56  }
 0x130   :  { %v5178_v47 = vpop.eup %5177  ;;  %v1258_v18 = vld [vmem:[#allocation2 + $0x70] sm:$0xff]  ;;  %v598_v22 = vadd.f32 %v566_v48, %v342_v61  ;;  %2617 = vperm.xlu0 %4782, %v6700_v52   ;;  %v2170_v50 = vpop.permute.xlu0 %2169 }
 0x131   :  { %4728 = vmatprep.mubr.msk.bf16.mxu0 %vm1127_vm0, %v1258_v18  ;;  %v854_v32 = vmul.f32 0.6931472, %v5178_v47  ;;  %v885_v20 = vadd.f32 %v852_v29, %v629_v24  ;;  %v1077_v54 = vmul.f32 %v1045_v45, %v597_v7  ;;  %v6703_v30 = vpop.permute.xlu1 %2181 }
 0x132   :  { %10290 = vst [vmem:[#allocation72_spill] sm:$0xff] %v6703_v30  ;;  %v1078_v39 = vmul.f32 %v1046_v46, %v598_v22  ;;  %v6726_v22 = vld [vmem:[%s10003_s1 + $0x90] sm:$0xff]  ;;  %v6739_v46 = vld [vmem:[%s10005_s3 + $0x1] ss:$0 sm:$0xff] }
 0x133   :  { %v886_v59 = vadd.f32 %v854_v32, %v630_v28  ;;  %v981_v61 = vmul.f32 %v949_v3, %v885_v20  ;;  %2381 = vperm.xlu1 %4780, %v6686_v17   ;;  %v2246_v47 = vsub.f32 %v6649_v57, %v6739_v46 }
 0x134   :  { %2625 = vperm.xlu0 %4782, %v6709_v10   ;;  %v6712_v24 = vpop.permute.xlu0 %2177 }
 0x135   :  { %v982_v62 = vmul.f32 %v950_v5, %v886_v59  ;;  %v1109_v2 = vsub.f32 %v1077_v54, %v981_v61  ;;  %v6714_v45 = vpop.permute.xlu1 %2189  ;;  %v6721_v54 = vld [vmem:[%s10005_s3] ss:$0 sm:$0xff] }
 0x136   :  { %10291 = vst [vmem:[#allocation73_spill] sm:$0xff] %v6714_v45  ;;  %v1274_v51 = vld [vmem:[#allocation3 + $0x70] sm:$0xff]  ;;  %v2050_v28 = vsub.f32 %v6412_v38, %v6721_v54  ;;  %v2052_v3 = vsub.f32 %v6427_v4, %v6721_v54  ;;  %v2054_v38 = vsub.f32 %v6439_v12, %v6721_v54  ;;  %v6749_v61 = vld [vmem:[%s10003_s1 + $0xa0] sm:$0xff]  ;;  %v2248_v4 = vsub.f32 %v6665_v14, %v6739_v46 }
 0x137   :  { %4692 = vmatprep.mubr.msk.bf16.mxu1 %vm1127_vm0, %v1274_v51  ;;  %v1110_v20 = vsub.f32 %v1078_v39, %v982_v62  ;;  %2389 = vperm.xlu1 %4780, %v6700_v52   ;;  %v2056_v57 = vsub.f32 %v6457_v49, %v6721_v54 }
 0x138   :  { %2633 = vperm.xlu0 %4782, %v6726_v22   ;;  %v2186_v5 = vpop.permute.xlu0 %2185  ;;  %v2082_v51 = vand.u32 2147483647, %v2050_v28  ;;  %v2084_v12 = vand.u32 2147483647, %v2052_v3  ;;  %v2086_v49 = vand.u32 2147483647, %v2054_v38  ;;  %v2254_v38 = vsub.f32 %v6712_v24, %v6739_v46 }
 0x139   :  { %v1126_v32 = vpack.c.bf16 %v1110_v20, %v1109_v2  ;;  %v6729_v48 = vpop.permute.xlu1 %2197  ;;  %v6772_v3 = vld [vmem:[%s10003_s1 + $0xb0] sm:$0xff] }
 0x13a   :  { %10292 = vst [vmem:[#allocation74_spill] sm:$0xff] %v6729_v48 }
 0x13b   :  { %v1174_v7 = vunpack.c.l.bf16 %v1126_v32  ;;  %v1175_v29 = vunpack.c.h.bf16 %v1126_v32  ;;  %1143 = vst.msk [vmem:[#allocation2 + $0x78] sm:$0xff] %vm1127_vm0, %v1126_v32  ;;  %2397 = vperm.xlu1 %4780, %v6709_v10   ;;  %v2280_v32 = vand.u32 2147483647, %v2248_v4  ;;  %v2088_v4 = vand.u32 2147483647, %v2056_v57 }
 0x13c   :  { %2641 = vperm.xlu0 %4782, %v6749_v61   ;;  %v2194_v39 = vpop.permute.xlu0 %2193  ;;  %v2286_v57 = vand.u32 2147483647, %v2254_v38 }
 0x13d   :  { %v1206_v18 = vsub.f32 %v1109_v2, %v1174_v7  ;;  %v1207_v59 = vsub.f32 %v1110_v20, %v1175_v29  ;;  %v6754_v62 = vpop.permute.xlu1 %2205  ;;  %v2278_v2 = vand.u32 2147483647, %v2246_v47  ;;  %v2250_v7 = vsub.f32 %v6689_v60, %v6739_v46 }
 0x13e   :  { %10293 = vst [vmem:[#allocation75_spill] sm:$0xff] %v6754_v62  ;;  %v2058_v29 = vsub.f32 %v6472_v40, %v6721_v54  ;;  %v2252_v62 = vsub.f32 %v2170_v50, %v6739_v46  ;;  %v2060_v40 = vsub.f32 %v6495_v27, %v6721_v54  ;;  %v6777_v60 = vadd.f32 %v2280_v32, %v2084_v12 }
 0x13f   :  { %v1223_v20 = vpack.c.bf16 %v1207_v59, %v1206_v18  ;;  %2405 = vperm.xlu1 %4780, %v6726_v22   ;;  %v6763_v14 = vadd.f32 %v2278_v2, %v2082_v51  ;;  %v2282_v47 = vand.u32 2147483647, %v2250_v7  ;;  %v2256_v12 = vsub.f32 %v2186_v5, %v6739_v46 }
 0x140   :  { %2649 = vperm.xlu0 %4782, %v6772_v3   ;;  %v2202_v18 = vpop.permute.xlu0 %2201  ;;  %v2284_v51 = vand.u32 2147483647, %v2252_v62  ;;  %v2090_v7 = vand.u32 2147483647, %v2058_v29  ;;  %v2064_v62 = vsub.f32 %v6511_v9, %v6721_v54  ;;  %v2258_v29 = vsub.f32 %v2194_v39, %v6739_v46 }
 0x141   :  { %1239 = vst.msk [vmem:[#allocation3 + $0x78] sm:$0xff] %vm1127_vm0, %v1223_v20  ;;  %v6779_v50 = vpop.permute.xlu1 %2213  ;;  %v2062_v20 = vsub.f32 %v6505_v63, %v6721_v54  ;;  %v6788_v27 = vadd.f32 %v2282_v47, %v2086_v49  ;;  %v6803_v63 = vld [vmem:[%s10003_s1 + $0xc0] sm:$0xff]  ;;  %v2288_v5 = vand.u32 2147483647, %v2256_v12  ;;  %v2066_v9 = vsub.f32 %v6523_v53, %v6721_v54 }
 0x142   :  { %v6766_v28 = vpop.f32.mrb[4].mxu0  ;;  %10294 = vst [vmem:[#allocation76_spill] sm:$0xff] %v6779_v50  ;;  %v1259_v59 = vld [vmem:[#allocation2 + $0x78] sm:$0xff]  ;;  %v6796_v24 = vadd.f32 %v2284_v51, %v2088_v4  ;;  %v6809_v4 = vadd.f32 %v2286_v57, %v2090_v7  ;;  %v2260_v51 = vsub.f32 %v2202_v18, %v6739_v46  ;;  %v2290_v45 = vand.u32 2147483647, %v2258_v29  ;;  %v6822_v18 = vld [vmem:[%s10003_s1 + $0xd0] sm:$0xff] }
 0x143   :  { %v6783_v2 = vpop.f32.mrb[5].mxu0  ;;  %4729 = vmatmul.mubr.msk.bf16.gmra.mrb[28].mxu0 %vm1127_vm0, %v1259_v59  ;;  %2413 = vperm.xlu1 %4780, %v6749_v61   ;;  %v2092_v59 = vand.u32 2147483647, %v2060_v40  ;;  %v2094_v38 = vand.u32 2147483647, %v2062_v20  ;;  %v2068_v39 = vsub.f32 %v6537_v35, %v6721_v54  ;;  %v2069_v20 = vsub.f32 %v6567_v25, %v6721_v54 }
 0x144   :  { %v6791_v32 = vpop.f32.mrb[6].mxu0  ;;  %2657 = vperm.xlu0 %4782, %v6803_v63   ;;  %v2210_v49 = vpop.permute.xlu0 %2209  ;;  %v2096_v36 = vand.u32 2147483647, %v2064_v62  ;;  %v2292_v12 = vand.u32 2147483647, %v2260_v51  ;;  %v2070_v25 = vsub.f32 %v6544_v8, %v6721_v54 }
 0x145   :  { %v6798_v50 = vpop.f32.mrb[7].mxu0  ;;  %v2222_v47 = vpop.permute.xlu1 %2221  ;;  %v6812_v48 = vadd.f32 %v2288_v5, %v2092_v59  ;;  %v2262_v53 = vsub.f32 %v2210_v49, %v6739_v46  ;;  %v6827_v62 = vadd.f32 %v2290_v45, %v2094_v38  ;;  %v2098_v59 = vand.u32 2147483647, %v2066_v9 }
 0x146   :  { %v2071_v5 = vsub.f32 %v6576_v41, %v6721_v54  ;;  %v6831_v29 = vadd.f32 %v2292_v12, %v2096_v36  ;;  %v2265_v0 = vsub.f32 %v2222_v47, %v6739_v46  ;;  %v2100_v15 = vand.u32 2147483647, %v2068_v39  ;;  %v6844_v36 = vld [vmem:[%s10003_s1 + $0xe0] sm:$0xff] }
 0x147   :  { %2421 = vperm.xlu1 %4780, %v6772_v3   ;;  %v2101_v41 = vand.u32 2147483647, %v2069_v20  ;;  %v6849_v39 = vadd.f32 %v6638_v16, %v6641_v34  ;;  %v6862_v20 = vadd.f32 %v6673_v13, %v6671_v55  ;;  %v2102_v16 = vand.u32 2147483647, %v2070_v25 }
 0x148   :  { %v4670_v40 = vpop.f32.mrb[4].mxu1  ;;  %v1275_v6 = vld [vmem:[#allocation3 + $0x78] sm:$0xff]  ;;  %2665 = vperm.xlu0 %4782, %v6822_v18   ;;  %v2218_v57 = vpop.permute.xlu0 %2217  ;;  %v2297_v12 = vand.u32 2147483647, %v2265_v0  ;;  %v2103_v8 = vand.u32 2147483647, %v2071_v5  ;;  %v6866_v0 = vadd.f32 %v6677_v33, %v6675_v23 }
 0x149   :  { %v1387_v30 = vpop.f32.mrb[5].mxu1  ;;  %4693 = vmatmul.mubr.msk.bf16.gmra.mrb[28].mxu1 %vm1127_vm0, %v1275_v6  ;;  %v2230_v35 = vpop.permute.xlu1 %2229  ;;  %v2294_v6 = vand.u32 2147483647, %v2262_v53  ;;  %v2264_v51 = vsub.f32 %v2218_v57, %v6739_v46  ;;  %10295 = vst [vmem:[#allocation77_spill] sm:$0xff] %v6849_v39  ;;  %v6854_v57 = vadd.f32 %v6655_v21, %v6653_v42  ;;  %10299 = vst [vmem:[#allocation81_spill] sm:$0xff] %v6862_v20  ;;  %v10028_v21 = vmov 4  }
 0x14a   :  { %v4671_v7 = vpop.f32.mrb[6].mxu1  ;;  %v2267_v9 = vsub.f32 %v2230_v35, %v6739_v46  ;;  %10300 = vst [vmem:[#allocation82_spill] sm:$0xff] %v6866_v0  ;;  %v6872_v42 = vadd.f32 %v6766_v28, %v4670_v40  ;;  %v6881_v13 = vadd.f32 %v6783_v2, %v1387_v30  ;;  %v6896_v28 = vld [vmem:[%s10003_s1] sm:$0xff]  ;;  %v6903_v30 = vld [vmem:[%s10003_s1 + $0x18] sm:$0xff]  ;;  %v6911_v2 = vld [vmem:[%s10003_s1 + $0x28] sm:$0xff] }
 0x14b   :  { %v1390_v49 = vpop.f32.mrb[7].mxu1  ;;  %2429 = vperm.xlu1 %4780, %v6803_v63   ;;  %v6838_v45 = vadd.f32 %v2294_v6, %v2098_v59  ;;  %v2296_v38 = vand.u32 2147483647, %v2264_v51  ;;  %10296 = vst [vmem:[#allocation78_spill] sm:$0xff] %v6854_v57  ;;  %v6858_v59 = vadd.f32 %v2297_v12, %v2101_v41  ;;  %v6884_v23 = vadd.f32 %v6791_v32, %v4671_v7  ;;  %v6918_v32 = vld [vmem:[%s10003_s1 + $0x38] sm:$0xff]  ;;  %v6925_v7 = vld [vmem:[%s10003_s1 + $0x48] sm:$0xff] }
 0x14c   :  { %2673 = vperm.xlu0 %4782, %v6844_v36   ;;  %v2226_v47 = vpop.permute.xlu0 %2225  ;;  %v2299_v53 = vand.u32 2147483647, %v2267_v9  ;;  %10302 = vst [vmem:[#allocation84_spill] sm:$0xff] %v6872_v42  ;;  %10303 = vst [vmem:[#allocation85_spill] sm:$0xff] %v6881_v13  ;;  %v6887_v33 = vadd.f32 %v6798_v50, %v1390_v49  ;;  %v10306_v50 = vmov 3   ;;  %v6932_v51 = vld [vmem:[%s10003_s1 + $0x58] sm:$0xff] }
 0x14d   :  { %v2266_v54 = vsub.f32 %v2226_v47, %v6739_v46  ;;  %v6856_v35 = vadd.f32 %v2296_v38, %v2100_v15  ;;  %10298 = vst [vmem:[#allocation80_spill] sm:$0xff] %v6858_v59  ;;  %v6877_v15 = vld [vmem:[%s10003_s1 + $0xf0] sm:$0xff]  ;;  %10304 = vst [vmem:[#allocation86_spill] sm:$0xff] %v6884_v23  ;;  %v6943_v12 = vld [vmem:[%s10003_s1 + $0x68] sm:$0xff] }
 0x14e   :  { %v6869_v46 = vadd.f32 %v2299_v53, %v2103_v8  ;;  %10305 = vst [vmem:[#allocation87_spill] sm:$0xff] %v6887_v33  ;;  %v7014_v33 = vld [vmem:[%s10003_s1 + $0xf8] sm:$0xff] }
 0x14f   :  { %10297 = vst [vmem:[#allocation79_spill] sm:$0xff] %v6856_v35  ;;  %2437 = vperm.xlu1 %4780, %v6822_v18   ;;  %v2298_v34 = vand.u32 2147483647, %v2266_v54 }
 0x150   :  { %10301 = vst [vmem:[#allocation83_spill] sm:$0xff] %v6869_v46  ;;  %2681 = vperm.xlu0 %4782, %v6877_v15  }
 0x151   :  { %v6889_v55 = vadd.f32 %v2298_v34, %v2102_v16  ;;  %v6954_v16 = vld [vmem:[%s10003_s1 + $0x78] sm:$0xff]  ;;  %v6961_v34 = vld [vmem:[%s10003_s1 + $0x88] sm:$0xff] }
 0x153   :  { %2445 = vperm.xlu1 %4780, %v6844_v36  }
 0x154   :  { %4783 = vset.pattern.permute.xlu0 %v10028_v21  ;;  %v7003_v21 = vld [vmem:[%s10003_s1 + $0xe8] sm:$0xff] }
 0x155   :  { %2789 = vperm.xlu0 %4783, %v6896_v28  }
 0x157   :  { %2453 = vperm.xlu1 %4780, %v6877_v15  }
 0x159   :  { %2801 = vperm.xlu0 %4783, %v6903_v30  }
 0x15b   :  { %4781 = vset.pattern.permute.xlu1 %v10306_v50  ;;  %v6968_v50 = vld [vmem:[%s10003_s1 + $0x98] sm:$0xff] }
 0x15c   :  { %2561 = vperm.xlu1 %4781, %v6896_v28  }
 0x15d   :  { %2809 = vperm.xlu0 %4783, %v6911_v2  }
 0x160   :  { %2569 = vperm.xlu1 %4781, %v6625_v19  }
 0x161   :  { %2817 = vperm.xlu0 %4783, %v6918_v32  }
 0x164   :  { %2573 = vperm.xlu1 %4781, %v6903_v30  }
 0x165   :  { %2825 = vperm.xlu0 %4783, %v6925_v7  }
 0x167   :  { %v4710_v40 = vpop.f32.mrb[8].mxu0 }
 0x168   :  { %v1612_v5 = vpop.f32.mrb[9].mxu0  ;;  %2581 = vperm.xlu1 %4781, %v6911_v2  }
 0x169   :  { %v4711_v6 = vpop.f32.mrb[10].mxu0  ;;  %2833 = vperm.xlu0 %4783, %v6932_v51  }
 0x16a   :  { %v1615_v49 = vpop.f32.mrb[11].mxu0 }
 0x16c   :  { %2589 = vperm.xlu1 %4781, %v6918_v32  }
 0x16d   :  { %v4674_v25 = vpop.f32.mrb[8].mxu1  ;;  %2841 = vperm.xlu0 %4783, %v6943_v12  }
 0x16e   :  { %v6935_v9 = vadd.f32 %v4710_v40, %v4674_v25  ;;  %v1403_v41 = vpop.f32.mrb[9].mxu1  ;;  %v6975_v40 = vld [vmem:[%s10003_s1 + $0xa8] sm:$0xff]  ;;  %v6996_v25 = vld [vmem:[%s10003_s1 + $0xd8] sm:$0xff] }
 0x16f   :  { %v6938_v38 = vadd.f32 %v1612_v5, %v1403_v41  ;;  %v4675_v47 = vpop.f32.mrb[10].mxu1  ;;  %v6982_v5 = vld [vmem:[%s10003_s1 + $0xb8] sm:$0xff] }
 0x170   :  { %v6946_v8 = vadd.f32 %v4711_v6, %v4675_v47  ;;  %v1406_v54 = vpop.f32.mrb[11].mxu1  ;;  %2597 = vperm.xlu1 %4781, %v6925_v7   ;;  %v6989_v6 = vld [vmem:[%s10003_s1 + $0xc8] sm:$0xff] }
 0x171   :  { %10307 = vst [vmem:[#allocation88_spill] sm:$0xff] %v6938_v38  ;;  %v6948_v53 = vadd.f32 %v1615_v49, %v1406_v54  ;;  %2849 = vperm.xlu0 %4783, %v6954_v16  }
 0x172   :  { %10308 = vst [vmem:[#allocation89_spill] sm:$0xff] %v6946_v8 }
 0x173   :  { %10309 = vst [vmem:[#allocation90_spill] sm:$0xff] %v6948_v53 }
 0x174   :  { %2605 = vperm.xlu1 %4781, %v6932_v51  }
 0x175   :  { %2857 = vperm.xlu0 %4783, %v6961_v34  }
 0x178   :  { %2613 = vperm.xlu1 %4781, %v6943_v12  }
 0x179   :  { %2865 = vperm.xlu0 %4783, %v6968_v50  }
 0x17c   :  { %2621 = vperm.xlu1 %4781, %v6954_v16  }
 0x17d   :  { %2873 = vperm.xlu0 %4783, %v6975_v40  }
 0x180   :  { %2629 = vperm.xlu1 %4781, %v6961_v34  }
 0x181   :  { %2881 = vperm.xlu0 %4783, %v6982_v5  }
 0x184   :  { %2637 = vperm.xlu1 %4781, %v6968_v50  }
 0x185   :  { %2889 = vperm.xlu0 %4783, %v6989_v6  }
 0x188   :  { %2645 = vperm.xlu1 %4781, %v6975_v40  }
 0x189   :  { %2897 = vperm.xlu0 %4783, %v6996_v25  }
 0x18a   :  { %v4714_v49 = vpop.f32.mrb[12].mxu0 }
 0x18b   :  { %v1628_v41 = vpop.f32.mrb[13].mxu0 }
 0x18c   :  { %v4715_v47 = vpop.f32.mrb[14].mxu0  ;;  %2653 = vperm.xlu1 %4781, %v6982_v5  }
 0x18d   :  { %v1631_v54 = vpop.f32.mrb[15].mxu0  ;;  %2905 = vperm.xlu0 %4783, %v7003_v21  }
 0x190   :  { %v4678_v46 = vpop.f32.mrb[12].mxu1  ;;  %2661 = vperm.xlu1 %4781, %v6989_v6  }
 0x191   :  { %v7006_v59 = vadd.f32 %v4714_v49, %v4678_v46  ;;  %v1419_v8 = vpop.f32.mrb[13].mxu1  ;;  %2913 = vperm.xlu0 %4783, %v7014_v33   ;;  %v10029_v46 = vmov 5  }
 0x192   :  { %v7009_v53 = vadd.f32 %v1628_v41, %v1419_v8  ;;  %v4679_v23 = vpop.f32.mrb[14].mxu1 }
 0x193   :  { %v7017_v20 = vadd.f32 %v4715_v47, %v4679_v23  ;;  %v1422_v57 = vpop.f32.mrb[15].mxu1  ;;  %v10317_v47 = vmov 4  }
 0x194   :  { %v7019_v39 = vadd.f32 %v1631_v54, %v1422_v57  ;;  %2669 = vperm.xlu1 %4781, %v6996_v25   ;;  %v2460_v54 = vlaneseq }
 0x195   :  { %10310 = vst [vmem:[#allocation91_spill] sm:$0xff] %v7017_v20  ;;  %4786 = vset.pattern.permute.xlu0 %v10029_v46 }
 0x196   :  { %10311 = vst [vmem:[#allocation92_spill] sm:$0xff] %v7019_v39  ;;  %2957 = vperm.xlu0 %4786, %v6597_v11   ;;  %v7045_v39 = vshrl.u32 %v2460_v54, 7 }
 0x197   :  { %v7024_v8 = vpop.permute.xlu0 %2565 }
 0x198   :  { %10312 = vst [vmem:[#allocation93_spill] sm:$0xff] %v7024_v8  ;;  %2677 = vperm.xlu1 %4781, %v7003_v21   ;;  %10320 = vst [vmem:[#allocation100_spill] sm:$0xff] %v7045_v39 }
 0x19a   :  { %2969 = vperm.xlu0 %4786, %v6614_v43   ;;  %v7028_v49 = vpop.permute.xlu1 %2337 }
 0x19b   :  { %10313 = vst [vmem:[#allocation94_spill] sm:$0xff] %v7028_v49  ;;  %v7030_v23 = vpop.permute.xlu0 %2577 }
 0x19c   :  { %10314 = vst [vmem:[#allocation95_spill] sm:$0xff] %v7030_v23  ;;  %2685 = vperm.xlu1 %4781, %v7014_v33  }
 0x19e   :  { %2977 = vperm.xlu0 %4786, %v6631_v26   ;;  %v7034_v57 = vpop.permute.xlu1 %2341 }
 0x19f   :  { %10315 = vst [vmem:[#allocation96_spill] sm:$0xff] %v7034_v57  ;;  %v7036_v41 = vpop.permute.xlu0 %2585 }
 0x1a0   :  { %10316 = vst [vmem:[#allocation97_spill] sm:$0xff] %v7036_v41  ;;  %4784 = vset.pattern.permute.xlu1 %v10317_v47 }
 0x1a1   :  { %2793 = vperm.xlu1 %4784, %v6597_v11   ;;  %v7054_v11 = vld [vmem:[%s10005_s3 + $0x3] ss:$0 sm:$0xff] }
 0x1a2   :  { %2985 = vperm.xlu0 %4786, %v6646_v44   ;;  %v7041_v46 = vpop.permute.xlu1 %2349 }
 0x1a3   :  { %10318 = vst [vmem:[#allocation98_spill] sm:$0xff] %v7041_v46  ;;  %v7043_v20 = vpop.permute.xlu0 %2593 }
 0x1a4   :  { %10319 = vst [vmem:[#allocation99_spill] sm:$0xff] %v7043_v20  ;;  %v7061_v20 = vld [vmem:[%s10005_s3 + $0x2] ss:$0 sm:$0xff] }
 0x1a5   :  { %2797 = vperm.xlu1 %4784, %v6625_v19   ;;  %10322 = vst [vmem:[#allocation102_spill] sm:$0xff] %v7061_v20 }
 0x1a6   :  { %2993 = vperm.xlu0 %4786, %v6662_v56   ;;  %v7049_v38 = vpop.permute.xlu1 %2357 }
 0x1a7   :  { %10321 = vst [vmem:[#allocation101_spill] sm:$0xff] %v7049_v38  ;;  %v4718_v13 = vpop.f32.mrb[16].mxu0  ;;  %v2602_v42 = vpop.permute.xlu0 %2601 }
 0x1a8   :  { %v1644_v47 = vpop.f32.mrb[17].mxu0  ;;  %v2702_v38 = vsub.f32 %v2602_v42, %v7054_v11 }
 0x1a9   :  { %v4719_v0 = vpop.f32.mrb[18].mxu0  ;;  %2805 = vperm.xlu1 %4784, %v6614_v43  }
 0x1aa   :  { %v1647_v54 = vpop.f32.mrb[19].mxu0  ;;  %3001 = vperm.xlu0 %4786, %v6686_v17   ;;  %v7064_v41 = vpop.permute.xlu1 %2365  ;;  %v2734_v35 = vand.u32 2147483647, %v2702_v38 }
 0x1ab   :  { %10323 = vst [vmem:[#allocation103_spill] sm:$0xff] %v7064_v41  ;;  %v2610_v23 = vpop.permute.xlu0 %2609 }
 0x1ac   :  { %v2704_v42 = vsub.f32 %v2610_v23, %v7054_v11 }
 0x1ad   :  { %v4682_v8 = vpop.f32.mrb[16].mxu1  ;;  %2813 = vperm.xlu1 %4784, %v6631_v26  }
 0x1ae   :  { %v7068_v46 = vadd.f32 %v4718_v13, %v4682_v8  ;;  %v1435_v57 = vpop.f32.mrb[17].mxu1  ;;  %3009 = vperm.xlu0 %4786, %v6700_v52   ;;  %v2374_v43 = vpop.permute.xlu1 %2373 }
 0x1af   :  { %v1645_v39 = vadd.f32 %v1644_v47, %v1435_v57  ;;  %v4683_v49 = vpop.f32.mrb[18].mxu1  ;;  %v2618_v37 = vpop.permute.xlu0 %2617  ;;  %v2474_v31 = vsub.f32 %v2374_v43, %v7061_v20  ;;  %v2736_v43 = vand.u32 2147483647, %v2704_v42 }
 0x1b0   :  { %v7072_v1 = vadd.f32 %v4719_v0, %v4683_v49  ;;  %v1438_v41 = vpop.f32.mrb[19].mxu1 }
 0x1b1   :  { %v7074_v58 = vadd.f32 %v1647_v54, %v1438_v41  ;;  %v2506_v26 = vand.u32 2147483647, %v2474_v31  ;;  %2821 = vperm.xlu1 %4784, %v6646_v44   ;;  %v2706_v31 = vsub.f32 %v2618_v37, %v7054_v11 }
 0x1b2   :  { %10324 = vst [vmem:[#allocation104_spill] sm:$0xff] %v7072_v1  ;;  %3017 = vperm.xlu0 %4786, %v6709_v10   ;;  %v2382_v13 = vpop.permute.xlu1 %2381 }
 0x1b3   :  { %10325 = vst [vmem:[#allocation105_spill] sm:$0xff] %v7074_v58  ;;  %v2538_v8 = vadd.f32 %v2506_v26, %v6763_v14  ;;  %v2626_v57 = vpop.permute.xlu0 %2625  ;;  %v2476_v47 = vsub.f32 %v2382_v13, %v7061_v20  ;;  %v2738_v13 = vand.u32 2147483647, %v2706_v31 }
 0x1b5   :  { %v2766_v0 = vadd.f32 %v2734_v35, %v2538_v8  ;;  %v2508_v49 = vand.u32 2147483647, %v2476_v47  ;;  %2829 = vperm.xlu1 %4784, %v6662_v56   ;;  %v2708_v35 = vsub.f32 %v2626_v57, %v7054_v11 }
 0x1b6   :  { %3025 = vperm.xlu0 %4786, %v6726_v22   ;;  %v2390_v38 = vpop.permute.xlu1 %2389 }
 0x1b7   :  { %v7085_v44 = vadd.f32 %v2766_v0, %v6935_v9  ;;  %v2540_v23 = vadd.f32 %v2508_v49, %v6777_v60  ;;  %v2634_v41 = vpop.permute.xlu0 %2633  ;;  %v2478_v14 = vsub.f32 %v2390_v38, %v7061_v20 }
 0x1b8   :  { %v2710_v49 = vsub.f32 %v2634_v41, %v7054_v11 }
 0x1b9   :  { %10326 = vst [vmem:[#allocation106_spill] sm:$0xff] %v7085_v44  ;;  %v2510_v54 = vand.u32 2147483647, %v2478_v14  ;;  %v2768_v26 = vadd.f32 %v2736_v43, %v2540_v23  ;;  %2837 = vperm.xlu1 %4784, %v6686_v17   ;;  %v2740_v43 = vand.u32 2147483647, %v2708_v35 }
 0x1ba   :  { %3033 = vperm.xlu0 %4786, %v6749_v61   ;;  %v2398_v42 = vpop.permute.xlu1 %2397 }
 0x1bb   :  { %v2542_v37 = vadd.f32 %v2510_v54, %v6788_v27  ;;  %v2642_v8 = vpop.permute.xlu0 %2641  ;;  %v7094_v9 = vadd.f32 %v2768_v26, %v7009_v53  ;;  %v2480_v60 = vsub.f32 %v2398_v42, %v7061_v20  ;;  %v2742_v26 = vand.u32 2147483647, %v2710_v49 }
 0x1bd   :  { %10327 = vst [vmem:[#allocation107_spill] sm:$0xff] %v7094_v9  ;;  %v2770_v47 = vadd.f32 %v2738_v13, %v2542_v37  ;;  %v2512_v0 = vand.u32 2147483647, %v2480_v60  ;;  %2845 = vperm.xlu1 %4784, %v6700_v52  }
 0x1be   :  { %3041 = vperm.xlu0 %4786, %v6772_v3   ;;  %v2406_v57 = vpop.permute.xlu1 %2405 }
 0x1bf   :  { %v7101_v38 = vadd.f32 %v2770_v47, %v7006_v59  ;;  %v2544_v27 = vadd.f32 %v2512_v0, %v6796_v24  ;;  %v2650_v31 = vpop.permute.xlu0 %2649  ;;  %v2482_v53 = vsub.f32 %v2406_v57, %v7061_v20 }
 0x1c0   :  { %v2714_v57 = vsub.f32 %v2650_v31, %v7054_v11 }
 0x1c1   :  { %10328 = vst [vmem:[#allocation108_spill] sm:$0xff] %v7101_v38  ;;  %v2514_v23 = vand.u32 2147483647, %v2482_v53  ;;  %v2772_v14 = vadd.f32 %v2740_v43, %v2544_v27  ;;  %2853 = vperm.xlu1 %4784, %v6709_v10  }
 0x1c2   :  { %3049 = vperm.xlu0 %4786, %v6803_v63   ;;  %v2414_v54 = vpop.permute.xlu1 %2413 }
 0x1c3   :  { %v2546_v35 = vadd.f32 %v2514_v23, %v6809_v4  ;;  %v7108_v42 = vpop.permute.xlu0 %2657  ;;  %v7110_v41 = vadd.f32 %v2772_v14, %v1645_v39  ;;  %v2484_v47 = vsub.f32 %v2414_v54, %v7061_v20 }
 0x1c5   :  { %10329 = vst [vmem:[#allocation109_spill] sm:$0xff] %v7110_v41  ;;  %v2774_v59 = vadd.f32 %v2742_v26, %v2546_v35  ;;  %2861 = vperm.xlu1 %4784, %v6726_v22   ;;  %v2516_v43 = vand.u32 2147483647, %v2484_v47  ;;  %v2746_v35 = vand.u32 2147483647, %v2714_v57 }
 0x1c6   :  { %3057 = vperm.xlu0 %4786, %v6822_v18   ;;  %v2422_v24 = vpop.permute.xlu1 %2421 }
 0x1c7   :  { %v7115_v13 = vadd.f32 %v2774_v59, %v7068_v46  ;;  %v7117_v37 = vpop.permute.xlu0 %2665  ;;  %v2486_v60 = vsub.f32 %v2422_v24, %v7061_v20  ;;  %v2712_v46 = vsub.f32 %v2642_v8, %v7054_v11  ;;  %v2548_v54 = vadd.f32 %v2516_v43, %v6812_v48 }
 0x1c8   :  { %v10031_v24 = vmov 6  }
 0x1c9   :  { %10330 = vst [vmem:[#allocation110_spill] sm:$0xff] %v7115_v13  ;;  %2869 = vperm.xlu1 %4784, %v6749_v61   ;;  %v2518_v39 = vand.u32 2147483647, %v2486_v60  ;;  %v2744_v31 = vand.u32 2147483647, %v2712_v46 }
 0x1ca   :  { %3065 = vperm.xlu0 %4786, %v6844_v36   ;;  %v2430_v4 = vpop.permute.xlu1 %2429 }
 0x1cb   :  { %v7123_v0 = vpop.permute.xlu0 %2673  ;;  %v2550_v53 = vadd.f32 %v2518_v39, %v6827_v62  ;;  %v2776_v47 = vadd.f32 %v2744_v31, %v2548_v54 }
 0x1cd   :  { %2877 = vperm.xlu1 %4784, %v6772_v3   ;;  %v2778_v60 = vadd.f32 %v2746_v35, %v2550_v53 }
 0x1ce   :  { %3073 = vperm.xlu0 %4786, %v6877_v15   ;;  %v2438_v27 = vpop.permute.xlu1 %2437 }
 0x1cf   :  { %v7130_v14 = vpop.permute.xlu0 %2681 }
 0x1d0   :  { %v4722_v49 = vpop.f32.mrb[20].mxu0 }
 0x1d1   :  { %v1660_v23 = vpop.f32.mrb[21].mxu0  ;;  %2885 = vperm.xlu1 %4784, %v6803_v63  }
 0x1d2   :  { %v4723_v26 = vpop.f32.mrb[22].mxu0  ;;  %4787 = vset.pattern.permute.xlu0 %v10031_v24  ;;  %v7135_v8 = vpop.permute.xlu1 %2445 }
 0x1d3   :  { %v1663_v59 = vpop.f32.mrb[23].mxu0  ;;  %3117 = vperm.xlu0 %4787, %v6896_v28  }
 0x1d4   :  { %v7138_v39 = vpop.permute.xlu0 %2789 }
 0x1d5   :  { %2893 = vperm.xlu1 %4784, %v6822_v18  }
 0x1d6   :  { %v4686_v62 = vpop.f32.mrb[20].mxu1  ;;  %v7141_v41 = vpop.permute.xlu1 %2453 }
 0x1d7   :  { %v1669_v13 = vadd.f32 %v4722_v49, %v4686_v62  ;;  %v1451_v48 = vpop.f32.mrb[21].mxu1  ;;  %3129 = vperm.xlu0 %4787, %v6903_v30   ;;  %v2488_v62 = vsub.f32 %v2430_v4, %v7061_v20 }
 0x1d8   :  { %v1661_v43 = vadd.f32 %v1660_v23, %v1451_v48  ;;  %v4687_v57 = vpop.f32.mrb[22].mxu1  ;;  %v7152_v35 = vpop.permute.xlu0 %2801 }
 0x1d9   :  { %v7143_v46 = vadd.f32 %v2778_v60, %v1669_v13  ;;  %v7145_v24 = vadd.f32 %v4723_v26, %v4687_v57  ;;  %v1454_v38 = vpop.f32.mrb[23].mxu1  ;;  %2901 = vperm.xlu1 %4784, %v6844_v36   ;;  %v2490_v60 = vsub.f32 %v2438_v27, %v7061_v20  ;;  %v2520_v57 = vand.u32 2147483647, %v2488_v62 }
 0x1da   :  { %v7148_v53 = vadd.f32 %v2776_v47, %v1661_v43  ;;  %v7150_v54 = vadd.f32 %v1663_v59, %v1454_v38  ;;  %v10335_v38 = vmov 5  }
 0x1db   :  { %10331 = vst [vmem:[#allocation111_spill] sm:$0xff] %v7143_v46  ;;  %10332 = vst [vmem:[#allocation112_spill] sm:$0xff] %v7145_v24  ;;  %3137 = vperm.xlu0 %4787, %v6911_v2   ;;  %v7156_v49 = vpop.permute.xlu1 %2561  ;;  %v2522_v43 = vand.u32 2147483647, %v2490_v60  ;;  %v2552_v60 = vadd.f32 %v2520_v57, %v6831_v29 }
 0x1dc   :  { %10333 = vst [vmem:[#allocation113_spill] sm:$0xff] %v7148_v53  ;;  %10334 = vst [vmem:[#allocation114_spill] sm:$0xff] %v7150_v54  ;;  %v7158_v23 = vpop.permute.xlu0 %2809 }
 0x1dd   :  { %2909 = vperm.xlu1 %4784, %v6877_v15   ;;  %v2554_v53 = vadd.f32 %v2522_v43, %v6838_v45 }
 0x1df   :  { %3145 = vperm.xlu0 %4787, %v6918_v32   ;;  %v7162_v13 = vpop.permute.xlu1 %2569 }
 0x1e0   :  { %v7164_v26 = vpop.permute.xlu0 %2817 }
 0x1e1   :  { %4785 = vset.pattern.permute.xlu1 %v10335_v38  ;;  %v2718_v38 = vsub.f32 %v7117_v37, %v7054_v11 }
 0x1e2   :  { %2953 = vperm.xlu1 %4785, %v6896_v28  }
 0x1e3   :  { %3153 = vperm.xlu0 %4787, %v6925_v7   ;;  %v7169_v59 = vpop.permute.xlu1 %2573  ;;  %v2750_v44 = vand.u32 2147483647, %v2718_v38 }
 0x1e4   :  { %v7171_v31 = vpop.permute.xlu0 %2825 }
 0x1e5   :  { %10336 = vst [vmem:[#allocation115_spill] sm:$0xff] %v7171_v31 }
 0x1e6   :  { %2961 = vperm.xlu1 %4785, %v6625_v19   ;;  %v2716_v19 = vsub.f32 %v7108_v42, %v7054_v11  ;;  %v2782_v42 = vadd.f32 %v2750_v44, %v2554_v53 }
 0x1e7   :  { %3161 = vperm.xlu0 %4787, %v6932_v51   ;;  %v7177_v47 = vpop.permute.xlu1 %2581 }
 0x1e8   :  { %v7179_v48 = vpop.permute.xlu0 %2833  ;;  %v2748_v54 = vand.u32 2147483647, %v2716_v19 }
 0x1e9   :  { %10337 = vst [vmem:[#allocation116_spill] sm:$0xff] %v7179_v48 }
 0x1ea   :  { %2965 = vperm.xlu1 %4785, %v6903_v30  }
 0x1eb   :  { %3169 = vperm.xlu0 %4787, %v6943_v12   ;;  %v7185_v27 = vpop.permute.xlu1 %2589 }
 0x1ec   :  { %v7189_v46 = vpop.permute.xlu0 %2841 }
 0x1ed   :  { %10338 = vst [vmem:[#allocation117_spill] sm:$0xff] %v7189_v46  ;;  %v2780_v46 = vadd.f32 %v2748_v54, %v2552_v60 }
 0x1ee   :  { %v4726_v4 = vpop.f32.mrb[24].mxu0  ;;  %2973 = vperm.xlu1 %4785, %v6911_v2  }
 0x1ef   :  { %v1676_v9 = vpop.f32.mrb[25].mxu0  ;;  %3177 = vperm.xlu0 %4787, %v6954_v16   ;;  %v7195_v24 = vpop.permute.xlu1 %2597 }
 0x1f0   :  { %v4727_v62 = vpop.f32.mrb[26].mxu0  ;;  %v7197_v1 = vpop.permute.xlu0 %2849 }
 0x1f1   :  { %v1679_v37 = vpop.f32.mrb[27].mxu0  ;;  %10339 = vst [vmem:[#allocation118_spill] sm:$0xff] %v7197_v1 }
 0x1f2   :  { %2981 = vperm.xlu1 %4785, %v6918_v32  }
 0x1f3   :  { %3185 = vperm.xlu0 %4787, %v6961_v34   ;;  %v7201_v29 = vpop.permute.xlu1 %2605 }
 0x1f4   :  { %v4690_v58 = vpop.f32.mrb[24].mxu1  ;;  %10340 = vst [vmem:[#allocation119_spill] sm:$0xff] %v7201_v29  ;;  %v7203_v48 = vpop.permute.xlu0 %2857 }
 0x1f5   :  { %v1685_v45 = vadd.f32 %v4726_v4, %v4690_v58  ;;  %v1467_v43 = vpop.f32.mrb[25].mxu1  ;;  %10341 = vst [vmem:[#allocation120_spill] sm:$0xff] %v7203_v48 }
 0x1f6   :  { %v1677_v57 = vadd.f32 %v1676_v9, %v1467_v43  ;;  %v4691_v38 = vpop.f32.mrb[26].mxu1  ;;  %2989 = vperm.xlu1 %4785, %v6925_v7  }
 0x1f7   :  { %v7205_v31 = vadd.f32 %v2782_v42, %v1685_v45  ;;  %v7207_v19 = vadd.f32 %v4727_v62, %v4691_v38  ;;  %v1470_v1 = vpop.f32.mrb[27].mxu1  ;;  %3193 = vperm.xlu0 %4787, %v6968_v50   ;;  %v7215_v58 = vpop.permute.xlu1 %2613  ;;  %v2492_v38 = vsub.f32 %v7135_v8, %v7061_v20  ;;  %v7268_v8 = vld [vmem:[%s10003_s1 + $0x8] sm:$0xff] }
 0x1f8   :  { %v7209_v44 = vadd.f32 %v2780_v46, %v1677_v57  ;;  %v7211_v53 = vadd.f32 %v1679_v37, %v1470_v1  ;;  %10346 = vst [vmem:[#allocation125_spill] sm:$0xff] %v7215_v58  ;;  %v7217_v54 = vpop.permute.xlu0 %2865  ;;  %v2494_v57 = vsub.f32 %v7141_v41, %v7061_v20  ;;  %v2722_v41 = vsub.f32 %v7130_v14, %v7054_v11 }
 0x1f9   :  { %10342 = vst [vmem:[#allocation121_spill] sm:$0xff] %v7205_v31  ;;  %10343 = vst [vmem:[#allocation122_spill] sm:$0xff] %v7207_v19 }
 0x1fa   :  { %10344 = vst [vmem:[#allocation123_spill] sm:$0xff] %v7209_v44  ;;  %10345 = vst [vmem:[#allocation124_spill] sm:$0xff] %v7211_v53  ;;  %2997 = vperm.xlu1 %4785, %v6932_v51   ;;  %v2526_v19 = vand.u32 2147483647, %v2494_v57  ;;  %v2524_v53 = vand.u32 2147483647, %v2492_v38  ;;  %v2720_v57 = vsub.f32 %v7123_v0, %v7054_v11 }
 0x1fb   :  { %10347 = vst [vmem:[#allocation126_spill] sm:$0xff] %v7217_v54  ;;  %3201 = vperm.xlu0 %4787, %v6975_v40   ;;  %v7221_v9 = vpop.permute.xlu1 %2621 }
 0x1fc   :  { %10348 = vst [vmem:[#allocation127_spill] sm:$0xff] %v7221_v9  ;;  %v7223_v4 = vpop.permute.xlu0 %2873  ;;  %v2752_v0 = vand.u32 2147483647, %v2720_v57 }
 0x1fd   :  { %10349 = vst [vmem:[#allocation128_spill] sm:$0xff] %v7223_v4 }
 0x1fe   :  { %3005 = vperm.xlu1 %4785, %v6943_v12  }
 0x1ff   :  { %3209 = vperm.xlu0 %4787, %v6982_v5   ;;  %v7227_v1 = vpop.permute.xlu1 %2629 }
 0x200   :  { %10350 = vst [vmem:[#allocation129_spill] sm:$0xff] %v7227_v1  ;;  %v7229_v46 = vpop.permute.xlu0 %2881 }
 0x201   :  { %10351 = vst [vmem:[#allocation130_spill] sm:$0xff] %v7229_v46  ;;  %v2754_v46 = vand.u32 2147483647, %v2722_v41  ;;  %v5373_v41 = vld [vmem:[%s10003_s1 + $0x30] sm:$0xff] }
 0x202   :  { %3013 = vperm.xlu1 %4785, %v6954_v16  }
 0x203   :  { %3217 = vperm.xlu0 %4787, %v6989_v6   ;;  %v7233_v60 = vpop.permute.xlu1 %2637 }
 0x204   :  { %10352 = vst [vmem:[#allocation131_spill] sm:$0xff] %v7233_v60  ;;  %v7235_v62 = vpop.permute.xlu0 %2889 }
 0x205   :  { %10353 = vst [vmem:[#allocation132_spill] sm:$0xff] %v7235_v62 }
 0x206   :  { %3021 = vperm.xlu1 %4785, %v6961_v34  }
 0x207   :  { %3225 = vperm.xlu0 %4787, %v6996_v25   ;;  %v7239_v37 = vpop.permute.xlu1 %2645 }
 0x208   :  { %10354 = vst [vmem:[#allocation133_spill] sm:$0xff] %v7239_v37  ;;  %v7241_v42 = vpop.permute.xlu0 %2897 }
 0x209   :  { %10355 = vst [vmem:[#allocation134_spill] sm:$0xff] %v7241_v42  ;;  %v10039_v42 = vmov 7  }
 0x20a   :  { %3029 = vperm.xlu1 %4785, %v6968_v50  }
 0x20b   :  { %3233 = vperm.xlu0 %4787, %v7003_v21   ;;  %v7245_v45 = vpop.permute.xlu1 %2653 }
 0x20c   :  { %10356 = vst [vmem:[#allocation135_spill] sm:$0xff] %v7245_v45  ;;  %v7247_v43 = vpop.permute.xlu0 %2905  ;;  %v7283_v45 = vld [vmem:[%s10003_s1 + $0x20] sm:$0xff] }
 0x20d   :  { %10357 = vst [vmem:[#allocation136_spill] sm:$0xff] %v7247_v43 }
 0x20e   :  { %3037 = vperm.xlu1 %4785, %v6975_v40  }
 0x20f   :  { %3241 = vperm.xlu0 %4787, %v7014_v33   ;;  %v7255_v31 = vpop.permute.xlu1 %2661 }
 0x210   :  { %10358 = vst [vmem:[#allocation137_spill] sm:$0xff] %v7255_v31  ;;  %v7257_v44 = vpop.permute.xlu0 %2913 }
 0x211   :  { %10359 = vst [vmem:[#allocation138_spill] sm:$0xff] %v7257_v44 }
 0x212   :  { %3045 = vperm.xlu1 %4785, %v6982_v5  }
 0x213   :  { %4790 = vset.pattern.permute.xlu0 %v10039_v42  ;;  %v7261_v43 = vpop.permute.xlu1 %2669  ;;  %v2558_v42 = vadd.f32 %v2526_v19, %v6889_v55 }
 0x214   :  { %10360 = vst [vmem:[#allocation139_spill] sm:$0xff] %v7261_v43  ;;  %3285 = vperm.xlu0 %4790, %v7268_v8   ;;  %v10362_v43 = vld [vmem:[#allocation79_spill] sm:$0xff] }
 0x215   :  { %v7273_v38 = vpop.permute.xlu0 %2957  ;;  %v2556_v14 = vadd.f32 %v2524_v53, %v10362_v43 }
 0x216   :  { %v4730_v44 = vpop.f32.mrb[28].mxu0  ;;  %10361 = vst [vmem:[#allocation140_spill] sm:$0xff] %v7273_v38  ;;  %3053 = vperm.xlu1 %4785, %v6989_v6   ;;  %v2786_v38 = vadd.f32 %v2754_v46, %v2558_v42  ;;  %v5374_v42 = vld [vmem:[%s10003_s1 + $0x40] sm:$0xff] }
 0x217   :  { %v1692_v62 = vpop.f32.mrb[29].mxu0  ;;  %v7278_v31 = vpop.permute.xlu1 %2677  ;;  %v2784_v19 = vadd.f32 %v2752_v0, %v2556_v14  ;;  %v10373_v0 = vmov 6  }
 0x218   :  { %10363 = vst [vmem:[#allocation79_spill] sm:$0xff] %v7278_v31  ;;  %3297 = vperm.xlu0 %4790, %v7283_v45  }
 0x219   :  { %v7286_v37 = vpop.permute.xlu0 %2969 }
 0x21a   :  { %10364 = vst [vmem:[#allocation141_spill] sm:$0xff] %v7286_v37  ;;  %3061 = vperm.xlu1 %4785, %v6996_v25  }
 0x21b   :  { %v7289_v4 = vpop.permute.xlu1 %2685 }
 0x21c   :  { %v4694_v55 = vpop.f32.mrb[28].mxu1  ;;  %10365 = vst [vmem:[#allocation142_spill] sm:$0xff] %v7289_v4  ;;  %3305 = vperm.xlu0 %4790, %v5373_v41  }
 0x21d   :  { %v1701_v53 = vadd.f32 %v4730_v44, %v4694_v55  ;;  %v1483_v43 = vpop.f32.mrb[29].mxu1  ;;  %v7294_v54 = vpop.permute.xlu0 %2977 }
 0x21e   :  { %v1693_v31 = vadd.f32 %v1692_v62, %v1483_v43  ;;  %10366 = vst [vmem:[#allocation143_spill] sm:$0xff] %v7294_v54  ;;  %3069 = vperm.xlu1 %4785, %v7003_v21  }
 0x21f   :  { %v7296_v57 = vadd.f32 %v2786_v38, %v1701_v53 }
 0x220   :  { %v7299_v46 = vadd.f32 %v2784_v19, %v1693_v31  ;;  %3313 = vperm.xlu0 %4790, %v5374_v42   ;;  %v7304_v44 = vpop.permute.xlu1 %2793  ;;  %v7324_v19 = vld [vmem:[%s10003_s1 + $0x10] sm:$0xff] }
 0x221   :  { %10367 = vst [vmem:[#allocation144_spill] sm:$0xff] %v7296_v57  ;;  %10369 = vst [vmem:[#allocation146_spill] sm:$0xff] %v7304_v44  ;;  %v7306_v14 = vpop.permute.xlu0 %2985  ;;  %v10479_v44 = vld [vmem:[#allocation65_spill] sm:$0xff] }
 0x222   :  { %10368 = vst [vmem:[#allocation145_spill] sm:$0xff] %v7299_v46  ;;  %10370 = vst [vmem:[#allocation147_spill] sm:$0xff] %v7306_v14  ;;  %3077 = vperm.xlu1 %4785, %v7014_v33  }
 0x224   :  { %3321 = vperm.xlu0 %4790, %v6662_v56   ;;  %v7310_v62 = vpop.permute.xlu1 %2797 }
 0x225   :  { %10371 = vst [vmem:[#allocation148_spill] sm:$0xff] %v7310_v62  ;;  %v7312_v38 = vpop.permute.xlu0 %2993  ;;  %v10394_v62 = vld [vmem:[#allocation13_spill] sm:$0xff] }
 0x226   :  { %10372 = vst [vmem:[#allocation149_spill] sm:$0xff] %v7312_v38  ;;  %4788 = vset.pattern.permute.xlu1 %v10373_v0  ;;  %v7378_v38 = vmul.f32 %v7268_v8, %v10394_v62 }
 0x227   :  { %3121 = vperm.xlu1 %4788, %v7268_v8  }
 0x228   :  { %3329 = vperm.xlu0 %4790, %v6686_v17   ;;  %v7317_v31 = vpop.permute.xlu1 %2805  ;;  %10395 = vst [vmem:[#allocation13_spill] sm:$0xff] %v7378_v38 }
 0x229   :  { %10374 = vst [vmem:[#allocation150_spill] sm:$0xff] %v7317_v31  ;;  %v7319_v55 = vpop.permute.xlu0 %3001  ;;  %v10390_v31 = vld [vmem:[#allocation9_spill] sm:$0xff] }
 0x22a   :  { %10375 = vst [vmem:[#allocation151_spill] sm:$0xff] %v7319_v55 }
 0x22b   :  { %3125 = vperm.xlu1 %4788, %v7324_v19  }
 0x22c   :  { %3337 = vperm.xlu0 %4790, %v6700_v52   ;;  %v7328_v56 = vpop.permute.xlu1 %2813 }
 0x22d   :  { %10376 = vst [vmem:[#allocation152_spill] sm:$0xff] %v7328_v56  ;;  %v7330_v53 = vpop.permute.xlu0 %3009 }
 0x22e   :  { %10377 = vst [vmem:[#allocation153_spill] sm:$0xff] %v7330_v53 }
 0x22f   :  { %3133 = vperm.xlu1 %4788, %v7283_v45  }
 0x230   :  { %3345 = vperm.xlu0 %4790, %v6709_v10   ;;  %v7334_v17 = vpop.permute.xlu1 %2821  ;;  %v5376_v10 = vld [vmem:[%s10003_s1 + $0x50] sm:$0xff] }
 0x231   :  { %10378 = vst [vmem:[#allocation154_spill] sm:$0xff] %v7334_v17  ;;  %v7336_v43 = vpop.permute.xlu0 %3017 }
 0x232   :  { %10379 = vst [vmem:[#allocation155_spill] sm:$0xff] %v7336_v43 }
 0x233   :  { %3141 = vperm.xlu1 %4788, %v5373_v41  }
 0x234   :  { %3353 = vperm.xlu0 %4790, %v6726_v22   ;;  %v7339_v0 = vpop.permute.xlu1 %2829 }
 0x235   :  { %10380 = vst [vmem:[#allocation156_spill] sm:$0xff] %v7339_v0  ;;  %v7341_v57 = vpop.permute.xlu0 %3025  ;;  %v5377_v0 = vld [vmem:[%s10003_s1 + $0x60] sm:$0xff] }
 0x236   :  { %10381 = vst [vmem:[#allocation157_spill] sm:$0xff] %v7341_v57  ;;  %v10388_v57 = vld [vmem:[#allocation7_spill] sm:$0xff] }
 0x237   :  { %3149 = vperm.xlu1 %4788, %v5374_v42   ;;  %v7366_v53 = vmul.f32 %v7324_v19, %v10388_v57  ;;  %v10398_v57 = vld [vmem:[#allocation10_spill] sm:$0xff] }
 0x238   :  { %3361 = vperm.xlu0 %4790, %v6749_v61   ;;  %v7344_v46 = vpop.permute.xlu1 %2837 }
 0x239   :  { %10382 = vst [vmem:[#allocation158_spill] sm:$0xff] %v7344_v46  ;;  %v7346_v56 = vpop.permute.xlu0 %3033  ;;  %10389 = vst [vmem:[#allocation7_spill] sm:$0xff] %v7366_v53  ;;  %v7387_v53 = vmul.f32 %v6918_v32, %v10398_v57  ;;  %v10409_v57 = vld [vmem:[#allocation17_spill] sm:$0xff] }
 0x23a   :  { %10383 = vst [vmem:[#allocation159_spill] sm:$0xff] %v7346_v56 }
 0x23b   :  { %3157 = vperm.xlu1 %4788, %v5376_v10   ;;  %10399 = vst [vmem:[#allocation10_spill] sm:$0xff] %v7387_v53  ;;  %v7409_v53 = vmul.f32 %v6943_v12, %v10409_v57  ;;  %v10422_v12 = vld [vmem:[#allocation23_spill] sm:$0xff]  ;;  %v10424_v57 = vld [vmem:[#allocation25_spill] sm:$0xff] }
 0x23c   :  { %3369 = vperm.xlu0 %4790, %v6772_v3   ;;  %v7352_v17 = vpop.permute.xlu1 %2845 }
 0x23d   :  { %10384 = vst [vmem:[#allocation160_spill] sm:$0xff] %v7352_v17  ;;  %v7354_v43 = vpop.permute.xlu0 %3041  ;;  %v7370_v17 = vmul.f32 %v6903_v30, %v10390_v31  ;;  %v10400_v31 = vld [vmem:[#allocation14_spill] sm:$0xff]  ;;  %10410 = vst [vmem:[#allocation17_spill] sm:$0xff] %v7409_v53 }
 0x23e   :  { %10385 = vst [vmem:[#allocation161_spill] sm:$0xff] %v7354_v43  ;;  %v10392_v43 = vld [vmem:[#allocation11_spill] sm:$0xff] }
 0x23f   :  { %3165 = vperm.xlu1 %4788, %v5377_v0   ;;  %10391 = vst [vmem:[#allocation9_spill] sm:$0xff] %v7370_v17  ;;  %v7374_v55 = vmul.f32 %v6896_v28, %v10392_v43  ;;  %v7391_v17 = vmul.f32 %v7283_v45, %v10400_v31  ;;  %v10402_v43 = vld [vmem:[#allocation16_spill] sm:$0xff]  ;;  %v10411_v45 = vld [vmem:[#allocation18_spill] sm:$0xff] }
 0x240   :  { %3377 = vperm.xlu0 %4790, %v6803_v63   ;;  %v7360_v46 = vpop.permute.xlu1 %2853  ;;  %v7412_v31 = vmul.f32 %v5374_v42, %v10411_v45  ;;  %v7432_v42 = vmul.f32 %v6968_v50, %v10422_v12  ;;  %v7436_v45 = vmul.f32 %v6975_v40, %v10424_v57  ;;  %v5379_v50 = vld [vmem:[%s10003_s1 + $0x80] sm:$0xff]  ;;  %v10432_v40 = vld [vmem:[#allocation29_spill] sm:$0xff]  ;;  %v10434_v12 = vld [vmem:[#allocation28_spill] sm:$0xff] }
 0x241   :  { %10386 = vst [vmem:[#allocation162_spill] sm:$0xff] %v7360_v46  ;;  %v7362_v56 = vpop.permute.xlu0 %3049  ;;  %10393 = vst [vmem:[#allocation11_spill] sm:$0xff] %v7374_v55  ;;  %v10396_v46 = vld [vmem:[#allocation8_spill] sm:$0xff]  ;;  %v7394_v55 = vmul.f32 %v5373_v41, %v10402_v43  ;;  %v10414_v43 = vld [vmem:[#allocation19_spill] sm:$0xff]  ;;  %v7460_v57 = vmul.f32 %v6726_v22, %v10434_v12 }
 0x242   :  { %10387 = vst [vmem:[#allocation163_spill] sm:$0xff] %v7362_v56  ;;  %v7383_v56 = vmul.f32 %v6911_v2, %v10396_v46  ;;  %10401 = vst [vmem:[#allocation14_spill] sm:$0xff] %v7391_v17  ;;  %v10407_v46 = vld [vmem:[#allocation15_spill] sm:$0xff]  ;;  %v10416_v17 = vld [vmem:[#allocation21_spill] sm:$0xff] }
 0x243   :  { %3173 = vperm.xlu1 %4788, %v6700_v52   ;;  %10403 = vst [vmem:[#allocation16_spill] sm:$0xff] %v7394_v55  ;;  %v10405_v52 = vld [vmem:[#allocation12_spill] sm:$0xff]  ;;  %v7405_v38 = vmul.f32 %v6932_v51, %v10407_v46  ;;  %10412 = vst [vmem:[#allocation18_spill] sm:$0xff] %v7412_v31  ;;  %v7418_v55 = vmul.f32 %v6954_v16, %v10414_v43  ;;  %v10420_v46 = vld [vmem:[#allocation22_spill] sm:$0xff] }
 0x244   :  { %10397 = vst [vmem:[#allocation8_spill] sm:$0xff] %v7383_v56  ;;  %3385 = vperm.xlu0 %4790, %v6822_v18   ;;  %v7397_v8 = vpop.permute.xlu1 %2861  ;;  %v7401_v62 = vmul.f32 %v6925_v7, %v10405_v52  ;;  %v7422_v52 = vmul.f32 %v6961_v34, %v10416_v17  ;;  %10423 = vst [vmem:[#allocation23_spill] sm:$0xff] %v7432_v42  ;;  %v5378_v16 = vld [vmem:[%s10003_s1 + $0x70] sm:$0xff]  ;;  %v10426_v34 = vld [vmem:[#allocation24_spill] sm:$0xff] }
 0x245   :  { %10404 = vst [vmem:[#allocation164_spill] sm:$0xff] %v7397_v8  ;;  %10408 = vst [vmem:[#allocation15_spill] sm:$0xff] %v7405_v38  ;;  %v7414_v41 = vpop.permute.xlu0 %3057  ;;  %v7428_v38 = vmul.f32 %v5377_v0, %v10420_v46  ;;  %v7442_v17 = vmul.f32 %v5378_v16, %v10426_v34  ;;  %v10430_v0 = vld [vmem:[#allocation26_spill] sm:$0xff]  ;;  %v7456_v46 = vmul.f32 %v6989_v6, %v10432_v40  ;;  %v10436_v16 = vld [vmem:[#allocation31_spill] sm:$0xff] }
 0x246   :  { %10406 = vst [vmem:[#allocation12_spill] sm:$0xff] %v7401_v62  ;;  %10413 = vst [vmem:[#allocation165_spill] sm:$0xff] %v7414_v41  ;;  %v10418_v62 = vld [vmem:[#allocation20_spill] sm:$0xff]  ;;  %v7452_v43 = vmul.f32 %v5379_v50, %v10430_v0  ;;  %v7476_v6 = vld [vmem:[%s10005_s3] ss:$0 sm:$0xff] }
 0x247   :  { %10415 = vst [vmem:[#allocation19_spill] sm:$0xff] %v7418_v55  ;;  %10417 = vst [vmem:[#allocation21_spill] sm:$0xff] %v7422_v52  ;;  %v7425_v51 = vmul.f32 %v5376_v10, %v10418_v62  ;;  %v10428_v10 = vld [vmem:[#allocation27_spill] sm:$0xff]  ;;  %3181 = vperm.xlu1 %4788, %v5379_v50   ;;  %v10441_v22 = vld [vmem:[#allocation37_spill] sm:$0xff] }
 0x248   :  { %10421 = vst [vmem:[#allocation22_spill] sm:$0xff] %v7428_v38  ;;  %10425 = vst [vmem:[#allocation25_spill] sm:$0xff] %v7436_v45  ;;  %v7446_v62 = vmul.f32 %v6982_v5, %v10428_v10  ;;  %v7464_v5 = vmul.f32 %v6996_v25, %v10436_v16  ;;  %3393 = vperm.xlu0 %4790, %v6844_v36   ;;  %v7467_v34 = vpop.permute.xlu1 %2869  ;;  %v10439_v10 = vld [vmem:[#allocation30_spill] sm:$0xff]  ;;  %v2041_v0 = vsub.f32 %v10441_v22, %v7476_v6  ;;  %v10443_v12 = vld [vmem:[#allocation39_spill] sm:$0xff] }
 0x249   :  { %10419 = vst [vmem:[#allocation20_spill] sm:$0xff] %v7425_v51  ;;  %10427 = vst [vmem:[#allocation24_spill] sm:$0xff] %v7442_v17  ;;  %v7471_v50 = vmul.f32 %v6749_v61, %v10439_v10  ;;  %v10442_v40 = vld [vmem:[#allocation42_spill] sm:$0xff]  ;;  %v2042_v16 = vsub.f32 %v10443_v12, %v7476_v6  ;;  %v10447_v10 = vld [vmem:[#allocation44_spill] sm:$0xff] }
 0x24a   :  { %10429 = vst [vmem:[#allocation27_spill] sm:$0xff] %v7446_v62  ;;  %10431 = vst [vmem:[#allocation26_spill] sm:$0xff] %v7452_v43  ;;  %v2040_v25 = vsub.f32 %v10442_v40, %v7476_v6  ;;  %v10445_v43 = vld [vmem:[#allocation33_spill] sm:$0xff]  ;;  %v10449_v22 = vld [vmem:[#allocation46_spill] sm:$0xff]  ;;  %v7524_v45 = vand.u32 2147483647, %v2041_v0 }
 0x24b   :  { %10433 = vst [vmem:[#allocation29_spill] sm:$0xff] %v7456_v46  ;;  %10435 = vst [vmem:[#allocation28_spill] sm:$0xff] %v7460_v57  ;;  %v7484_v57 = vpop.permute.xlu0 %3065  ;;  %v7488_v61 = vmul.f32 %v7003_v21, %v10445_v43  ;;  %v10448_v17 = vld [vmem:[#allocation41_spill] sm:$0xff]  ;;  %v10450_v51 = vld [vmem:[#allocation32_spill] sm:$0xff] }
 0x24c   :  { %10437 = vst [vmem:[#allocation31_spill] sm:$0xff] %v7464_v5  ;;  %10438 = vst [vmem:[#allocation166_spill] sm:$0xff] %v7467_v34  ;;  %v2044_v38 = vsub.f32 %v10448_v17, %v7476_v6  ;;  %v2045_v5 = vsub.f32 %v10449_v22, %v7476_v6  ;;  %v7498_v40 = vmul.f32 %v6772_v3, %v10450_v51  ;;  %v10452_v12 = vld [vmem:[#allocation43_spill] sm:$0xff]  ;;  %v10454_v43 = vld [vmem:[#allocation45_spill] sm:$0xff]  ;;  %3401 = vperm.xlu0 %4790, %v6877_v15  }
 0x24d   :  { %10440 = vst [vmem:[#allocation30_spill] sm:$0xff] %v7471_v50  ;;  %10444 = vst [vmem:[#allocation37_spill] sm:$0xff] %v7484_v57  ;;  %v2043_v50 = vsub.f32 %v10447_v10, %v7476_v6  ;;  %v2046_v46 = vsub.f32 %v10452_v12, %v7476_v6  ;;  %v10453_v31 = vld [vmem:[#allocation47_spill] sm:$0xff]  ;;  %v5381_v17 = vld [vmem:[%s10003_s1 + $0x90] sm:$0xff] }
 0x24e   :  { %10446 = vst [vmem:[#allocation42_spill] sm:$0xff] %v7488_v61  ;;  %10451 = vst [vmem:[#allocation39_spill] sm:$0xff] %v7498_v40  ;;  %v2047_v21 = vsub.f32 %v10453_v31, %v7476_v6  ;;  %v2048_v61 = vsub.f32 %v10454_v43, %v7476_v6  ;;  %3189 = vperm.xlu1 %4788, %v5381_v17   ;;  %v10455_v10 = vld [vmem:[#allocation35_spill] sm:$0xff]  ;;  %v10457_v3 = vld [vmem:[#allocation34_spill] sm:$0xff]  ;;  %v7522_v43 = vpop.permute.xlu1 %2877  ;;  %v7526_v17 = vand.u32 2147483647, %v2040_v25 }
 0x24f   :  { %v7511_v22 = vmul.f32 %v7014_v33, %v10455_v10  ;;  %v7515_v51 = vmul.f32 %v6803_v63, %v10457_v3  ;;  %v10459_v12 = vld [vmem:[#allocation48_spill] sm:$0xff]  ;;  %v10460_v31 = vld [vmem:[#allocation49_spill] sm:$0xff]  ;;  %10461 = vst [vmem:[#allocation41_spill] sm:$0xff] %v7522_v43  ;;  %v7528_v33 = vand.u32 2147483647, %v2042_v16  ;;  %v10462_v10 = vld [vmem:[#allocation50_spill] sm:$0xff]  ;;  %v7532_v3 = vpop.permute.xlu0 %3073 }
 0x250   :  { %v2049_v40 = vsub.f32 %v10459_v12, %v7476_v6  ;;  %v2051_v62 = vsub.f32 %v10460_v31, %v7476_v6  ;;  %v2053_v63 = vsub.f32 %v10462_v10, %v7476_v6  ;;  %10463 = vst [vmem:[#allocation46_spill] sm:$0xff] %v7532_v3  ;;  %v7536_v12 = vand.u32 2147483647, %v2044_v38  ;;  %v10465_v52 = vld [vmem:[#allocation52_spill] sm:$0xff]  ;;  %v10471_v56 = vld [vmem:[#allocation61_spill] sm:$0xff]  ;;  %v10472_v3 = vld [vmem:[#allocation59_spill] sm:$0xff] }
 0x251   :  { %10456 = vst [vmem:[#allocation33_spill] sm:$0xff] %v7511_v22  ;;  %10458 = vst [vmem:[#allocation44_spill] sm:$0xff] %v7515_v51  ;;  %v7534_v51 = vand.u32 2147483647, %v2043_v50  ;;  %v7538_v31 = vand.u32 2147483647, %v2045_v5  ;;  %v2057_v10 = vsub.f32 %v10465_v52, %v7476_v6 }
 0x252   :  { %v10464_v22 = vld [vmem:[#allocation51_spill] sm:$0xff]  ;;  %v7542_v0 = vand.u32 2147483647, %v2046_v46  ;;  %v7544_v25 = vand.u32 2147483647, %v2047_v21  ;;  %v10467_v21 = vld [vmem:[#allocation54_spill] sm:$0xff]  ;;  %v7562_v53 = vpop.permute.xlu1 %2885 }
 0x253   :  { %v2055_v42 = vsub.f32 %v10464_v22, %v7476_v6  ;;  %v7546_v16 = vand.u32 2147483647, %v2048_v61  ;;  %v5382_v50 = vld [vmem:[%s10003_s1 + $0xa0] sm:$0xff]  ;;  %v7553_v38 = vand.u32 2147483647, %v2049_v40  ;;  %v10466_v22 = vld [vmem:[#allocation53_spill] sm:$0xff]  ;;  %v2061_v55 = vsub.f32 %v10467_v21, %v7476_v6 }
 0x254   :  { %3197 = vperm.xlu1 %4788, %v5382_v50   ;;  %v7555_v5 = vand.u32 2147483647, %v2051_v62  ;;  %v2059_v46 = vsub.f32 %v10466_v22, %v7476_v6  ;;  %v10468_v61 = vmov 2   ;;  %10469 = vst [vmem:[#allocation32_spill] sm:$0xff] %v7562_v53  ;;  %v7564_v52 = vand.u32 2147483647, %v2053_v63 }
 0x255   :  { %4791 = vset.pattern.permute.xlu0 %v10468_v61  ;;  %v7569_v50 = vld [vmem:[%s10005_s3 + $0x1] ss:$0 sm:$0xff]  ;;  %v10470_v62 = vld [vmem:[#allocation58_spill] sm:$0xff]  ;;  %v7578_v61 = vand.u32 2147483647, %v2055_v42  ;;  %v10474_v43 = vld [vmem:[#allocation56_spill] sm:$0xff] }
 0x256   :  { %v2236_v40 = vsub.f32 %v10470_v62, %v7569_v50  ;;  %v2237_v22 = vsub.f32 %v10471_v56, %v7569_v50  ;;  %v2238_v21 = vsub.f32 %v10472_v3, %v7569_v50  ;;  %2333 = vperm.xlu0 %4791, %v6896_v28   ;;  %v10473_v63 = vld [vmem:[#allocation55_spill] sm:$0xff]  ;;  %v2065_v57 = vsub.f32 %v10474_v43, %v7476_v6  ;;  %v7586_v62 = vpop.permute.xlu0 %3117  ;;  %v10477_v56 = vld [vmem:[#allocation57_spill] sm:$0xff]  ;;  %v10478_v28 = vld [vmem:[#allocation60_spill] sm:$0xff]  ;;  %v7607_v54 = vpop.permute.xlu1 %2893 }
 0x257   :  { %v2063_v53 = vsub.f32 %v10473_v63, %v7476_v6  ;;  %v10475_v34 = vld [vmem:[#allocation63_spill] sm:$0xff]  ;;  %10476 = vst [vmem:[#allocation43_spill] sm:$0xff] %v7586_v62  ;;  %v7588_v41 = vand.u32 2147483647, %v2057_v10  ;;  %v2067_v3 = vsub.f32 %v10477_v56, %v7476_v6  ;;  %v2239_v42 = vsub.f32 %v10478_v28, %v7569_v50  ;;  %v5384_v43 = vld [vmem:[%s10003_s1 + $0xb0] sm:$0xff]  ;;  %v10480_v10 = vld [vmem:[#allocation62_spill] sm:$0xff] }
 0x258   :  { %v2240_v8 = vsub.f32 %v10475_v34, %v7569_v50  ;;  %v2242_v14 = vsub.f32 %v10479_v44, %v7569_v50  ;;  %3205 = vperm.xlu1 %4788, %v5384_v43   ;;  %v7599_v63 = vand.u32 2147483647, %v2059_v46  ;;  %v7601_v34 = vand.u32 2147483647, %v2061_v55  ;;  %v10481_v6 = vld [vmem:[#allocation67_spill] sm:$0xff]  ;;  %10482 = vst [vmem:[#allocation47_spill] sm:$0xff] %v7607_v54 }
 0x259   :  { %v2241_v62 = vsub.f32 %v10480_v10, %v7569_v50  ;;  %v2244_v56 = vsub.f32 %v10481_v6, %v7569_v50  ;;  %v10483_v28 = vld [vmem:[#allocation36_spill] sm:$0xff]  ;;  %v2268_v37 = vand.u32 2147483647, %v2236_v40  ;;  %v2269_v4 = vand.u32 2147483647, %v2237_v22  ;;  %v10485_v46 = vld [vmem:[#allocation38_spill] sm:$0xff] }
 0x25a   :  { %v7611_v44 = vmul.f32 %v6822_v18, %v10483_v28  ;;  %v2270_v60 = vand.u32 2147483647, %v2238_v21  ;;  %2345 = vperm.xlu0 %4791, %v6903_v30   ;;  %v7616_v55 = vmul.f32 %v6844_v36, %v10485_v46  ;;  %v7618_v43 = vand.u32 2147483647, %v2063_v53  ;;  %v7622_v48 = vpop.permute.xlu0 %3129  ;;  %v10488_v54 = vld [vmem:[#allocation40_spill] sm:$0xff]  ;;  %v5385_v36 = vld [vmem:[%s10003_s1 + $0xc0] sm:$0xff] }
 0x25b   :  { %v7620_v10 = vand.u32 2147483647, %v2065_v57  ;;  %v2272_v6 = vand.u32 2147483647, %v2240_v8  ;;  %10487 = vst [vmem:[#allocation34_spill] sm:$0xff] %v7622_v48  ;;  %v7626_v18 = vmul.f32 %v6877_v15, %v10488_v54  ;;  %v10490_v57 = vld [vmem:[#allocation64_spill] sm:$0xff]  ;;  %v7640_v15 = vadd.f32 %v2268_v37, %v7526_v17 }
 0x25c   :  { %10484 = vst [vmem:[#allocation45_spill] sm:$0xff] %v7611_v44  ;;  %10486 = vst [vmem:[#allocation35_spill] sm:$0xff] %v7616_v55  ;;  %v7628_v40 = vand.u32 2147483647, %v2067_v3  ;;  %v2271_v22 = vand.u32 2147483647, %v2239_v42  ;;  %3213 = vperm.xlu1 %4788, %v5385_v36   ;;  %v2243_v8 = vsub.f32 %v10490_v57, %v7569_v50  ;;  %v7637_v55 = vpop.permute.xlu1 %2901  ;;  %v2301_v54 = vadd.f32 %v2269_v4, %v7524_v45 }
 0x25d   :  { %10489 = vst [vmem:[#allocation48_spill] sm:$0xff] %v7626_v18  ;;  %v2274_v21 = vand.u32 2147483647, %v2242_v14  ;;  %v2273_v30 = vand.u32 2147483647, %v2241_v62  ;;  %v10491_v28 = vld [vmem:[#allocation66_spill] sm:$0xff]  ;;  %v7644_v14 = vadd.f32 %v2270_v60, %v7528_v33  ;;  %v2304_v42 = vadd.f32 %v2272_v6, %v7536_v12 }
 0x25e   :  { %v2276_v53 = vand.u32 2147483647, %v2244_v56  ;;  %v2245_v46 = vsub.f32 %v10491_v28, %v7569_v50  ;;  %10492 = vst [vmem:[#allocation49_spill] sm:$0xff] %v7637_v55  ;;  %10493 = vst [vmem:[#allocation50_spill] sm:$0xff] %v7640_v15  ;;  %v10494_v3 = vld [vmem:[#allocation68_spill] sm:$0xff]  ;;  %2353 = vperm.xlu0 %4791, %v6911_v2   ;;  %v10495_v56 = vld [vmem:[#allocation94_spill] sm:$0xff]  ;;  %v7656_v4 = vpop.permute.xlu0 %3137  ;;  %v7659_v60 = vadd.f32 %v2271_v22, %v7534_v51 }
 0x25f   :  { %v2247_v62 = vsub.f32 %v10494_v3, %v7569_v50  ;;  %v2465_v36 = vsub.f32 %v10495_v56, %v7061_v20  ;;  %v10496_v57 = vld [vmem:[#allocation98_spill] sm:$0xff]  ;;  %v10497_v37 = vld [vmem:[#allocation101_spill] sm:$0xff]  ;;  %10498 = vst [vmem:[#allocation51_spill] sm:$0xff] %v7656_v4  ;;  %v2306_v45 = vadd.f32 %v2274_v21, %v7542_v0  ;;  %v10501_v12 = vld [vmem:[#allocation103_spill] sm:$0xff]  ;;  %v7670_v56 = vadd.f32 %v2273_v30, %v7538_v31 }
 0x260   :  { %v2468_v28 = vsub.f32 %v10496_v57, %v7061_v20  ;;  %v2470_v17 = vsub.f32 %v10497_v37, %v7061_v20  ;;  %10499 = vst [vmem:[#allocation52_spill] sm:$0xff] %v7659_v60  ;;  %v10500_v2 = vld [vmem:[#allocation69_spill] sm:$0xff]  ;;  %v2472_v6 = vsub.f32 %v10501_v12, %v7061_v20  ;;  %v2308_v57 = vadd.f32 %v2276_v53, %v7546_v16  ;;  %v7673_v37 = vpop.permute.xlu1 %2909  ;;  %v10504_v21 = vld [vmem:[#allocation70_spill] sm:$0xff]  ;;  %v10506_v44 = vld [vmem:[#allocation95_spill] sm:$0xff] }
 0x261   :  { %v2249_v33 = vsub.f32 %v10500_v2, %v7569_v50  ;;  %v5386_v3 = vld [vmem:[%s10003_s1 + $0xd0] sm:$0xff]  ;;  %10502 = vst [vmem:[#allocation53_spill] sm:$0xff] %v7670_v56  ;;  %v2275_v51 = vand.u32 2147483647, %v2243_v8  ;;  %v2277_v22 = vand.u32 2147483647, %v2245_v46  ;;  %v2251_v2 = vsub.f32 %v10504_v21, %v7569_v50 }
 0x262   :  { %3221 = vperm.xlu1 %4788, %v5386_v3   ;;  %10503 = vst [vmem:[#allocation54_spill] sm:$0xff] %v7673_v37  ;;  %v2279_v0 = vand.u32 2147483647, %v2247_v62  ;;  %v10505_v12 = vld [vmem:[#allocation93_spill] sm:$0xff]  ;;  %v2696_v60 = vsub.f32 %v10506_v44, %v7054_v11  ;;  %2361 = vperm.xlu0 %4791, %v6918_v32   ;;  %v2497_v31 = vand.u32 2147483647, %v2465_v36  ;;  %v7684_v46 = vpop.permute.xlu0 %3145 }
 0x263   :  { %v2693_v18 = vsub.f32 %v10505_v12, %v7054_v11  ;;  %v10507_v30 = vld [vmem:[#allocation97_spill] sm:$0xff]  ;;  %v2500_v53 = vand.u32 2147483647, %v2468_v28  ;;  %v2502_v8 = vand.u32 2147483647, %v2470_v17  ;;  %10508 = vst [vmem:[#allocation58_spill] sm:$0xff] %v7684_v46 }
 0x264   :  { %v2698_v16 = vsub.f32 %v10507_v30, %v7054_v11  ;;  %v2281_v62 = vand.u32 2147483647, %v2249_v33  ;;  %v10509_v3 = vld [vmem:[#allocation71_spill] sm:$0xff]  ;;  %v2504_v15 = vand.u32 2147483647, %v2472_v6  ;;  %v10511_v44 = vld [vmem:[#allocation72_spill] sm:$0xff]  ;;  %v2529_v48 = vadd.f32 %v2497_v31, %v2301_v54 }
 0x265   :  { %v2253_v21 = vsub.f32 %v10509_v3, %v7569_v50  ;;  %v10510_v56 = vld [vmem:[#allocation99_spill] sm:$0xff]  ;;  %v2255_v36 = vsub.f32 %v10511_v44, %v7569_v50  ;;  %v10512_v28 = vld [vmem:[#allocation73_spill] sm:$0xff]  ;;  %v10513_v33 = vld [vmem:[#allocation74_spill] sm:$0xff]  ;;  %v2725_v55 = vand.u32 2147483647, %v2693_v18  ;;  %v7706_v44 = vpop.permute.xlu1 %2953  ;;  %v2532_v1 = vadd.f32 %v2500_v53, %v2304_v42 }
 0x266   :  { %v2700_v12 = vsub.f32 %v10510_v56, %v7054_v11  ;;  %v5387_v32 = vld [vmem:[%s10003_s1 + $0xe0] sm:$0xff]  ;;  %v2257_v17 = vsub.f32 %v10512_v28, %v7569_v50  ;;  %v2259_v30 = vsub.f32 %v10513_v33, %v7569_v50  ;;  %v10515_v56 = vld [vmem:[#allocation76_spill] sm:$0xff]  ;;  %v2728_v46 = vand.u32 2147483647, %v2696_v60  ;;  %2369 = vperm.xlu0 %4791, %v6925_v7   ;;  %v7708_v33 = vpop.permute.xlu0 %3153  ;;  %v5388_v18 = vld [vmem:[%s10003_s1 + $0xf0] sm:$0xff] }
 0x267   :  { %3229 = vperm.xlu1 %4788, %v5387_v32   ;;  %v10514_v3 = vld [vmem:[#allocation75_spill] sm:$0xff]  ;;  %v2263_v6 = vsub.f32 %v10515_v56, %v7569_v50  ;;  %v10516_v4 = vld [vmem:[#allocation96_spill] sm:$0xff]  ;;  %v2730_v28 = vand.u32 2147483647, %v2698_v16  ;;  %v2534_v9 = vadd.f32 %v2502_v8, %v2306_v45  ;;  %v2283_v58 = vand.u32 2147483647, %v2251_v2 }
 0x268   :  { %v2261_v37 = vsub.f32 %v10514_v3, %v7569_v50  ;;  %v2466_v32 = vsub.f32 %v10516_v4, %v7061_v20  ;;  %v2732_v3 = vand.u32 2147483647, %v2700_v12  ;;  %v2536_v29 = vadd.f32 %v2504_v15, %v2308_v57 }
 0x269   :  { %v2694_v50 = vsub.f32 %v7162_v13, %v7054_v11  ;;  %v7716_v7 = vadd.f32 %v2275_v51, %v7544_v25  ;;  %v2285_v54 = vand.u32 2147483647, %v2253_v21  ;;  %v2287_v4 = vand.u32 2147483647, %v2255_v36  ;;  %v7724_v13 = vld [vmem:[%s10003_s1 + $0x58] sm:$0xff]  ;;  %v7727_v57 = vpop.permute.xlu1 %2961 }
 0x26a   :  { %v2289_v42 = vand.u32 2147483647, %v2257_v17  ;;  %v7719_v60 = vadd.f32 %v2277_v22, %v7553_v38  ;;  %v2291_v45 = vand.u32 2147483647, %v2259_v30  ;;  %v2293_v2 = vand.u32 2147483647, %v2261_v37  ;;  %2377 = vperm.xlu0 %4791, %v7724_v13   ;;  %v7729_v53 = vpop.permute.xlu0 %3161 }
 0x26b   :  { %3237 = vperm.xlu1 %4788, %v5388_v18   ;;  %10517 = vst [vmem:[#allocation61_spill] sm:$0xff] %v7716_v7  ;;  %v2498_v15 = vand.u32 2147483647, %v2466_v32  ;;  %v2295_v25 = vand.u32 2147483647, %v2263_v6  ;;  %v2757_v51 = vadd.f32 %v2725_v55, %v2529_v48  ;;  %v2762_v31 = vadd.f32 %v2730_v28, %v2534_v9  ;;  %v10529_v55 = vld [vmem:[#allocation82_spill] sm:$0xff] }
 0x26c   :  { %10518 = vst [vmem:[#allocation59_spill] sm:$0xff] %v7719_v60  ;;  %v2760_v16 = vadd.f32 %v2728_v46, %v2532_v1  ;;  %v7732_v38 = vadd.f32 %v2279_v0, %v7555_v5  ;;  %v7735_v22 = vadd.f32 %v2281_v62, %v7564_v52  ;;  %v2764_v37 = vadd.f32 %v2732_v3, %v2536_v29  ;;  %v7753_v1 = vld [vmem:[%s10005_s3 + $0x4] ss:$0 sm:$0xff]  ;;  %v7770_v52 = vld [vmem:[%s10003_s1 + $0x68] sm:$0xff]  ;;  %v10533_v0 = vld [vmem:[#allocation85_spill] sm:$0xff] }
 0x26d   :  { %v2726_v8 = vand.u32 2147483647, %v2694_v50  ;;  %v10521_v21 = vmov 7   ;;  %v7739_v12 = vadd.f32 %v2283_v58, %v7578_v61  ;;  %v7742_v36 = vadd.f32 %v2285_v54, %v7588_v41  ;;  %v5390_v29 = vld [vmem:[%s10003_s1] sm:$0xff]  ;;  %v10535_v62 = vld [vmem:[#allocation88_spill] sm:$0xff]  ;;  %v7907_v32 = vld [vmem:[%s10003_s1 + $0x98] sm:$0xff] }
 0x26e   :  { %10519 = vst [vmem:[#allocation55_spill] sm:$0xff] %v7732_v38  ;;  %10520 = vst [vmem:[#allocation56_spill] sm:$0xff] %v7735_v22  ;;  %v7745_v48 = vadd.f32 %v2287_v4, %v7599_v63  ;;  %v7748_v9 = vadd.f32 %v2289_v42, %v7601_v34  ;;  %v7759_v58 = vadd.f32 %v2291_v45, %v7618_v43  ;;  %2385 = vperm.xlu0 %4791, %v7770_v52   ;;  %v7773_v63 = vpop.permute.xlu1 %2965  ;;  %v7787_v46 = vpop.permute.xlu0 %3169  ;;  %v7816_v4 = vld [vmem:[%s10003_s1 + $0x78] sm:$0xff]  ;;  %v10538_v45 = vld [vmem:[#allocation115_spill] sm:$0xff] }
 0x26f   :  { %4789 = vset.pattern.permute.xlu1 %v10521_v21  ;;  %10522 = vst [vmem:[#allocation63_spill] sm:$0xff] %v7739_v12  ;;  %10523 = vst [vmem:[#allocation57_spill] sm:$0xff] %v7742_v36  ;;  %v7762_v41 = vadd.f32 %v2293_v2, %v7620_v10  ;;  %v2530_v5 = vadd.f32 %v2498_v15, %v7644_v14  ;;  %v2692_v61 = vsub.f32 %v7156_v49, %v7054_v11  ;;  %v10531_v10 = vld [vmem:[#allocation84_spill] sm:$0xff]  ;;  %v10560_v28 = vld [vmem:[#allocation135_spill] sm:$0xff] }
 0x270   :  { %10524 = vst [vmem:[#allocation60_spill] sm:$0xff] %v7745_v48  ;;  %10525 = vst [vmem:[#allocation65_spill] sm:$0xff] %v7748_v9  ;;  %3281 = vperm.xlu1 %4789, %v5390_v29   ;;  %v7776_v34 = vadd.f32 %v2295_v25, %v7628_v40  ;;  %v7779_v43 = vadd.f32 %v2757_v51, %v10529_v55  ;;  %v7782_v14 = vadd.f32 %v2762_v31, %v10531_v10  ;;  %v10539_v25 = vld [vmem:[#allocation77_spill] sm:$0xff]  ;;  %v10543_v21 = vld [vmem:[#allocation116_spill] sm:$0xff] }
 0x271   :  { %10526 = vst [vmem:[#allocation62_spill] sm:$0xff] %v7759_v58  ;;  %10527 = vst [vmem:[#allocation67_spill] sm:$0xff] %v7762_v41  ;;  %v7785_v49 = vadd.f32 %v2760_v16, %v10533_v0  ;;  %v7790_v17 = vadd.f32 %v2764_v37, %v10535_v62  ;;  %v2758_v56 = vadd.f32 %v2726_v8, %v2530_v5  ;;  %v7809_v18 = vand.u32 2147483647, %v2692_v61  ;;  %v10542_v37 = vld [vmem:[#allocation119_spill] sm:$0xff]  ;;  %v10545_v61 = vld [vmem:[#allocation125_spill] sm:$0xff] }
 0x272   :  { %10528 = vst [vmem:[#allocation36_spill] sm:$0xff] %v7776_v34  ;;  %10530 = vst [vmem:[#allocation38_spill] sm:$0xff] %v7779_v43  ;;  %v2695_v40 = vsub.f32 %v7169_v59, %v7054_v11  ;;  %v2697_v3 = vsub.f32 %v7177_v47, %v7054_v11  ;;  %v2699_v54 = vsub.f32 %v7185_v27, %v7054_v11  ;;  %2393 = vperm.xlu0 %4791, %v7816_v4   ;;  %v7819_v47 = vpop.permute.xlu1 %2973  ;;  %v7829_v15 = vpop.permute.xlu0 %3177  ;;  %v5393_v10 = vld [vmem:[%s10003_s1 + $0x18] sm:$0xff]  ;;  %v10546_v0 = vld [vmem:[#allocation117_spill] sm:$0xff] }
 0x273   :  { %10532 = vst [vmem:[#allocation40_spill] sm:$0xff] %v7782_v14  ;;  %10534 = vst [vmem:[#allocation64_spill] sm:$0xff] %v7785_v49  ;;  %v2701_v27 = vsub.f32 %v7195_v24, %v7054_v11  ;;  %v7832_v51 = vadd.f32 %v2758_v56, %v10539_v25  ;;  %v2703_v8 = vsub.f32 %v10542_v37, %v7054_v11  ;;  %v10548_v25 = vld [vmem:[#allocation127_spill] sm:$0xff]  ;;  %v7862_v37 = vld [vmem:[%s10003_s1 + $0x88] sm:$0xff] }
 0x274   :  { %10536 = vst [vmem:[#allocation66_spill] sm:$0xff] %v7790_v17  ;;  %3289 = vperm.xlu1 %4789, %v7324_v19   ;;  %10537 = vst [vmem:[#allocation68_spill] sm:$0xff] %v7809_v18  ;;  %v7836_v16 = vand.u32 2147483647, %v2695_v40  ;;  %v7844_v24 = vand.u32 2147483647, %v2697_v3  ;;  %v2705_v55 = vsub.f32 %v10545_v61, %v7054_v11  ;;  %v2707_v3 = vsub.f32 %v10548_v25, %v7054_v11 }
 0x275   :  { %10540 = vst [vmem:[#allocation94_spill] sm:$0xff] %v7832_v51  ;;  %v7855_v40 = vand.u32 2147483647, %v2699_v54  ;;  %v7871_v54 = vand.u32 2147483647, %v2701_v27  ;;  %v10551_v62 = vld [vmem:[#allocation129_spill] sm:$0xff]  ;;  %v10610_v20 = vmax.f32 %v7138_v39, %v7753_v1 }
 0x276   :  { %10541 = vst [vmem:[#allocation98_spill] sm:$0xff] %v7836_v16  ;;  %10544 = vst [vmem:[#allocation101_spill] sm:$0xff] %v7844_v24  ;;  %2401 = vperm.xlu0 %4791, %v7862_v37   ;;  %v7865_v61 = vpop.permute.xlu1 %2981  ;;  %v2709_v25 = vsub.f32 %v10551_v62, %v7054_v11  ;;  %v7875_v29 = vpop.permute.xlu0 %3185  ;;  %v10552_v31 = vld [vmem:[#allocation120_spill] sm:$0xff]  ;;  %v7881_v59 = vand.u32 2147483647, %v2703_v8  ;;  %v10554_v5 = vld [vmem:[#allocation131_spill] sm:$0xff] }
 0x277   :  { %10547 = vst [vmem:[#allocation69_spill] sm:$0xff] %v7855_v40  ;;  %10550 = vst [vmem:[#allocation103_spill] sm:$0xff] %v7871_v54  ;;  %v2711_v19 = vsub.f32 %v10554_v5, %v7054_v11  ;;  %v10555_v56 = vld [vmem:[#allocation126_spill] sm:$0xff]  ;;  %v7889_v62 = vand.u32 2147483647, %v2705_v55  ;;  %v10557_v50 = vld [vmem:[#allocation128_spill] sm:$0xff]  ;;  %v2715_v55 = vsub.f32 %v10560_v28, %v7054_v11 }
 0x278   :  { %3293 = vperm.xlu1 %4789, %v5393_v10   ;;  %v10549_v10 = vld [vmem:[#allocation118_spill] sm:$0xff]  ;;  %10553 = vst [vmem:[#allocation70_spill] sm:$0xff] %v7881_v59  ;;  %v5395_v2 = vld [vmem:[%s10003_s1 + $0x28] sm:$0xff]  ;;  %v7898_v5 = vand.u32 2147483647, %v2707_v3  ;;  %v10559_v27 = vld [vmem:[#allocation133_spill] sm:$0xff] }
 0x279   :  { %10556 = vst [vmem:[#allocation93_spill] sm:$0xff] %v7889_v62  ;;  %v2713_v42 = vsub.f32 %v10559_v27, %v7054_v11  ;;  %v7916_v30 = vand.u32 2147483647, %v2709_v25  ;;  %v10563_v27 = vld [vmem:[#allocation137_spill] sm:$0xff]  ;;  %v10564_v14 = vld [vmem:[#allocation132_spill] sm:$0xff]  ;;  %v10566_v25 = vld [vmem:[#allocation139_spill] sm:$0xff] }
 0x27a   :  { %10558 = vst [vmem:[#allocation95_spill] sm:$0xff] %v7898_v5  ;;  %2409 = vperm.xlu0 %4791, %v7907_v32   ;;  %v7910_v6 = vpop.permute.xlu1 %2989  ;;  %v2717_v28 = vsub.f32 %v10563_v27, %v7054_v11  ;;  %v7920_v17 = vpop.permute.xlu0 %3193  ;;  %v7926_v43 = vand.u32 2147483647, %v2711_v19  ;;  %v7931_v8 = vld [vmem:[%s10005_s3 + $0x5] ss:$0 sm:$0xff]  ;;  %v2719_v3 = vsub.f32 %v10566_v25, %v7054_v11  ;;  %v10567_v27 = vld [vmem:[#allocation134_spill] sm:$0xff]  ;;  %v10619_v5 = vmax.f32 %v7152_v35, %v7753_v1 }
 0x27b   :  { %10562 = vst [vmem:[#allocation97_spill] sm:$0xff] %v7916_v30  ;;  %v10568_v49 = vld [vmem:[#allocation79_spill] sm:$0xff]  ;;  %v10569_v19 = vld [vmem:[#allocation142_spill] sm:$0xff]  ;;  %v10571_v25 = vld [vmem:[#allocation136_spill] sm:$0xff]  ;;  %v7952_v41 = vand.u32 2147483647, %v2715_v55 }
 0x27c   :  { %3301 = vperm.xlu1 %4789, %v5395_v2   ;;  %v10561_v2 = vld [vmem:[#allocation130_spill] sm:$0xff]  ;;  %10565 = vst [vmem:[#allocation71_spill] sm:$0xff] %v7926_v43  ;;  %v2721_v58 = vsub.f32 %v10568_v49, %v7054_v11  ;;  %v2723_v51 = vsub.f32 %v10569_v19, %v7054_v11  ;;  %v7946_v43 = vand.u32 2147483647, %v2713_v42  ;;  %v7957_v49 = vld [vmem:[%s10003_s1 + $0xa8] sm:$0xff]  ;;  %v10617_v42 = vmin.f32 %v7138_v39, %v7753_v1 }
 0x27d   :  { %v5397_v9 = vld [vmem:[%s10003_s1 + $0x38] sm:$0xff]  ;;  %10572 = vst [vmem:[#allocation72_spill] sm:$0xff] %v7952_v41  ;;  %v7966_v48 = vand.u32 2147483647, %v2717_v28  ;;  %v7974_v30 = vand.u32 2147483647, %v2719_v3  ;;  %v10621_v39 = vmax.f32 %v7158_v23, %v7753_v1 }
 0x27e   :  { %10570 = vst [vmem:[#allocation99_spill] sm:$0xff] %v7946_v43  ;;  %2417 = vperm.xlu0 %4791, %v7957_v49   ;;  %v7960_v11 = vpop.permute.xlu1 %2997  ;;  %v7970_v41 = vpop.permute.xlu0 %3201  ;;  %v7980_v12 = vand.u32 2147483647, %v2721_v58  ;;  %v5399_v3 = vld [vmem:[%s10003_s1 + $0x48] sm:$0xff]  ;;  %v8061_v16 = vld [vmem:[%s10005_s3 + $0x6] ss:$0 sm:$0xff] }
 0x27f   :  { %10574 = vst [vmem:[#allocation73_spill] sm:$0xff] %v7966_v48  ;;  %10576 = vst [vmem:[#allocation74_spill] sm:$0xff] %v7974_v30  ;;  %v7986_v48 = vand.u32 2147483647, %v2723_v51  ;;  %v8002_v51 = vld [vmem:[%s10003_s1 + $0xb8] sm:$0xff]  ;;  %v8045_v40 = vld [vmem:[%s10003_s1 + $0xc8] sm:$0xff] }
 0x280   :  { %3309 = vperm.xlu1 %4789, %v5397_v9   ;;  %10578 = vst [vmem:[#allocation75_spill] sm:$0xff] %v7980_v12  ;;  %v10601_v58 = vld [vmem:[#allocation43_spill] sm:$0xff]  ;;  %v8093_v60 = vld [vmem:[%s10003_s1 + $0xd8] sm:$0xff] }
 0x281   :  { %10580 = vst [vmem:[#allocation76_spill] sm:$0xff] %v7986_v48  ;;  %v3248_v7 = vmin.f32 %v10601_v58, %v8061_v16  ;;  %v3896_v34 = vmax.f32 %v10601_v58, %v8061_v16  ;;  %v10606_v22 = vld [vmem:[#allocation34_spill] sm:$0xff]  ;;  %v10608_v12 = vld [vmem:[#allocation51_spill] sm:$0xff]  ;;  %v8139_v48 = vld [vmem:[%s10003_s1 + $0xe8] sm:$0xff] }
 0x282   :  { %2425 = vperm.xlu0 %4791, %v8002_v51   ;;  %v8015_v30 = vpop.permute.xlu0 %3209  ;;  %v3251_v59 = vmin.f32 %v10606_v22, %v8061_v16  ;;  %v3253_v24 = vmin.f32 %v10608_v12, %v8061_v16  ;;  %v3899_v54 = vmax.f32 %v10606_v22, %v8061_v16  ;;  %10612 = vst [vmem:[#allocation88_spill] sm:$0xff] %v8139_v48  ;;  %v10616_v22 = vld [vmem:[#allocation58_spill] sm:$0xff]  ;;  %v10620_v58 = vld [vmem:[#allocation47_spill] sm:$0xff] }
 0x283   :  { %v8132_v28 = vsub.f32 %v3248_v7, %v10610_v20  ;;  %v10615_v20 = vld [vmem:[#allocation32_spill] sm:$0xff]  ;;  %v3255_v62 = vmin.f32 %v10616_v22, %v8061_v16  ;;  %v8157_v36 = vsub.f32 %v3896_v34, %v10617_v42  ;;  %v3901_v7 = vmax.f32 %v10608_v12, %v8061_v16 }
 0x284   :  { %3317 = vperm.xlu1 %4789, %v5399_v3   ;;  %v8005_v3 = vpop.permute.xlu1 %3005  ;;  %v8164_v38 = vsub.f32 %v3251_v59, %v10619_v5  ;;  %v8175_v34 = vsub.f32 %v3253_v24, %v10621_v39  ;;  %v3257_v42 = vmin.f32 %v7708_v33, %v8061_v16  ;;  %v10622_v12 = vmin.f32 %v7152_v35, %v7753_v1  ;;  %v8193_v24 = vld [vmem:[%s10003_s1 + $0xf8] sm:$0xff] }
 0x285   :  { %10583 = vst [vmem:[#allocation96_spill] sm:$0xff] %v8005_v3  ;;  %10611 = vst [vmem:[#allocation85_spill] sm:$0xff] %v8132_v28  ;;  %v3903_v55 = vmax.f32 %v10616_v22, %v8061_v16  ;;  %v3905_v22 = vmax.f32 %v7708_v33, %v8061_v16  ;;  %v10628_v35 = vld [vmem:[#allocation54_spill] sm:$0xff]  ;;  %v3911_v33 = vmax.f32 %v7829_v15, %v8061_v16 }
 0x286   :  { %2433 = vperm.xlu0 %4791, %v8045_v40   ;;  %v8063_v18 = vpop.permute.xlu0 %3217  ;;  %10618 = vst [vmem:[#allocation77_spill] sm:$0xff] %v8157_v36  ;;  %v8184_v5 = vsub.f32 %v3899_v54, %v10622_v12  ;;  %v10626_v54 = vmax.f32 %v7164_v26, %v7753_v1  ;;  %v3259_v12 = vmin.f32 %v7729_v53, %v8061_v16 }
 0x288   :  { %3325 = vperm.xlu1 %4789, %v7724_v13   ;;  %v8048_v13 = vpop.permute.xlu1 %3013  ;;  %10623 = vst [vmem:[#allocation119_spill] sm:$0xff] %v8184_v5  ;;  %v8203_v39 = vsub.f32 %v3255_v62, %v10626_v54  ;;  %v10627_v5 = vmin.f32 %v7158_v23, %v7753_v1  ;;  %v3261_v62 = vmin.f32 %v7787_v46, %v8061_v16 }
 0x289   :  { %10592 = vst [vmem:[#allocation82_spill] sm:$0xff] %v8048_v13  ;;  %v3907_v23 = vmax.f32 %v7729_v53, %v8061_v16  ;;  %v3909_v54 = vmax.f32 %v7787_v46, %v8061_v16  ;;  %v10637_v53 = vmax.f32 %v10546_v0, %v7753_v1  ;;  %v10639_v46 = vmin.f32 %v10543_v21, %v7753_v1 }
 0x28a   :  { %2441 = vperm.xlu0 %4791, %v8093_v60   ;;  %v8106_v19 = vpop.permute.xlu0 %3225  ;;  %v8215_v28 = vsub.f32 %v3901_v7, %v10627_v5  ;;  %v10631_v7 = vmin.f32 %v7164_v26, %v7753_v1  ;;  %v10634_v26 = vmin.f32 %v10538_v45, %v7753_v1 }
 0x28c   :  { %3333 = vperm.xlu1 %4789, %v7770_v52   ;;  %v8096_v52 = vpop.permute.xlu1 %3021  ;;  %v8235_v5 = vsub.f32 %v3903_v55, %v10631_v7  ;;  %v10635_v55 = vmax.f32 %v10543_v21, %v7753_v1 }
 0x28d   :  { %10602 = vst [vmem:[#allocation84_spill] sm:$0xff] %v8096_v52  ;;  %v10772_v52 = vld [vmem:[#allocation161_spill] sm:$0xff] }
 0x28e   :  { %2449 = vperm.xlu0 %4791, %v8139_v48   ;;  %v8152_v43 = vpop.permute.xlu0 %3233  ;;  %v10629_v48 = vmax.f32 %v10538_v45, %v7753_v1  ;;  %v8255_v7 = vsub.f32 %v3259_v12, %v10635_v55  ;;  %v8266_v45 = vsub.f32 %v3261_v62, %v10637_v53  ;;  %v8276_v55 = vsub.f32 %v3907_v23, %v10639_v46 }
 0x28f   :  { %v10641_v12 = vmax.f32 %v10549_v10, %v7753_v1  ;;  %v3913_v23 = vmax.f32 %v7875_v29, %v8061_v16  ;;  %v10645_v62 = vmin.f32 %v10546_v0, %v7753_v1  ;;  %v3915_v0 = vmax.f32 %v7920_v17, %v8061_v16 }
 0x290   :  { %3341 = vperm.xlu1 %4789, %v7816_v4   ;;  %v8142_v4 = vpop.permute.xlu1 %3029  ;;  %v8227_v9 = vsub.f32 %v3257_v42, %v10629_v48  ;;  %v3263_v48 = vmin.f32 %v7829_v15, %v8061_v16  ;;  %v10632_v42 = vld [vmem:[#allocation11_spill] sm:$0xff]  ;;  %10636 = vst [vmem:[#allocation127_spill] sm:$0xff] %v8255_v7  ;;  %10638 = vst [vmem:[#allocation118_spill] sm:$0xff] %v8266_v45  ;;  %v10643_v15 = vld [vmem:[#allocation9_spill] sm:$0xff] }
 0x291   :  { %10613 = vst [vmem:[#allocation115_spill] sm:$0xff] %v8142_v4  ;;  %10640 = vst [vmem:[#allocation129_spill] sm:$0xff] %v8276_v55  ;;  %v8301_v55 = vsub.f32 %v3909_v54, %v10645_v62  ;;  %v10649_v62 = vmin.f32 %v10549_v10, %v7753_v1  ;;  %v10653_v10 = vmin.f32 %v10552_v31, %v7753_v1 }
 0x292   :  { %2457 = vperm.xlu0 %4791, %v8193_v24   ;;  %v8209_v59 = vpop.permute.xlu0 %3241  ;;  %10630 = vst [vmem:[#allocation125_spill] sm:$0xff] %v8227_v9  ;;  %v8290_v21 = vsub.f32 %v3263_v48, %v10641_v12  ;;  %v3269_v48 = vmin.f32 %v7970_v41, %v8061_v16 }
 0x293   :  { %10646 = vst [vmem:[#allocation126_spill] sm:$0xff] %v8301_v55  ;;  %v8322_v53 = vsub.f32 %v3911_v33, %v10649_v62  ;;  %v8338_v33 = vsub.f32 %v3913_v23, %v10653_v10  ;;  %v3271_v62 = vmin.f32 %v8015_v30, %v8061_v16  ;;  %v3273_v10 = vmin.f32 %v8063_v18, %v8061_v16 }
 0x294   :  { %3349 = vperm.xlu1 %4789, %v7862_v37   ;;  %v8196_v37 = vpop.permute.xlu1 %3037  ;;  %10642 = vst [vmem:[#allocation120_spill] sm:$0xff] %v8290_v21 }
 0x295   :  { %10625 = vst [vmem:[#allocation116_spill] sm:$0xff] %v8196_v37  ;;  %10650 = vst [vmem:[#allocation133_spill] sm:$0xff] %v8322_v53  ;;  %v10747_v37 = vld [vmem:[#allocation155_spill] sm:$0xff] }
 0x296   :  { %3606 = vperm.xlu0 %4791, %v10632_v42   ;;  %v3267_v42 = vmin.f32 %v7920_v17, %v8061_v16  ;;  %10654 = vst [vmem:[#allocation130_spill] sm:$0xff] %v8338_v33  ;;  %v10661_v33 = vmin.f32 %v10557_v50, %v7753_v1 }
 0x298   :  { %3357 = vperm.xlu1 %4789, %v7907_v32   ;;  %v8244_v36 = vpop.permute.xlu1 %3045  ;;  %v8250_v32 = vsub.f32 %v3905_v22, %v10634_v26  ;;  %v3265_v22 = vmin.f32 %v7875_v29, %v8061_v16  ;;  %v8270_v26 = vpop.permute.xlu0 %3285  ;;  %v10651_v29 = vmax.f32 %v10555_v56, %v7753_v1 }
 0x299   :  { %10633 = vst [vmem:[#allocation117_spill] sm:$0xff] %v8244_v36 }
 0x29a   :  { %3621 = vperm.xlu0 %4791, %v10643_v15   ;;  %v10647_v15 = vmax.f32 %v10552_v31, %v7753_v1  ;;  %v8329_v45 = vsub.f32 %v3267_v42, %v10651_v29  ;;  %v10655_v42 = vld [vmem:[#allocation8_spill] sm:$0xff]  ;;  %v10657_v31 = vmax.f32 %v10557_v50, %v7753_v1  ;;  %v3921_v50 = vmax.f32 %v8063_v18, %v8061_v16 }
 0x29b   :  { %v10668_v18 = vmax.f32 %v10564_v14, %v7753_v1 }
 0x29c   :  { %3365 = vperm.xlu1 %4789, %v7957_v49   ;;  %v8295_v46 = vpop.permute.xlu1 %3053  ;;  %v8313_v49 = vsub.f32 %v3265_v22, %v10647_v15  ;;  %v8317_v54 = vpop.permute.xlu0 %3297  ;;  %10652 = vst [vmem:[#allocation135_spill] sm:$0xff] %v8329_v45  ;;  %v3917_v22 = vmax.f32 %v7970_v41, %v8061_v16  ;;  %v8354_v23 = vsub.f32 %v3269_v48, %v10657_v31 }
 0x29d   :  { %10644 = vst [vmem:[#allocation131_spill] sm:$0xff] %v8295_v46  ;;  %v4695_v48 = vpop.f32.mrb[30].mxu1  ;;  %v10663_v41 = vmax.f32 %v10561_v2, %v7753_v1 }
 0x29e   :  { %10648 = vst [vmem:[#allocation128_spill] sm:$0xff] %v8313_v49  ;;  %3631 = vperm.xlu0 %4791, %v10655_v42   ;;  %10658 = vst [vmem:[#allocation132_spill] sm:$0xff] %v8354_v23  ;;  %v10659_v42 = vmin.f32 %v10555_v56, %v7753_v1  ;;  %v8374_v17 = vsub.f32 %v3917_v22, %v10661_v33  ;;  %v3277_v22 = vmin.f32 %v8152_v43, %v8061_v16  ;;  %v10665_v33 = vld [vmem:[#allocation10_spill] sm:$0xff] }
 0x2a0   :  { %3373 = vperm.xlu1 %4789, %v8002_v51   ;;  %v8345_v29 = vpop.permute.xlu1 %3061  ;;  %v8362_v15 = vsub.f32 %v3915_v0, %v10659_v42  ;;  %v3919_v51 = vmax.f32 %v8015_v30, %v8061_v16  ;;  %v8368_v12 = vpop.permute.xlu0 %3305  ;;  %10662 = vst [vmem:[#allocation134_spill] sm:$0xff] %v8374_v17  ;;  %v3275_v0 = vmin.f32 %v8106_v19, %v8061_v16  ;;  %v8417_v17 = vld [vmem:[%s10005_s3 + $0x7] ss:$0 sm:$0xff] }
 0x2a1   :  { %10656 = vst [vmem:[#allocation137_spill] sm:$0xff] %v8345_v29  ;;  %v4731_v42 = vpop.f32.mrb[30].mxu0  ;;  %v1486_v30 = vpop.f32.mrb[31].mxu1 }
 0x2a2   :  { %10660 = vst [vmem:[#allocation139_spill] sm:$0xff] %v8362_v15  ;;  %v8384_v15 = vsub.f32 %v3271_v62, %v10663_v41  ;;  %3641 = vperm.xlu0 %4791, %v10665_v33   ;;  %v8393_v56 = vadd.f32 %v4731_v42, %v4695_v48  ;;  %v8403_v41 = vsub.f32 %v3273_v10, %v10668_v18 }
 0x2a3   :  { %v10670_v33 = vmin.f32 %v10561_v2, %v7753_v1  ;;  %v3923_v48 = vmax.f32 %v8106_v19, %v8061_v16  ;;  %v3279_v42 = vmin.f32 %v8209_v59, %v8061_v16  ;;  %v10673_v19 = vmax.f32 %v10567_v27, %v7753_v1 }
 0x2a4   :  { %3381 = vperm.xlu1 %4789, %v8045_v40   ;;  %10664 = vst [vmem:[#allocation79_spill] sm:$0xff] %v8384_v15  ;;  %v8391_v31 = vpop.permute.xlu1 %3069  ;;  %10667 = vst [vmem:[#allocation136_spill] sm:$0xff] %v8393_v56  ;;  %v1695_v40 = vpop.f32.mrb[31].mxu0 }
 0x2a5   :  { %10666 = vst [vmem:[#allocation142_spill] sm:$0xff] %v8391_v31  ;;  %10669 = vst [vmem:[#allocation43_spill] sm:$0xff] %v8403_v41  ;;  %v8408_v49 = vsub.f32 %v3919_v51, %v10670_v33  ;;  %v8419_v62 = vpop.permute.xlu0 %3313  ;;  %v8421_v10 = vadd.f32 %v1695_v40, %v1486_v30  ;;  %v8430_v18 = vsub.f32 %v3275_v0, %v10673_v19  ;;  %v10679_v19 = vld [vmem:[#allocation12_spill] sm:$0xff] }
 0x2a6   :  { %v3925_v33 = vmax.f32 %v8152_v43, %v8061_v16  ;;  %v10675_v30 = vmin.f32 %v10564_v14, %v7753_v1  ;;  %v10677_v51 = vmax.f32 %v10571_v25, %v7753_v1  ;;  %v3927_v0 = vmax.f32 %v8209_v59, %v8061_v16  ;;  %3651 = vperm.xlu0 %4791, %v10679_v19   ;;  %v10683_v19 = vld [vmem:[#allocation138_spill] sm:$0xff]  ;;  %v10688_v59 = vld [vmem:[#allocation88_spill] sm:$0xff] }
 0x2a7   :  { %10671 = vst [vmem:[#allocation34_spill] sm:$0xff] %v8408_v49  ;;  %10672 = vst [vmem:[#allocation51_spill] sm:$0xff] %v8421_v10  ;;  %v10692_v41 = vld [vmem:[#allocation140_spill] sm:$0xff]  ;;  %v10722_v49 = vld [vmem:[#allocation7_spill] sm:$0xff] }
 0x2a8   :  { %10674 = vst [vmem:[#allocation32_spill] sm:$0xff] %v8430_v18  ;;  %3389 = vperm.xlu1 %4789, %v8093_v60   ;;  %v8439_v40 = vsub.f32 %v3921_v50, %v10675_v30  ;;  %v8444_v2 = vsub.f32 %v3277_v22, %v10677_v51  ;;  %v8449_v43 = vpop.permute.xlu1 %3077  ;;  %v3413_v50 = vmin.f32 %v8270_v26, %v8417_v17 }
 0x2a9   :  { %10680 = vst [vmem:[#allocation54_spill] sm:$0xff] %v8449_v43  ;;  %v10681_v22 = vmin.f32 %v10567_v27, %v7753_v1  ;;  %v10684_v60 = vmax.f32 %v10683_v19, %v7753_v1  ;;  %v8472_v14 = vpop.permute.xlu0 %3321  ;;  %v10686_v27 = vmin.f32 %v10571_v25, %v7753_v1  ;;  %v3929_v30 = vmax.f32 %v8270_v26, %v8417_v17  ;;  %v10695_v25 = vld [vmem:[#allocation141_spill] sm:$0xff] }
 0x2aa   :  { %10676 = vst [vmem:[#allocation58_spill] sm:$0xff] %v8439_v40  ;;  %10678 = vst [vmem:[#allocation47_spill] sm:$0xff] %v8444_v2  ;;  %v10693_v26 = vmax.f32 %v10692_v41, %v7931_v8 }
 0x2ab   :  { %v8461_v51 = vsub.f32 %v3923_v48, %v10681_v22  ;;  %v8470_v45 = vsub.f32 %v3279_v42, %v10684_v60  ;;  %v8478_v48 = vsub.f32 %v3925_v33, %v10686_v27  ;;  %v10689_v60 = vmin.f32 %v10683_v19, %v7753_v1  ;;  %v10691_v27 = vld [vmem:[#allocation15_spill] sm:$0xff] }
 0x2ac   :  { %3397 = vperm.xlu1 %4789, %v10688_v59   ;;  %v3416_v33 = vmin.f32 %v8317_v54, %v8417_v17  ;;  %3661 = vperm.xlu0 %4791, %v10691_v27   ;;  %v3509_v22 = vsub.f32 %v3413_v50, %v10693_v26  ;;  %v3932_v19 = vmax.f32 %v8317_v54, %v8417_v17 }
 0x2ad   :  { %10682 = vst [vmem:[#allocation11_spill] sm:$0xff] %v8461_v51  ;;  %10685 = vst [vmem:[#allocation9_spill] sm:$0xff] %v8470_v45  ;;  %v8489_v51 = vsub.f32 %v3927_v0, %v10689_v60  ;;  %v3418_v0 = vmin.f32 %v8368_v12, %v8417_v17  ;;  %v3122_v60 = vpop.permute.xlu1 %3121  ;;  %v8508_v27 = vpop.permute.xlu0 %3329  ;;  %v10694_v26 = vmin.f32 %v10692_v41, %v7931_v8 }
 0x2ae   :  { %10687 = vst [vmem:[#allocation8_spill] sm:$0xff] %v8478_v48  ;;  %v3249_v2 = vmin.f32 %v3122_v60, %v8061_v16  ;;  %v3897_v50 = vmax.f32 %v3122_v60, %v8061_v16  ;;  %v3934_v42 = vmax.f32 %v8368_v12, %v8417_v17  ;;  %v10696_v45 = vmax.f32 %v10695_v25, %v7931_v8  ;;  %v10698_v60 = vld [vmem:[#allocation146_spill] sm:$0xff] }
 0x2af   :  { %10690 = vst [vmem:[#allocation10_spill] sm:$0xff] %v8489_v51  ;;  %v3993_v59 = vsub.f32 %v3929_v30, %v10694_v26  ;;  %v3420_v41 = vmin.f32 %v8419_v62, %v8417_v17  ;;  %v10697_v30 = vld [vmem:[#allocation17_spill] sm:$0xff]  ;;  %v10699_v26 = vmax.f32 %v10698_v60, %v7753_v1  ;;  %v10700_v18 = vmin.f32 %v10698_v60, %v7753_v1 }
 0x2b0   :  { %3405 = vperm.xlu1 %4789, %v8193_v24   ;;  %v8525_v51 = vsub.f32 %v3416_v33, %v10696_v45  ;;  %3671 = vperm.xlu0 %4791, %v10697_v30   ;;  %v3541_v48 = vmax.f32 %v3509_v22, 0.0  ;;  %v10701_v24 = vmin.f32 %v10695_v25, %v7931_v8  ;;  %v10702_v45 = vld [vmem:[#allocation143_spill] sm:$0xff] }
 0x2b1   :  { %v3445_v54 = vsub.f32 %v3249_v2, %v10699_v26  ;;  %v3961_v12 = vsub.f32 %v3897_v50, %v10700_v18  ;;  %v10703_v33 = vmax.f32 %v10702_v45, %v7931_v8  ;;  %v8544_v46 = vpop.permute.xlu1 %3125  ;;  %v5405_v2 = vld [vmem:[%s10005_s3 + $0x3] sm:$0x1]  ;;  %v5406_v18 = vld [vmem:[%s10005_s3 + $0x2] sm:$0x1]  ;;  %v8558_v30 = vpop.permute.xlu0 %3337  ;;  %v10705_v60 = vmin.f32 %v10702_v45, %v7931_v8 }
 0x2b2   :  { %v3996_v40 = vsub.f32 %v3932_v19, %v10701_v24  ;;  %v1907_v22 = vmul.f32 %v5406_v18, %v5405_v2  ;;  %v3936_v19 = vmax.f32 %v8419_v62, %v8417_v17  ;;  %v3422_v2 = vmin.f32 %v8472_v14, %v8417_v17  ;;  %v10709_v45 = vld [vmem:[#allocation19_spill] sm:$0xff] }
 0x2b3   :  { %v8542_v15 = vsub.f32 %v3418_v0, %v10703_v33  ;;  %v3477_v50 = vmax.f32 %v3445_v54, 0.0  ;;  %v8556_v0 = vmul.f32 %v3993_v59, %v3961_v12  ;;  %v3998_v26 = vsub.f32 %v3934_v42, %v10705_v60  ;;  %v10707_v59 = vld [vmem:[#allocation147_spill] sm:$0xff]  ;;  %v10710_v60 = vld [vmem:[#allocation13_spill] sm:$0xff] }
 0x2b4   :  { %v10706_v18 = vmov 2   ;;  %v3544_v62 = vmax.f32 %v8525_v51, 0.0  ;;  %v10708_v54 = vmax.f32 %v10707_v59, %v7931_v8  ;;  %3681 = vperm.xlu0 %4791, %v10709_v45   ;;  %v3424_v51 = vmin.f32 %v8508_v27, %v8417_v17 }
 0x2b5   :  { %10704 = vst [vmem:[#allocation12_spill] sm:$0xff] %v8556_v0  ;;  %4792 = vset.pattern.permute.xlu1 %v10706_v18  ;;  %v8580_v33 = vmul.f32 %v3541_v48, %v3477_v50  ;;  %v3546_v24 = vmax.f32 %v8542_v15, 0.0  ;;  %v3938_v18 = vmax.f32 %v8472_v14, %v8417_v17  ;;  %v3134_v25 = vpop.permute.xlu1 %3133  ;;  %v10715_v45 = vmin.f32 %v10707_v59, %v7931_v8  ;;  %v8595_v48 = vpop.permute.xlu0 %3345  ;;  %v10716_v50 = vld [vmem:[#allocation149_spill] sm:$0xff] }
 0x2b6   :  { %v8574_v12 = vsub.f32 %v3420_v41, %v10708_v54  ;;  %3611 = vperm.xlu1 %4792, %v10710_v60   ;;  %v10712_v41 = vld [vmem:[#allocation100_spill] sm:$0xff]  ;;  %5179 = vrcp.f32 %v8556_v0  ;;  %v3252_v15 = vmin.f32 %v3134_v25, %v8061_v16  ;;  %v3900_v14 = vmax.f32 %v3134_v25, %v8061_v16  ;;  %v10718_v25 = vld [vmem:[#allocation21_spill] sm:$0xff] }
 0x2b7   :  { %10711 = vst [vmem:[#allocation138_spill] sm:$0xff] %v8580_v33  ;;  %v10713_v54 = vsub.s32 0, %v10712_v41  ;;  %v4000_v42 = vsub.f32 %v3936_v19, %v10715_v45  ;;  %v10717_v60 = vmax.f32 %v10716_v50, %v7931_v8  ;;  %v3940_v59 = vmax.f32 %v8508_v27, %v8417_v17  ;;  %v10719_v45 = vld [vmem:[#allocation150_spill] sm:$0xff]  ;;  %v10724_v41 = vld [vmem:[#allocation151_spill] sm:$0xff] }
 0x2b8   :  { %v3250_v19 = vmin.f32 %v8544_v46, %v8061_v16  ;;  %3691 = vperm.xlu0 %4791, %v10718_v25   ;;  %v10723_v27 = vmin.f32 %v10716_v50, %v7931_v8  ;;  %v3426_v25 = vmin.f32 %v8558_v30, %v8417_v17 }
 0x2b9   :  { %v8589_v29 = vrot.slane %v1907_v22, %v10713_v54  ;;  %v8602_v33 = vsub.f32 %v3422_v2, %v10717_v60  ;;  %v10720_v2 = vmax.f32 %v10719_v45, %v7753_v1  ;;  %v10721_v22 = vmin.f32 %v10719_v45, %v7753_v1  ;;  %v3142_v45 = vpop.permute.xlu1 %3141 }
 0x2ba   :  { %3616 = vperm.xlu1 %4792, %v10722_v49   ;;  %v8624_v23 = vsub.f32 %v3938_v18, %v10723_v27  ;;  %v10725_v54 = vmax.f32 %v10724_v41, %v7931_v8  ;;  %v3354_v49 = vpop.permute.xlu0 %3353  ;;  %v3254_v50 = vmin.f32 %v3142_v45, %v8061_v16  ;;  %v3902_v18 = vmax.f32 %v3142_v45, %v8061_v16  ;;  %v10731_v45 = vld [vmem:[#allocation152_spill] sm:$0xff] }
 0x2bb   :  { %10714 = vst [vmem:[#allocation88_spill] sm:$0xff] %v8589_v29  ;;  %v3448_v60 = vsub.f32 %v3252_v15, %v10720_v2  ;;  %v3964_v31 = vsub.f32 %v3900_v14, %v10721_v22  ;;  %v3898_v15 = vmax.f32 %v8544_v46, %v8061_v16  ;;  %v3942_v27 = vmax.f32 %v8558_v30, %v8417_v17  ;;  %v10728_v46 = vld [vmem:[#allocation148_spill] sm:$0xff] }
 0x2bc   :  { %v8629_v43 = vsub.f32 %v3424_v51, %v10725_v54  ;;  %v10727_v51 = vmin.f32 %v10724_v41, %v7931_v8  ;;  %v10732_v2 = vmax.f32 %v10731_v45, %v7753_v1 }
 0x2bd   :  { %v3480_v14 = vmax.f32 %v3448_v60, 0.0  ;;  %v8635_v22 = vmul.f32 %v3996_v40, %v3964_v31  ;;  %v10729_v60 = vmax.f32 %v10728_v46, %v7753_v1  ;;  %v10730_v40 = vld [vmem:[#allocation23_spill] sm:$0xff] }
 0x2be   :  { %v8643_v54 = vsub.f32 %v3940_v59, %v10727_v51  ;;  %3701 = vperm.xlu0 %4791, %v10730_v40   ;;  %v3450_v36 = vsub.f32 %v3254_v50, %v10732_v2  ;;  %v10733_v59 = vmin.f32 %v10731_v45, %v7753_v1  ;;  %v10734_v51 = vld [vmem:[#allocation14_spill] sm:$0xff]  ;;  %v10738_v40 = vmin.f32 %v10728_v46, %v7753_v1 }
 0x2bf   :  { %10726 = vst [vmem:[#allocation15_spill] sm:$0xff] %v8635_v22  ;;  %v8650_v31 = vsub.f32 %v3250_v19, %v10729_v60  ;;  %5181 = vrcp.f32 %v8635_v22  ;;  %3626 = vperm.xlu1 %4792, %v10734_v51   ;;  %v8661_v30 = vmul.f32 %v3544_v62, %v3480_v14  ;;  %v10736_v19 = vld [vmem:[#allocation153_spill] sm:$0xff]  ;;  %v3428_v50 = vmin.f32 %v8595_v48, %v8417_v17  ;;  %v3362_v62 = vpop.permute.xlu0 %3361 }
 0x2c0   :  { %v3966_v41 = vsub.f32 %v3902_v18, %v10733_v59  ;;  %v10737_v60 = vmax.f32 %v10736_v19, %v7931_v8  ;;  %v8672_v4 = vsub.f32 %v3898_v15, %v10738_v40  ;;  %v3150_v18 = vpop.permute.xlu1 %3149  ;;  %v3482_v2 = vmax.f32 %v3450_v36, 0.0  ;;  %v5180_v36 = vpop.eup %5179 }
 0x2c1   :  { %10735 = vst [vmem:[#allocation140_spill] sm:$0xff] %v8661_v30  ;;  %v3256_v14 = vmin.f32 %v3150_v18, %v8061_v16  ;;  %v3904_v59 = vmax.f32 %v3150_v18, %v8061_v16  ;;  %v3944_v46 = vmax.f32 %v8595_v48, %v8417_v17  ;;  %v10748_v30 = vmax.f32 %v10747_v37, %v7931_v8 }
 0x2c2   :  { %v8667_v56 = vsub.f32 %v3426_v25, %v10737_v60  ;;  %v8676_v45 = vmul.f32 %v3998_v26, %v3966_v41  ;;  %v10740_v25 = vmin.f32 %v10736_v19, %v7931_v8  ;;  %v3430_v60 = vmin.f32 %v3354_v49, %v8417_v17  ;;  %v10741_v26 = vld [vmem:[#allocation25_spill] sm:$0xff]  ;;  %v10742_v41 = vld [vmem:[#allocation154_spill] sm:$0xff] }
 0x2c3   :  { %3711 = vperm.xlu0 %4791, %v10741_v26   ;;  %v10743_v40 = vmax.f32 %v10742_v41, %v7753_v1  ;;  %v8698_v15 = vmul.f32 %v3546_v24, %v3482_v2  ;;  %v8704_v29 = vsub.f32 %v3428_v50, %v10748_v30  ;;  %v3946_v26 = vmax.f32 %v3354_v49, %v8417_v17  ;;  %v10751_v50 = vld [vmem:[#allocation157_spill] sm:$0xff] }
 0x2c4   :  { %10739 = vst [vmem:[#allocation141_spill] sm:$0xff] %v8676_v45  ;;  %v8683_v51 = vsub.f32 %v3942_v27, %v10740_v25  ;;  %5183 = vrcp.f32 %v8676_v45  ;;  %v10744_v27 = vmin.f32 %v10742_v41, %v7753_v1  ;;  %v10745_v25 = vld [vmem:[#allocation16_spill] sm:$0xff]  ;;  %v3432_v10 = vmin.f32 %v3362_v62, %v8417_v17 }
 0x2c5   :  { %v3452_v18 = vsub.f32 %v3256_v14, %v10743_v40  ;;  %3636 = vperm.xlu1 %4792, %v10745_v25   ;;  %10746 = vst [vmem:[#allocation17_spill] sm:$0xff] %v8698_v15  ;;  %v3158_v14 = vpop.permute.xlu1 %3157  ;;  %v4121_v2 = vmul.f32 %v5180_v36, %v8556_v0  ;;  %v10752_v49 = vmax.f32 %v10751_v50, %v7931_v8  ;;  %v10758_v15 = vmax.f32 %v8574_v12, 0.0  ;;  %v10761_v0 = vld [vmem:[#allocation159_spill] sm:$0xff] }
 0x2c6   :  { %v3968_v19 = vsub.f32 %v3904_v59, %v10744_v27  ;;  %v3370_v59 = vpop.permute.xlu0 %3369  ;;  %v3258_v41 = vmin.f32 %v3158_v14, %v8061_v16  ;;  %v3906_v24 = vmax.f32 %v3158_v14, %v8061_v16  ;;  %v10750_v27 = vmin.f32 %v10747_v37, %v7931_v8 }
 0x2c7   :  { %v3484_v40 = vmax.f32 %v3452_v18, 0.0  ;;  %v8721_v25 = vsub.f32 %v3430_v60, %v10752_v49  ;;  %v10753_v18 = vld [vmem:[#allocation27_spill] sm:$0xff]  ;;  %v10760_v49 = vmin.f32 %v10751_v50, %v7931_v8  ;;  %v10796_v7 = vmax.f32 %v8667_v56, 0.0  ;;  %v10800_v56 = vld [vmem:[#allocation37_spill] sm:$0xff] }
 0x2c8   :  { %v8708_v21 = vmul.f32 %v4000_v42, %v3968_v19  ;;  %v8716_v30 = vsub.f32 %v3944_v46, %v10750_v27  ;;  %v3948_v42 = vmax.f32 %v3362_v62, %v8417_v17  ;;  %3721 = vperm.xlu0 %4791, %v10753_v18   ;;  %v10754_v19 = vld [vmem:[#allocation156_spill] sm:$0xff]  ;;  %v10757_v27 = vld [vmem:[#allocation18_spill] sm:$0xff]  ;;  %v3950_v62 = vmax.f32 %v3370_v59, %v8417_v17 }
 0x2c9   :  { %v10755_v14 = vmax.f32 %v10754_v19, %v7753_v1  ;;  %v10756_v37 = vmin.f32 %v10754_v19, %v7753_v1  ;;  %3646 = vperm.xlu1 %4792, %v10757_v27   ;;  %v8735_v60 = vmul.f32 %v10758_v15, %v3484_v40  ;;  %v8741_v18 = vsub.f32 %v3946_v26, %v10760_v49  ;;  %v3166_v19 = vpop.permute.xlu1 %3165  ;;  %v10769_v49 = vld [vmem:[#allocation20_spill] sm:$0xff] }
 0x2ca   :  { %10749 = vst [vmem:[#allocation146_spill] sm:$0xff] %v8708_v21  ;;  %5185 = vrcp.f32 %v8708_v21  ;;  %v3378_v15 = vpop.permute.xlu0 %3377  ;;  %v3260_v40 = vmin.f32 %v3166_v19, %v8061_v16  ;;  %v3908_v50 = vmax.f32 %v3166_v19, %v8061_v16  ;;  %v4153_v26 = vsub.f32 2.0, %v4121_v2 }
 0x2cb   :  { %v3454_v48 = vsub.f32 %v3258_v41, %v10755_v14  ;;  %v3970_v46 = vsub.f32 %v3906_v24, %v10756_v37  ;;  %10759 = vst [vmem:[#allocation143_spill] sm:$0xff] %v8735_v60  ;;  %v10762_v41 = vmax.f32 %v10761_v0, %v7931_v8  ;;  %v3434_v24 = vmin.f32 %v3370_v59, %v8417_v17  ;;  %v5182_v37 = vpop.eup %5181 }
 0x2cc   :  { %v4124_v59 = vmul.f32 %v5182_v37, %v8635_v22 }
 0x2cd   :  { %v8746_v14 = vsub.f32 %v3432_v10, %v10762_v41  ;;  %v3486_v27 = vmax.f32 %v3454_v48, 0.0  ;;  %v8750_v12 = vmul.f32 %v8624_v23, %v3970_v46  ;;  %v10764_v10 = vmin.f32 %v10761_v0, %v7931_v8  ;;  %v10765_v48 = vld [vmem:[#allocation29_spill] sm:$0xff]  ;;  %v10766_v23 = vld [vmem:[#allocation158_spill] sm:$0xff]  ;;  %3656 = vperm.xlu1 %4792, %v10769_v49  }
 0x2ce   :  { %3731 = vperm.xlu0 %4791, %v10765_v48   ;;  %v10767_v46 = vmax.f32 %v10766_v23, %v7753_v1  ;;  %v10768_v2 = vmin.f32 %v10766_v23, %v7753_v1  ;;  %v10770_v0 = vmax.f32 %v8602_v33, 0.0  ;;  %v10773_v48 = vmax.f32 %v10772_v52, %v7931_v8  ;;  %v5184_v23 = vpop.eup %5183  ;;  %v3386_v33 = vpop.permute.xlu0 %3385 }
 0x2cf   :  { %10763 = vst [vmem:[#allocation147_spill] sm:$0xff] %v8750_v12  ;;  %v8758_v41 = vsub.f32 %v3948_v42, %v10764_v10  ;;  %5187 = vrcp.f32 %v8750_v12 }
 0x2d0   :  { %v3456_v60 = vsub.f32 %v3260_v40, %v10767_v46  ;;  %v3972_v19 = vsub.f32 %v3908_v50, %v10768_v2  ;;  %v8772_v42 = vmul.f32 %v10770_v0, %v3486_v27  ;;  %v8779_v53 = vsub.f32 %v3434_v24, %v10773_v48  ;;  %v3174_v46 = vpop.permute.xlu1 %3173 }
 0x2d1   :  { %v3436_v40 = vmin.f32 %v3378_v15, %v8417_v17  ;;  %v3262_v27 = vmin.f32 %v3174_v46, %v8061_v16  ;;  %v3910_v2 = vmax.f32 %v3174_v46, %v8061_v16  ;;  %v10775_v0 = vmin.f32 %v10772_v52, %v7931_v8 }
 0x2d2   :  { %10771 = vst [vmem:[#allocation19_spill] sm:$0xff] %v8772_v42  ;;  %v3488_v50 = vmax.f32 %v3456_v60, 0.0  ;;  %v8783_v49 = vmul.f32 %v8643_v54, %v3972_v19  ;;  %v3952_v24 = vmax.f32 %v3378_v15, %v8417_v17  ;;  %v3438_v48 = vmin.f32 %v3386_v33, %v8417_v17  ;;  %v10777_v54 = vld [vmem:[#allocation31_spill] sm:$0xff]  ;;  %v10778_v19 = vld [vmem:[#allocation160_spill] sm:$0xff] }
 0x2d3   :  { %v8790_v10 = vsub.f32 %v3950_v62, %v10775_v0  ;;  %v8794_v42 = vmul.f32 %v5180_v36, %v4153_v26  ;;  %v4126_v60 = vmul.f32 %v5184_v23, %v8676_v45  ;;  %3741 = vperm.xlu0 %4791, %v10777_v54   ;;  %v10779_v46 = vmax.f32 %v10778_v19, %v7753_v1  ;;  %v10781_v0 = vld [vmem:[#allocation22_spill] sm:$0xff]  ;;  %v10782_v26 = vld [vmem:[#allocation163_spill] sm:$0xff] }
 0x2d4   :  { %10774 = vst [vmem:[#allocation13_spill] sm:$0xff] %v8783_v49  ;;  %5189 = vrcp.f32 %v8783_v49  ;;  %v10780_v52 = vmin.f32 %v10778_v19, %v7753_v1  ;;  %3666 = vperm.xlu1 %4792, %v10781_v0   ;;  %v4156_v15 = vsub.f32 2.0, %v4124_v59  ;;  %v10783_v45 = vmax.f32 %v10782_v26, %v7931_v8  ;;  %v3182_v13 = vpop.permute.xlu1 %3181 }
 0x2d5   :  { %10776 = vst [vmem:[#allocation100_spill] sm:$0xff] %v8794_v42  ;;  %v3458_v22 = vsub.f32 %v3262_v27, %v10779_v46  ;;  %v10784_v54 = vmax.f32 %v8629_v43, 0.0  ;;  %v5186_v27 = vpop.eup %5185  ;;  %v3264_v59 = vmin.f32 %v3182_v13, %v8061_v16  ;;  %v10787_v0 = vmin.f32 %v10782_v26, %v7931_v8 }
 0x2d6   :  { %v3974_v62 = vsub.f32 %v3910_v2, %v10780_v52  ;;  %v8810_v42 = vsub.f32 %v3436_v40, %v10783_v45  ;;  %v3394_v2 = vpop.permute.xlu0 %3393  ;;  %v3912_v52 = vmax.f32 %v3182_v13, %v8061_v16  ;;  %v10788_v40 = vld [vmem:[#allocation165_spill] sm:$0xff]  ;;  %v10791_v13 = vld [vmem:[#allocation162_spill] sm:$0xff] }
 0x2d7   :  { %v8814_v55 = vmul.f32 %v10784_v54, %v3488_v50  ;;  %v3490_v46 = vmax.f32 %v3458_v22, 0.0  ;;  %v8824_v45 = vsub.f32 %v3952_v24, %v10787_v0  ;;  %v10789_v43 = vmax.f32 %v10788_v40, %v7931_v8  ;;  %v10790_v54 = vld [vmem:[#allocation42_spill] sm:$0xff] }
 0x2d8   :  { %v8817_v19 = vmul.f32 %v8683_v51, %v3974_v62  ;;  %v3954_v22 = vmax.f32 %v3386_v33, %v8417_v17  ;;  %v3440_v51 = vmin.f32 %v3394_v2, %v8417_v17  ;;  %v4158_v62 = vsub.f32 2.0, %v4126_v60  ;;  %3751 = vperm.xlu0 %4791, %v10790_v54  }
 0x2d9   :  { %10785 = vst [vmem:[#allocation149_spill] sm:$0xff] %v8814_v55  ;;  %v8829_v50 = vsub.f32 %v3438_v48, %v10789_v43  ;;  %v10792_v36 = vmax.f32 %v10791_v13, %v7753_v1  ;;  %v10793_v24 = vmin.f32 %v10791_v13, %v7753_v1  ;;  %v10794_v55 = vld [vmem:[#allocation24_spill] sm:$0xff]  ;;  %v4128_v48 = vmul.f32 %v5186_v27, %v8708_v21  ;;  %v3190_v43 = vpop.permute.xlu1 %3189  ;;  %v5188_v3 = vpop.eup %5187 }
 0x2da   :  { %10786 = vst [vmem:[#allocation21_spill] sm:$0xff] %v8817_v19  ;;  %5191 = vrcp.f32 %v8817_v19  ;;  %3676 = vperm.xlu1 %4792, %v10794_v55   ;;  %v8844_v60 = vmul.f32 %v5182_v37, %v4156_v15  ;;  %v8848_v54 = vmul.f32 %v10796_v7, %v3490_v46  ;;  %v3914_v55 = vmax.f32 %v3190_v43, %v8061_v16 }
 0x2db   :  { %v3460_v26 = vsub.f32 %v3264_v59, %v10792_v36  ;;  %v3976_v0 = vsub.f32 %v3912_v52, %v10793_v24  ;;  %v3402_v59 = vpop.permute.xlu0 %3401  ;;  %v3266_v52 = vmin.f32 %v3190_v43, %v8061_v16  ;;  %v10799_v37 = vmin.f32 %v10788_v40, %v7931_v8  ;;  %v10803_v24 = vld [vmem:[#allocation164_spill] sm:$0xff] }
 0x2dc   :  { %10795 = vst [vmem:[#allocation150_spill] sm:$0xff] %v8844_v60  ;;  %10797 = vst [vmem:[#allocation7_spill] sm:$0xff] %v8848_v54  ;;  %v10801_v7 = vmax.f32 %v10800_v56, %v7931_v8  ;;  %v10805_v40 = vmin.f32 %v10803_v24, %v7753_v1  ;;  %v8876_v13 = vmul.f32 %v5184_v23, %v4158_v62 }
 0x2dd   :  { %v3492_v9 = vmax.f32 %v3460_v26, 0.0  ;;  %v8851_v36 = vmul.f32 %v8716_v30, %v3976_v0  ;;  %v8859_v15 = vsub.f32 %v3954_v22, %v10799_v37  ;;  %v3956_v30 = vmax.f32 %v3394_v2, %v8417_v17  ;;  %v10802_v26 = vld [vmem:[#allocation33_spill] sm:$0xff]  ;;  %v10806_v37 = vld [vmem:[#allocation26_spill] sm:$0xff]  ;;  %v3198_v33 = vpop.permute.xlu1 %3197 }
 0x2de   :  { %v8864_v46 = vsub.f32 %v3440_v51, %v10801_v7  ;;  %3761 = vperm.xlu0 %4791, %v10802_v26   ;;  %v10804_v0 = vmax.f32 %v10803_v24, %v7753_v1  ;;  %v3978_v22 = vsub.f32 %v3914_v55, %v10805_v40  ;;  %3686 = vperm.xlu1 %4792, %v10806_v37   ;;  %v4160_v51 = vsub.f32 2.0, %v4128_v48  ;;  %v5190_v21 = vpop.eup %5189 }
 0x2df   :  { %10798 = vst [vmem:[#allocation151_spill] sm:$0xff] %v8851_v36  ;;  %5193 = vrcp.f32 %v8851_v36  ;;  %10807 = vst [vmem:[#allocation148_spill] sm:$0xff] %v8876_v13  ;;  %v4130_v7 = vmul.f32 %v5188_v3, %v8750_v12  ;;  %v3442_v2 = vmin.f32 %v3402_v59, %v8417_v17  ;;  %v10808_v26 = vmax.f32 %v8704_v29, 0.0  ;;  %v2334_v29 = vpop.permute.xlu0 %2333 }
 0x2e0   :  { %v3462_v43 = vsub.f32 %v3266_v52, %v10804_v0  ;;  %v8885_v0 = vmul.f32 %v8741_v18, %v3978_v22  ;;  %v3268_v55 = vmin.f32 %v3198_v33, %v8061_v16  ;;  %v3916_v23 = vmax.f32 %v3198_v33, %v8061_v16  ;;  %v10812_v18 = vld [vmem:[#allocation102_spill] sm:$0xff] }
 0x2e1   :  { %v8882_v54 = vmul.f32 %v10808_v26, %v3492_v9  ;;  %v4132_v62 = vmul.f32 %v5190_v21, %v8783_v49  ;;  %v10811_v24 = vmin.f32 %v10800_v56, %v7931_v8  ;;  %v3958_v9 = vmax.f32 %v3402_v59, %v8417_v17  ;;  %v10813_v22 = vld [vmem:[#allocation166_spill] sm:$0xff]  ;;  %v3206_v49 = vpop.permute.xlu1 %3205 }
 0x2e2   :  { %v3494_v52 = vmax.f32 %v3462_v43, 0.0  ;;  %10810 = vst [vmem:[#allocation152_spill] sm:$0xff] %v8885_v0  ;;  %5195 = vrcp.f32 %v8885_v0  ;;  %v2464_v43 = vsub.f32 %v2334_v29, %v10812_v18  ;;  %v10814_v37 = vmax.f32 %v10813_v22, %v7753_v1 }
 0x2e3   :  { %10809 = vst [vmem:[#allocation23_spill] sm:$0xff] %v8882_v54  ;;  %v8894_v40 = vsub.f32 %v3956_v30, %v10811_v24  ;;  %v10815_v26 = vmin.f32 %v10813_v22, %v7753_v1  ;;  %v10816_v54 = vld [vmem:[#allocation28_spill] sm:$0xff]  ;;  %v4162_v56 = vsub.f32 2.0, %v4130_v7  ;;  %v10817_v30 = vld [vmem:[#allocation46_spill] sm:$0xff]  ;;  %v8911_v12 = vmul.f32 %v5186_v27, %v4160_v51  ;;  %v2346_v51 = vpop.permute.xlu0 %2345 }
 0x2e4   :  { %v3464_v33 = vsub.f32 %v3268_v55, %v10814_v37  ;;  %3696 = vperm.xlu1 %4792, %v10816_v54   ;;  %v10818_v24 = vmax.f32 %v10817_v30, %v7931_v8  ;;  %v10820_v29 = vmax.f32 %v8721_v25, 0.0  ;;  %v5192_v55 = vpop.eup %5191  ;;  %v2496_v37 = vand.u32 2147483647, %v2464_v43 }
 0x2e5   :  { %v3980_v48 = vsub.f32 %v3916_v23, %v10815_v26  ;;  %10819 = vst [vmem:[#allocation14_spill] sm:$0xff] %v8911_v12  ;;  %v3270_v54 = vmin.f32 %v3206_v49, %v8061_v16  ;;  %v4164_v7 = vsub.f32 2.0, %v4132_v62  ;;  %v4134_v22 = vmul.f32 %v5192_v55, %v8817_v19 }
 0x2e6   :  { %v8909_v59 = vsub.f32 %v3442_v2, %v10818_v24  ;;  %v8915_v13 = vmul.f32 %v10820_v29, %v3494_v52  ;;  %v3496_v60 = vmax.f32 %v3464_v33, 0.0  ;;  %v10823_v2 = vmin.f32 %v10817_v30, %v7931_v8  ;;  %v10824_v52 = vld [vmem:[#allocation50_spill] sm:$0xff]  ;;  %v3214_v29 = vpop.permute.xlu1 %3213 }
 0x2e7   :  { %v8918_v23 = vmul.f32 %v8758_v41, %v3980_v48  ;;  %v3918_v25 = vmax.f32 %v3206_v49, %v8061_v16  ;;  %v2528_v26 = vadd.f32 %v2496_v37, %v10824_v52  ;;  %v2467_v41 = vsub.f32 %v2346_v51, %v10812_v18  ;;  %v10825_v48 = vld [vmem:[#allocation41_spill] sm:$0xff]  ;;  %v10827_v33 = vld [vmem:[#allocation30_spill] sm:$0xff]  ;;  %v10832_v52 = vld [vmem:[#allocation68_spill] sm:$0xff] }
 0x2e8   :  { %10821 = vst [vmem:[#allocation153_spill] sm:$0xff] %v8915_v13  ;;  %v8925_v27 = vsub.f32 %v3958_v9, %v10823_v2  ;;  %v10826_v43 = vmax.f32 %v10825_v48, %v7753_v1  ;;  %3706 = vperm.xlu1 %4792, %v10827_v33   ;;  %v10828_v9 = vmin.f32 %v10825_v48, %v7753_v1  ;;  %v10830_v37 = vmax.f32 %v8746_v14, 0.0  ;;  %v10835_v14 = vld [vmem:[#allocation78_spill] sm:$0xff]  ;;  %v10836_v48 = vld [vmem:[#allocation52_spill] sm:$0xff] }
 0x2e9   :  { %10822 = vst [vmem:[#allocation25_spill] sm:$0xff] %v8918_v23  ;;  %5197 = vrcp.f32 %v8918_v23  ;;  %v8939_v49 = vmul.f32 %v5188_v3, %v4162_v56  ;;  %v8945_v51 = vpop.eup %5193  ;;  %v2756_v13 = vadd.f32 %v10832_v52, %v2528_v26  ;;  %v3272_v33 = vmin.f32 %v3214_v29, %v8061_v16  ;;  %v10842_v52 = vld [vmem:[#allocation98_spill] sm:$0xff] }
 0x2ea   :  { %v3466_v62 = vsub.f32 %v3270_v54, %v10826_v43  ;;  %v3982_v30 = vsub.f32 %v3918_v25, %v10828_v9  ;;  %v8943_v2 = vmul.f32 %v10830_v37, %v3496_v60  ;;  %v2499_v54 = vand.u32 2147483647, %v2467_v41  ;;  %v2354_v25 = vpop.permute.xlu0 %2353 }
 0x2eb   :  { %10829 = vst [vmem:[#allocation154_spill] sm:$0xff] %v8939_v49  ;;  %v4166_v24 = vsub.f32 2.0, %v4134_v22  ;;  %v3920_v3 = vmax.f32 %v3214_v29, %v8061_v16  ;;  %v8953_v56 = vmul.f32 %v5190_v21, %v4164_v7  ;;  %v8956_v60 = vadd.f32 %v2756_v13, %v10835_v14  ;;  %v10838_v22 = vld [vmem:[#allocation39_spill] sm:$0xff]  ;;  %v3222_v7 = vpop.permute.xlu1 %3221 }
 0x2ec   :  { %10831 = vst [vmem:[#allocation16_spill] sm:$0xff] %v8943_v2  ;;  %v3498_v43 = vmax.f32 %v3466_v62, 0.0  ;;  %v8950_v19 = vmul.f32 %v8790_v10, %v3982_v30  ;;  %v2531_v9 = vadd.f32 %v2499_v54, %v10836_v48  ;;  %v2469_v26 = vsub.f32 %v2354_v25, %v10812_v18  ;;  %3716 = vperm.xlu1 %4792, %v10838_v22   ;;  %v5196_v37 = vpop.eup %5195  ;;  %v10956_v2 = vld [vmem:[#allocation133_spill] sm:$0xff] }
 0x2ed   :  { %10834 = vst [vmem:[#allocation157_spill] sm:$0xff] %v8953_v56  ;;  %v10837_v41 = vmax.f32 %v10615_v20, %v7753_v1  ;;  %v4136_v10 = vmul.f32 %v8945_v51, %v8851_v36  ;;  %v10839_v21 = vmin.f32 %v10615_v20, %v7753_v1  ;;  %v10840_v30 = vmax.f32 %v8779_v53, 0.0  ;;  %v10845_v53 = vld [vmem:[#allocation81_spill] sm:$0xff] }
 0x2ee   :  { %10833 = vst [vmem:[#allocation155_spill] sm:$0xff] %v8950_v19  ;;  %5199 = vrcp.f32 %v8950_v19  ;;  %v2759_v54 = vadd.f32 %v10842_v52, %v2531_v9  ;;  %v3274_v14 = vmin.f32 %v3222_v7, %v8061_v16  ;;  %v4138_v48 = vmul.f32 %v5196_v37, %v8885_v0  ;;  %v2362_v22 = vpop.permute.xlu0 %2361  ;;  %v10848_v52 = vld [vmem:[#allocation44_spill] sm:$0xff] }
 0x2ef   :  { %v3468_v62 = vsub.f32 %v3272_v33, %v10837_v41  ;;  %v3984_v13 = vsub.f32 %v3920_v3, %v10839_v21  ;;  %v8972_v29 = vmul.f32 %v10840_v30, %v3498_v43  ;;  %v2501_v33 = vand.u32 2147483647, %v2469_v26  ;;  %v10846_v21 = vld [vmem:[#allocation53_spill] sm:$0xff] }
 0x2f0   :  { %v3922_v20 = vmax.f32 %v3222_v7, %v8061_v16  ;;  %v8981_v3 = vmul.f32 %v5192_v55, %v4166_v24  ;;  %v8984_v43 = vadd.f32 %v2759_v54, %v10845_v53  ;;  %v2471_v9 = vsub.f32 %v2362_v22, %v10812_v18  ;;  %3726 = vperm.xlu1 %4792, %v10848_v52   ;;  %v10852_v22 = vld [vmem:[#allocation101_spill] sm:$0xff] }
 0x2f1   :  { %10841 = vst [vmem:[#allocation27_spill] sm:$0xff] %v8972_v29  ;;  %v3500_v25 = vmax.f32 %v3468_v62, 0.0  ;;  %v8978_v41 = vmul.f32 %v8824_v45, %v3984_v13  ;;  %v2533_v30 = vadd.f32 %v2501_v33, %v10846_v21  ;;  %v10847_v26 = vmax.f32 %v10620_v58, %v7753_v1  ;;  %v3230_v13 = vpop.permute.xlu1 %3229 }
 0x2f2   :  { %10844 = vst [vmem:[#allocation18_spill] sm:$0xff] %v8981_v3  ;;  %v4168_v45 = vsub.f32 2.0, %v4136_v10  ;;  %v10849_v55 = vmin.f32 %v10620_v58, %v7753_v1  ;;  %v10850_v7 = vmax.f32 %v8810_v42, 0.0  ;;  %v2503_v21 = vand.u32 2147483647, %v2471_v9  ;;  %v2370_v58 = vpop.permute.xlu0 %2369  ;;  %v10856_v9 = vld [vmem:[#allocation49_spill] sm:$0xff] }
 0x2f3   :  { %10843 = vst [vmem:[#allocation156_spill] sm:$0xff] %v8978_v41  ;;  %v3470_v62 = vsub.f32 %v3274_v14, %v10847_v26  ;;  %5201 = vrcp.f32 %v8978_v41  ;;  %v5198_v33 = vpop.eup %5197  ;;  %v2761_v53 = vadd.f32 %v10852_v22, %v2533_v30  ;;  %v3276_v14 = vmin.f32 %v3230_v13, %v8061_v16 }
 0x2f4   :  { %v3986_v24 = vsub.f32 %v3922_v20, %v10849_v55  ;;  %v8998_v54 = vmul.f32 %v10850_v7, %v3500_v25  ;;  %v4170_v26 = vsub.f32 2.0, %v4138_v48  ;;  %v4140_v10 = vmul.f32 %v5198_v33, %v8918_v23  ;;  %v10854_v55 = vld [vmem:[#allocation87_spill] sm:$0xff]  ;;  %v10855_v25 = vld [vmem:[#allocation61_spill] sm:$0xff] }
 0x2f5   :  { %v3502_v29 = vmax.f32 %v3470_v62, 0.0  ;;  %v3924_v20 = vmax.f32 %v3230_v13, %v8061_v16  ;;  %v9008_v42 = vadd.f32 %v2761_v53, %v10854_v55  ;;  %v2535_v7 = vadd.f32 %v2503_v21, %v10855_v25  ;;  %v10858_v48 = vld [vmem:[#allocation45_spill] sm:$0xff]  ;;  %v3238_v13 = vpop.permute.xlu1 %3237 }
 0x2f6   :  { %10851 = vst [vmem:[#allocation159_spill] sm:$0xff] %v8998_v54  ;;  %v9004_v52 = vmul.f32 %v8859_v15, %v3986_v24  ;;  %v2473_v30 = vsub.f32 %v2370_v58, %v10812_v18  ;;  %v10857_v62 = vmax.f32 %v10856_v9, %v7753_v1  ;;  %3736 = vperm.xlu1 %4792, %v10858_v48   ;;  %v4172_v54 = vsub.f32 2.0, %v4140_v10  ;;  %v10862_v21 = vld [vmem:[#allocation69_spill] sm:$0xff]  ;;  %v2378_v48 = vpop.permute.xlu0 %2377 }
 0x2f7   :  { %v10859_v15 = vmin.f32 %v10856_v9, %v7753_v1  ;;  %v10860_v53 = vmax.f32 %v8829_v50, 0.0  ;;  %v2763_v58 = vadd.f32 %v10862_v21, %v2535_v7  ;;  %v3926_v0 = vmax.f32 %v3238_v13, %v8061_v16 }
 0x2f8   :  { %10853 = vst [vmem:[#allocation29_spill] sm:$0xff] %v9004_v52  ;;  %v3472_v22 = vsub.f32 %v3276_v14, %v10857_v62  ;;  %5203 = vrcp.f32 %v9004_v52  ;;  %v2505_v25 = vand.u32 2147483647, %v2473_v30  ;;  %v3278_v14 = vmin.f32 %v3238_v13, %v8061_v16  ;;  %v5200_v62 = vpop.eup %5199  ;;  %v10867_v30 = vld [vmem:[#allocation59_spill] sm:$0xff] }
 0x2f9   :  { %v3988_v24 = vsub.f32 %v3924_v20, %v10859_v15  ;;  %v9022_v55 = vmul.f32 %v10860_v53, %v3502_v29  ;;  %v9031_v20 = vmul.f32 %v8945_v51, %v4168_v45  ;;  %v9033_v9 = vmul.f32 %v5196_v37, %v4170_v26  ;;  %v10866_v29 = vld [vmem:[#allocation86_spill] sm:$0xff]  ;;  %v10868_v53 = vld [vmem:[#allocation35_spill] sm:$0xff] }
 0x2fa   :  { %v3504_v23 = vmax.f32 %v3472_v22, 0.0  ;;  %v4142_v50 = vmul.f32 %v5200_v62, %v8950_v19  ;;  %v9037_v7 = vadd.f32 %v2763_v58, %v10866_v29  ;;  %v2537_v22 = vadd.f32 %v2505_v25, %v10867_v30  ;;  %3746 = vperm.xlu1 %4792, %v10868_v53   ;;  %v10873_v13 = vld [vmem:[#allocation103_spill] sm:$0xff]  ;;  %v3282_v25 = vpop.permute.xlu1 %3281  ;;  %v10946_v19 = vld [vmem:[#allocation126_spill] sm:$0xff] }
 0x2fb   :  { %10861 = vst [vmem:[#allocation158_spill] sm:$0xff] %v9022_v55  ;;  %v9027_v10 = vmul.f32 %v8894_v40, %v3988_v24  ;;  %10864 = vst [vmem:[#allocation161_spill] sm:$0xff] %v9031_v20  ;;  %v2475_v15 = vsub.f32 %v2378_v48, %v10812_v18  ;;  %v10869_v16 = vmax.f32 %v10628_v35, %v7753_v1  ;;  %v10871_v45 = vmax.f32 %v8864_v46, 0.0 }
 0x2fc   :  { %10865 = vst [vmem:[#allocation31_spill] sm:$0xff] %v9033_v9  ;;  %v10870_v51 = vmin.f32 %v10628_v35, %v7753_v1  ;;  %v4174_v24 = vsub.f32 2.0, %v4142_v50  ;;  %v2765_v21 = vadd.f32 %v10873_v13, %v2537_v22  ;;  %v9054_v48 = vmul.f32 %v5198_v33, %v4172_v54  ;;  %v10877_v50 = vld [vmem:[#allocation55_spill] sm:$0xff]  ;;  %v10878_v33 = vld [vmem:[#allocation48_spill] sm:$0xff] }
 0x2fd   :  { %10863 = vst [vmem:[#allocation20_spill] sm:$0xff] %v9027_v10  ;;  %5205 = vrcp.f32 %v9027_v10  ;;  %v3474_v40 = vsub.f32 %v3278_v14, %v10869_v16  ;;  %v9051_v26 = vmul.f32 %v10871_v45, %v3504_v23  ;;  %v2507_v58 = vand.u32 2147483647, %v2475_v15  ;;  %v5202_v29 = vpop.eup %5201  ;;  %v2386_v14 = vpop.permute.xlu0 %2385  ;;  %v10882_v45 = vld [vmem:[#allocation70_spill] sm:$0xff] }
 0x2fe   :  { %v3990_v37 = vsub.f32 %v3926_v0, %v10870_v51  ;;  %10874 = vst [vmem:[#allocation22_spill] sm:$0xff] %v9054_v48  ;;  %v3412_v1 = vmin.f32 %v3282_v25, %v8417_v17  ;;  %v3928_v35 = vmax.f32 %v3282_v25, %v8417_v17  ;;  %v4144_v46 = vmul.f32 %v5202_v29, %v8978_v41  ;;  %v10876_v0 = vld [vmem:[#allocation90_spill] sm:$0xff] }
 0x2ff   :  { %10872 = vst [vmem:[#allocation160_spill] sm:$0xff] %v9051_v26  ;;  %v3506_v30 = vmax.f32 %v3474_v40, 0.0  ;;  %v9063_v23 = vadd.f32 %v2765_v21, %v10876_v0  ;;  %v2539_v22 = vadd.f32 %v2507_v58, %v10877_v50  ;;  %v2477_v54 = vsub.f32 %v2386_v14, %v10812_v18  ;;  %3756 = vperm.xlu1 %4792, %v10878_v33   ;;  %v3290_v58 = vpop.permute.xlu1 %3289  ;;  %v10885_v33 = vld [vmem:[#allocation77_spill] sm:$0xff] }
 0x300   :  { %v9057_v53 = vmul.f32 %v8925_v27, %v3990_v37  ;;  %v10879_v27 = vmax.f32 %v7706_v44, %v7931_v8  ;;  %v10880_v16 = vmin.f32 %v7706_v44, %v7931_v8  ;;  %v9075_v51 = vmul.f32 %v5200_v62, %v4174_v24 }
 0x301   :  { %v4176_v37 = vsub.f32 2.0, %v4144_v46  ;;  %v2767_v13 = vadd.f32 %v10882_v45, %v2539_v22  ;;  %v2509_v21 = vand.u32 2147483647, %v2477_v54  ;;  %v10883_v25 = vmax.f32 %v8909_v59, 0.0  ;;  %v10888_v22 = vld [vmem:[#allocation56_spill] sm:$0xff] }
 0x302   :  { %10875 = vst [vmem:[#allocation163_spill] sm:$0xff] %v9057_v53  ;;  %5207 = vrcp.f32 %v9057_v53  ;;  %v3508_v15 = vsub.f32 %v3412_v1, %v10879_v27  ;;  %v3992_v40 = vsub.f32 %v3928_v35, %v10880_v16  ;;  %10881 = vst [vmem:[#allocation165_spill] sm:$0xff] %v9075_v51  ;;  %v5204_v0 = vpop.eup %5203  ;;  %v2394_v1 = vpop.permute.xlu0 %2393  ;;  %v3414_v44 = vmin.f32 %v3290_v58, %v8417_v17  ;;  %v10886_v35 = vld [vmem:[#allocation89_spill] sm:$0xff] }
 0x303   :  { %v9080_v14 = vmul.f32 %v10883_v25, %v3506_v30  ;;  %v3930_v62 = vmax.f32 %v3290_v58, %v8417_v17  ;;  %v4146_v24 = vmul.f32 %v5204_v0, %v9004_v52  ;;  %v9089_v46 = vadd.f32 %v2767_v13, %v10886_v35  ;;  %v10893_v25 = vld [vmem:[#allocation93_spill] sm:$0xff]  ;;  %v3294_v35 = vpop.permute.xlu1 %3293 }
 0x304   :  { %v3540_v50 = vmax.f32 %v3508_v15, 0.0  ;;  %v9083_v26 = vmul.f32 %v3992_v40, %v10885_v33  ;;  %v2541_v54 = vadd.f32 %v2509_v21, %v10888_v22  ;;  %v2479_v59 = vsub.f32 %v2394_v1, %v10812_v18  ;;  %v10891_v40 = vld [vmem:[#allocation85_spill] sm:$0xff] }
 0x305   :  { %10884 = vst [vmem:[#allocation42_spill] sm:$0xff] %v9080_v14  ;;  %10887 = vst [vmem:[#allocation162_spill] sm:$0xff] %v9089_v46  ;;  %v10889_v30 = vmax.f32 %v7727_v57, %v7931_v8  ;;  %v10890_v15 = vmin.f32 %v7727_v57, %v7931_v8  ;;  %v10892_v45 = vmax.f32 %v10891_v40, 0.0  ;;  %v4178_v13 = vsub.f32 2.0, %v4146_v24 }
 0x306   :  { %5209 = vrcp.f32 %v9083_v26  ;;  %v2769_v33 = vadd.f32 %v10893_v25, %v2541_v54  ;;  %v2511_v21 = vand.u32 2147483647, %v2479_v59  ;;  %v9105_v1 = vmul.f32 %v5202_v29, %v4176_v37  ;;  %v10897_v54 = vld [vmem:[#allocation63_spill] sm:$0xff] }
 0x307   :  { %v3510_v27 = vsub.f32 %v3414_v44, %v10889_v30  ;;  %v3994_v16 = vsub.f32 %v3930_v62, %v10890_v15  ;;  %v9102_v58 = vmul.f32 %v3540_v50, %v10892_v45  ;;  %v5206_v22 = vpop.eup %5205  ;;  %v2402_v44 = vpop.permute.xlu0 %2401  ;;  %v3415_v57 = vmin.f32 %v3294_v35, %v8417_v17  ;;  %v10895_v30 = vld [vmem:[#allocation92_spill] sm:$0xff]  ;;  %v10901_v25 = vld [vmem:[#allocation95_spill] sm:$0xff] }
 0x308   :  { %10894 = vst [vmem:[#allocation24_spill] sm:$0xff] %v9105_v1  ;;  %v3931_v62 = vmax.f32 %v3294_v35, %v8417_v17  ;;  %v4148_v50 = vmul.f32 %v5206_v22, %v9027_v10  ;;  %v9114_v24 = vadd.f32 %v2769_v33, %v10895_v30  ;;  %v2543_v59 = vadd.f32 %v2511_v21, %v10897_v54  ;;  %v3302_v35 = vpop.permute.xlu1 %3301  ;;  %v10903_v10 = vld [vmem:[#allocation119_spill] sm:$0xff]  ;;  %v10936_v1 = vld [vmem:[#allocation129_spill] sm:$0xff] }
 0x309   :  { %v3542_v14 = vmax.f32 %v3510_v27, 0.0  ;;  %v9108_v52 = vmul.f32 %v3994_v16, %v8672_v4  ;;  %v2481_v29 = vsub.f32 %v2402_v44, %v10812_v18  ;;  %v10898_v4 = vmax.f32 %v7773_v63, %v7931_v8 }
 0x30a   :  { %10896 = vst [vmem:[#allocation37_spill] sm:$0xff] %v9114_v24  ;;  %v10899_v27 = vmin.f32 %v7773_v63, %v7931_v8  ;;  %v10900_v16 = vmax.f32 %v8650_v31, 0.0  ;;  %v4180_v45 = vsub.f32 2.0, %v4148_v50  ;;  %v2771_v33 = vadd.f32 %v10901_v25, %v2543_v59  ;;  %v10906_v59 = vld [vmem:[#allocation57_spill] sm:$0xff] }
 0x30b   :  { %5211 = vrcp.f32 %v9108_v52  ;;  %v3511_v37 = vsub.f32 %v3415_v57, %v10898_v4  ;;  %v2513_v21 = vand.u32 2147483647, %v2481_v29  ;;  %v9130_v44 = vmul.f32 %v5204_v0, %v4178_v13  ;;  %v2410_v57 = vpop.permute.xlu0 %2409  ;;  %v10910_v25 = vld [vmem:[#allocation97_spill] sm:$0xff] }
 0x30c   :  { %v3995_v15 = vsub.f32 %v3931_v62, %v10899_v27  ;;  %v9127_v40 = vmul.f32 %v3542_v14, %v10900_v16  ;;  %v5208_v30 = vpop.eup %5207  ;;  %v3417_v63 = vmin.f32 %v3302_v35, %v8417_v17  ;;  %v3933_v62 = vmax.f32 %v3302_v35, %v8417_v17  ;;  %v10904_v14 = vld [vmem:[#allocation91_spill] sm:$0xff]  ;;  %v3310_v35 = vpop.permute.xlu1 %3309 }
 0x30d   :  { %10902 = vst [vmem:[#allocation33_spill] sm:$0xff] %v9130_v44  ;;  %v3543_v54 = vmax.f32 %v3511_v37, 0.0  ;;  %v4150_v31 = vmul.f32 %v5208_v30, %v9057_v53  ;;  %v9139_v50 = vadd.f32 %v2771_v33, %v10904_v14  ;;  %v2545_v29 = vadd.f32 %v2513_v21, %v10906_v59 }
 0x30e   :  { %v9133_v55 = vmul.f32 %v3995_v15, %v10903_v10  ;;  %v2483_v0 = vsub.f32 %v2410_v57, %v10812_v18  ;;  %v10907_v10 = vmax.f32 %v7819_v47, %v7931_v8  ;;  %v10908_v4 = vmin.f32 %v7819_v47, %v7931_v8 }
 0x30f   :  { %10905 = vst [vmem:[#allocation164_spill] sm:$0xff] %v9139_v50  ;;  %v10909_v27 = vmax.f32 %v8164_v38, 0.0  ;;  %v4182_v16 = vsub.f32 2.0, %v4150_v31  ;;  %v2773_v33 = vadd.f32 %v10910_v25, %v2545_v29  ;;  %v9155_v57 = vmul.f32 %v5206_v22, %v4180_v45  ;;  %v10914_v29 = vld [vmem:[#allocation60_spill] sm:$0xff]  ;;  %v10918_v25 = vld [vmem:[#allocation71_spill] sm:$0xff] }
 0x310   :  { %5213 = vrcp.f32 %v9133_v55  ;;  %v3513_v13 = vsub.f32 %v3417_v63, %v10907_v10  ;;  %v3997_v37 = vsub.f32 %v3933_v62, %v10908_v4  ;;  %v2515_v21 = vand.u32 2147483647, %v2483_v0  ;;  %v5210_v14 = vpop.eup %5209  ;;  %v2418_v63 = vpop.permute.xlu0 %2417 }
 0x311   :  { %v9152_v15 = vmul.f32 %v3543_v54, %v10909_v27  ;;  %10911 = vst [vmem:[#allocation26_spill] sm:$0xff] %v9155_v57  ;;  %v3419_v47 = vmin.f32 %v3310_v35, %v8417_v17  ;;  %v3935_v62 = vmax.f32 %v3310_v35, %v8417_v17  ;;  %v4120_v38 = vmul.f32 %v5210_v14, %v9083_v26  ;;  %v10912_v54 = vld [vmem:[#allocation105_spill] sm:$0xff]  ;;  %v3318_v35 = vpop.permute.xlu1 %3317 }
 0x312   :  { %v3545_v59 = vmax.f32 %v3513_v13, 0.0  ;;  %v9158_v53 = vmul.f32 %v3997_v37, %v8215_v28  ;;  %v9164_v31 = vadd.f32 %v2773_v33, %v10912_v54  ;;  %v2547_v0 = vadd.f32 %v2515_v21, %v10914_v29 }
 0x313   :  { %v2485_v22 = vsub.f32 %v2418_v63, %v10812_v18  ;;  %v10915_v28 = vmax.f32 %v7865_v61, %v7931_v8  ;;  %v10916_v10 = vmin.f32 %v7865_v61, %v7931_v8  ;;  %v10917_v4 = vmax.f32 %v8175_v34, 0.0 }
 0x314   :  { %10913 = vst [vmem:[#allocation102_spill] sm:$0xff] %v9164_v31  ;;  %5215 = vrcp.f32 %v9158_v53  ;;  %v4152_v27 = vsub.f32 2.0, %v4120_v38  ;;  %v2775_v33 = vadd.f32 %v10918_v25, %v2547_v0  ;;  %v9180_v63 = vmul.f32 %v5208_v30, %v4182_v16  ;;  %v10922_v0 = vld [vmem:[#allocation65_spill] sm:$0xff] }
 0x315   :  { %v3515_v45 = vsub.f32 %v3419_v47, %v10915_v28  ;;  %v3999_v13 = vsub.f32 %v3935_v62, %v10916_v10  ;;  %v9177_v37 = vmul.f32 %v3545_v59, %v10917_v4  ;;  %v2517_v21 = vand.u32 2147483647, %v2485_v22  ;;  %v5212_v54 = vpop.eup %5211  ;;  %v2426_v47 = vpop.permute.xlu0 %2425  ;;  %v10920_v59 = vld [vmem:[#allocation104_spill] sm:$0xff]  ;;  %v10925_v4 = vld [vmem:[#allocation99_spill] sm:$0xff] }
 0x316   :  { %10919 = vst [vmem:[#allocation166_spill] sm:$0xff] %v9180_v63  ;;  %v3421_v61 = vmin.f32 %v3318_v35, %v8417_v17  ;;  %v3937_v62 = vmax.f32 %v3318_v35, %v8417_v17  ;;  %v4122_v34 = vmul.f32 %v5212_v54, %v9108_v52  ;;  %v9189_v38 = vadd.f32 %v2775_v33, %v10920_v59  ;;  %v3326_v35 = vpop.permute.xlu1 %3325 }
 0x317   :  { %v3547_v29 = vmax.f32 %v3515_v45, 0.0  ;;  %v9183_v57 = vmul.f32 %v3999_v13, %v8235_v5  ;;  %v2549_v22 = vadd.f32 %v2517_v21, %v10922_v0  ;;  %v2487_v30 = vsub.f32 %v2426_v47, %v10812_v18 }
 0x318   :  { %10921 = vst [vmem:[#allocation28_spill] sm:$0xff] %v9189_v38  ;;  %v10923_v5 = vmax.f32 %v7910_v6, %v7931_v8  ;;  %v10924_v28 = vmin.f32 %v7910_v6, %v7931_v8  ;;  %v9200_v10 = vmul.f32 %v5210_v14, %v4152_v27  ;;  %v4154_v13 = vsub.f32 2.0, %v4122_v34 }
 0x319   :  { %5217 = vrcp.f32 %v9183_v57  ;;  %v2777_v25 = vadd.f32 %v10925_v4, %v2549_v22  ;;  %v2519_v33 = vand.u32 2147483647, %v2487_v30  ;;  %v10926_v21 = vmax.f32 %v8203_v39, 0.0  ;;  %v10929_v22 = vld [vmem:[#allocation62_spill] sm:$0xff] }
 0x31a   :  { %v3517_v16 = vsub.f32 %v3421_v61, %v10923_v5  ;;  %v4001_v45 = vsub.f32 %v3937_v62, %v10924_v28  ;;  %v5214_v59 = vpop.eup %5213  ;;  %v2434_v61 = vpop.permute.xlu0 %2433  ;;  %v3423_v6 = vmin.f32 %v3326_v35, %v8417_v17  ;;  %v3939_v14 = vmax.f32 %v3326_v35, %v8417_v17  ;;  %v10927_v62 = vld [vmem:[#allocation114_spill] sm:$0xff]  ;;  %v10932_v28 = vld [vmem:[#allocation125_spill] sm:$0xff]  ;;  %v10934_v35 = vld [vmem:[#allocation72_spill] sm:$0xff] }
 0x31b   :  { %v9205_v47 = vmul.f32 %v3547_v29, %v10926_v21  ;;  %v4123_v27 = vmul.f32 %v5214_v59, %v9133_v55  ;;  %v9214_v34 = vadd.f32 %v2777_v25, %v10927_v62  ;;  %v2551_v30 = vadd.f32 %v2519_v33, %v10929_v22  ;;  %v3334_v62 = vpop.permute.xlu1 %3333 }
 0x31c   :  { %v3549_v0 = vmax.f32 %v3517_v16, 0.0  ;;  %v9208_v63 = vmul.f32 %v4001_v45, %v8250_v32  ;;  %v2489_v39 = vsub.f32 %v2434_v61, %v10812_v18  ;;  %v10930_v32 = vmax.f32 %v7960_v11, %v7931_v8 }
 0x31d   :  { %10928 = vst [vmem:[#allocation46_spill] sm:$0xff] %v9214_v34  ;;  %v10931_v5 = vmin.f32 %v7960_v11, %v7931_v8  ;;  %v10933_v45 = vmax.f32 %v10932_v28, 0.0  ;;  %v4155_v25 = vsub.f32 2.0, %v4123_v27  ;;  %v2779_v21 = vadd.f32 %v10934_v35, %v2551_v30  ;;  %v10939_v30 = vld [vmem:[#allocation67_spill] sm:$0xff] }
 0x31e   :  { %5219 = vrcp.f32 %v9208_v63  ;;  %v3519_v29 = vsub.f32 %v3423_v6, %v10930_v32  ;;  %v2521_v33 = vand.u32 2147483647, %v2489_v39  ;;  %v9230_v61 = vmul.f32 %v5212_v54, %v4154_v13  ;;  %v5216_v22 = vpop.eup %5215  ;;  %v2442_v6 = vpop.permute.xlu0 %2441  ;;  %v10937_v32 = vld [vmem:[#allocation112_spill] sm:$0xff]  ;;  %v10977_v34 = vld [vmem:[#allocation139_spill] sm:$0xff] }
 0x31f   :  { %v4003_v16 = vsub.f32 %v3939_v14, %v10931_v5  ;;  %v9227_v4 = vmul.f32 %v3549_v0, %v10933_v45  ;;  %v3425_v11 = vmin.f32 %v3334_v62, %v8417_v17  ;;  %v3941_v14 = vmax.f32 %v3334_v62, %v8417_v17  ;;  %v10940_v13 = vld [vmem:[#allocation96_spill] sm:$0xff]  ;;  %v10943_v45 = vld [vmem:[#allocation73_spill] sm:$0xff]  ;;  %v3342_v62 = vpop.permute.xlu1 %3341 }
 0x320   :  { %10935 = vst [vmem:[#allocation50_spill] sm:$0xff] %v9230_v61  ;;  %v3551_v44 = vmax.f32 %v3519_v29, 0.0  ;;  %v4125_v0 = vmul.f32 %v5216_v22, %v9158_v53  ;;  %v9239_v27 = vadd.f32 %v2779_v21, %v10937_v32  ;;  %v2553_v39 = vadd.f32 %v2521_v33, %v10939_v30  ;;  %v10944_v33 = vld [vmem:[#allocation127_spill] sm:$0xff] }
 0x321   :  { %v9233_v41 = vmul.f32 %v4003_v16, %v10936_v1  ;;  %v2491_v54 = vsub.f32 %v2442_v6, %v10812_v18  ;;  %v10941_v1 = vmax.f32 %v10940_v13, %v7931_v8  ;;  %v10942_v5 = vmin.f32 %v10940_v13, %v7931_v8 }
 0x322   :  { %10938 = vst [vmem:[#allocation41_spill] sm:$0xff] %v9239_v27  ;;  %v9250_v17 = vmul.f32 %v5214_v59, %v4155_v25  ;;  %v4157_v28 = vsub.f32 2.0, %v4125_v0  ;;  %v2781_v35 = vadd.f32 %v10943_v45, %v2553_v39  ;;  %v10945_v32 = vmax.f32 %v10944_v33, 0.0  ;;  %v9263_v59 = vld [vmem:[%s10005_s3 + $0x7] ss:$0 sm:$0xff]  ;;  %v10947_v39 = vld [vmem:[#allocation124_spill] sm:$0xff] }
 0x323   :  { %5221 = vrcp.f32 %v9233_v41  ;;  %v3521_v29 = vsub.f32 %v3425_v11, %v10941_v1  ;;  %v4005_v16 = vsub.f32 %v3941_v14, %v10942_v5  ;;  %v2523_v21 = vand.u32 2147483647, %v2491_v54  ;;  %v5218_v30 = vpop.eup %5217  ;;  %v2450_v11 = vpop.permute.xlu0 %2449  ;;  %v10949_v54 = vld [vmem:[#allocation36_spill] sm:$0xff]  ;;  %v10950_v1 = vld [vmem:[#allocation82_spill] sm:$0xff]  ;;  %s5443_s3 = smov [#allocation4]  }
 0x324   :  { %v9255_v6 = vmul.f32 %v3551_v44, %v10945_v32  ;;  %v3427_v25 = vmin.f32 %v3342_v62, %v9263_v59  ;;  %v3943_v14 = vmax.f32 %v3342_v62, %v9263_v59  ;;  %v4127_v0 = vmul.f32 %v5218_v30, %v9183_v57  ;;  %v10953_v32 = vld [vmem:[#allocation74_spill] sm:$0xff]  ;;  %v3350_v9 = vpop.permute.xlu1 %3349  ;;  %s4541_s11 = sshll.u32 %s5443_s3, 4  ;;  %s4542_s11 = int_to_ptr.vmem [resolvable:$true] %s4541_s11 }
 0x325   :  { %v3553_v51 = vmax.f32 %v3521_v29, 0.0  ;;  %v9258_v48 = vmul.f32 %v4005_v16, %v10946_v19  ;;  %v9269_v44 = vadd.f32 %v2781_v35, %v10947_v39  ;;  %v2555_v13 = vadd.f32 %v2523_v21, %v10949_v54  ;;  %v10954_v21 = vld [vmem:[#allocation118_spill] sm:$0xff]  ;;  %s5410_s12 = scalar_lea.vmem %s4542_s11, 4096  ;;  %p5415_p1 = scmp.lt.s32.totalorder %s4542_s11, %s4542_s11 }
 0x326   :  { %v2493_v19 = vsub.f32 %v2450_v11, %v10812_v18  ;;  %v10951_v29 = vmax.f32 %v10950_v1, %v7931_v8  ;;  %v10952_v16 = vmin.f32 %v10950_v1, %v7931_v8  ;;  %v9280_v62 = vmul.f32 %v5216_v22, %v4157_v28  ;;  %p5411_p0 = scmp.ne.s32.totalorder %s4542_s11, %s5410_s12  ;;  %p5416_p2 = scmp.lt.s32.totalorder %s5410_s12, %s5410_s12 }
 0x327   :  { %10948 = vst [vmem:[#allocation30_spill] sm:$0xff] %v9269_v44  ;;  %5223 = vrcp.f32 %v9258_v48  ;;  %v4159_v33 = vsub.f32 2.0, %v4127_v0  ;;  %v2783_v35 = vadd.f32 %v10953_v32, %v2555_v13  ;;  %v10955_v54 = vmax.f32 %v10954_v21, 0.0  ;;  %v10959_v13 = vld [vmem:[#allocation80_spill] sm:$0xff]  ;;  %v10966_v44 = vld [vmem:[#allocation130_spill] sm:$0xff] }
 0x328   :  { %v3523_v5 = vsub.f32 %v3427_v25, %v10951_v29  ;;  %v4007_v45 = vsub.f32 %v3943_v14, %v10952_v16  ;;  %v2525_v39 = vand.u32 2147483647, %v2493_v19  ;;  %v5220_v20 = vpop.eup %5219  ;;  %v2458_v25 = vpop.permute.xlu0 %2457  ;;  %v3429_v1 = vmin.f32 %v3350_v9, %v9263_v59  ;;  %v10957_v14 = vld [vmem:[#allocation122_spill] sm:$0xff]  ;;  %v10960_v29 = vld [vmem:[#allocation84_spill] sm:$0xff]  ;;  %p5417_p3 = por %p5416_p2, %p5415_p1 }
 0x329   :  { %v9285_v11 = vmul.f32 %v3553_v51, %v10955_v54  ;;  %v3945_v22 = vmax.f32 %v3350_v9, %v9263_v59  ;;  %v4129_v28 = vmul.f32 %v5220_v20, %v9208_v63  ;;  %v9294_v0 = vadd.f32 %v2783_v35, %v10957_v14  ;;  %v10963_v35 = vld [vmem:[#allocation75_spill] sm:$0xff]  ;;  %v3358_v14 = vpop.permute.xlu1 %3357 }
 0x32a   :  { %v3555_v36 = vmax.f32 %v3523_v5, 0.0  ;;  %v9288_v3 = vmul.f32 %v4007_v45, %v10956_v2  ;;  %v2557_v19 = vadd.f32 %v2525_v39, %v10959_v13  ;;  %v2495_v51 = vsub.f32 %v2458_v25, %v10812_v18  ;;  %v10964_v39 = vld [vmem:[#allocation120_spill] sm:$0xff]  ;;  %p5418_p4 = pnand %p5417_p3, %p5411_p0 }
 0x32b   :  { %10958 = vst [vmem:[#allocation68_spill] sm:$0xff] %v9294_v0  ;;  %v10961_v2 = vmax.f32 %v10960_v29, %v7931_v8  ;;  %v10962_v16 = vmin.f32 %v10960_v29, %v7931_v8  ;;  %v9305_v9 = vmul.f32 %v5218_v30, %v4159_v33  ;;  %v4161_v32 = vsub.f32 2.0, %v4129_v28 }
 0x32c   :  { %5225 = vrcp.f32 %v9288_v3  ;;  %v2527_v21 = vand.u32 2147483647, %v2495_v51  ;;  %v2785_v54 = vadd.f32 %v10963_v35, %v2557_v19  ;;  %v10965_v13 = vmax.f32 %v10964_v39, 0.0  ;;  %v10968_v19 = vld [vmem:[#allocation51_spill] sm:$0xff] }
 0x32d   :  { %v3525_v5 = vsub.f32 %v3429_v1, %v10961_v2  ;;  %v4009_v45 = vsub.f32 %v3945_v22, %v10962_v16  ;;  %v5222_v25 = vpop.eup %5221  ;;  %v3607_v1 = vpop.permute.xlu0 %3606  ;;  %v3431_v29 = vmin.f32 %v3358_v14, %v9263_v59  ;;  %v3947_v30 = vmax.f32 %v3358_v14, %v9263_v59  ;;  %v10967_v22 = vld [vmem:[#allocation83_spill] sm:$0xff]  ;;  %v10970_v2 = vld [vmem:[#allocation88_spill] sm:$0xff] }
 0x32e   :  { %v9310_v18 = vmul.f32 %v3555_v36, %v10965_v13  ;;  %v4131_v33 = vmul.f32 %v5222_v25, %v9233_v41  ;;  %v2559_v28 = vadd.f32 %v2527_v21, %v10967_v22  ;;  %v9320_v51 = vadd.f32 %v2785_v54, %v10968_v19  ;;  %v10974_v13 = vld [vmem:[#allocation76_spill] sm:$0xff]  ;;  %v3366_v22 = vpop.permute.xlu1 %3365 }
 0x32f   :  { %v3557_v0 = vmax.f32 %v3525_v5, 0.0  ;;  %v9313_v56 = vmul.f32 %v4009_v45, %v10966_v44  ;;  %v3768_v36 = vadd.f32 %v10970_v2, %v3607_v1  ;;  %v10971_v5 = vld [vmem:[#allocation115_spill] sm:$0xff]  ;;  %v9330_v14 = vmul.f32 %v5220_v20, %v4161_v32  ;;  %v10975_v19 = vld [vmem:[#allocation128_spill] sm:$0xff] }
 0x330   :  { %10969 = vst [vmem:[#allocation78_spill] sm:$0xff] %v9320_v51  ;;  %v10972_v44 = vmax.f32 %v10971_v5, %v7931_v8  ;;  %v10973_v45 = vmin.f32 %v10971_v5, %v7931_v8  ;;  %v4163_v39 = vsub.f32 2.0, %v4131_v33  ;;  %v2787_v21 = vadd.f32 %v10974_v13, %v2559_v28  ;;  %v10978_v33 = vld [vmem:[#allocation136_spill] sm:$0xff] }
 0x331   :  { %5227 = vrcp.f32 %v9313_v56  ;;  %v3800_v54 = vsub.f32 %v3768_v36, %v9102_v58  ;;  %v10976_v1 = vmax.f32 %v10975_v19, 0.0  ;;  %v5224_v27 = vpop.eup %5223  ;;  %v3949_v20 = vmax.f32 %v3366_v22, %v9263_v59  ;;  %v10980_v5 = vld [vmem:[#allocation116_spill] sm:$0xff] }
 0x332   :  { %v3527_v16 = vsub.f32 %v3431_v29, %v10972_v44  ;;  %v4011_v35 = vsub.f32 %v3947_v30, %v10973_v45  ;;  %v3622_v44 = vpop.permute.xlu0 %3621  ;;  %v3433_v30 = vmin.f32 %v3366_v22, %v9263_v59  ;;  %v4133_v32 = vmul.f32 %v5224_v27, %v9258_v48 }
 0x333   :  { %v9336_v51 = vmul.f32 %v3557_v0, %v10976_v1  ;;  %v9345_v28 = vadd.f32 %v2787_v21, %v10978_v33  ;;  %v4056_v36 = vsub.f32 %v9083_v26, %v3800_v54  ;;  %5229 = vrcp.f32 %v3800_v54  ;;  %v3374_v21 = vpop.permute.xlu1 %3373  ;;  %v10983_v26 = vld [vmem:[#allocation135_spill] sm:$0xff] }
 0x334   :  { %v3559_v49 = vmax.f32 %v3527_v16, 0.0  ;;  %v9339_v29 = vmul.f32 %v4011_v35, %v10977_v34  ;;  %v3771_v0 = vadd.f32 %v10970_v2, %v3622_v44  ;;  %v10981_v34 = vmax.f32 %v10980_v5, %v7931_v8 }
 0x335   :  { %10979 = vst [vmem:[#allocation52_spill] sm:$0xff] %v9345_v28  ;;  %v10982_v45 = vmin.f32 %v10980_v5, %v7931_v8  ;;  %v4165_v13 = vsub.f32 2.0, %v4133_v32  ;;  %v9357_v22 = vmul.f32 %v9200_v10, %v4056_v36  ;;  %v9359_v19 = vmul.f32 %v5222_v25, %v4163_v39 }
 0x336   :  { %5231 = vrcp.f32 %v9339_v29  ;;  %v3529_v16 = vsub.f32 %v3433_v30, %v10981_v34  ;;  %v10984_v1 = vmax.f32 %v10983_v26, 0.0  ;;  %v5226_v44 = vpop.eup %5225  ;;  %v9366_v28 = vsub.f32 %v3771_v0, %v9152_v15  ;;  %v10985_v34 = vld [vmem:[#allocation134_spill] sm:$0xff]  ;;  %v10986_v0 = vld [vmem:[#allocation117_spill] sm:$0xff] }
 0x337   :  { %v4013_v35 = vsub.f32 %v3949_v20, %v10982_v45  ;;  %v3632_v20 = vpop.permute.xlu0 %3631  ;;  %v3435_v32 = vmin.f32 %v3374_v21, %v9263_v59  ;;  %v4135_v10 = vmul.f32 %v5226_v44, %v9288_v3  ;;  %v3951_v39 = vmax.f32 %v3374_v21, %v9263_v59  ;;  %v10988_v45 = vld [vmem:[#allocation132_spill] sm:$0xff] }
 0x338   :  { %v9363_v33 = vmul.f32 %v3559_v49, %v10984_v1  ;;  %v3561_v30 = vmax.f32 %v3529_v16, 0.0  ;;  %v3773_v25 = vadd.f32 %v10970_v2, %v3632_v20  ;;  %v9375_v36 = vmul.f32 %v5224_v27, %v4165_v13  ;;  %v3382_v13 = vpop.permute.xlu1 %3381 }
 0x339   :  { %v9369_v38 = vmul.f32 %v4013_v35, %v10985_v34  ;;  %v4059_v49 = vsub.f32 %v9133_v55, %v9366_v28  ;;  %5233 = vrcp.f32 %v9366_v28  ;;  %v10987_v5 = vmax.f32 %v10986_v0, %v7931_v8 }
 0x33a   :  { %v10989_v35 = vmax.f32 %v10988_v45, 0.0  ;;  %v4167_v1 = vsub.f32 2.0, %v4135_v10  ;;  %v9389_v21 = vsub.f32 %v3773_v25, %v9177_v37  ;;  %v10990_v27 = vmin.f32 %v10986_v0, %v7931_v8  ;;  %v10991_v0 = vld [vmem:[#allocation34_spill] sm:$0xff] }
 0x33b   :  { %v3531_v16 = vsub.f32 %v3435_v32, %v10987_v5  ;;  %5235 = vrcp.f32 %v9369_v38  ;;  %v5228_v34 = vpop.eup %5227  ;;  %v9395_v20 = vmul.f32 %v9250_v17, %v4059_v49  ;;  %v3642_v5 = vpop.permute.xlu0 %3641  ;;  %v3953_v10 = vmax.f32 %v3382_v13, %v9263_v59  ;;  %v10992_v17 = vld [vmem:[#allocation131_spill] sm:$0xff] }
 0x33c   :  { %v9385_v26 = vmul.f32 %v3561_v30, %v10989_v35  ;;  %v4015_v55 = vsub.f32 %v3951_v39, %v10990_v27  ;;  %v3437_v30 = vmin.f32 %v3382_v13, %v9263_v59  ;;  %v4137_v45 = vmul.f32 %v5228_v34, %v9313_v56 }
 0x33d   :  { %v3563_v32 = vmax.f32 %v3531_v16, 0.0  ;;  %v4061_v25 = vsub.f32 %v9158_v53, %v9389_v21  ;;  %5237 = vrcp.f32 %v9389_v21  ;;  %v3775_v35 = vadd.f32 %v10970_v2, %v3642_v5  ;;  %v5230_v31 = vpop.eup %5229  ;;  %v10996_v5 = vld [vmem:[#allocation79_spill] sm:$0xff] }
 0x33e   :  { %v9404_v39 = vmul.f32 %v4015_v55, %v10991_v0  ;;  %v10993_v49 = vmax.f32 %v10992_v17, %v7931_v8  ;;  %v10995_v27 = vmin.f32 %v10992_v17, %v7931_v8  ;;  %v9415_v12 = vmul.f32 %v5226_v44, %v4167_v1  ;;  %v3390_v55 = vpop.permute.xlu1 %3389  ;;  %v10999_v1 = vld [vmem:[#allocation58_spill] sm:$0xff] }
 0x33f   :  { %v4169_v53 = vsub.f32 2.0, %v4137_v45  ;;  %v9418_v50 = vmul.f32 %v9280_v62, %v4061_v25  ;;  %v10997_v0 = vmax.f32 %v10996_v5, 0.0  ;;  %v9428_v17 = vsub.f32 %v3775_v35, %v9205_v47  ;;  %v3652_v62 = vpop.permute.xlu0 %3651 }
 0x340   :  { %v9410_v16 = vsub.f32 %v3437_v30, %v10993_v49  ;;  %v4017_v13 = vsub.f32 %v3953_v10, %v10995_v27  ;;  %5239 = vrcp.f32 %v9404_v39  ;;  %v9425_v30 = vpop.eup %5231  ;;  %v4280_v49 = vmul.f32 %v5230_v31, %v3800_v54 }
 0x341   :  { %v9423_v24 = vmul.f32 %v3563_v32, %v10997_v0  ;;  %v9436_v45 = vmul.f32 %v9425_v30, %v9339_v29  ;;  %v3777_v25 = vadd.f32 %v10970_v2, %v3652_v62  ;;  %v3439_v32 = vmin.f32 %v3390_v55, %v9263_v59 }
 0x342   :  { %10994 = vst [vmem:[#allocation39_spill] sm:$0xff] %v9410_v16  ;;  %v9432_v10 = vmul.f32 %v4017_v13, %v10999_v1  ;;  %v3955_v27 = vmax.f32 %v3390_v55, %v9263_v59  ;;  %v4312_v54 = vsub.f32 2.0, %v4280_v49  ;;  %v4063_v35 = vsub.f32 %v9183_v57, %v9428_v17  ;;  %v11001_v1 = vld [vmem:[#allocation137_spill] sm:$0xff]  ;;  %v3398_v55 = vpop.permute.xlu1 %3397 }
 0x343   :  { %10998 = vst [vmem:[#allocation98_spill] sm:$0xff] %v9423_v24  ;;  %5241 = vrcp.f32 %v9428_v17  ;;  %v9444_v5 = vmul.f32 %v5228_v34, %v4169_v53  ;;  %v9449_v0 = vsub.f32 %v3777_v25, %v9227_v4  ;;  %v11002_v62 = vmax.f32 %v11001_v1, %v7931_v8  ;;  %v5234_v49 = vpop.eup %5233  ;;  %v3662_v13 = vpop.permute.xlu0 %3661 }
 0x344   :  { %11000 = vst [vmem:[#allocation81_spill] sm:$0xff] %v9432_v10  ;;  %5243 = vrcp.f32 %v9432_v10  ;;  %v4344_v24 = vmul.f32 %v5230_v31, %v4312_v54  ;;  %v9457_v57 = vmul.f32 %v9305_v9, %v4063_v35  ;;  %v11004_v34 = vmin.f32 %v11001_v1, %v7931_v8 }
 0x345   :  { %v9454_v44 = vsub.f32 %v3439_v32, %v11002_v62  ;;  %v3441_v16 = vmin.f32 %v3398_v55, %v9263_v59  ;;  %v9463_v25 = vpop.eup %5235  ;;  %v4283_v61 = vmul.f32 %v5234_v49, %v9366_v28  ;;  %v4065_v32 = vsub.f32 %v9208_v63, %v9449_v0  ;;  %v11006_v63 = vld [vmem:[#allocation142_spill] sm:$0xff] }
 0x346   :  { %v4019_v53 = vsub.f32 %v3955_v27, %v11004_v34  ;;  %5245 = vrcp.f32 %v9449_v0  ;;  %v4376_v9 = vmul.f32 %v4344_v24, %v9102_v58  ;;  %v9473_v54 = vmul.f32 %v9463_v25, %v9369_v38  ;;  %v11005_v27 = vld [vmem:[#allocation11_spill] sm:$0xff]  ;;  %v3406_v24 = vpop.permute.xlu1 %3405 }
 0x347   :  { %11003 = vst [vmem:[#allocation53_spill] sm:$0xff] %v9454_v44  ;;  %v3779_v1 = vadd.f32 %v10970_v2, %v3662_v13  ;;  %v5238_v62 = vpop.eup %5237  ;;  %v4315_v28 = vsub.f32 2.0, %v4283_v61  ;;  %v9480_v34 = vmul.f32 %v9330_v14, %v4065_v32  ;;  %v11007_v46 = vmax.f32 %v11006_v63, %v7931_v8  ;;  %v3672_v61 = vpop.permute.xlu0 %3671 }
 0x348   :  { %v9476_v35 = vmul.f32 %v4019_v53, %v11005_v27  ;;  %v3957_v58 = vmax.f32 %v3398_v55, %v9263_v59  ;;  %v4408_v44 = vsub.f32 %v9357_v22, %v4376_v9  ;;  %v4285_v27 = vmul.f32 %v5238_v62, %v9389_v21 }
 0x349   :  { %v9485_v31 = vsub.f32 %v3441_v16, %v11007_v46  ;;  %v4347_v14 = vmul.f32 %v5234_v49, %v4315_v28  ;;  %v9495_v32 = vsub.f32 %v3779_v1, %v9255_v6  ;;  %v11009_v16 = vmin.f32 %v11006_v63, %v7931_v8  ;;  %v11010_v28 = vld [vmem:[#allocation8_spill] sm:$0xff] }
 0x34a   :  { %5247 = vrcp.f32 %v9476_v35  ;;  %v9492_v13 = vpop.eup %5239  ;;  %v4472_v22 = vadd.f32 %v8956_v60, %v4408_v44  ;;  %v4317_v9 = vsub.f32 2.0, %v4285_v27  ;;  %v3781_v53 = vadd.f32 %v10970_v2, %v3672_v61 }
 0x34b   :  { %11008 = vst [vmem:[#allocation44_spill] sm:$0xff] %v9485_v31  ;;  %v4021_v55 = vsub.f32 %v3957_v58, %v11009_v16  ;;  %v9504_v21 = vmul.f32 %v9492_v13, %v9404_v39  ;;  %v4379_v49 = vmul.f32 %v4347_v14, %v9152_v15  ;;  %v4067_v1 = vsub.f32 %v9233_v41, %v9495_v32  ;;  %v3682_v61 = vpop.permute.xlu0 %3681  ;;  %v3612_v15 = vpop.permute.xlu1 %3611 }
 0x34c   :  { %5249 = vrcp.f32 %v9495_v32  ;;  %4504 = vst [vmem:[#allocation4] sm:$0xff] %v4472_v22  ;;  %v4349_v60 = vmul.f32 %v5238_v62, %v4317_v9  ;;  %v9516_v58 = vsub.f32 %v3781_v53, %v9285_v11  ;;  %v3443_v27 = vmin.f32 %v3406_v24, %v9263_v59 }
 0x34d   :  { %v9512_v46 = vmul.f32 %v4021_v55, %v11010_v28  ;;  %v5242_v63 = vpop.eup %5241  ;;  %v4411_v41 = vsub.f32 %v9395_v20, %v4379_v49  ;;  %v9524_v55 = vmul.f32 %v9359_v19, %v4067_v1  ;;  %v11011_v49 = vld [vmem:[#allocation54_spill] sm:$0xff] }
 0x34e   :  { %v9519_v14 = vpop.eup %5243  ;;  %v4287_v16 = vmul.f32 %v5242_v63, %v9428_v17  ;;  %v4381_v62 = vmul.f32 %v4349_v60, %v9177_v37  ;;  %v4069_v22 = vsub.f32 %v9258_v48, %v9516_v58  ;;  %v11012_v19 = vmax.f32 %v11011_v49, %v7931_v8 }
 0x34f   :  { %5251 = vrcp.f32 %v9512_v46  ;;  %v9530_v53 = vmul.f32 %v9519_v14, %v9432_v10  ;;  %v4475_v20 = vadd.f32 %v8984_v43, %v4411_v41  ;;  %v3959_v37 = vmax.f32 %v3406_v24, %v9263_v59  ;;  %v3692_v31 = vpop.permute.xlu0 %3691  ;;  %v3617_v10 = vpop.permute.xlu1 %3616 }
 0x350   :  { %5253 = vrcp.f32 %v9516_v58  ;;  %v5246_v9 = vpop.eup %5245  ;;  %v4319_v17 = vsub.f32 2.0, %v4287_v16  ;;  %v9539_v1 = vsub.f32 %v3443_v27, %v11012_v19  ;;  %v4413_v28 = vsub.f32 %v9418_v50, %v4381_v62 }
 0x351   :  { %v4177_v60 = vsub.f32 2.0, %v9530_v53  ;;  %v4289_v44 = vmul.f32 %v5246_v9, %v9449_v0  ;;  %v9546_v48 = vmul.f32 %v9375_v36, %v4069_v22  ;;  %4507 = vst [vmem:[#allocation4 + $0x18] sm:$0xff] %v4475_v20  ;;  %v11013_v27 = vmin.f32 %v11011_v49, %v7931_v8  ;;  %v11014_v20 = vld [vmem:[#allocation10_spill] sm:$0xff] }
 0x352   :  { %v4351_v43 = vmul.f32 %v5242_v63, %v4319_v17  ;;  %v3571_v41 = vmax.f32 %v9539_v1, 0.0  ;;  %v3783_v59 = vadd.f32 %v10970_v2, %v3682_v61  ;;  %v4477_v24 = vadd.f32 %v9008_v42, %v4413_v28 }
 0x353   :  { %v4023_v16 = vsub.f32 %v3959_v37, %v11013_v27  ;;  %v4321_v0 = vsub.f32 2.0, %v4289_v44  ;;  %v3785_v36 = vadd.f32 %v10970_v2, %v3692_v31  ;;  %v3769_v62 = vadd.f32 %v10970_v2, %v3612_v15  ;;  %v11015_v31 = vld [vmem:[#allocation138_spill] sm:$0xff]  ;;  %v3702_v49 = vpop.permute.xlu0 %3701  ;;  %v3627_v19 = vpop.permute.xlu1 %3626 }
 0x354   :  { %v9553_v50 = vpop.eup %5247  ;;  %v4383_v22 = vmul.f32 %v4351_v43, %v9205_v47  ;;  %v9567_v61 = vsub.f32 %v3783_v59, %v9310_v18  ;;  %4509 = vst [vmem:[#allocation4 + $0x28] sm:$0xff] %v4477_v24  ;;  %v11016_v47 = vsub.f32 2.0, %v9436_v45 }
 0x355   :  { %v9561_v63 = vmul.f32 %v9553_v50, %v9476_v35  ;;  %v9564_v8 = vmul.f32 %v4023_v16, %v11014_v20  ;;  %v4353_v17 = vmul.f32 %v5246_v9, %v4321_v0  ;;  %v9570_v42 = vsub.f32 %v3785_v36, %v9336_v51 }
 0x356   :  { %v9573_v44 = vsub.f32 %v3769_v62, %v11015_v31  ;;  %v4203_v15 = vmul.f32 %v9425_v30, %v11016_v47  ;;  %v5250_v37 = vpop.eup %5249  ;;  %v4415_v28 = vsub.f32 %v9457_v57, %v4383_v22  ;;  %v4071_v9 = vsub.f32 %v9288_v3, %v9567_v61  ;;  %v11017_v3 = vld [vmem:[#allocation12_spill] sm:$0xff] }
 0x357   :  { %v4179_v43 = vsub.f32 2.0, %v9561_v63  ;;  %5255 = vrcp.f32 %v9564_v8  ;;  %v4385_v27 = vmul.f32 %v4353_v17, %v9227_v4  ;;  %v4291_v16 = vmul.f32 %v5250_v37, %v9495_v32  ;;  %v3637_v62 = vpop.permute.xlu1 %3636  ;;  %v11018_v22 = vld [vmem:[#allocation100_spill] sm:$0xff] }
 0x358   :  { %5257 = vrcp.f32 %v9567_v61  ;;  %v4073_v30 = vsub.f32 %v9313_v56, %v9570_v42  ;;  %v4479_v57 = vadd.f32 %v9037_v7, %v4415_v28  ;;  %v9592_v59 = vmul.f32 %v9415_v12, %v4071_v9  ;;  %v3712_v7 = vpop.permute.xlu0 %3711 }
 0x359   :  { %v9588_v45 = vpop.eup %5251  ;;  %5259 = vrcp.f32 %v9570_v42  ;;  %v4057_v24 = vsub.f32 %v11017_v3, %v9573_v44  ;;  %v4417_v32 = vsub.f32 %v9480_v34, %v4385_v27  ;;  %v4323_v0 = vsub.f32 2.0, %v4291_v16 }
 0x35a   :  { %v5254_v4 = vpop.eup %5253  ;;  %v9600_v36 = vmul.f32 %v9588_v45, %v9512_v46  ;;  %v9603_v56 = vmul.f32 %v9444_v5, %v4073_v30  ;;  %4511 = vst [vmem:[#allocation4 + $0x38] sm:$0xff] %v4479_v57  ;;  %5261 = vrcp.f32 %v9573_v44  ;;  %v3787_v34 = vadd.f32 %v10970_v2, %v3702_v49 }
 0x35b   :  { %v4293_v12 = vmul.f32 %v5254_v4, %v9516_v58  ;;  %v9607_v20 = vmul.f32 %v11018_v22, %v4057_v24  ;;  %v4481_v17 = vadd.f32 %v9063_v23, %v4417_v32  ;;  %v4355_v47 = vmul.f32 %v5250_v37, %v4323_v0  ;;  %v3647_v24 = vpop.permute.xlu1 %3646 }
 0x35c   :  { %v4181_v28 = vsub.f32 2.0, %v9600_v36  ;;  %v3770_v5 = vadd.f32 %v10970_v2, %v3617_v10  ;;  %v9615_v27 = vsub.f32 %v3787_v34, %v9363_v33  ;;  %v11019_v58 = vsub.f32 2.0, %v9473_v54  ;;  %v3722_v3 = vpop.permute.xlu0 %3721  ;;  %v11023_v34 = vld [vmem:[#allocation50_spill] sm:$0xff] }
 0x35d   :  { %v4325_v9 = vsub.f32 2.0, %v4293_v12  ;;  %v3789_v30 = vadd.f32 %v10970_v2, %v3712_v7  ;;  %4513 = vst [vmem:[#allocation4 + $0x48] sm:$0xff] %v4481_v17  ;;  %v4387_v49 = vmul.f32 %v4355_v47, %v9255_v6  ;;  %v3772_v37 = vadd.f32 %v10970_v2, %v3627_v19  ;;  %v11022_v12 = vld [vmem:[#allocation162_spill] sm:$0xff]  ;;  %v11024_v47 = vld [vmem:[#allocation15_spill] sm:$0xff] }
 0x35e   :  { %v4205_v16 = vmul.f32 %v9463_v25, %v11019_v58  ;;  %v9623_v23 = vsub.f32 %v3770_v5, %v9127_v40  ;;  %v11020_v10 = vsub.f32 2.0, %v9504_v21  ;;  %v4075_v25 = vsub.f32 %v9339_v29, %v9615_v27  ;;  %v11021_v21 = vld [vmem:[#allocation140_spill] sm:$0xff] }
 0x35f   :  { %v4357_v32 = vmul.f32 %v5254_v4, %v4325_v9  ;;  %5263 = vrcp.f32 %v9615_v27  ;;  %v9633_v54 = vsub.f32 %v3789_v30, %v9385_v26  ;;  %v4419_v6 = vsub.f32 %v9524_v55, %v4387_v49 }
 0x360   :  { %v4207_v57 = vmul.f32 %v9492_v13, %v11020_v10  ;;  %v4058_v19 = vsub.f32 %v9108_v52, %v9623_v23  ;;  %5265 = vrcp.f32 %v9623_v23  ;;  %v9640_v13 = vsub.f32 %v3772_v37, %v11021_v21  ;;  %v11025_v37 = vld [vmem:[#allocation150_spill] sm:$0xff] }
 0x361   :  { %v9642_v0 = vpop.eup %5255  ;;  %v4389_v4 = vmul.f32 %v4357_v32, %v9285_v11  ;;  %v9645_v29 = vmul.f32 %v4203_v15, %v4075_v25  ;;  %v4077_v7 = vsub.f32 %v9369_v38, %v9633_v54  ;;  %5267 = vrcp.f32 %v9633_v54  ;;  %v9660_v15 = vpop.permute.xlu1 %3656 }
 0x362   :  { %v5258_v55 = vpop.eup %5257  ;;  %v4483_v22 = vadd.f32 %v11022_v12, %v4419_v6  ;;  %v9653_v52 = vmul.f32 %v9642_v0, %v9564_v8  ;;  %v9656_v17 = vmul.f32 %v11023_v34, %v4058_v19  ;;  %v4060_v11 = vsub.f32 %v11024_v47, %v9640_v13  ;;  %v3732_v25 = vpop.permute.xlu0 %3731  ;;  %v11026_v19 = vld [vmem:[#allocation37_spill] sm:$0xff]  ;;  %v11029_v12 = vld [vmem:[#allocation39_spill] sm:$0xff] }
 0x363   :  { %v5260_v5 = vpop.eup %5259  ;;  %v4421_v38 = vsub.f32 %v9546_v48, %v4389_v4  ;;  %v4295_v9 = vmul.f32 %v5258_v55, %v9567_v61  ;;  %v9664_v58 = vmul.f32 %v4205_v16, %v4077_v7  ;;  %5269 = vrcp.f32 %v9640_v13  ;;  %v11027_v16 = vld [vmem:[#allocation43_spill] sm:$0xff] }
 0x364   :  { %4515 = vst [vmem:[#allocation4 + $0x58] sm:$0xff] %v4483_v22  ;;  %v4183_v30 = vsub.f32 2.0, %v9653_v52  ;;  %v4297_v49 = vmul.f32 %v5260_v5, %v9570_v42  ;;  %v9670_v10 = vmul.f32 %v11025_v37, %v4060_v11  ;;  %v3791_v32 = vadd.f32 %v10970_v2, %v3722_v3  ;;  %v5262_v6 = vpop.eup %5261  ;;  %v11031_v11 = vld [vmem:[#allocation98_spill] sm:$0xff]  ;;  %v11061_v52 = vld [vmem:[#allocation40_spill] sm:$0xff] }
 0x365   :  { %v4485_v48 = vadd.f32 %v11026_v19, %v4421_v38  ;;  %v4327_v4 = vsub.f32 2.0, %v4295_v9  ;;  %v3774_v61 = vadd.f32 %v10970_v2, %v3637_v62  ;;  %v11028_v7 = vmax.f32 %v11027_v16, 0.0  ;;  %v9688_v38 = vpop.permute.xlu1 %3666  ;;  %v11032_v9 = vld [vmem:[#allocation17_spill] sm:$0xff] }
 0x366   :  { %v11030_v22 = vmax.f32 %v11029_v12, 0.0  ;;  %v4329_v47 = vsub.f32 2.0, %v4297_v49  ;;  %v4281_v42 = vmul.f32 %v5262_v6, %v9573_v44  ;;  %v9683_v37 = vsub.f32 %v3791_v32, %v11031_v11 }
 0x367   :  { %v4209_v3 = vmul.f32 %v9519_v14, %v4177_v60  ;;  %4517 = vst [vmem:[#allocation4 + $0x68] sm:$0xff] %v4485_v48  ;;  %v4359_v62 = vmul.f32 %v5258_v55, %v4327_v4  ;;  %v9691_v19 = vsub.f32 %v3774_v61, %v11032_v9  ;;  %v3793_v16 = vadd.f32 %v10970_v2, %v3732_v25  ;;  %v11033_v60 = vld [vmem:[#allocation141_spill] sm:$0xff] }
 0x368   :  { %v9679_v34 = vmul.f32 %v11030_v22, %v11028_v7  ;;  %v3776_v49 = vadd.f32 %v10970_v2, %v3647_v24  ;;  %v4361_v7 = vmul.f32 %v5260_v5, %v4329_v47  ;;  %v4313_v44 = vsub.f32 2.0, %v4281_v42  ;;  %v11034_v47 = vld [vmem:[#allocation148_spill] sm:$0xff] }
 0x369   :  { %v4079_v32 = vsub.f32 %v9404_v39, %v9683_v37  ;;  %5271 = vrcp.f32 %v9683_v37  ;;  %v5264_v53 = vpop.eup %5263  ;;  %v4391_v14 = vmul.f32 %v4359_v62, %v9310_v18  ;;  %v4062_v55 = vsub.f32 %v11033_v60, %v9691_v19  ;;  %v9709_v61 = vpop.permute.xlu1 %3676  ;;  %v11035_v62 = vld [vmem:[#allocation81_spill] sm:$0xff] }
 0x36a   :  { %5273 = vrcp.f32 %v9691_v19  ;;  %v9703_v48 = vsub.f32 %v3793_v16, %v9679_v34  ;;  %v5266_v25 = vpop.eup %5265  ;;  %v4393_v24 = vmul.f32 %v4361_v7, %v9336_v51  ;;  %v4345_v5 = vmul.f32 %v5262_v6, %v4313_v44  ;;  %v3742_v7 = vpop.permute.xlu0 %3741 }
 0x36b   :  { %v4299_v4 = vmul.f32 %v5264_v53, %v9615_v27  ;;  %v9707_v39 = vmul.f32 %v4207_v57, %v4079_v32  ;;  %v5268_v12 = vpop.eup %5267  ;;  %v4423_v18 = vsub.f32 %v9592_v59, %v4391_v14  ;;  %v4282_v22 = vmul.f32 %v5266_v25, %v9623_v23  ;;  %v11036_v32 = vld [vmem:[#allocation164_spill] sm:$0xff]  ;;  %v11037_v23 = vld [vmem:[#allocation102_spill] sm:$0xff] }
 0x36c   :  { %v9714_v42 = vmul.f32 %v11034_v47, %v4062_v55  ;;  %v4081_v16 = vsub.f32 %v11035_v62, %v9703_v48  ;;  %v4425_v51 = vsub.f32 %v9603_v56, %v4393_v24  ;;  %v4377_v6 = vmul.f32 %v4345_v5, %v11015_v31  ;;  %v11038_v5 = vld [vmem:[#allocation143_spill] sm:$0xff] }
 0x36d   :  { %v4331_v27 = vsub.f32 2.0, %v4299_v4  ;;  %v4301_v57 = vmul.f32 %v5268_v12, %v9633_v54  ;;  %v5270_v44 = vpop.eup %5269  ;;  %v4487_v60 = vadd.f32 %v11036_v32, %v4423_v18  ;;  %v4314_v59 = vsub.f32 2.0, %v4282_v22  ;;  %v9727_v24 = vpop.permute.xlu1 %3686  ;;  %v11039_v18 = vld [vmem:[#allocation32_spill] sm:$0xff]  ;;  %v11041_v22 = vld [vmem:[#allocation53_spill] sm:$0xff] }
 0x36e   :  { %v9722_v14 = vmul.f32 %v4209_v3, %v4081_v16  ;;  %5275 = vrcp.f32 %v9703_v48  ;;  %v4489_v55 = vadd.f32 %v11037_v23, %v4425_v51  ;;  %v4409_v47 = vsub.f32 %v9607_v20, %v4377_v6  ;;  %v11043_v51 = vld [vmem:[#allocation38_spill] sm:$0xff] }
 0x36f   :  { %v4363_v62 = vmul.f32 %v5264_v53, %v4331_v27  ;;  %v4333_v56 = vsub.f32 2.0, %v4301_v57  ;;  %4519 = vst [vmem:[#allocation4 + $0x78] sm:$0xff] %v4487_v60  ;;  %v4346_v31 = vmul.f32 %v5266_v25, %v4314_v59  ;;  %v4284_v54 = vmul.f32 %v5270_v44, %v9640_v13  ;;  %v11044_v27 = vld [vmem:[#allocation146_spill] sm:$0xff] }
 0x370   :  { %v9731_v4 = vsub.f32 %v3776_v49, %v11038_v5  ;;  %v11040_v3 = vmax.f32 %v11039_v18, 0.0  ;;  %v11042_v16 = vmax.f32 %v11041_v22, 0.0  ;;  %4521 = vst [vmem:[#allocation4 + $0x88] sm:$0xff] %v4489_v55  ;;  %v4473_v20 = vadd.f32 %v11043_v51, %v4409_v47 }
 0x371   :  { %v4395_v53 = vmul.f32 %v4363_v62, %v9363_v33  ;;  %v4365_v6 = vmul.f32 %v5268_v12, %v4333_v56  ;;  %v4211_v25 = vmul.f32 %v9553_v50, %v4179_v43  ;;  %v4378_v13 = vmul.f32 %v4346_v31, %v9127_v40  ;;  %v3752_v50 = vpop.permute.xlu0 %3751  ;;  %v9753_v43 = vpop.permute.xlu1 %3696  ;;  %v11045_v62 = vld [vmem:[#allocation14_spill] sm:$0xff] }
 0x372   :  { %v9737_v32 = vmul.f32 %v11042_v16, %v11040_v3  ;;  %v4316_v49 = vsub.f32 2.0, %v4284_v54  ;;  %v4064_v57 = vsub.f32 %v11044_v27, %v9731_v4  ;;  %5277 = vrcp.f32 %v9731_v4  ;;  %4505 = vst [vmem:[#allocation4 + $0x8] sm:$0xff] %v4473_v20  ;;  %v11047_v54 = vld [vmem:[#allocation94_spill] sm:$0xff] }
 0x373   :  { %v5272_v60 = vpop.eup %5271  ;;  %v4427_v59 = vsub.f32 %v9645_v29, %v4395_v53  ;;  %v4397_v23 = vmul.f32 %v4365_v6, %v9385_v26  ;;  %v3795_v33 = vadd.f32 %v10970_v2, %v3742_v7  ;;  %v3778_v63 = vadd.f32 %v10970_v2, %v9660_v15  ;;  %v11046_v29 = vld [vmem:[#allocation28_spill] sm:$0xff]  ;;  %v11050_v6 = vld [vmem:[#allocation147_spill] sm:$0xff] }
 0x374   :  { %v5274_v40 = vpop.eup %5273  ;;  %v4410_v12 = vsub.f32 %v9656_v17, %v4378_v13  ;;  %v4348_v55 = vmul.f32 %v5270_v44, %v4316_v49  ;;  %v4303_v47 = vmul.f32 %v5272_v60, %v9683_v37  ;;  %v9758_v56 = vmul.f32 %v11045_v62, %v4064_v57  ;;  %v11048_v44 = vld [vmem:[#allocation19_spill] sm:$0xff]  ;;  %v11049_v37 = vld [vmem:[#allocation46_spill] sm:$0xff] }
 0x375   :  { %v4491_v31 = vadd.f32 %v11046_v29, %v4427_v59  ;;  %v4429_v26 = vsub.f32 %v9664_v58, %v4397_v23  ;;  %v4286_v7 = vmul.f32 %v5274_v40, %v9691_v19  ;;  %v9764_v15 = vsub.f32 %v3795_v33, %v9737_v32  ;;  %v9775_v19 = vpop.permute.xlu1 %3706  ;;  %v11053_v23 = vld [vmem:[#allocation44_spill] sm:$0xff] }
 0x376   :  { %v4474_v18 = vadd.f32 %v11047_v54, %v4410_v12  ;;  %v4380_v3 = vmul.f32 %v4348_v55, %v11021_v21  ;;  %v4335_v17 = vsub.f32 2.0, %v4303_v47  ;;  %v9769_v22 = vsub.f32 %v3778_v63, %v11048_v44  ;;  %v3762_v12 = vpop.permute.xlu0 %3761  ;;  %v11056_v47 = vld [vmem:[#allocation154_spill] sm:$0xff]  ;;  %v11057_v54 = vld [vmem:[#allocation9_spill] sm:$0xff] }
 0x377   :  { %4523 = vst [vmem:[#allocation4 + $0x98] sm:$0xff] %v4491_v31  ;;  %v4493_v16 = vadd.f32 %v11049_v37, %v4429_v26  ;;  %v4318_v51 = vsub.f32 2.0, %v4286_v7  ;;  %v4083_v58 = vsub.f32 %v9476_v35, %v9764_v15  ;;  %5279 = vrcp.f32 %v9764_v15  ;;  %v11051_v35 = vld [vmem:[#allocation47_spill] sm:$0xff]  ;;  %v11060_v37 = vld [vmem:[#allocation149_spill] sm:$0xff] }
 0x378   :  { %v5276_v20 = vpop.eup %5275  ;;  %4506 = vst [vmem:[#allocation4 + $0x10] sm:$0xff] %v4474_v18  ;;  %v4412_v53 = vsub.f32 %v9670_v10, %v4380_v3  ;;  %v4367_v21 = vmul.f32 %v5272_v60, %v4335_v17  ;;  %v4066_v13 = vsub.f32 %v11050_v6, %v9769_v22  ;;  %5281 = vrcp.f32 %v9769_v22  ;;  %v11055_v10 = vld [vmem:[#allocation64_spill] sm:$0xff] }
 0x379   :  { %4525 = vst [vmem:[#allocation4 + $0xa8] sm:$0xff] %v4493_v16  ;;  %v4350_v49 = vmul.f32 %v5274_v40, %v4318_v51  ;;  %v4305_v27 = vmul.f32 %v5276_v20, %v9703_v48  ;;  %v9782_v57 = vmul.f32 %v4211_v25, %v4083_v58  ;;  %v11052_v59 = vmax.f32 %v11051_v35, 0.0  ;;  %v3717_v26 = vpop.permute.xlu1 %3716  ;;  %v11062_v58 = vld [vmem:[#allocation13_spill] sm:$0xff] }
 0x37a   :  { %v11054_v33 = vmax.f32 %v11053_v23, 0.0  ;;  %v4476_v60 = vadd.f32 %v11055_v10, %v4412_v53  ;;  %v4399_v55 = vmul.f32 %v4367_v21, %v11031_v11  ;;  %v9793_v62 = vmul.f32 %v11056_v47, %v4066_v13  ;;  %v11063_v21 = vld [vmem:[#allocation7_spill] sm:$0xff]  ;;  %v11064_v35 = vld [vmem:[#allocation157_spill] sm:$0xff] }
 0x37b   :  { %v4213_v48 = vmul.f32 %v9588_v45, %v4181_v28  ;;  %v4382_v25 = vmul.f32 %v4350_v49, %v11032_v9  ;;  %v4337_v40 = vsub.f32 2.0, %v4305_v27  ;;  %v3797_v29 = vadd.f32 %v10970_v2, %v3752_v50  ;;  %v11066_v10 = vld [vmem:[#allocation21_spill] sm:$0xff] }
 0x37c   :  { %v9788_v63 = vmul.f32 %v11054_v33, %v11052_v59  ;;  %v3780_v31 = vadd.f32 %v10970_v2, %v9688_v38  ;;  %v5278_v7 = vpop.eup %5277  ;;  %4508 = vst [vmem:[#allocation4 + $0x20] sm:$0xff] %v4476_v60  ;;  %v4431_v11 = vsub.f32 %v9707_v39, %v4399_v55  ;;  %v11058_v18 = vmax.f32 %v11057_v54, 0.0  ;;  %v11059_v39 = vld [vmem:[#allocation41_spill] sm:$0xff] }
 0x37d   :  { %v4215_v45 = vmul.f32 %v9642_v0, %v4183_v30  ;;  %v3799_v28 = vadd.f32 %v10970_v2, %v3762_v12  ;;  %v4414_v9 = vsub.f32 %v9714_v42, %v4382_v25  ;;  %v4369_v38 = vmul.f32 %v5276_v20, %v4337_v40  ;;  %v3727_v51 = vpop.permute.xlu1 %3726  ;;  %v11069_v54 = vld [vmem:[#allocation153_spill] sm:$0xff] }
 0x37e   :  { %v9807_v36 = vmul.f32 %v3571_v41, %v11058_v18  ;;  %v4288_v50 = vmul.f32 %v5278_v7, %v9731_v4  ;;  %v9816_v3 = vsub.f32 %v3797_v29, %v9788_v63  ;;  %v4495_v17 = vadd.f32 %v11059_v39, %v4431_v11  ;;  %v11072_v39 = vld [vmem:[#allocation151_spill] sm:$0xff] }
 0x37f   :  { %v9820_v1 = vsub.f32 %v3780_v31, %v11060_v37  ;;  %v3782_v0 = vadd.f32 %v10970_v2, %v9709_v61  ;;  %v4478_v30 = vadd.f32 %v11061_v52, %v4414_v9  ;;  %v4401_v42 = vmul.f32 %v4369_v38, %v9679_v34 }
 0x380   :  { %v9823_v41 = vsub.f32 %v3799_v28, %v9807_v36  ;;  %v4320_v16 = vsub.f32 2.0, %v4288_v50  ;;  %v4085_v4 = vsub.f32 %v9512_v46, %v9816_v3  ;;  %4527 = vst [vmem:[#allocation4 + $0xb8] sm:$0xff] %v4495_v17  ;;  %5283 = vrcp.f32 %v9816_v3 }
 0x381   :  { %v4068_v20 = vsub.f32 %v11062_v58, %v9820_v1  ;;  %v9837_v61 = vsub.f32 %v3782_v0, %v11063_v21  ;;  %v5280_v6 = vpop.eup %5279  ;;  %4510 = vst [vmem:[#allocation4 + $0x30] sm:$0xff] %v4478_v30  ;;  %v4433_v34 = vsub.f32 %v9722_v14, %v4401_v42  ;;  %5285 = vrcp.f32 %v9820_v1  ;;  %v3737_v55 = vpop.permute.xlu1 %3736  ;;  %v11073_v0 = vld [vmem:[#allocation152_spill] sm:$0xff]  ;;  %v11074_v30 = vld [vmem:[#allocation25_spill] sm:$0xff] }
 0x382   :  { %v4087_v53 = vsub.f32 %v9564_v8, %v9823_v41  ;;  %v4352_v13 = vmul.f32 %v5278_v7, %v4320_v16  ;;  %v9840_v49 = vmul.f32 %v4213_v48, %v4085_v4  ;;  %v5282_v46 = vpop.eup %5281  ;;  %v4307_v27 = vmul.f32 %v5280_v6, %v9764_v15  ;;  %v11065_v8 = vld [vmem:[#allocation30_spill] sm:$0xff]  ;;  %v11068_v7 = vld [vmem:[#allocation23_spill] sm:$0xff]  ;;  %v11076_v58 = vld [vmem:[#allocation161_spill] sm:$0xff] }
 0x383   :  { %v9845_v59 = vmul.f32 %v11064_v35, %v4068_v20  ;;  %5287 = vrcp.f32 %v9823_v41  ;;  %v4497_v33 = vadd.f32 %v11065_v8, %v4433_v34  ;;  %v4290_v14 = vmul.f32 %v5282_v46, %v9769_v22  ;;  %v11075_v16 = vld [vmem:[#allocation27_spill] sm:$0xff] }
 0x384   :  { %v9847_v23 = vmul.f32 %v4215_v45, %v4087_v53  ;;  %v4384_v12 = vmul.f32 %v4352_v13, %v11038_v5  ;;  %v4070_v60 = vsub.f32 %v11066_v10, %v9837_v61  ;;  %v4339_v47 = vsub.f32 2.0, %v4307_v27  ;;  %v11067_v5 = vld [vmem:[#allocation18_spill] sm:$0xff]  ;;  %v11077_v53 = vld [vmem:[#allocation31_spill] sm:$0xff] }
 0x385   :  { %5289 = vrcp.f32 %v9837_v61  ;;  %v3784_v15 = vadd.f32 %v10970_v2, %v9727_v24  ;;  %v3786_v48 = vadd.f32 %v10970_v2, %v9753_v43  ;;  %4529 = vst [vmem:[#allocation4 + $0xc8] sm:$0xff] %v4497_v33  ;;  %v4322_v40 = vsub.f32 2.0, %v4290_v14  ;;  %v11070_v43 = vld [vmem:[#allocation66_spill] sm:$0xff]  ;;  %v3747_v50 = vpop.permute.xlu1 %3746  ;;  %v11079_v35 = vld [vmem:[#allocation155_spill] sm:$0xff]  ;;  %v11080_v33 = vld [vmem:[#allocation68_spill] sm:$0xff] }
 0x386   :  { %v4416_v25 = vsub.f32 %v9758_v56, %v4384_v12  ;;  %v9862_v29 = vmul.f32 %v11067_v5, %v4070_v60  ;;  %v3788_v22 = vadd.f32 %v10970_v2, %v9775_v19  ;;  %v4371_v31 = vmul.f32 %v5280_v6, %v4339_v47  ;;  %v11071_v56 = vld [vmem:[#allocation16_spill] sm:$0xff]  ;;  %v11081_v10 = vld [vmem:[#allocation159_spill] sm:$0xff]  ;;  %v11082_v47 = vld [vmem:[#allocation106_spill] sm:$0xff] }
 0x387   :  { %v9867_v11 = vsub.f32 %v3784_v15, %v11068_v7  ;;  %v9870_v18 = vsub.f32 %v3786_v48, %v11069_v54  ;;  %v3790_v24 = vadd.f32 %v10970_v2, %v3717_v26  ;;  %v4354_v28 = vmul.f32 %v5282_v46, %v4322_v40  ;;  %v11078_v46 = vld [vmem:[#allocation22_spill] sm:$0xff]  ;;  %v11083_v48 = vld [vmem:[#allocation165_spill] sm:$0xff] }
 0x388   :  { %v4480_v45 = vadd.f32 %v11070_v43, %v4416_v25  ;;  %v9875_v9 = vsub.f32 %v3788_v22, %v11071_v56  ;;  %v3792_v38 = vadd.f32 %v10970_v2, %v3727_v51  ;;  %v4403_v19 = vmul.f32 %v4371_v31, %v9737_v32  ;;  %v11084_v31 = vld [vmem:[#allocation156_spill] sm:$0xff] }
 0x389   :  { %v4072_v17 = vsub.f32 %v11072_v39, %v9867_v11  ;;  %5291 = vrcp.f32 %v9867_v11  ;;  %v4074_v52 = vsub.f32 %v11073_v0, %v9870_v18  ;;  %v4386_v26 = vmul.f32 %v4354_v28, %v11048_v44  ;;  %v3757_v40 = vpop.permute.xlu1 %3756 }
 0x38a   :  { %4512 = vst [vmem:[#allocation4 + $0x40] sm:$0xff] %v4480_v45  ;;  %5293 = vrcp.f32 %v9870_v18  ;;  %v4076_v42 = vsub.f32 %v11074_v30, %v9875_v9  ;;  %v9889_v4 = vsub.f32 %v3790_v24, %v11075_v16  ;;  %v5284_v32 = vpop.eup %5283  ;;  %v4435_v51 = vsub.f32 %v9782_v57, %v4403_v19  ;;  %v11085_v19 = vld [vmem:[#allocation24_spill] sm:$0xff] }
 0x38b   :  { %v9893_v20 = vmul.f32 %v11076_v58, %v4072_v17  ;;  %v9896_v6 = vmul.f32 %v11077_v53, %v4074_v52  ;;  %5295 = vrcp.f32 %v9875_v9  ;;  %v5286_v44 = vpop.eup %5285  ;;  %v4418_v34 = vsub.f32 %v9793_v62, %v4386_v26  ;;  %v11086_v17 = vld [vmem:[#allocation158_spill] sm:$0xff]  ;;  %v11088_v58 = vld [vmem:[#allocation29_spill] sm:$0xff] }
 0x38c   :  { %v4309_v13 = vmul.f32 %v5284_v32, %v9816_v3  ;;  %v9902_v27 = vmul.f32 %v11078_v46, %v4076_v42  ;;  %v4078_v8 = vsub.f32 %v11079_v35, %v9889_v4  ;;  %v4499_v12 = vadd.f32 %v11080_v33, %v4435_v51  ;;  %v11089_v53 = vld [vmem:[#allocation42_spill] sm:$0xff] }
 0x38d   :  { %v5288_v57 = vpop.eup %5287  ;;  %v4292_v14 = vmul.f32 %v5286_v44, %v9820_v1  ;;  %5297 = vrcp.f32 %v9889_v4  ;;  %v9910_v60 = vsub.f32 %v3792_v38, %v11081_v10  ;;  %v4482_v62 = vadd.f32 %v11082_v47, %v4418_v34  ;;  %v11092_v47 = vld [vmem:[#allocation78_spill] sm:$0xff] }
 0x38e   :  { %v4341_v15 = vsub.f32 2.0, %v4309_v13  ;;  %v4311_v3 = vmul.f32 %v5288_v57, %v9823_v41  ;;  %v9915_v25 = vmul.f32 %v11083_v48, %v4078_v8  ;;  %4531 = vst [vmem:[#allocation4 + $0xd8] sm:$0xff] %v4499_v12  ;;  %v3794_v24 = vadd.f32 %v10970_v2, %v3737_v55  ;;  %v11087_v55 = vld [vmem:[#allocation160_spill] sm:$0xff] }
 0x38f   :  { %v5290_v5 = vpop.eup %5289  ;;  %v4324_v22 = vsub.f32 2.0, %v4292_v14  ;;  %v4080_v1 = vsub.f32 %v11084_v31, %v9910_v60  ;;  %5299 = vrcp.f32 %v9910_v60  ;;  %4514 = vst [vmem:[#allocation4 + $0x50] sm:$0xff] %v4482_v62  ;;  %v3796_v41 = vadd.f32 %v10970_v2, %v3747_v50  ;;  %v11091_v12 = vld [vmem:[#allocation20_spill] sm:$0xff] }
 0x390   :  { %v4373_v43 = vmul.f32 %v5284_v32, %v4341_v15  ;;  %v4343_v45 = vsub.f32 2.0, %v4311_v3  ;;  %v4294_v28 = vmul.f32 %v5290_v5, %v9837_v61  ;;  %v3826_v0 = vsub.f32 %v3794_v24, %v11086_v17 }
 0x391   :  { %v4356_v38 = vmul.f32 %v5286_v44, %v4324_v22  ;;  %v9924_v39 = vmul.f32 %v11085_v19, %v4080_v1  ;;  %v3798_v52 = vadd.f32 %v10970_v2, %v3757_v40  ;;  %v9930_v51 = vsub.f32 %v3796_v41, %v11087_v55  ;;  %v11095_v22 = vld [vmem:[#allocation52_spill] sm:$0xff] }
 0x392   :  { %v4405_v26 = vmul.f32 %v4373_v43, %v9788_v63  ;;  %v4375_v30 = vmul.f32 %v5288_v57, %v4343_v45  ;;  %v4326_v42 = vsub.f32 2.0, %v4294_v28  ;;  %v4082_v50 = vsub.f32 %v11088_v58, %v3826_v0  ;;  %v11096_v28 = vld [vmem:[#allocation163_spill] sm:$0xff]  ;;  %v11097_v41 = vld [vmem:[#allocation108_spill] sm:$0xff] }
 0x393   :  { %v5292_v32 = vpop.eup %5291  ;;  %v4388_v61 = vmul.f32 %v4356_v38, %v11060_v37  ;;  %5301 = vrcp.f32 %v3826_v0  ;;  %v9935_v44 = vsub.f32 %v3798_v52, %v11089_v53  ;;  %v11090_v37 = vld [vmem:[#allocation33_spill] sm:$0xff]  ;;  %v4084_v14 = vsub.f32 %v11091_v12, %v9930_v51 }
 0x394   :  { %v5294_v34 = vpop.eup %5293  ;;  %v4437_v13 = vsub.f32 %v9840_v49, %v4405_v26  ;;  %v4407_v2 = vmul.f32 %v4375_v30, %v9807_v36  ;;  %v4358_v63 = vmul.f32 %v5290_v5, %v4326_v42  ;;  %v4296_v46 = vmul.f32 %v5292_v32, %v9867_v11  ;;  %v11093_v11 = vld [vmem:[#allocation107_spill] sm:$0xff]  ;;  %v11098_v30 = vld [vmem:[#allocation166_spill] sm:$0xff] }
 0x395   :  { %v5296_v35 = vpop.eup %5295  ;;  %v4420_v8 = vsub.f32 %v9845_v59, %v4388_v61  ;;  %v4298_v57 = vmul.f32 %v5294_v34, %v9870_v18  ;;  %v9943_v33 = vmul.f32 %v11090_v37, %v4082_v50  ;;  %v11094_v18 = vld [vmem:[#allocation26_spill] sm:$0xff]  ;;  %5303 = vrcp.f32 %v9930_v51 }
 0x396   :  { %v4501_v62 = vadd.f32 %v11092_v47, %v4437_v13  ;;  %v4439_v49 = vsub.f32 %v9847_v23, %v4407_v2  ;;  %v4390_v36 = vmul.f32 %v4358_v63, %v11063_v21  ;;  %v4328_v15 = vsub.f32 2.0, %v4296_v46  ;;  %v11099_v13 = vld [vmem:[#allocation109_spill] sm:$0xff]  ;;  %v11100_v46 = vld [vmem:[#allocation110_spill] sm:$0xff] }
 0x397   :  { %v5298_v3 = vpop.eup %5297  ;;  %v4484_v48 = vadd.f32 %v11093_v11, %v4420_v8  ;;  %v4330_v40 = vsub.f32 2.0, %v4298_v57  ;;  %v4300_v59 = vmul.f32 %v5296_v35, %v9875_v9  ;;  %v9953_v5 = vmul.f32 %v11094_v18, %v4084_v14  ;;  %v11104_v11 = vld [vmem:[#allocation121_spill] sm:$0xff] }
 0x398   :  { %4533 = vst [vmem:[#allocation4 + $0xe8] sm:$0xff] %v4501_v62  ;;  %v4503_v31 = vadd.f32 %v11095_v22, %v4439_v49  ;;  %v4422_v1 = vsub.f32 %v9862_v29, %v4390_v36  ;;  %v4360_v24 = vmul.f32 %v5292_v32, %v4328_v15  ;;  %v4302_v23 = vmul.f32 %v5298_v3, %v9889_v4 }
 0x399   :  { %v5300_v43 = vpop.eup %5299  ;;  %4516 = vst [vmem:[#allocation4 + $0x60] sm:$0xff] %v4484_v48  ;;  %v4362_v21 = vmul.f32 %v5294_v34, %v4330_v40  ;;  %v4332_v45 = vsub.f32 2.0, %v4300_v59  ;;  %v4086_v9 = vsub.f32 %v11096_v28, %v9935_v44  ;;  %5305 = vrcp.f32 %v9935_v44 }
 0x39a   :  { %4535 = vst [vmem:[#allocation4 + $0xf8] sm:$0xff] %v4503_v31  ;;  %v4486_v38 = vadd.f32 %v11097_v41, %v4422_v1  ;;  %v4392_v19 = vmul.f32 %v4360_v24, %v11068_v7  ;;  %v4334_v52 = vsub.f32 2.0, %v4302_v23  ;;  %v4304_v29 = vmul.f32 %v5300_v43, %v9910_v60  ;;  %v11106_v1 = vld [vmem:[#allocation144_spill] sm:$0xff] }
 0x39b   :  { %v4394_v26 = vmul.f32 %v4362_v21, %v11069_v54  ;;  %v4364_v4 = vmul.f32 %v5296_v35, %v4332_v45  ;;  %v4246_v42 = vmul.f32 %v11098_v30, %v4086_v9 }
 0x39c   :  { %4518 = vst [vmem:[#allocation4 + $0x70] sm:$0xff] %v4486_v38  ;;  %v4424_v32 = vsub.f32 %v9893_v20, %v4392_v19  ;;  %v4366_v61 = vmul.f32 %v5298_v3, %v4334_v52  ;;  %v4336_v58 = vsub.f32 2.0, %v4304_v29 }
 0x39d   :  { %v5302_v50 = vpop.eup %5301  ;;  %v4426_v34 = vsub.f32 %v9896_v6, %v4394_v26  ;;  %v4396_v7 = vmul.f32 %v4364_v4, %v11071_v56  ;;  %v11101_v6 = vld [vmem:[#allocation113_spill] sm:$0xff]  ;;  %v11102_v56 = vld [vmem:[#allocation111_spill] sm:$0xff] }
 0x39e   :  { %v4488_v2 = vadd.f32 %v11099_v13, %v4424_v32  ;;  %v4398_v60 = vmul.f32 %v4366_v61, %v11075_v16  ;;  %v4368_v54 = vmul.f32 %v5300_v43, %v4336_v58  ;;  %v4306_v63 = vmul.f32 %v5302_v50, %v3826_v0  ;;  %v11103_v0 = vld [vmem:[#allocation123_spill] sm:$0xff] }
 0x39f   :  { %v4490_v35 = vadd.f32 %v11100_v46, %v4426_v34  ;;  %v4428_v8 = vsub.f32 %v9902_v27, %v4396_v7  ;;  %v5304_v62 = vpop.eup %5303 }
 0x3a0   :  { %4520 = vst [vmem:[#allocation4 + $0x80] sm:$0xff] %v4488_v2  ;;  %v4430_v20 = vsub.f32 %v9915_v25, %v4398_v60  ;;  %v4400_v57 = vmul.f32 %v4368_v54, %v11081_v10  ;;  %v4338_v37 = vsub.f32 2.0, %v4306_v63  ;;  %v4308_v25 = vmul.f32 %v5304_v62, %v9930_v51  ;;  %v11105_v51 = vld [vmem:[#allocation145_spill] sm:$0xff] }
 0x3a1   :  { %4522 = vst [vmem:[#allocation4 + $0x90] sm:$0xff] %v4490_v35  ;;  %v4492_v12 = vadd.f32 %v11101_v6, %v4428_v8 }
 0x3a2   :  { %v4494_v14 = vadd.f32 %v11102_v56, %v4430_v20  ;;  %v4432_v47 = vsub.f32 %v9924_v39, %v4400_v57  ;;  %v4370_v16 = vmul.f32 %v5302_v50, %v4338_v37  ;;  %v4340_v15 = vsub.f32 2.0, %v4308_v25 }
 0x3a3   :  { %4524 = vst [vmem:[#allocation4 + $0xa0] sm:$0xff] %v4492_v12  ;;  %v5306_v36 = vpop.eup %5305 }
 0x3a4   :  { %4526 = vst [vmem:[#allocation4 + $0xb0] sm:$0xff] %v4494_v14  ;;  %v4496_v49 = vadd.f32 %v11103_v0, %v4432_v47  ;;  %v4402_v27 = vmul.f32 %v4370_v16, %v11086_v17  ;;  %v4310_v3 = vmul.f32 %v5306_v36, %v9935_v44  ;;  %v4372_v39 = vmul.f32 %v5304_v62, %v4340_v15 }
 0x3a6   :  { %4528 = vst [vmem:[#allocation4 + $0xc0] sm:$0xff] %v4496_v49  ;;  %v4434_v10 = vsub.f32 %v9943_v33, %v4402_v27  ;;  %v4342_v40 = vsub.f32 2.0, %v4310_v3  ;;  %v4404_v59 = vmul.f32 %v4372_v39, %v11087_v55 }
 0x3a8   :  { %v4498_v48 = vadd.f32 %v11104_v11, %v4434_v10  ;;  %v4374_v18 = vmul.f32 %v5306_v36, %v4342_v40  ;;  %v4436_v22 = vsub.f32 %v9953_v5, %v4404_v59 }
 0x3aa   :  { %4530 = vst [vmem:[#allocation4 + $0xd0] sm:$0xff] %v4498_v48  ;;  %v4406_v17 = vmul.f32 %v4374_v18, %v11089_v53  ;;  %v4500_v31 = vadd.f32 %v11105_v51, %v4436_v22 }
 0x3ac   :  { %v4438_v33 = vsub.f32 %v4246_v42, %v4406_v17  ;;  %4532 = vst [vmem:[#allocation4 + $0xe0] sm:$0xff] %v4500_v31 }
 0x3ae   :  { %v4502_v44 = vadd.f32 %v11106_v1, %v4438_v33 }
 0x3b0   :  { %4534 = vst [vmem:[#allocation4 + $0xf0] sm:$0xff] %v4502_v44 }
 0x3b1   :  { %5421 = shalt.err (!%p5418_p4)
}
 0x3b2   :  { %s5422_s15 = scalar_lea.hbm %s10006_s4, 4096 }
 0x3b3   :  { %p5423_p5 = scmp.ne.s32.totalorder %s10006_s4, %s5422_s15  ;;  %p5426_p6 = scmp.lt.u32.totalorder %s5422_s15, %s10006_s4 }
 0x3b5   :  { %p5428_p7 = pnand %p5426_p6, %p5423_p5 }
 0x3b7   :  { %5431 = shalt.err (!%p5428_p7)
}
 0x3b8   :  { %s5444_s20 = smov 128   ;;  %s5445_s21 = smov 8  }
 0x3b9   :  { %4547 = dma.vmem_to_hbm [thread:$0]  %s4542_s11, 4096, %s10006_s4, [#allocation5], %s5444_s20, %s5444_s20, %s5445_s21  }
 0x3ba   :  { %5432 = dma.done.wait [#allocation5], 4096  }
 0x3bb   :  { %5433 = vsyncadd [#allocation5], 4294963200 }
 0x3bc   :  { %4551 = vsyncpa [#allocation5], 1 }

</bundles_post_ra>
